<compile_context>
chip_gen: v7x
topology: tpu7x:2x2x1
jax: 0.10.0
libtpu: 0.0.40
codegen_flags: <defaults>
</compile_context>

<pallas_src>
import numpy as np
import jax
import jax.numpy as jnp
from jax.experimental import pallas as pl
from jax.experimental.pallas import tpu as pltpu

# ----------------------------- configuration --------------------------------
B = 2                    # batch
C = 4                    # n_channels
S = 2                    # sampling_factor
SH, SW = 8, 8            # low-res (ms) spatial size
H, W = SH * S, SW * S    # high-res spatial size (16, 16)
HW = H * W               # 256  (lane-dense flattened spatial dim)
LW = SH * SW             # 64   (true low-res flattened size)
LWP = 128                # low-res size padded to a full 128-lane vreg
BC = B * C               # 8
KS = 5                   # Gaussian kernel_size
STD = 1.0                # Gaussian std
N_ITERS = 3              # stages
N_RESBLOCKS = 2          # resblocks
N_LAYERS = 2 + 2 * N_RESBLOCKS   # head + 2 convs per resblock + tail
NTAP = 10 * BC           # 9 shifted taps + 1 ones-block (bias) = 80 rows

# variational parameters (nn.Parameter init values in __init__)
GAMMA = 1.0
TAU = 0.05
LMB = 50.0
MU = 10.0

# --------------------- deterministic synthetic parameters -------------------
_rng = np.random.RandomState(0)


def _conv_w(co, ci):
    return (_rng.randn(co, ci, 3, 3) * 0.08).astype(np.float32)


def _conv_b(co):
    return (_rng.randn(co) * 0.02).astype(np.float32)


# ProxNet: conv -> [resblock]*N -> conv, hidden width == n_channels (C -> C).
# TODO(synk): hidden width / exact topology of the real ProxNet is unknown.
_LAYER_WB = [(_conv_w(C, C), _conv_b(C)) for _ in range(N_LAYERS)]


def _pack_layers():
    """Pack conv weights (+bias) into (N_LAYERS, BC, 10*BC) block-diag matrices.

    Columns [t*BC + b*C + c] (t = ky*3 + kx) multiply the shifted+masked tap t
    of channel c of batch b; columns [9*BC + row] multiply the all-ones block
    and carry the bias, so the whole zero-padded 3x3 conv + bias is one dot.
    """
    Wp = np.zeros((N_LAYERS, BC, NTAP), np.float32)
    for l, (w, bvec) in enumerate(_LAYER_WB):
        for bb in range(B):
            for o in range(C):
                row = bb * C + o
                Wp[l, row, 9 * BC + row] = bvec[o]          # bias via ones rows
                for t in range(9):
                    ky, kx = t // 3, t % 3
                    for c in range(C):
                        Wp[l, row, t * BC + bb * C + c] = w[o, c, ky, kx]
    return Wp


def _tap_masks_broadcast():
    """Border-validity masks for the 8 non-center taps, pre-broadcast to (BC, HW)."""
    m = np.zeros((9, H, W), np.float32)
    for t in range(9):
        sy, sx = t // 3 - 1, t % 3 - 1
        i0, i1 = max(0, -sy), min(H, H - sy)
        j0, j1 = max(0, -sx), min(W, W - sx)
        m[t, i0:i1, j0:j1] = 1.0
    m = m.reshape(9, HW)
    nc = [t for t in range(9) if t != 4]
    mb = np.broadcast_to(m[nc][:, None, :], (8, BC, HW))
    return np.ascontiguousarray(mb, dtype=np.float32)


# ---------------------- linear operators as Kronecker matrices --------------
def _gaussian_1d(ks, std):
    r = (ks - 1) / 2.0
    x = np.arange(ks) - r
    g = np.exp(-(x ** 2) / (2.0 * std ** 2))
    return g / g.sum()


def _blur_matrix(n, g):
    ks = len(g)
    r = ks // 2
    A = np.zeros((n, n), np.float64)
    for i in range(n):
        for k in range(ks):
            j = i + k - r
            if 0 <= j < n:
                A[i, j] += g[k]
    return A


def _upsample_matrix(n_low, s):
    U = np.zeros((n_low * s, n_low), np.float64)
    for i in range(n_low * s):
        U[i, i // s] = 1.0
    return U


def _downsample_matrix(n_high, s):
    D = np.zeros((n_high // s, n_high), np.float64)
    for i in range(n_high // s):
        D[i, i * s] = 1.0
    return D


def build_operators():
    """DB / BU as right-multiplication matrices, low-res axis zero-padded to 128.

    For row-major flattened images x (rows = (b, c), cols = i*W + j):
        DB(x) = x @ DB_KT   (HW -> LWP, lanes >= LW are zero)
        BU(q) = q @ BU_KT   (LWP -> HW, rows >= LW are zero)
    """
    g = _gaussian_1d(KS, STD)
    A_H, A_W = _blur_matrix(H, g), _blur_matrix(W, g)
    U_H, U_W = _upsample_matrix(SH, S), _upsample_matrix(SW, S)
    D_H, D_W = _downsample_matrix(H, S), _downsample_matrix(W, S)
    DB_K = np.kron(D_H @ A_H, D_W @ A_W)     # (LW, HW)  downsample(blur(.))
    BU_K = np.kron(A_H @ U_H, A_W @ U_W)     # (HW, LW)  blur(upsample(.))
    DB_KT = np.zeros((HW, LWP), np.float32)
    DB_KT[:, :LW] = DB_K.T
    BU_KT = np.zeros((LWP, HW), np.float32)
    BU_KT[:LW, :] = BU_K.T
    return DB_KT, BU_KT


_DB_KT, _BU_KT = build_operators()           # (256, 128), (128, 256)
_W_PACK = _pack_layers()                     # (6, 8, 80)
_MASKS_B = _tap_masks_broadcast()            # (8, 8, 256)


# ------------------------------ fused kernel ---------------------------------
def _vpsnet_kernel(ms_ref, lms_ref, pimg_ref, dbkt_ref, bukt_ref,
                   wpk_ref, msk_ref, u_out_ref, taps_ref):
    bf16 = jnp.bfloat16
    f = ms_ref[...]          # (BC, LWP) f32, lanes >= LW are zero
    lms = lms_ref[...]       # (BC, HW)  f32
    pimg = pimg_ref[...]     # (BC, HW)  f32
    dbkt = dbkt_ref[...]     # (HW, LWP) bf16
    bukt = bukt_ref[...]     # (LWP, HW) bf16

    # Ones block of the tap matrix (bias rows); written once, never overwritten.
    taps_ref[pl.ds(9 * BC, BC), :] = jnp.ones((BC, HW), jnp.float32)

    def conv3x3(x, layer):
        # x: (BC, HW) f32.  A 2-D shift (sy, sx) is a lane rotation by
        # sy*W + sx in the flattened layout; wrap-around positions are zeroed
        # by the pre-broadcast border masks.  Center tap needs no mask.
        mi = 0
        for t in range(9):
            sy, sx = t // 3 - 1, t % 3 - 1
            s = sy * W + sx
            if s == 0:
                tap = x
            else:
                tap = pltpu.roll(x, shift=(-s) % HW, axis=1) * msk_ref[mi]
                mi += 1
            taps_ref[pl.ds(t * BC, BC), :] = tap
        # Single MXU dot per layer; bias is carried by the ones rows.
        return jnp.dot(wpk_ref[layer], taps_ref[...].astype(bf16),
                       preferred_element_type=jnp.float32)

    def proxnet(x):
        h = jnp.maximum(conv3x3(x, 0), 0.0)
        layer = 1
        for _ in range(N_RESBLOCKS):
            t = jnp.maximum(conv3x3(h, layer), 0.0)
            t = conv3x3(t, layer + 1)
            h = h + t
            layer += 2
        return conv3x3(h, layer)

    # -------- precomputes (u_tilde, P_tilde, initial q) on the MXU --------
    u_tilde = jnp.dot(f.astype(bf16), bukt, preferred_element_type=jnp.float32)
    db_p = jnp.dot(pimg.astype(bf16), dbkt, preferred_element_type=jnp.float32)
    p_tilde = jnp.dot(db_p.astype(bf16), bukt, preferred_element_type=jnp.float32)

    u = lms
    p = lms
    q = jnp.dot(lms.astype(bf16), dbkt, preferred_element_type=jnp.float32)
    u_barra = u

    # loop-invariant elementwise factors (hoisted out of the stages)
    lmb_term = LMB * p_tilde * pimg * u_tilde
    inv_den_u = 1.0 / (1.0 + TAU * LMB * p_tilde * p_tilde)
    inv_den_q = 1.0 / (1.0 + GAMMA / MU)
    inv_gamma = 1.0 / GAMMA

    # -------- variational stages (N_ITERS = 3, statically unrolled) --------
    for _ in range(N_ITERS):
        u_prev = u
        p = p + GAMMA * u_barra - GAMMA * proxnet(p * inv_gamma + u_barra)
        db_ub = jnp.dot(u_barra.astype(bf16), dbkt,
                        preferred_element_type=jnp.float32)
        q = (q + GAMMA * (db_ub - f)) * inv_den_q
        bu_q = jnp.dot(q.astype(bf16), bukt, preferred_element_type=jnp.float32)
        u = (u - TAU * (p + bu_q - lmb_term)) * inv_den_u
        u_barra = 2.0 * u - u_prev

    u_out_ref[...] = u


# ----------------------------- VPSNet forward --------------------------------
@jax.jit
def vpsnet_forward(ms, lms, pan):
    # P = pan.repeat(1, n_channels, 1, 1) if single-band
    pimg = (jnp.broadcast_to(pan, (pan.shape[0], C, pan.shape[2], pan.shape[3]))
            if pan.shape[1] == 1 else pan)

    # Pad low-res operand to 128 lanes once (operators are zero-padded to match).
    f_pad = jnp.zeros((BC, LWP), jnp.float32).at[:, :LW].set(
        ms.reshape(BC, LW).astype(jnp.float32))

    args = (
        f_pad,
        lms.reshape(BC, HW).astype(jnp.float32),
        pimg.reshape(BC, HW).astype(jnp.float32),
        jnp.asarray(_DB_KT).astype(jnp.bfloat16),
        jnp.asarray(_BU_KT).astype(jnp.bfloat16),
        jnp.asarray(_W_PACK).astype(jnp.bfloat16),
        jnp.asarray(_MASKS_B),
    )

    # Single grid point; every operand (< 0.5 MiB total) lives fully in VMEM.
    vmem = pl.BlockSpec(memory_space=pltpu.MemorySpace.VMEM)
    u_flat = pl.pallas_call(
        _vpsnet_kernel,
        out_shape=jax.ShapeDtypeStruct((BC, HW), jnp.float32),
        in_specs=[vmem] * len(args),
        out_specs=vmem,
        scratch_shapes=[pltpu.VMEM((NTAP, HW), jnp.float32)],
    )(*args)

    # metrics_per_stage=False, radiometric=False -> return u only
    return u_flat.reshape(B, C, H, W)


# ----------------------------------- main ------------------------------------
if __name__ == "__main__":
    key = jax.random.PRNGKey(0)
    k1, k2, k3 = jax.random.split(key, 3)
    ms = jax.random.normal(k1, (B, C, SH, SW), dtype=jnp.float32)
    lms = jax.random.normal(k2, (B, C, H, W), dtype=jnp.float32)
    pan = jax.random.normal(k3, (B, 1, H, W), dtype=jnp.float32)

    u = vpsnet_forward(ms, lms, pan)
    jax.block_until_ready(u)

    assert u.shape == (B, C, H, W), u.shape
    assert bool(jnp.all(jnp.isfinite(u)))
    print("KERNEL_OK")
</pallas_src>

<mosaic_0001>
module attributes {stable_mosaic.version = 11 : i64} {
  func.func @_vpsnet_kernel(%arg0: memref<8x128xf32, #tpu.memory_space<vmem>>, %arg1: memref<8x256xf32, #tpu.memory_space<vmem>>, %arg2: memref<8x256xf32, #tpu.memory_space<vmem>>, %arg3: memref<256x128xbf16, #tpu.memory_space<vmem>>, %arg4: memref<128x256xbf16, #tpu.memory_space<vmem>>, %arg5: memref<6x8x80xbf16, #tpu.memory_space<vmem>>, %arg6: memref<8x8x256xf32, #tpu.memory_space<vmem>>, %arg7: memref<8x256xf32, #tpu.memory_space<vmem>>, %arg8: memref<80x256xf32, #tpu.memory_space<vmem>>) attributes {dimension_semantics = [], scalar_prefetch = 0 : i64, scratch_operands = 1 : i64, tpu.core_type = #tpu.core_type<tc>} {
    %c0 = arith.constant 0 : index
    %c0_0 = arith.constant 0 : index
    %0 = vector.load %arg0[%c0, %c0_0] : memref<8x128xf32, #tpu.memory_space<vmem>>, vector<8x128xf32>
    %c0_1 = arith.constant 0 : index
    %c0_2 = arith.constant 0 : index
    %1 = vector.load %arg1[%c0_1, %c0_2] : memref<8x256xf32, #tpu.memory_space<vmem>>, vector<8x256xf32>
    %c0_3 = arith.constant 0 : index
    %c0_4 = arith.constant 0 : index
    %2 = vector.load %arg2[%c0_3, %c0_4] : memref<8x256xf32, #tpu.memory_space<vmem>>, vector<8x256xf32>
    %c0_5 = arith.constant 0 : index
    %c0_6 = arith.constant 0 : index
    %3 = vector.load %arg3[%c0_5, %c0_6] : memref<256x128xbf16, #tpu.memory_space<vmem>>, vector<256x128xbf16>
    %c0_7 = arith.constant 0 : index
    %c0_8 = arith.constant 0 : index
    %4 = vector.load %arg4[%c0_7, %c0_8] : memref<128x256xbf16, #tpu.memory_space<vmem>>, vector<128x256xbf16>
    %cst = arith.constant 1.000000e+00 : f32
    %5 = vector.broadcast %cst : f32 to vector<8x256xf32>
    %c72 = arith.constant 72 : index
    %c0_9 = arith.constant 0 : index
    %6 = vector.load %arg8[%c72, %c0_9] : memref<80x256xf32, #tpu.memory_space<vmem>>, vector<8x256xf32>
    tpu.vector_store %arg8[%c72, %c0_9], %5 {strides = array<i32>} : memref<80x256xf32, #tpu.memory_space<vmem>>, vector<8x256xf32>,
    %7 = arith.truncf %0 : vector<8x128xf32> to vector<8x128xbf16>
    %cst_10 = arith.constant dense<0.000000e+00> : vector<8x256xf32>
    %8 = tpu.matmul %7, %4, %cst_10 {dimension_numbers = #tpu.dot_dimension_numbers<[1], [0], [0], [1], [0, 0, 1, 1], [], []>} : vector<8x128xbf16>, vector<128x256xbf16>, vector<8x256xf32> -> vector<8x256xf32>
    %9 = arith.truncf %2 : vector<8x256xf32> to vector<8x256xbf16>
    %cst_11 = arith.constant dense<0.000000e+00> : vector<8x128xf32>
    %10 = tpu.matmul %9, %3, %cst_11 {dimension_numbers = #tpu.dot_dimension_numbers<[1], [0], [0], [1], [0, 0, 1, 1], [], []>} : vector<8x256xbf16>, vector<256x128xbf16>, vector<8x128xf32> -> vector<8x128xf32>
    %11 = arith.truncf %10 : vector<8x128xf32> to vector<8x128xbf16>
    %cst_12 = arith.constant dense<0.000000e+00> : vector<8x256xf32>
    %12 = tpu.matmul %11, %4, %cst_12 {dimension_numbers = #tpu.dot_dimension_numbers<[1], [0], [0], [1], [0, 0, 1, 1], [], []>} : vector<8x128xbf16>, vector<128x256xbf16>, vector<8x256xf32> -> vector<8x256xf32>
    %13 = arith.truncf %1 : vector<8x256xf32> to vector<8x256xbf16>
    %cst_13 = arith.constant dense<0.000000e+00> : vector<8x128xf32>
    %14 = tpu.matmul %13, %3, %cst_13 {dimension_numbers = #tpu.dot_dimension_numbers<[1], [0], [0], [1], [0, 0, 1, 1], [], []>} : vector<8x256xbf16>, vector<256x128xbf16>, vector<8x128xf32> -> vector<8x128xf32>
    %cst_14 = arith.constant 5.000000e+01 : f32
    %15 = vector.broadcast %cst_14 : f32 to vector<8x256xf32>
    %16 = arith.mulf %15, %12 : vector<8x256xf32>
    %17 = arith.mulf %16, %2 : vector<8x256xf32>
    %18 = arith.mulf %17, %8 : vector<8x256xf32>
    %cst_15 = arith.constant 2.500000e+00 : f32
    %19 = vector.broadcast %cst_15 : f32 to vector<8x256xf32>
    %20 = arith.mulf %19, %12 : vector<8x256xf32>
    %21 = arith.mulf %20, %12 : vector<8x256xf32>
    %cst_16 = arith.constant 1.000000e+00 : f32
    %22 = vector.broadcast %cst_16 : f32 to vector<8x256xf32>
    %23 = arith.addf %22, %21 : vector<8x256xf32>
    %cst_17 = arith.constant 1.000000e+00 : f32
    %24 = vector.broadcast %cst_17 : f32 to vector<8x256xf32>
    %25 = arith.divf %24, %23 : vector<8x256xf32>
    %cst_18 = arith.constant 1.000000e+00 : f32
    %26 = vector.broadcast %cst_18 : f32 to vector<8x256xf32>
    %27 = arith.mulf %26, %1 : vector<8x256xf32>
    %28 = arith.addf %1, %27 : vector<8x256xf32>
    %cst_19 = arith.constant 1.000000e+00 : f32
    %29 = vector.broadcast %cst_19 : f32 to vector<8x256xf32>
    %30 = arith.mulf %1, %29 : vector<8x256xf32>
    %31 = arith.addf %30, %1 : vector<8x256xf32>
    %c17_i32 = arith.constant 17 : i32
    %32 = tpu.dynamic_rotate %31 by %c17_i32 dim 1 : vector<8x256xf32>, i32 -> vector<8x256xf32>
    %c0_20 = arith.constant 0 : index
    %c0_21 = arith.constant 0 : index
    %c0_22 = arith.constant 0 : index
    %33 = vector.load %arg6[%c0_20, %c0_21, %c0_22] : memref<8x8x256xf32, #tpu.memory_space<vmem>>, vector<1x8x256xf32>
    %34 = vector.shape_cast %33 : vector<1x8x256xf32> to vector<8x256xf32>
    %35 = arith.mulf %32, %34 : vector<8x256xf32>
    %c0_23 = arith.constant 0 : index
    %c0_24 = arith.constant 0 : index
    %36 = vector.load %arg8[%c0_23, %c0_24] : memref<80x256xf32, #tpu.memory_space<vmem>>, vector<8x256xf32>
    tpu.vector_store %arg8[%c0_23, %c0_24], %35 {strides = array<i32>} : memref<80x256xf32, #tpu.memory_space<vmem>>, vector<8x256xf32>,
    %c16_i32 = arith.constant 16 : i32
    %37 = tpu.dynamic_rotate %31 by %c16_i32 dim 1 : vector<8x256xf32>, i32 -> vector<8x256xf32>
    %c1 = arith.constant 1 : index
    %c0_25 = arith.constant 0 : index
    %c0_26 = arith.constant 0 : index
    %38 = vector.load %arg6[%c1, %c0_25, %c0_26] : memref<8x8x256xf32, #tpu.memory_space<vmem>>, vector<1x8x256xf32>
    %39 = vector.shape_cast %38 : vector<1x8x256xf32> to vector<8x256xf32>
    %40 = arith.mulf %37, %39 : vector<8x256xf32>
    %c8 = arith.constant 8 : index
    %c0_27 = arith.constant 0 : index
    %41 = vector.load %arg8[%c8, %c0_27] : memref<80x256xf32, #tpu.memory_space<vmem>>, vector<8x256xf32>
    tpu.vector_store %arg8[%c8, %c0_27], %40 {strides = array<i32>} : memref<80x256xf32, #tpu.memory_space<vmem>>, vector<8x256xf32>,
    %c15_i32 = arith.constant 15 : i32
    %42 = tpu.dynamic_rotate %31 by %c15_i32 dim 1 : vector<8x256xf32>, i32 -> vector<8x256xf32>
    %c2 = arith.constant 2 : index
    %c0_28 = arith.constant 0 : index
    %c0_29 = arith.constant 0 : index
    %43 = vector.load %arg6[%c2, %c0_28, %c0_29] : memref<8x8x256xf32, #tpu.memory_space<vmem>>, vector<1x8x256xf32>
    %44 = vector.shape_cast %43 : vector<1x8x256xf32> to vector<8x256xf32>
    %45 = arith.mulf %42, %44 : vector<8x256xf32>
    %c16 = arith.constant 16 : index
    %c0_30 = arith.constant 0 : index
    %46 = vector.load %arg8[%c16, %c0_30] : memref<80x256xf32, #tpu.memory_space<vmem>>, vector<8x256xf32>
    tpu.vector_store %arg8[%c16, %c0_30], %45 {strides = array<i32>} : memref<80x256xf32, #tpu.memory_space<vmem>>, vector<8x256xf32>,
    %c1_i32 = arith.constant 1 : i32
    %47 = tpu.dynamic_rotate %31 by %c1_i32 dim 1 : vector<8x256xf32>, i32 -> vector<8x256xf32>
    %c3 = arith.constant 3 : index
    %c0_31 = arith.constant 0 : index
    %c0_32 = arith.constant 0 : index
    %48 = vector.load %arg6[%c3, %c0_31, %c0_32] : memref<8x8x256xf32, #tpu.memory_space<vmem>>, vector<1x8x256xf32>
    %49 = vector.shape_cast %48 : vector<1x8x256xf32> to vector<8x256xf32>
    %50 = arith.mulf %47, %49 : vector<8x256xf32>
    %c24 = arith.constant 24 : index
    %c0_33 = arith.constant 0 : index
    %51 = vector.load %arg8[%c24, %c0_33] : memref<80x256xf32, #tpu.memory_space<vmem>>, vector<8x256xf32>
    tpu.vector_store %arg8[%c24, %c0_33], %50 {strides = array<i32>} : memref<80x256xf32, #tpu.memory_space<vmem>>, vector<8x256xf32>,
    %c32 = arith.constant 32 : index
    %c0_34 = arith.constant 0 : index
    %52 = vector.load %arg8[%c32, %c0_34] : memref<80x256xf32, #tpu.memory_space<vmem>>, vector<8x256xf32>
    tpu.vector_store %arg8[%c32, %c0_34], %31 {strides = array<i32>} : memref<80x256xf32, #tpu.memory_space<vmem>>, vector<8x256xf32>,
    %c255_i32 = arith.constant 255 : i32
    %53 = tpu.dynamic_rotate %31 by %c255_i32 dim 1 : vector<8x256xf32>, i32 -> vector<8x256xf32>
    %c4 = arith.constant 4 : index
    %c0_35 = arith.constant 0 : index
    %c0_36 = arith.constant 0 : index
    %54 = vector.load %arg6[%c4, %c0_35, %c0_36] : memref<8x8x256xf32, #tpu.memory_space<vmem>>, vector<1x8x256xf32>
    %55 = vector.shape_cast %54 : vector<1x8x256xf32> to vector<8x256xf32>
    %56 = arith.mulf %53, %55 : vector<8x256xf32>
    %c40 = arith.constant 40 : index
    %c0_37 = arith.constant 0 : index
    %57 = vector.load %arg8[%c40, %c0_37] : memref<80x256xf32, #tpu.memory_space<vmem>>, vector<8x256xf32>
    tpu.vector_store %arg8[%c40, %c0_37], %56 {strides = array<i32>} : memref<80x256xf32, #tpu.memory_space<vmem>>, vector<8x256xf32>,
    %c241_i32 = arith.constant 241 : i32
    %58 = tpu.dynamic_rotate %31 by %c241_i32 dim 1 : vector<8x256xf32>, i32 -> vector<8x256xf32>
    %c5 = arith.constant 5 : index
    %c0_38 = arith.constant 0 : index
    %c0_39 = arith.constant 0 : index
    %59 = vector.load %arg6[%c5, %c0_38, %c0_39] : memref<8x8x256xf32, #tpu.memory_space<vmem>>, vector<1x8x256xf32>
    %60 = vector.shape_cast %59 : vector<1x8x256xf32> to vector<8x256xf32>
    %61 = arith.mulf %58, %60 : vector<8x256xf32>
    %c48 = arith.constant 48 : index
    %c0_40 = arith.constant 0 : index
    %62 = vector.load %arg8[%c48, %c0_40] : memref<80x256xf32, #tpu.memory_space<vmem>>, vector<8x256xf32>
    tpu.vector_store %arg8[%c48, %c0_40], %61 {strides = array<i32>} : memref<80x256xf32, #tpu.memory_space<vmem>>, vector<8x256xf32>,
    %c240_i32 = arith.constant 240 : i32
    %63 = tpu.dynamic_rotate %31 by %c240_i32 dim 1 : vector<8x256xf32>, i32 -> vector<8x256xf32>
    %c6 = arith.constant 6 : index
    %c0_41 = arith.constant 0 : index
    %c0_42 = arith.constant 0 : index
    %64 = vector.load %arg6[%c6, %c0_41, %c0_42] : memref<8x8x256xf32, #tpu.memory_space<vmem>>, vector<1x8x256xf32>
    %65 = vector.shape_cast %64 : vector<1x8x256xf32> to vector<8x256xf32>
    %66 = arith.mulf %63, %65 : vector<8x256xf32>
    %c56 = arith.constant 56 : index
    %c0_43 = arith.constant 0 : index
    %67 = vector.load %arg8[%c56, %c0_43] : memref<80x256xf32, #tpu.memory_space<vmem>>, vector<8x256xf32>
    tpu.vector_store %arg8[%c56, %c0_43], %66 {strides = array<i32>} : memref<80x256xf32, #tpu.memory_space<vmem>>, vector<8x256xf32>,
    %c239_i32 = arith.constant 239 : i32
    %68 = tpu.dynamic_rotate %31 by %c239_i32 dim 1 : vector<8x256xf32>, i32 -> vector<8x256xf32>
    %c7 = arith.constant 7 : index
    %c0_44 = arith.constant 0 : index
    %c0_45 = arith.constant 0 : index
    %69 = vector.load %arg6[%c7, %c0_44, %c0_45] : memref<8x8x256xf32, #tpu.memory_space<vmem>>, vector<1x8x256xf32>
    %70 = vector.shape_cast %69 : vector<1x8x256xf32> to vector<8x256xf32>
    %71 = arith.mulf %68, %70 : vector<8x256xf32>
    %c64 = arith.constant 64 : index
    %c0_46 = arith.constant 0 : index
    %72 = vector.load %arg8[%c64, %c0_46] : memref<80x256xf32, #tpu.memory_space<vmem>>, vector<8x256xf32>
    tpu.vector_store %arg8[%c64, %c0_46], %71 {strides = array<i32>} : memref<80x256xf32, #tpu.memory_space<vmem>>, vector<8x256xf32>,
    %c0_47 = arith.constant 0 : index
    %c0_48 = arith.constant 0 : index
    %c0_49 = arith.constant 0 : index
    %73 = vector.load %arg5[%c0_47, %c0_48, %c0_49] : memref<6x8x80xbf16, #tpu.memory_space<vmem>>, vector<1x8x80xbf16>
    %74 = vector.shape_cast %73 : vector<1x8x80xbf16> to vector<8x80xbf16>
    %c0_50 = arith.constant 0 : index
    %c0_51 = arith.constant 0 : index
    %75 = vector.load %arg8[%c0_50, %c0_51] : memref<80x256xf32, #tpu.memory_space<vmem>>, vector<80x256xf32>
    %76 = arith.truncf %75 : vector<80x256xf32> to vector<80x256xbf16>
    %cst_52 = arith.constant dense<0.000000e+00> : vector<8x256xf32>
    %77 = tpu.matmul %74, %76, %cst_52 {dimension_numbers = #tpu.dot_dimension_numbers<[1], [0], [0], [1], [0, 0, 1, 1], [], []>} : vector<8x80xbf16>, vector<80x256xbf16>, vector<8x256xf32> -> vector<8x256xf32>
    %cst_53 = arith.constant 0.000000e+00 : f32
    %78 = vector.broadcast %cst_53 : f32 to vector<8x256xf32>
    %79 = arith.maximumf %77, %78 : vector<8x256xf32>
    %c17_i32_54 = arith.constant 17 : i32
    %80 = tpu.dynamic_rotate %79 by %c17_i32_54 dim 1 : vector<8x256xf32>, i32 -> vector<8x256xf32>
    %c0_55 = arith.constant 0 : index
    %c0_56 = arith.constant 0 : index
    %c0_57 = arith.constant 0 : index
    %81 = vector.load %arg6[%c0_55, %c0_56, %c0_57] : memref<8x8x256xf32, #tpu.memory_space<vmem>>, vector<1x8x256xf32>
    %82 = vector.shape_cast %81 : vector<1x8x256xf32> to vector<8x256xf32>
    %83 = arith.mulf %80, %82 : vector<8x256xf32>
    %c0_58 = arith.constant 0 : index
    %c0_59 = arith.constant 0 : index
    %84 = vector.load %arg8[%c0_58, %c0_59] : memref<80x256xf32, #tpu.memory_space<vmem>>, vector<8x256xf32>
    tpu.vector_store %arg8[%c0_58, %c0_59], %83 {strides = array<i32>} : memref<80x256xf32, #tpu.memory_space<vmem>>, vector<8x256xf32>,
    %c16_i32_60 = arith.constant 16 : i32
    %85 = tpu.dynamic_rotate %79 by %c16_i32_60 dim 1 : vector<8x256xf32>, i32 -> vector<8x256xf32>
    %c1_61 = arith.constant 1 : index
    %c0_62 = arith.constant 0 : index
    %c0_63 = arith.constant 0 : index
    %86 = vector.load %arg6[%c1_61, %c0_62, %c0_63] : memref<8x8x256xf32, #tpu.memory_space<vmem>>, vector<1x8x256xf32>
    %87 = vector.shape_cast %86 : vector<1x8x256xf32> to vector<8x256xf32>
    %88 = arith.mulf %85, %87 : vector<8x256xf32>
    %c8_64 = arith.constant 8 : index
    %c0_65 = arith.constant 0 : index
    %89 = vector.load %arg8[%c8_64, %c0_65] : memref<80x256xf32, #tpu.memory_space<vmem>>, vector<8x256xf32>
    tpu.vector_store %arg8[%c8_64, %c0_65], %88 {strides = array<i32>} : memref<80x256xf32, #tpu.memory_space<vmem>>, vector<8x256xf32>,
    %c15_i32_66 = arith.constant 15 : i32
    %90 = tpu.dynamic_rotate %79 by %c15_i32_66 dim 1 : vector<8x256xf32>, i32 -> vector<8x256xf32>
    %c2_67 = arith.constant 2 : index
    %c0_68 = arith.constant 0 : index
    %c0_69 = arith.constant 0 : index
    %91 = vector.load %arg6[%c2_67, %c0_68, %c0_69] : memref<8x8x256xf32, #tpu.memory_space<vmem>>, vector<1x8x256xf32>
    %92 = vector.shape_cast %91 : vector<1x8x256xf32> to vector<8x256xf32>
    %93 = arith.mulf %90, %92 : vector<8x256xf32>
    %c16_70 = arith.constant 16 : index
    %c0_71 = arith.constant 0 : index
    %94 = vector.load %arg8[%c16_70, %c0_71] : memref<80x256xf32, #tpu.memory_space<vmem>>, vector<8x256xf32>
    tpu.vector_store %arg8[%c16_70, %c0_71], %93 {strides = array<i32>} : memref<80x256xf32, #tpu.memory_space<vmem>>, vector<8x256xf32>,
    %c1_i32_72 = arith.constant 1 : i32
    %95 = tpu.dynamic_rotate %79 by %c1_i32_72 dim 1 : vector<8x256xf32>, i32 -> vector<8x256xf32>
    %c3_73 = arith.constant 3 : index
    %c0_74 = arith.constant 0 : index
    %c0_75 = arith.constant 0 : index
    %96 = vector.load %arg6[%c3_73, %c0_74, %c0_75] : memref<8x8x256xf32, #tpu.memory_space<vmem>>, vector<1x8x256xf32>
    %97 = vector.shape_cast %96 : vector<1x8x256xf32> to vector<8x256xf32>
    %98 = arith.mulf %95, %97 : vector<8x256xf32>
    %c24_76 = arith.constant 24 : index
    %c0_77 = arith.constant 0 : index
    %99 = vector.load %arg8[%c24_76, %c0_77] : memref<80x256xf32, #tpu.memory_space<vmem>>, vector<8x256xf32>
    tpu.vector_store %arg8[%c24_76, %c0_77], %98 {strides = array<i32>} : memref<80x256xf32, #tpu.memory_space<vmem>>, vector<8x256xf32>,
    %c32_78 = arith.constant 32 : index
    %c0_79 = arith.constant 0 : index
    %100 = vector.load %arg8[%c32_78, %c0_79] : memref<80x256xf32, #tpu.memory_space<vmem>>, vector<8x256xf32>
    tpu.vector_store %arg8[%c32_78, %c0_79], %79 {strides = array<i32>} : memref<80x256xf32, #tpu.memory_space<vmem>>, vector<8x256xf32>,
    %c255_i32_80 = arith.constant 255 : i32
    %101 = tpu.dynamic_rotate %79 by %c255_i32_80 dim 1 : vector<8x256xf32>, i32 -> vector<8x256xf32>
    %c4_81 = arith.constant 4 : index
    %c0_82 = arith.constant 0 : index
    %c0_83 = arith.constant 0 : index
    %102 = vector.load %arg6[%c4_81, %c0_82, %c0_83] : memref<8x8x256xf32, #tpu.memory_space<vmem>>, vector<1x8x256xf32>
    %103 = vector.shape_cast %102 : vector<1x8x256xf32> to vector<8x256xf32>
    %104 = arith.mulf %101, %103 : vector<8x256xf32>
    %c40_84 = arith.constant 40 : index
    %c0_85 = arith.constant 0 : index
    %105 = vector.load %arg8[%c40_84, %c0_85] : memref<80x256xf32, #tpu.memory_space<vmem>>, vector<8x256xf32>
    tpu.vector_store %arg8[%c40_84, %c0_85], %104 {strides = array<i32>} : memref<80x256xf32, #tpu.memory_space<vmem>>, vector<8x256xf32>,
    %c241_i32_86 = arith.constant 241 : i32
    %106 = tpu.dynamic_rotate %79 by %c241_i32_86 dim 1 : vector<8x256xf32>, i32 -> vector<8x256xf32>
    %c5_87 = arith.constant 5 : index
    %c0_88 = arith.constant 0 : index
    %c0_89 = arith.constant 0 : index
    %107 = vector.load %arg6[%c5_87, %c0_88, %c0_89] : memref<8x8x256xf32, #tpu.memory_space<vmem>>, vector<1x8x256xf32>
    %108 = vector.shape_cast %107 : vector<1x8x256xf32> to vector<8x256xf32>
    %109 = arith.mulf %106, %108 : vector<8x256xf32>
    %c48_90 = arith.constant 48 : index
    %c0_91 = arith.constant 0 : index
    %110 = vector.load %arg8[%c48_90, %c0_91] : memref<80x256xf32, #tpu.memory_space<vmem>>, vector<8x256xf32>
    tpu.vector_store %arg8[%c48_90, %c0_91], %109 {strides = array<i32>} : memref<80x256xf32, #tpu.memory_space<vmem>>, vector<8x256xf32>,
    %c240_i32_92 = arith.constant 240 : i32
    %111 = tpu.dynamic_rotate %79 by %c240_i32_92 dim 1 : vector<8x256xf32>, i32 -> vector<8x256xf32>
    %c6_93 = arith.constant 6 : index
    %c0_94 = arith.constant 0 : index
    %c0_95 = arith.constant 0 : index
    %112 = vector.load %arg6[%c6_93, %c0_94, %c0_95] : memref<8x8x256xf32, #tpu.memory_space<vmem>>, vector<1x8x256xf32>
    %113 = vector.shape_cast %112 : vector<1x8x256xf32> to vector<8x256xf32>
    %114 = arith.mulf %111, %113 : vector<8x256xf32>
    %c56_96 = arith.constant 56 : index
    %c0_97 = arith.constant 0 : index
    %115 = vector.load %arg8[%c56_96, %c0_97] : memref<80x256xf32, #tpu.memory_space<vmem>>, vector<8x256xf32>
    tpu.vector_store %arg8[%c56_96, %c0_97], %114 {strides = array<i32>} : memref<80x256xf32, #tpu.memory_space<vmem>>, vector<8x256xf32>,
    %c239_i32_98 = arith.constant 239 : i32
    %116 = tpu.dynamic_rotate %79 by %c239_i32_98 dim 1 : vector<8x256xf32>, i32 -> vector<8x256xf32>
    %c7_99 = arith.constant 7 : index
    %c0_100 = arith.constant 0 : index
    %c0_101 = arith.constant 0 : index
    %117 = vector.load %arg6[%c7_99, %c0_100, %c0_101] : memref<8x8x256xf32, #tpu.memory_space<vmem>>, vector<1x8x256xf32>
    %118 = vector.shape_cast %117 : vector<1x8x256xf32> to vector<8x256xf32>
    %119 = arith.mulf %116, %118 : vector<8x256xf32>
    %c64_102 = arith.constant 64 : index
    %c0_103 = arith.constant 0 : index
    %120 = vector.load %arg8[%c64_102, %c0_103] : memref<80x256xf32, #tpu.memory_space<vmem>>, vector<8x256xf32>
    tpu.vector_store %arg8[%c64_102, %c0_103], %119 {strides = array<i32>} : memref<80x256xf32, #tpu.memory_space<vmem>>, vector<8x256xf32>,
    %c1_104 = arith.constant 1 : index
    %c0_105 = arith.constant 0 : index
    %c0_106 = arith.constant 0 : index
    %121 = vector.load %arg5[%c1_104, %c0_105, %c0_106] : memref<6x8x80xbf16, #tpu.memory_space<vmem>>, vector<1x8x80xbf16>
    %122 = vector.shape_cast %121 : vector<1x8x80xbf16> to vector<8x80xbf16>
    %c0_107 = arith.constant 0 : index
    %c0_108 = arith.constant 0 : index
    %123 = vector.load %arg8[%c0_107, %c0_108] : memref<80x256xf32, #tpu.memory_space<vmem>>, vector<80x256xf32>
    %124 = arith.truncf %123 : vector<80x256xf32> to vector<80x256xbf16>
    %cst_109 = arith.constant dense<0.000000e+00> : vector<8x256xf32>
    %125 = tpu.matmul %122, %124, %cst_109 {dimension_numbers = #tpu.dot_dimension_numbers<[1], [0], [0], [1], [0, 0, 1, 1], [], []>} : vector<8x80xbf16>, vector<80x256xbf16>, vector<8x256xf32> -> vector<8x256xf32>
    %cst_110 = arith.constant 0.000000e+00 : f32
    %126 = vector.broadcast %cst_110 : f32 to vector<8x256xf32>
    %127 = arith.maximumf %125, %126 : vector<8x256xf32>
    %c17_i32_111 = arith.constant 17 : i32
    %128 = tpu.dynamic_rotate %127 by %c17_i32_111 dim 1 : vector<8x256xf32>, i32 -> vector<8x256xf32>
    %c0_112 = arith.constant 0 : index
    %c0_113 = arith.constant 0 : index
    %c0_114 = arith.constant 0 : index
    %129 = vector.load %arg6[%c0_112, %c0_113, %c0_114] : memref<8x8x256xf32, #tpu.memory_space<vmem>>, vector<1x8x256xf32>
    %130 = vector.shape_cast %129 : vector<1x8x256xf32> to vector<8x256xf32>
    %131 = arith.mulf %128, %130 : vector<8x256xf32>
    %c0_115 = arith.constant 0 : index
    %c0_116 = arith.constant 0 : index
    %132 = vector.load %arg8[%c0_115, %c0_116] : memref<80x256xf32, #tpu.memory_space<vmem>>, vector<8x256xf32>
    tpu.vector_store %arg8[%c0_115, %c0_116], %131 {strides = array<i32>} : memref<80x256xf32, #tpu.memory_space<vmem>>, vector<8x256xf32>,
    %c16_i32_117 = arith.constant 16 : i32
    %133 = tpu.dynamic_rotate %127 by %c16_i32_117 dim 1 : vector<8x256xf32>, i32 -> vector<8x256xf32>
    %c1_118 = arith.constant 1 : index
    %c0_119 = arith.constant 0 : index
    %c0_120 = arith.constant 0 : index
    %134 = vector.load %arg6[%c1_118, %c0_119, %c0_120] : memref<8x8x256xf32, #tpu.memory_space<vmem>>, vector<1x8x256xf32>
    %135 = vector.shape_cast %134 : vector<1x8x256xf32> to vector<8x256xf32>
    %136 = arith.mulf %133, %135 : vector<8x256xf32>
    %c8_121 = arith.constant 8 : index
    %c0_122 = arith.constant 0 : index
    %137 = vector.load %arg8[%c8_121, %c0_122] : memref<80x256xf32, #tpu.memory_space<vmem>>, vector<8x256xf32>
    tpu.vector_store %arg8[%c8_121, %c0_122], %136 {strides = array<i32>} : memref<80x256xf32, #tpu.memory_space<vmem>>, vector<8x256xf32>,
    %c15_i32_123 = arith.constant 15 : i32
    %138 = tpu.dynamic_rotate %127 by %c15_i32_123 dim 1 : vector<8x256xf32>, i32 -> vector<8x256xf32>
    %c2_124 = arith.constant 2 : index
    %c0_125 = arith.constant 0 : index
    %c0_126 = arith.constant 0 : index
    %139 = vector.load %arg6[%c2_124, %c0_125, %c0_126] : memref<8x8x256xf32, #tpu.memory_space<vmem>>, vector<1x8x256xf32>
    %140 = vector.shape_cast %139 : vector<1x8x256xf32> to vector<8x256xf32>
    %141 = arith.mulf %138, %140 : vector<8x256xf32>
    %c16_127 = arith.constant 16 : index
    %c0_128 = arith.constant 0 : index
    %142 = vector.load %arg8[%c16_127, %c0_128] : memref<80x256xf32, #tpu.memory_space<vmem>>, vector<8x256xf32>
    tpu.vector_store %arg8[%c16_127, %c0_128], %141 {strides = array<i32>} : memref<80x256xf32, #tpu.memory_space<vmem>>, vector<8x256xf32>,
    %c1_i32_129 = arith.constant 1 : i32
    %143 = tpu.dynamic_rotate %127 by %c1_i32_129 dim 1 : vector<8x256xf32>, i32 -> vector<8x256xf32>
    %c3_130 = arith.constant 3 : index
    %c0_131 = arith.constant 0 : index
    %c0_132 = arith.constant 0 : index
    %144 = vector.load %arg6[%c3_130, %c0_131, %c0_132] : memref<8x8x256xf32, #tpu.memory_space<vmem>>, vector<1x8x256xf32>
    %145 = vector.shape_cast %144 : vector<1x8x256xf32> to vector<8x256xf32>
    %146 = arith.mulf %143, %145 : vector<8x256xf32>
    %c24_133 = arith.constant 24 : index
    %c0_134 = arith.constant 0 : index
    %147 = vector.load %arg8[%c24_133, %c0_134] : memref<80x256xf32, #tpu.memory_space<vmem>>, vector<8x256xf32>
    tpu.vector_store %arg8[%c24_133, %c0_134], %146 {strides = array<i32>} : memref<80x256xf32, #tpu.memory_space<vmem>>, vector<8x256xf32>,
    %c32_135 = arith.constant 32 : index
    %c0_136 = arith.constant 0 : index
    %148 = vector.load %arg8[%c32_135, %c0_136] : memref<80x256xf32, #tpu.memory_space<vmem>>, vector<8x256xf32>
    tpu.vector_store %arg8[%c32_135, %c0_136], %127 {strides = array<i32>} : memref<80x256xf32, #tpu.memory_space<vmem>>, vector<8x256xf32>,
    %c255_i32_137 = arith.constant 255 : i32
    %149 = tpu.dynamic_rotate %127 by %c255_i32_137 dim 1 : vector<8x256xf32>, i32 -> vector<8x256xf32>
    %c4_138 = arith.constant 4 : index
    %c0_139 = arith.constant 0 : index
    %c0_140 = arith.constant 0 : index
    %150 = vector.load %arg6[%c4_138, %c0_139, %c0_140] : memref<8x8x256xf32, #tpu.memory_space<vmem>>, vector<1x8x256xf32>
    %151 = vector.shape_cast %150 : vector<1x8x256xf32> to vector<8x256xf32>
    %152 = arith.mulf %149, %151 : vector<8x256xf32>
    %c40_141 = arith.constant 40 : index
    %c0_142 = arith.constant 0 : index
    %153 = vector.load %arg8[%c40_141, %c0_142] : memref<80x256xf32, #tpu.memory_space<vmem>>, vector<8x256xf32>
    tpu.vector_store %arg8[%c40_141, %c0_142], %152 {strides = array<i32>} : memref<80x256xf32, #tpu.memory_space<vmem>>, vector<8x256xf32>,
    %c241_i32_143 = arith.constant 241 : i32
    %154 = tpu.dynamic_rotate %127 by %c241_i32_143 dim 1 : vector<8x256xf32>, i32 -> vector<8x256xf32>
    %c5_144 = arith.constant 5 : index
    %c0_145 = arith.constant 0 : index
    %c0_146 = arith.constant 0 : index
    %155 = vector.load %arg6[%c5_144, %c0_145, %c0_146] : memref<8x8x256xf32, #tpu.memory_space<vmem>>, vector<1x8x256xf32>
    %156 = vector.shape_cast %155 : vector<1x8x256xf32> to vector<8x256xf32>
    %157 = arith.mulf %154, %156 : vector<8x256xf32>
    %c48_147 = arith.constant 48 : index
    %c0_148 = arith.constant 0 : index
    %158 = vector.load %arg8[%c48_147, %c0_148] : memref<80x256xf32, #tpu.memory_space<vmem>>, vector<8x256xf32>
    tpu.vector_store %arg8[%c48_147, %c0_148], %157 {strides = array<i32>} : memref<80x256xf32, #tpu.memory_space<vmem>>, vector<8x256xf32>,
    %c240_i32_149 = arith.constant 240 : i32
    %159 = tpu.dynamic_rotate %127 by %c240_i32_149 dim 1 : vector<8x256xf32>, i32 -> vector<8x256xf32>
    %c6_150 = arith.constant 6 : index
    %c0_151 = arith.constant 0 : index
    %c0_152 = arith.constant 0 : index
    %160 = vector.load %arg6[%c6_150, %c0_151, %c0_152] : memref<8x8x256xf32, #tpu.memory_space<vmem>>, vector<1x8x256xf32>
    %161 = vector.shape_cast %160 : vector<1x8x256xf32> to vector<8x256xf32>
    %162 = arith.mulf %159, %161 : vector<8x256xf32>
    %c56_153 = arith.constant 56 : index
    %c0_154 = arith.constant 0 : index
    %163 = vector.load %arg8[%c56_153, %c0_154] : memref<80x256xf32, #tpu.memory_space<vmem>>, vector<8x256xf32>
    tpu.vector_store %arg8[%c56_153, %c0_154], %162 {strides = array<i32>} : memref<80x256xf32, #tpu.memory_space<vmem>>, vector<8x256xf32>,
    %c239_i32_155 = arith.constant 239 : i32
    %164 = tpu.dynamic_rotate %127 by %c239_i32_155 dim 1 : vector<8x256xf32>, i32 -> vector<8x256xf32>
    %c7_156 = arith.constant 7 : index
    %c0_157 = arith.constant 0 : index
    %c0_158 = arith.constant 0 : index
    %165 = vector.load %arg6[%c7_156, %c0_157, %c0_158] : memref<8x8x256xf32, #tpu.memory_space<vmem>>, vector<1x8x256xf32>
    %166 = vector.shape_cast %165 : vector<1x8x256xf32> to vector<8x256xf32>
    %167 = arith.mulf %164, %166 : vector<8x256xf32>
    %c64_159 = arith.constant 64 : index
    %c0_160 = arith.constant 0 : index
    %168 = vector.load %arg8[%c64_159, %c0_160] : memref<80x256xf32, #tpu.memory_space<vmem>>, vector<8x256xf32>
    tpu.vector_store %arg8[%c64_159, %c0_160], %167 {strides = array<i32>} : memref<80x256xf32, #tpu.memory_space<vmem>>, vector<8x256xf32>,
    %c2_161 = arith.constant 2 : index
    %c0_162 = arith.constant 0 : index
    %c0_163 = arith.constant 0 : index
    %169 = vector.load %arg5[%c2_161, %c0_162, %c0_163] : memref<6x8x80xbf16, #tpu.memory_space<vmem>>, vector<1x8x80xbf16>
    %170 = vector.shape_cast %169 : vector<1x8x80xbf16> to vector<8x80xbf16>
    %c0_164 = arith.constant 0 : index
    %c0_165 = arith.constant 0 : index
    %171 = vector.load %arg8[%c0_164, %c0_165] : memref<80x256xf32, #tpu.memory_space<vmem>>, vector<80x256xf32>
    %172 = arith.truncf %171 : vector<80x256xf32> to vector<80x256xbf16>
    %cst_166 = arith.constant dense<0.000000e+00> : vector<8x256xf32>
    %173 = tpu.matmul %170, %172, %cst_166 {dimension_numbers = #tpu.dot_dimension_numbers<[1], [0], [0], [1], [0, 0, 1, 1], [], []>} : vector<8x80xbf16>, vector<80x256xbf16>, vector<8x256xf32> -> vector<8x256xf32>
    %174 = arith.addf %79, %173 : vector<8x256xf32>
    %c17_i32_167 = arith.constant 17 : i32
    %175 = tpu.dynamic_rotate %174 by %c17_i32_167 dim 1 : vector<8x256xf32>, i32 -> vector<8x256xf32>
    %c0_168 = arith.constant 0 : index
    %c0_169 = arith.constant 0 : index
    %c0_170 = arith.constant 0 : index
    %176 = vector.load %arg6[%c0_168, %c0_169, %c0_170] : memref<8x8x256xf32, #tpu.memory_space<vmem>>, vector<1x8x256xf32>
    %177 = vector.shape_cast %176 : vector<1x8x256xf32> to vector<8x256xf32>
    %178 = arith.mulf %175, %177 : vector<8x256xf32>
    %c0_171 = arith.constant 0 : index
    %c0_172 = arith.constant 0 : index
    %179 = vector.load %arg8[%c0_171, %c0_172] : memref<80x256xf32, #tpu.memory_space<vmem>>, vector<8x256xf32>
    tpu.vector_store %arg8[%c0_171, %c0_172], %178 {strides = array<i32>} : memref<80x256xf32, #tpu.memory_space<vmem>>, vector<8x256xf32>,
    %c16_i32_173 = arith.constant 16 : i32
    %180 = tpu.dynamic_rotate %174 by %c16_i32_173 dim 1 : vector<8x256xf32>, i32 -> vector<8x256xf32>
    %c1_174 = arith.constant 1 : index
    %c0_175 = arith.constant 0 : index
    %c0_176 = arith.constant 0 : index
    %181 = vector.load %arg6[%c1_174, %c0_175, %c0_176] : memref<8x8x256xf32, #tpu.memory_space<vmem>>, vector<1x8x256xf32>
    %182 = vector.shape_cast %181 : vector<1x8x256xf32> to vector<8x256xf32>
    %183 = arith.mulf %180, %182 : vector<8x256xf32>
    %c8_177 = arith.constant 8 : index
    %c0_178 = arith.constant 0 : index
    %184 = vector.load %arg8[%c8_177, %c0_178] : memref<80x256xf32, #tpu.memory_space<vmem>>, vector<8x256xf32>
    tpu.vector_store %arg8[%c8_177, %c0_178], %183 {strides = array<i32>} : memref<80x256xf32, #tpu.memory_space<vmem>>, vector<8x256xf32>,
    %c15_i32_179 = arith.constant 15 : i32
    %185 = tpu.dynamic_rotate %174 by %c15_i32_179 dim 1 : vector<8x256xf32>, i32 -> vector<8x256xf32>
    %c2_180 = arith.constant 2 : index
    %c0_181 = arith.constant 0 : index
    %c0_182 = arith.constant 0 : index
    %186 = vector.load %arg6[%c2_180, %c0_181, %c0_182] : memref<8x8x256xf32, #tpu.memory_space<vmem>>, vector<1x8x256xf32>
    %187 = vector.shape_cast %186 : vector<1x8x256xf32> to vector<8x256xf32>
    %188 = arith.mulf %185, %187 : vector<8x256xf32>
    %c16_183 = arith.constant 16 : index
    %c0_184 = arith.constant 0 : index
    %189 = vector.load %arg8[%c16_183, %c0_184] : memref<80x256xf32, #tpu.memory_space<vmem>>, vector<8x256xf32>
    tpu.vector_store %arg8[%c16_183, %c0_184], %188 {strides = array<i32>} : memref<80x256xf32, #tpu.memory_space<vmem>>, vector<8x256xf32>,
    %c1_i32_185 = arith.constant 1 : i32
    %190 = tpu.dynamic_rotate %174 by %c1_i32_185 dim 1 : vector<8x256xf32>, i32 -> vector<8x256xf32>
    %c3_186 = arith.constant 3 : index
    %c0_187 = arith.constant 0 : index
    %c0_188 = arith.constant 0 : index
    %191 = vector.load %arg6[%c3_186, %c0_187, %c0_188] : memref<8x8x256xf32, #tpu.memory_space<vmem>>, vector<1x8x256xf32>
    %192 = vector.shape_cast %191 : vector<1x8x256xf32> to vector<8x256xf32>
    %193 = arith.mulf %190, %192 : vector<8x256xf32>
    %c24_189 = arith.constant 24 : index
    %c0_190 = arith.constant 0 : index
    %194 = vector.load %arg8[%c24_189, %c0_190] : memref<80x256xf32, #tpu.memory_space<vmem>>, vector<8x256xf32>
    tpu.vector_store %arg8[%c24_189, %c0_190], %193 {strides = array<i32>} : memref<80x256xf32, #tpu.memory_space<vmem>>, vector<8x256xf32>,
    %c32_191 = arith.constant 32 : index
    %c0_192 = arith.constant 0 : index
    %195 = vector.load %arg8[%c32_191, %c0_192] : memref<80x256xf32, #tpu.memory_space<vmem>>, vector<8x256xf32>
    tpu.vector_store %arg8[%c32_191, %c0_192], %174 {strides = array<i32>} : memref<80x256xf32, #tpu.memory_space<vmem>>, vector<8x256xf32>,
    %c255_i32_193 = arith.constant 255 : i32
    %196 = tpu.dynamic_rotate %174 by %c255_i32_193 dim 1 : vector<8x256xf32>, i32 -> vector<8x256xf32>
    %c4_194 = arith.constant 4 : index
    %c0_195 = arith.constant 0 : index
    %c0_196 = arith.constant 0 : index
    %197 = vector.load %arg6[%c4_194, %c0_195, %c0_196] : memref<8x8x256xf32, #tpu.memory_space<vmem>>, vector<1x8x256xf32>
    %198 = vector.shape_cast %197 : vector<1x8x256xf32> to vector<8x256xf32>
    %199 = arith.mulf %196, %198 : vector<8x256xf32>
    %c40_197 = arith.constant 40 : index
    %c0_198 = arith.constant 0 : index
    %200 = vector.load %arg8[%c40_197, %c0_198] : memref<80x256xf32, #tpu.memory_space<vmem>>, vector<8x256xf32>
    tpu.vector_store %arg8[%c40_197, %c0_198], %199 {strides = array<i32>} : memref<80x256xf32, #tpu.memory_space<vmem>>, vector<8x256xf32>,
    %c241_i32_199 = arith.constant 241 : i32
    %201 = tpu.dynamic_rotate %174 by %c241_i32_199 dim 1 : vector<8x256xf32>, i32 -> vector<8x256xf32>
    %c5_200 = arith.constant 5 : index
    %c0_201 = arith.constant 0 : index
    %c0_202 = arith.constant 0 : index
    %202 = vector.load %arg6[%c5_200, %c0_201, %c0_202] : memref<8x8x256xf32, #tpu.memory_space<vmem>>, vector<1x8x256xf32>
    %203 = vector.shape_cast %202 : vector<1x8x256xf32> to vector<8x256xf32>
    %204 = arith.mulf %201, %203 : vector<8x256xf32>
    %c48_203 = arith.constant 48 : index
    %c0_204 = arith.constant 0 : index
    %205 = vector.load %arg8[%c48_203, %c0_204] : memref<80x256xf32, #tpu.memory_space<vmem>>, vector<8x256xf32>
    tpu.vector_store %arg8[%c48_203, %c0_204], %204 {strides = array<i32>} : memref<80x256xf32, #tpu.memory_space<vmem>>, vector<8x256xf32>,
    %c240_i32_205 = arith.constant 240 : i32
    %206 = tpu.dynamic_rotate %174 by %c240_i32_205 dim 1 : vector<8x256xf32>, i32 -> vector<8x256xf32>
    %c6_206 = arith.constant 6 : index
    %c0_207 = arith.constant 0 : index
    %c0_208 = arith.constant 0 : index
    %207 = vector.load %arg6[%c6_206, %c0_207, %c0_208] : memref<8x8x256xf32, #tpu.memory_space<vmem>>, vector<1x8x256xf32>
    %208 = vector.shape_cast %207 : vector<1x8x256xf32> to vector<8x256xf32>
    %209 = arith.mulf %206, %208 : vector<8x256xf32>
    %c56_209 = arith.constant 56 : index
    %c0_210 = arith.constant 0 : index
    %210 = vector.load %arg8[%c56_209, %c0_210] : memref<80x256xf32, #tpu.memory_space<vmem>>, vector<8x256xf32>
    tpu.vector_store %arg8[%c56_209, %c0_210], %209 {strides = array<i32>} : memref<80x256xf32, #tpu.memory_space<vmem>>, vector<8x256xf32>,
    %c239_i32_211 = arith.constant 239 : i32
    %211 = tpu.dynamic_rotate %174 by %c239_i32_211 dim 1 : vector<8x256xf32>, i32 -> vector<8x256xf32>
    %c7_212 = arith.constant 7 : index
    %c0_213 = arith.constant 0 : index
    %c0_214 = arith.constant 0 : index
    %212 = vector.load %arg6[%c7_212, %c0_213, %c0_214] : memref<8x8x256xf32, #tpu.memory_space<vmem>>, vector<1x8x256xf32>
    %213 = vector.shape_cast %212 : vector<1x8x256xf32> to vector<8x256xf32>
    %214 = arith.mulf %211, %213 : vector<8x256xf32>
    %c64_215 = arith.constant 64 : index
    %c0_216 = arith.constant 0 : index
    %215 = vector.load %arg8[%c64_215, %c0_216] : memref<80x256xf32, #tpu.memory_space<vmem>>, vector<8x256xf32>
    tpu.vector_store %arg8[%c64_215, %c0_216], %214 {strides = array<i32>} : memref<80x256xf32, #tpu.memory_space<vmem>>, vector<8x256xf32>,
    %c3_217 = arith.constant 3 : index
    %c0_218 = arith.constant 0 : index
    %c0_219 = arith.constant 0 : index
    %216 = vector.load %arg5[%c3_217, %c0_218, %c0_219] : memref<6x8x80xbf16, #tpu.memory_space<vmem>>, vector<1x8x80xbf16>
    %217 = vector.shape_cast %216 : vector<1x8x80xbf16> to vector<8x80xbf16>
    %c0_220 = arith.constant 0 : index
    %c0_221 = arith.constant 0 : index
    %218 = vector.load %arg8[%c0_220, %c0_221] : memref<80x256xf32, #tpu.memory_space<vmem>>, vector<80x256xf32>
    %219 = arith.truncf %218 : vector<80x256xf32> to vector<80x256xbf16>
    %cst_222 = arith.constant dense<0.000000e+00> : vector<8x256xf32>
    %220 = tpu.matmul %217, %219, %cst_222 {dimension_numbers = #tpu.dot_dimension_numbers<[1], [0], [0], [1], [0, 0, 1, 1], [], []>} : vector<8x80xbf16>, vector<80x256xbf16>, vector<8x256xf32> -> vector<8x256xf32>
    %cst_223 = arith.constant 0.000000e+00 : f32
    %221 = vector.broadcast %cst_223 : f32 to vector<8x256xf32>
    %222 = arith.maximumf %220, %221 : vector<8x256xf32>
    %c17_i32_224 = arith.constant 17 : i32
    %223 = tpu.dynamic_rotate %222 by %c17_i32_224 dim 1 : vector<8x256xf32>, i32 -> vector<8x256xf32>
    %c0_225 = arith.constant 0 : index
    %c0_226 = arith.constant 0 : index
    %c0_227 = arith.constant 0 : index
    %224 = vector.load %arg6[%c0_225, %c0_226, %c0_227] : memref<8x8x256xf32, #tpu.memory_space<vmem>>, vector<1x8x256xf32>
    %225 = vector.shape_cast %224 : vector<1x8x256xf32> to vector<8x256xf32>
    %226 = arith.mulf %223, %225 : vector<8x256xf32>
    %c0_228 = arith.constant 0 : index
    %c0_229 = arith.constant 0 : index
    %227 = vector.load %arg8[%c0_228, %c0_229] : memref<80x256xf32, #tpu.memory_space<vmem>>, vector<8x256xf32>
    tpu.vector_store %arg8[%c0_228, %c0_229], %226 {strides = array<i32>} : memref<80x256xf32, #tpu.memory_space<vmem>>, vector<8x256xf32>,
    %c16_i32_230 = arith.constant 16 : i32
    %228 = tpu.dynamic_rotate %222 by %c16_i32_230 dim 1 : vector<8x256xf32>, i32 -> vector<8x256xf32>
    %c1_231 = arith.constant 1 : index
    %c0_232 = arith.constant 0 : index
    %c0_233 = arith.constant 0 : index
    %229 = vector.load %arg6[%c1_231, %c0_232, %c0_233] : memref<8x8x256xf32, #tpu.memory_space<vmem>>, vector<1x8x256xf32>
    %230 = vector.shape_cast %229 : vector<1x8x256xf32> to vector<8x256xf32>
    %231 = arith.mulf %228, %230 : vector<8x256xf32>
    %c8_234 = arith.constant 8 : index
    %c0_235 = arith.constant 0 : index
    %232 = vector.load %arg8[%c8_234, %c0_235] : memref<80x256xf32, #tpu.memory_space<vmem>>, vector<8x256xf32>
    tpu.vector_store %arg8[%c8_234, %c0_235], %231 {strides = array<i32>} : memref<80x256xf32, #tpu.memory_space<vmem>>, vector<8x256xf32>,
    %c15_i32_236 = arith.constant 15 : i32
    %233 = tpu.dynamic_rotate %222 by %c15_i32_236 dim 1 : vector<8x256xf32>, i32 -> vector<8x256xf32>
    %c2_237 = arith.constant 2 : index
    %c0_238 = arith.constant 0 : index
    %c0_239 = arith.constant 0 : index
    %234 = vector.load %arg6[%c2_237, %c0_238, %c0_239] : memref<8x8x256xf32, #tpu.memory_space<vmem>>, vector<1x8x256xf32>
    %235 = vector.shape_cast %234 : vector<1x8x256xf32> to vector<8x256xf32>
    %236 = arith.mulf %233, %235 : vector<8x256xf32>
    %c16_240 = arith.constant 16 : index
    %c0_241 = arith.constant 0 : index
    %237 = vector.load %arg8[%c16_240, %c0_241] : memref<80x256xf32, #tpu.memory_space<vmem>>, vector<8x256xf32>
    tpu.vector_store %arg8[%c16_240, %c0_241], %236 {strides = array<i32>} : memref<80x256xf32, #tpu.memory_space<vmem>>, vector<8x256xf32>,
    %c1_i32_242 = arith.constant 1 : i32
    %238 = tpu.dynamic_rotate %222 by %c1_i32_242 dim 1 : vector<8x256xf32>, i32 -> vector<8x256xf32>
    %c3_243 = arith.constant 3 : index
    %c0_244 = arith.constant 0 : index
    %c0_245 = arith.constant 0 : index
    %239 = vector.load %arg6[%c3_243, %c0_244, %c0_245] : memref<8x8x256xf32, #tpu.memory_space<vmem>>, vector<1x8x256xf32>
    %240 = vector.shape_cast %239 : vector<1x8x256xf32> to vector<8x256xf32>
    %241 = arith.mulf %238, %240 : vector<8x256xf32>
    %c24_246 = arith.constant 24 : index
    %c0_247 = arith.constant 0 : index
    %242 = vector.load %arg8[%c24_246, %c0_247] : memref<80x256xf32, #tpu.memory_space<vmem>>, vector<8x256xf32>
    tpu.vector_store %arg8[%c24_246, %c0_247], %241 {strides = array<i32>} : memref<80x256xf32, #tpu.memory_space<vmem>>, vector<8x256xf32>,
    %c32_248 = arith.constant 32 : index
    %c0_249 = arith.constant 0 : index
    %243 = vector.load %arg8[%c32_248, %c0_249] : memref<80x256xf32, #tpu.memory_space<vmem>>, vector<8x256xf32>
    tpu.vector_store %arg8[%c32_248, %c0_249], %222 {strides = array<i32>} : memref<80x256xf32, #tpu.memory_space<vmem>>, vector<8x256xf32>,
    %c255_i32_250 = arith.constant 255 : i32
    %244 = tpu.dynamic_rotate %222 by %c255_i32_250 dim 1 : vector<8x256xf32>, i32 -> vector<8x256xf32>
    %c4_251 = arith.constant 4 : index
    %c0_252 = arith.constant 0 : index
    %c0_253 = arith.constant 0 : index
    %245 = vector.load %arg6[%c4_251, %c0_252, %c0_253] : memref<8x8x256xf32, #tpu.memory_space<vmem>>, vector<1x8x256xf32>
    %246 = vector.shape_cast %245 : vector<1x8x256xf32> to vector<8x256xf32>
    %247 = arith.mulf %244, %246 : vector<8x256xf32>
    %c40_254 = arith.constant 40 : index
    %c0_255 = arith.constant 0 : index
    %248 = vector.load %arg8[%c40_254, %c0_255] : memref<80x256xf32, #tpu.memory_space<vmem>>, vector<8x256xf32>
    tpu.vector_store %arg8[%c40_254, %c0_255], %247 {strides = array<i32>} : memref<80x256xf32, #tpu.memory_space<vmem>>, vector<8x256xf32>,
    %c241_i32_256 = arith.constant 241 : i32
    %249 = tpu.dynamic_rotate %222 by %c241_i32_256 dim 1 : vector<8x256xf32>, i32 -> vector<8x256xf32>
    %c5_257 = arith.constant 5 : index
    %c0_258 = arith.constant 0 : index
    %c0_259 = arith.constant 0 : index
    %250 = vector.load %arg6[%c5_257, %c0_258, %c0_259] : memref<8x8x256xf32, #tpu.memory_space<vmem>>, vector<1x8x256xf32>
    %251 = vector.shape_cast %250 : vector<1x8x256xf32> to vector<8x256xf32>
    %252 = arith.mulf %249, %251 : vector<8x256xf32>
    %c48_260 = arith.constant 48 : index
    %c0_261 = arith.constant 0 : index
    %253 = vector.load %arg8[%c48_260, %c0_261] : memref<80x256xf32, #tpu.memory_space<vmem>>, vector<8x256xf32>
    tpu.vector_store %arg8[%c48_260, %c0_261], %252 {strides = array<i32>} : memref<80x256xf32, #tpu.memory_space<vmem>>, vector<8x256xf32>,
    %c240_i32_262 = arith.constant 240 : i32
    %254 = tpu.dynamic_rotate %222 by %c240_i32_262 dim 1 : vector<8x256xf32>, i32 -> vector<8x256xf32>
    %c6_263 = arith.constant 6 : index
    %c0_264 = arith.constant 0 : index
    %c0_265 = arith.constant 0 : index
    %255 = vector.load %arg6[%c6_263, %c0_264, %c0_265] : memref<8x8x256xf32, #tpu.memory_space<vmem>>, vector<1x8x256xf32>
    %256 = vector.shape_cast %255 : vector<1x8x256xf32> to vector<8x256xf32>
    %257 = arith.mulf %254, %256 : vector<8x256xf32>
    %c56_266 = arith.constant 56 : index
    %c0_267 = arith.constant 0 : index
    %258 = vector.load %arg8[%c56_266, %c0_267] : memref<80x256xf32, #tpu.memory_space<vmem>>, vector<8x256xf32>
    tpu.vector_store %arg8[%c56_266, %c0_267], %257 {strides = array<i32>} : memref<80x256xf32, #tpu.memory_space<vmem>>, vector<8x256xf32>,
    %c239_i32_268 = arith.constant 239 : i32
    %259 = tpu.dynamic_rotate %222 by %c239_i32_268 dim 1 : vector<8x256xf32>, i32 -> vector<8x256xf32>
    %c7_269 = arith.constant 7 : index
    %c0_270 = arith.constant 0 : index
    %c0_271 = arith.constant 0 : index
    %260 = vector.load %arg6[%c7_269, %c0_270, %c0_271] : memref<8x8x256xf32, #tpu.memory_space<vmem>>, vector<1x8x256xf32>
    %261 = vector.shape_cast %260 : vector<1x8x256xf32> to vector<8x256xf32>
    %262 = arith.mulf %259, %261 : vector<8x256xf32>
    %c64_272 = arith.constant 64 : index
    %c0_273 = arith.constant 0 : index
    %263 = vector.load %arg8[%c64_272, %c0_273] : memref<80x256xf32, #tpu.memory_space<vmem>>, vector<8x256xf32>
    tpu.vector_store %arg8[%c64_272, %c0_273], %262 {strides = array<i32>} : memref<80x256xf32, #tpu.memory_space<vmem>>, vector<8x256xf32>,
    %c4_274 = arith.constant 4 : index
    %c0_275 = arith.constant 0 : index
    %c0_276 = arith.constant 0 : index
    %264 = vector.load %arg5[%c4_274, %c0_275, %c0_276] : memref<6x8x80xbf16, #tpu.memory_space<vmem>>, vector<1x8x80xbf16>
    %265 = vector.shape_cast %264 : vector<1x8x80xbf16> to vector<8x80xbf16>
    %c0_277 = arith.constant 0 : index
    %c0_278 = arith.constant 0 : index
    %266 = vector.load %arg8[%c0_277, %c0_278] : memref<80x256xf32, #tpu.memory_space<vmem>>, vector<80x256xf32>
    %267 = arith.truncf %266 : vector<80x256xf32> to vector<80x256xbf16>
    %cst_279 = arith.constant dense<0.000000e+00> : vector<8x256xf32>
    %268 = tpu.matmul %265, %267, %cst_279 {dimension_numbers = #tpu.dot_dimension_numbers<[1], [0], [0], [1], [0, 0, 1, 1], [], []>} : vector<8x80xbf16>, vector<80x256xbf16>, vector<8x256xf32> -> vector<8x256xf32>
    %269 = arith.addf %174, %268 : vector<8x256xf32>
    %c17_i32_280 = arith.constant 17 : i32
    %270 = tpu.dynamic_rotate %269 by %c17_i32_280 dim 1 : vector<8x256xf32>, i32 -> vector<8x256xf32>
    %c0_281 = arith.constant 0 : index
    %c0_282 = arith.constant 0 : index
    %c0_283 = arith.constant 0 : index
    %271 = vector.load %arg6[%c0_281, %c0_282, %c0_283] : memref<8x8x256xf32, #tpu.memory_space<vmem>>, vector<1x8x256xf32>
    %272 = vector.shape_cast %271 : vector<1x8x256xf32> to vector<8x256xf32>
    %273 = arith.mulf %270, %272 : vector<8x256xf32>
    %c0_284 = arith.constant 0 : index
    %c0_285 = arith.constant 0 : index
    %274 = vector.load %arg8[%c0_284, %c0_285] : memref<80x256xf32, #tpu.memory_space<vmem>>, vector<8x256xf32>
    tpu.vector_store %arg8[%c0_284, %c0_285], %273 {strides = array<i32>} : memref<80x256xf32, #tpu.memory_space<vmem>>, vector<8x256xf32>,
    %c16_i32_286 = arith.constant 16 : i32
    %275 = tpu.dynamic_rotate %269 by %c16_i32_286 dim 1 : vector<8x256xf32>, i32 -> vector<8x256xf32>
    %c1_287 = arith.constant 1 : index
    %c0_288 = arith.constant 0 : index
    %c0_289 = arith.constant 0 : index
    %276 = vector.load %arg6[%c1_287, %c0_288, %c0_289] : memref<8x8x256xf32, #tpu.memory_space<vmem>>, vector<1x8x256xf32>
    %277 = vector.shape_cast %276 : vector<1x8x256xf32> to vector<8x256xf32>
    %278 = arith.mulf %275, %277 : vector<8x256xf32>
    %c8_290 = arith.constant 8 : index
    %c0_291 = arith.constant 0 : index
    %279 = vector.load %arg8[%c8_290, %c0_291] : memref<80x256xf32, #tpu.memory_space<vmem>>, vector<8x256xf32>
    tpu.vector_store %arg8[%c8_290, %c0_291], %278 {strides = array<i32>} : memref<80x256xf32, #tpu.memory_space<vmem>>, vector<8x256xf32>,
    %c15_i32_292 = arith.constant 15 : i32
    %280 = tpu.dynamic_rotate %269 by %c15_i32_292 dim 1 : vector<8x256xf32>, i32 -> vector<8x256xf32>
    %c2_293 = arith.constant 2 : index
    %c0_294 = arith.constant 0 : index
    %c0_295 = arith.constant 0 : index
    %281 = vector.load %arg6[%c2_293, %c0_294, %c0_295] : memref<8x8x256xf32, #tpu.memory_space<vmem>>, vector<1x8x256xf32>
    %282 = vector.shape_cast %281 : vector<1x8x256xf32> to vector<8x256xf32>
    %283 = arith.mulf %280, %282 : vector<8x256xf32>
    %c16_296 = arith.constant 16 : index
    %c0_297 = arith.constant 0 : index
    %284 = vector.load %arg8[%c16_296, %c0_297] : memref<80x256xf32, #tpu.memory_space<vmem>>, vector<8x256xf32>
    tpu.vector_store %arg8[%c16_296, %c0_297], %283 {strides = array<i32>} : memref<80x256xf32, #tpu.memory_space<vmem>>, vector<8x256xf32>,
    %c1_i32_298 = arith.constant 1 : i32
    %285 = tpu.dynamic_rotate %269 by %c1_i32_298 dim 1 : vector<8x256xf32>, i32 -> vector<8x256xf32>
    %c3_299 = arith.constant 3 : index
    %c0_300 = arith.constant 0 : index
    %c0_301 = arith.constant 0 : index
    %286 = vector.load %arg6[%c3_299, %c0_300, %c0_301] : memref<8x8x256xf32, #tpu.memory_space<vmem>>, vector<1x8x256xf32>
    %287 = vector.shape_cast %286 : vector<1x8x256xf32> to vector<8x256xf32>
    %288 = arith.mulf %285, %287 : vector<8x256xf32>
    %c24_302 = arith.constant 24 : index
    %c0_303 = arith.constant 0 : index
    %289 = vector.load %arg8[%c24_302, %c0_303] : memref<80x256xf32, #tpu.memory_space<vmem>>, vector<8x256xf32>
    tpu.vector_store %arg8[%c24_302, %c0_303], %288 {strides = array<i32>} : memref<80x256xf32, #tpu.memory_space<vmem>>, vector<8x256xf32>,
    %c32_304 = arith.constant 32 : index
    %c0_305 = arith.constant 0 : index
    %290 = vector.load %arg8[%c32_304, %c0_305] : memref<80x256xf32, #tpu.memory_space<vmem>>, vector<8x256xf32>
    tpu.vector_store %arg8[%c32_304, %c0_305], %269 {strides = array<i32>} : memref<80x256xf32, #tpu.memory_space<vmem>>, vector<8x256xf32>,
    %c255_i32_306 = arith.constant 255 : i32
    %291 = tpu.dynamic_rotate %269 by %c255_i32_306 dim 1 : vector<8x256xf32>, i32 -> vector<8x256xf32>
    %c4_307 = arith.constant 4 : index
    %c0_308 = arith.constant 0 : index
    %c0_309 = arith.constant 0 : index
    %292 = vector.load %arg6[%c4_307, %c0_308, %c0_309] : memref<8x8x256xf32, #tpu.memory_space<vmem>>, vector<1x8x256xf32>
    %293 = vector.shape_cast %292 : vector<1x8x256xf32> to vector<8x256xf32>
    %294 = arith.mulf %291, %293 : vector<8x256xf32>
    %c40_310 = arith.constant 40 : index
    %c0_311 = arith.constant 0 : index
    %295 = vector.load %arg8[%c40_310, %c0_311] : memref<80x256xf32, #tpu.memory_space<vmem>>, vector<8x256xf32>
    tpu.vector_store %arg8[%c40_310, %c0_311], %294 {strides = array<i32>} : memref<80x256xf32, #tpu.memory_space<vmem>>, vector<8x256xf32>,
    %c241_i32_312 = arith.constant 241 : i32
    %296 = tpu.dynamic_rotate %269 by %c241_i32_312 dim 1 : vector<8x256xf32>, i32 -> vector<8x256xf32>
    %c5_313 = arith.constant 5 : index
    %c0_314 = arith.constant 0 : index
    %c0_315 = arith.constant 0 : index
    %297 = vector.load %arg6[%c5_313, %c0_314, %c0_315] : memref<8x8x256xf32, #tpu.memory_space<vmem>>, vector<1x8x256xf32>
    %298 = vector.shape_cast %297 : vector<1x8x256xf32> to vector<8x256xf32>
    %299 = arith.mulf %296, %298 : vector<8x256xf32>
    %c48_316 = arith.constant 48 : index
    %c0_317 = arith.constant 0 : index
    %300 = vector.load %arg8[%c48_316, %c0_317] : memref<80x256xf32, #tpu.memory_space<vmem>>, vector<8x256xf32>
    tpu.vector_store %arg8[%c48_316, %c0_317], %299 {strides = array<i32>} : memref<80x256xf32, #tpu.memory_space<vmem>>, vector<8x256xf32>,
    %c240_i32_318 = arith.constant 240 : i32
    %301 = tpu.dynamic_rotate %269 by %c240_i32_318 dim 1 : vector<8x256xf32>, i32 -> vector<8x256xf32>
    %c6_319 = arith.constant 6 : index
    %c0_320 = arith.constant 0 : index
    %c0_321 = arith.constant 0 : index
    %302 = vector.load %arg6[%c6_319, %c0_320, %c0_321] : memref<8x8x256xf32, #tpu.memory_space<vmem>>, vector<1x8x256xf32>
    %303 = vector.shape_cast %302 : vector<1x8x256xf32> to vector<8x256xf32>
    %304 = arith.mulf %301, %303 : vector<8x256xf32>
    %c56_322 = arith.constant 56 : index
    %c0_323 = arith.constant 0 : index
    %305 = vector.load %arg8[%c56_322, %c0_323] : memref<80x256xf32, #tpu.memory_space<vmem>>, vector<8x256xf32>
    tpu.vector_store %arg8[%c56_322, %c0_323], %304 {strides = array<i32>} : memref<80x256xf32, #tpu.memory_space<vmem>>, vector<8x256xf32>,
    %c239_i32_324 = arith.constant 239 : i32
    %306 = tpu.dynamic_rotate %269 by %c239_i32_324 dim 1 : vector<8x256xf32>, i32 -> vector<8x256xf32>
    %c7_325 = arith.constant 7 : index
    %c0_326 = arith.constant 0 : index
    %c0_327 = arith.constant 0 : index
    %307 = vector.load %arg6[%c7_325, %c0_326, %c0_327] : memref<8x8x256xf32, #tpu.memory_space<vmem>>, vector<1x8x256xf32>
    %308 = vector.shape_cast %307 : vector<1x8x256xf32> to vector<8x256xf32>
    %309 = arith.mulf %306, %308 : vector<8x256xf32>
    %c64_328 = arith.constant 64 : index
    %c0_329 = arith.constant 0 : index
    %310 = vector.load %arg8[%c64_328, %c0_329] : memref<80x256xf32, #tpu.memory_space<vmem>>, vector<8x256xf32>
    tpu.vector_store %arg8[%c64_328, %c0_329], %309 {strides = array<i32>} : memref<80x256xf32, #tpu.memory_space<vmem>>, vector<8x256xf32>,
    %c5_330 = arith.constant 5 : index
    %c0_331 = arith.constant 0 : index
    %c0_332 = arith.constant 0 : index
    %311 = vector.load %arg5[%c5_330, %c0_331, %c0_332] : memref<6x8x80xbf16, #tpu.memory_space<vmem>>, vector<1x8x80xbf16>
    %312 = vector.shape_cast %311 : vector<1x8x80xbf16> to vector<8x80xbf16>
    %c0_333 = arith.constant 0 : index
    %c0_334 = arith.constant 0 : index
    %313 = vector.load %arg8[%c0_333, %c0_334] : memref<80x256xf32, #tpu.memory_space<vmem>>, vector<80x256xf32>
    %314 = arith.truncf %313 : vector<80x256xf32> to vector<80x256xbf16>
    %cst_335 = arith.constant dense<0.000000e+00> : vector<8x256xf32>
    %315 = tpu.matmul %312, %314, %cst_335 {dimension_numbers = #tpu.dot_dimension_numbers<[1], [0], [0], [1], [0, 0, 1, 1], [], []>} : vector<8x80xbf16>, vector<80x256xbf16>, vector<8x256xf32> -> vector<8x256xf32>
    %cst_336 = arith.constant 1.000000e+00 : f32
    %316 = vector.broadcast %cst_336 : f32 to vector<8x256xf32>
    %317 = arith.mulf %316, %315 : vector<8x256xf32>
    %318 = arith.subf %28, %317 : vector<8x256xf32>
    %319 = arith.truncf %1 : vector<8x256xf32> to vector<8x256xbf16>
    %cst_337 = arith.constant dense<0.000000e+00> : vector<8x128xf32>
    %320 = tpu.matmul %319, %3, %cst_337 {dimension_numbers = #tpu.dot_dimension_numbers<[1], [0], [0], [1], [0, 0, 1, 1], [], []>} : vector<8x256xbf16>, vector<256x128xbf16>, vector<8x128xf32> -> vector<8x128xf32>
    %321 = arith.subf %320, %0 : vector<8x128xf32>
    %cst_338 = arith.constant 1.000000e+00 : f32
    %322 = vector.broadcast %cst_338 : f32 to vector<8x128xf32>
    %323 = arith.mulf %322, %321 : vector<8x128xf32>
    %324 = arith.addf %14, %323 : vector<8x128xf32>
    %cst_339 = arith.constant 0.909090936 : f32
    %325 = vector.broadcast %cst_339 : f32 to vector<8x128xf32>
    %326 = arith.mulf %324, %325 : vector<8x128xf32>
    %327 = arith.truncf %326 : vector<8x128xf32> to vector<8x128xbf16>
    %cst_340 = arith.constant dense<0.000000e+00> : vector<8x256xf32>
    %328 = tpu.matmul %327, %4, %cst_340 {dimension_numbers = #tpu.dot_dimension_numbers<[1], [0], [0], [1], [0, 0, 1, 1], [], []>} : vector<8x128xbf16>, vector<128x256xbf16>, vector<8x256xf32> -> vector<8x256xf32>
    %329 = arith.addf %318, %328 : vector<8x256xf32>
    %330 = arith.subf %329, %18 : vector<8x256xf32>
    %cst_341 = arith.constant 5.000000e-02 : f32
    %331 = vector.broadcast %cst_341 : f32 to vector<8x256xf32>
    %332 = arith.mulf %331, %330 : vector<8x256xf32>
    %333 = arith.subf %1, %332 : vector<8x256xf32>
    %334 = arith.mulf %333, %25 : vector<8x256xf32>
    %cst_342 = arith.constant 2.000000e+00 : f32
    %335 = vector.broadcast %cst_342 : f32 to vector<8x256xf32>
    %336 = arith.mulf %335, %334 : vector<8x256xf32>
    %337 = arith.subf %336, %1 : vector<8x256xf32>
    %cst_343 = arith.constant 1.000000e+00 : f32
    %338 = vector.broadcast %cst_343 : f32 to vector<8x256xf32>
    %339 = arith.mulf %338, %337 : vector<8x256xf32>
    %340 = arith.addf %318, %339 : vector<8x256xf32>
    %cst_344 = arith.constant 1.000000e+00 : f32
    %341 = vector.broadcast %cst_344 : f32 to vector<8x256xf32>
    %342 = arith.mulf %318, %341 : vector<8x256xf32>
    %343 = arith.addf %342, %337 : vector<8x256xf32>
    %c17_i32_345 = arith.constant 17 : i32
    %344 = tpu.dynamic_rotate %343 by %c17_i32_345 dim 1 : vector<8x256xf32>, i32 -> vector<8x256xf32>
    %c0_346 = arith.constant 0 : index
    %c0_347 = arith.constant 0 : index
    %c0_348 = arith.constant 0 : index
    %345 = vector.load %arg6[%c0_346, %c0_347, %c0_348] : memref<8x8x256xf32, #tpu.memory_space<vmem>>, vector<1x8x256xf32>
    %346 = vector.shape_cast %345 : vector<1x8x256xf32> to vector<8x256xf32>
    %347 = arith.mulf %344, %346 : vector<8x256xf32>
    %c0_349 = arith.constant 0 : index
    %c0_350 = arith.constant 0 : index
    %348 = vector.load %arg8[%c0_349, %c0_350] : memref<80x256xf32, #tpu.memory_space<vmem>>, vector<8x256xf32>
    tpu.vector_store %arg8[%c0_349, %c0_350], %347 {strides = array<i32>} : memref<80x256xf32, #tpu.memory_space<vmem>>, vector<8x256xf32>,
    %c16_i32_351 = arith.constant 16 : i32
    %349 = tpu.dynamic_rotate %343 by %c16_i32_351 dim 1 : vector<8x256xf32>, i32 -> vector<8x256xf32>
    %c1_352 = arith.constant 1 : index
    %c0_353 = arith.constant 0 : index
    %c0_354 = arith.constant 0 : index
    %350 = vector.load %arg6[%c1_352, %c0_353, %c0_354] : memref<8x8x256xf32, #tpu.memory_space<vmem>>, vector<1x8x256xf32>
    %351 = vector.shape_cast %350 : vector<1x8x256xf32> to vector<8x256xf32>
    %352 = arith.mulf %349, %351 : vector<8x256xf32>
    %c8_355 = arith.constant 8 : index
    %c0_356 = arith.constant 0 : index
    %353 = vector.load %arg8[%c8_355, %c0_356] : memref<80x256xf32, #tpu.memory_space<vmem>>, vector<8x256xf32>
    tpu.vector_store %arg8[%c8_355, %c0_356], %352 {strides = array<i32>} : memref<80x256xf32, #tpu.memory_space<vmem>>, vector<8x256xf32>,
    %c15_i32_357 = arith.constant 15 : i32
    %354 = tpu.dynamic_rotate %343 by %c15_i32_357 dim 1 : vector<8x256xf32>, i32 -> vector<8x256xf32>
    %c2_358 = arith.constant 2 : index
    %c0_359 = arith.constant 0 : index
    %c0_360 = arith.constant 0 : index
    %355 = vector.load %arg6[%c2_358, %c0_359, %c0_360] : memref<8x8x256xf32, #tpu.memory_space<vmem>>, vector<1x8x256xf32>
    %356 = vector.shape_cast %355 : vector<1x8x256xf32> to vector<8x256xf32>
    %357 = arith.mulf %354, %356 : vector<8x256xf32>
    %c16_361 = arith.constant 16 : index
    %c0_362 = arith.constant 0 : index
    %358 = vector.load %arg8[%c16_361, %c0_362] : memref<80x256xf32, #tpu.memory_space<vmem>>, vector<8x256xf32>
    tpu.vector_store %arg8[%c16_361, %c0_362], %357 {strides = array<i32>} : memref<80x256xf32, #tpu.memory_space<vmem>>, vector<8x256xf32>,
    %c1_i32_363 = arith.constant 1 : i32
    %359 = tpu.dynamic_rotate %343 by %c1_i32_363 dim 1 : vector<8x256xf32>, i32 -> vector<8x256xf32>
    %c3_364 = arith.constant 3 : index
    %c0_365 = arith.constant 0 : index
    %c0_366 = arith.constant 0 : index
    %360 = vector.load %arg6[%c3_364, %c0_365, %c0_366] : memref<8x8x256xf32, #tpu.memory_space<vmem>>, vector<1x8x256xf32>
    %361 = vector.shape_cast %360 : vector<1x8x256xf32> to vector<8x256xf32>
    %362 = arith.mulf %359, %361 : vector<8x256xf32>
    %c24_367 = arith.constant 24 : index
    %c0_368 = arith.constant 0 : index
    %363 = vector.load %arg8[%c24_367, %c0_368] : memref<80x256xf32, #tpu.memory_space<vmem>>, vector<8x256xf32>
    tpu.vector_store %arg8[%c24_367, %c0_368], %362 {strides = array<i32>} : memref<80x256xf32, #tpu.memory_space<vmem>>, vector<8x256xf32>,
    %c32_369 = arith.constant 32 : index
    %c0_370 = arith.constant 0 : index
    %364 = vector.load %arg8[%c32_369, %c0_370] : memref<80x256xf32, #tpu.memory_space<vmem>>, vector<8x256xf32>
    tpu.vector_store %arg8[%c32_369, %c0_370], %343 {strides = array<i32>} : memref<80x256xf32, #tpu.memory_space<vmem>>, vector<8x256xf32>,
    %c255_i32_371 = arith.constant 255 : i32
    %365 = tpu.dynamic_rotate %343 by %c255_i32_371 dim 1 : vector<8x256xf32>, i32 -> vector<8x256xf32>
    %c4_372 = arith.constant 4 : index
    %c0_373 = arith.constant 0 : index
    %c0_374 = arith.constant 0 : index
    %366 = vector.load %arg6[%c4_372, %c0_373, %c0_374] : memref<8x8x256xf32, #tpu.memory_space<vmem>>, vector<1x8x256xf32>
    %367 = vector.shape_cast %366 : vector<1x8x256xf32> to vector<8x256xf32>
    %368 = arith.mulf %365, %367 : vector<8x256xf32>
    %c40_375 = arith.constant 40 : index
    %c0_376 = arith.constant 0 : index
    %369 = vector.load %arg8[%c40_375, %c0_376] : memref<80x256xf32, #tpu.memory_space<vmem>>, vector<8x256xf32>
    tpu.vector_store %arg8[%c40_375, %c0_376], %368 {strides = array<i32>} : memref<80x256xf32, #tpu.memory_space<vmem>>, vector<8x256xf32>,
    %c241_i32_377 = arith.constant 241 : i32
    %370 = tpu.dynamic_rotate %343 by %c241_i32_377 dim 1 : vector<8x256xf32>, i32 -> vector<8x256xf32>
    %c5_378 = arith.constant 5 : index
    %c0_379 = arith.constant 0 : index
    %c0_380 = arith.constant 0 : index
    %371 = vector.load %arg6[%c5_378, %c0_379, %c0_380] : memref<8x8x256xf32, #tpu.memory_space<vmem>>, vector<1x8x256xf32>
    %372 = vector.shape_cast %371 : vector<1x8x256xf32> to vector<8x256xf32>
    %373 = arith.mulf %370, %372 : vector<8x256xf32>
    %c48_381 = arith.constant 48 : index
    %c0_382 = arith.constant 0 : index
    %374 = vector.load %arg8[%c48_381, %c0_382] : memref<80x256xf32, #tpu.memory_space<vmem>>, vector<8x256xf32>
    tpu.vector_store %arg8[%c48_381, %c0_382], %373 {strides = array<i32>} : memref<80x256xf32, #tpu.memory_space<vmem>>, vector<8x256xf32>,
    %c240_i32_383 = arith.constant 240 : i32
    %375 = tpu.dynamic_rotate %343 by %c240_i32_383 dim 1 : vector<8x256xf32>, i32 -> vector<8x256xf32>
    %c6_384 = arith.constant 6 : index
    %c0_385 = arith.constant 0 : index
    %c0_386 = arith.constant 0 : index
    %376 = vector.load %arg6[%c6_384, %c0_385, %c0_386] : memref<8x8x256xf32, #tpu.memory_space<vmem>>, vector<1x8x256xf32>
    %377 = vector.shape_cast %376 : vector<1x8x256xf32> to vector<8x256xf32>
    %378 = arith.mulf %375, %377 : vector<8x256xf32>
    %c56_387 = arith.constant 56 : index
    %c0_388 = arith.constant 0 : index
    %379 = vector.load %arg8[%c56_387, %c0_388] : memref<80x256xf32, #tpu.memory_space<vmem>>, vector<8x256xf32>
    tpu.vector_store %arg8[%c56_387, %c0_388], %378 {strides = array<i32>} : memref<80x256xf32, #tpu.memory_space<vmem>>, vector<8x256xf32>,
    %c239_i32_389 = arith.constant 239 : i32
    %380 = tpu.dynamic_rotate %343 by %c239_i32_389 dim 1 : vector<8x256xf32>, i32 -> vector<8x256xf32>
    %c7_390 = arith.constant 7 : index
    %c0_391 = arith.constant 0 : index
    %c0_392 = arith.constant 0 : index
    %381 = vector.load %arg6[%c7_390, %c0_391, %c0_392] : memref<8x8x256xf32, #tpu.memory_space<vmem>>, vector<1x8x256xf32>
    %382 = vector.shape_cast %381 : vector<1x8x256xf32> to vector<8x256xf32>
    %383 = arith.mulf %380, %382 : vector<8x256xf32>
    %c64_393 = arith.constant 64 : index
    %c0_394 = arith.constant 0 : index
    %384 = vector.load %arg8[%c64_393, %c0_394] : memref<80x256xf32, #tpu.memory_space<vmem>>, vector<8x256xf32>
    tpu.vector_store %arg8[%c64_393, %c0_394], %383 {strides = array<i32>} : memref<80x256xf32, #tpu.memory_space<vmem>>, vector<8x256xf32>,
    %c0_395 = arith.constant 0 : index
    %c0_396 = arith.constant 0 : index
    %c0_397 = arith.constant 0 : index
    %385 = vector.load %arg5[%c0_395, %c0_396, %c0_397] : memref<6x8x80xbf16, #tpu.memory_space<vmem>>, vector<1x8x80xbf16>
    %386 = vector.shape_cast %385 : vector<1x8x80xbf16> to vector<8x80xbf16>
    %c0_398 = arith.constant 0 : index
    %c0_399 = arith.constant 0 : index
    %387 = vector.load %arg8[%c0_398, %c0_399] : memref<80x256xf32, #tpu.memory_space<vmem>>, vector<80x256xf32>
    %388 = arith.truncf %387 : vector<80x256xf32> to vector<80x256xbf16>
    %cst_400 = arith.constant dense<0.000000e+00> : vector<8x256xf32>
    %389 = tpu.matmul %386, %388, %cst_400 {dimension_numbers = #tpu.dot_dimension_numbers<[1], [0], [0], [1], [0, 0, 1, 1], [], []>} : vector<8x80xbf16>, vector<80x256xbf16>, vector<8x256xf32> -> vector<8x256xf32>
    %cst_401 = arith.constant 0.000000e+00 : f32
    %390 = vector.broadcast %cst_401 : f32 to vector<8x256xf32>
    %391 = arith.maximumf %389, %390 : vector<8x256xf32>
    %c17_i32_402 = arith.constant 17 : i32
    %392 = tpu.dynamic_rotate %391 by %c17_i32_402 dim 1 : vector<8x256xf32>, i32 -> vector<8x256xf32>
    %c0_403 = arith.constant 0 : index
    %c0_404 = arith.constant 0 : index
    %c0_405 = arith.constant 0 : index
    %393 = vector.load %arg6[%c0_403, %c0_404, %c0_405] : memref<8x8x256xf32, #tpu.memory_space<vmem>>, vector<1x8x256xf32>
    %394 = vector.shape_cast %393 : vector<1x8x256xf32> to vector<8x256xf32>
    %395 = arith.mulf %392, %394 : vector<8x256xf32>
    %c0_406 = arith.constant 0 : index
    %c0_407 = arith.constant 0 : index
    %396 = vector.load %arg8[%c0_406, %c0_407] : memref<80x256xf32, #tpu.memory_space<vmem>>, vector<8x256xf32>
    tpu.vector_store %arg8[%c0_406, %c0_407], %395 {strides = array<i32>} : memref<80x256xf32, #tpu.memory_space<vmem>>, vector<8x256xf32>,
    %c16_i32_408 = arith.constant 16 : i32
    %397 = tpu.dynamic_rotate %391 by %c16_i32_408 dim 1 : vector<8x256xf32>, i32 -> vector<8x256xf32>
    %c1_409 = arith.constant 1 : index
    %c0_410 = arith.constant 0 : index
    %c0_411 = arith.constant 0 : index
    %398 = vector.load %arg6[%c1_409, %c0_410, %c0_411] : memref<8x8x256xf32, #tpu.memory_space<vmem>>, vector<1x8x256xf32>
    %399 = vector.shape_cast %398 : vector<1x8x256xf32> to vector<8x256xf32>
    %400 = arith.mulf %397, %399 : vector<8x256xf32>
    %c8_412 = arith.constant 8 : index
    %c0_413 = arith.constant 0 : index
    %401 = vector.load %arg8[%c8_412, %c0_413] : memref<80x256xf32, #tpu.memory_space<vmem>>, vector<8x256xf32>
    tpu.vector_store %arg8[%c8_412, %c0_413], %400 {strides = array<i32>} : memref<80x256xf32, #tpu.memory_space<vmem>>, vector<8x256xf32>,
    %c15_i32_414 = arith.constant 15 : i32
    %402 = tpu.dynamic_rotate %391 by %c15_i32_414 dim 1 : vector<8x256xf32>, i32 -> vector<8x256xf32>
    %c2_415 = arith.constant 2 : index
    %c0_416 = arith.constant 0 : index
    %c0_417 = arith.constant 0 : index
    %403 = vector.load %arg6[%c2_415, %c0_416, %c0_417] : memref<8x8x256xf32, #tpu.memory_space<vmem>>, vector<1x8x256xf32>
    %404 = vector.shape_cast %403 : vector<1x8x256xf32> to vector<8x256xf32>
    %405 = arith.mulf %402, %404 : vector<8x256xf32>
    %c16_418 = arith.constant 16 : index
    %c0_419 = arith.constant 0 : index
    %406 = vector.load %arg8[%c16_418, %c0_419] : memref<80x256xf32, #tpu.memory_space<vmem>>, vector<8x256xf32>
    tpu.vector_store %arg8[%c16_418, %c0_419], %405 {strides = array<i32>} : memref<80x256xf32, #tpu.memory_space<vmem>>, vector<8x256xf32>,
    %c1_i32_420 = arith.constant 1 : i32
    %407 = tpu.dynamic_rotate %391 by %c1_i32_420 dim 1 : vector<8x256xf32>, i32 -> vector<8x256xf32>
    %c3_421 = arith.constant 3 : index
    %c0_422 = arith.constant 0 : index
    %c0_423 = arith.constant 0 : index
    %408 = vector.load %arg6[%c3_421, %c0_422, %c0_423] : memref<8x8x256xf32, #tpu.memory_space<vmem>>, vector<1x8x256xf32>
    %409 = vector.shape_cast %408 : vector<1x8x256xf32> to vector<8x256xf32>
    %410 = arith.mulf %407, %409 : vector<8x256xf32>
    %c24_424 = arith.constant 24 : index
    %c0_425 = arith.constant 0 : index
    %411 = vector.load %arg8[%c24_424, %c0_425] : memref<80x256xf32, #tpu.memory_space<vmem>>, vector<8x256xf32>
    tpu.vector_store %arg8[%c24_424, %c0_425], %410 {strides = array<i32>} : memref<80x256xf32, #tpu.memory_space<vmem>>, vector<8x256xf32>,
    %c32_426 = arith.constant 32 : index
    %c0_427 = arith.constant 0 : index
    %412 = vector.load %arg8[%c32_426, %c0_427] : memref<80x256xf32, #tpu.memory_space<vmem>>, vector<8x256xf32>
    tpu.vector_store %arg8[%c32_426, %c0_427], %391 {strides = array<i32>} : memref<80x256xf32, #tpu.memory_space<vmem>>, vector<8x256xf32>,
    %c255_i32_428 = arith.constant 255 : i32
    %413 = tpu.dynamic_rotate %391 by %c255_i32_428 dim 1 : vector<8x256xf32>, i32 -> vector<8x256xf32>
    %c4_429 = arith.constant 4 : index
    %c0_430 = arith.constant 0 : index
    %c0_431 = arith.constant 0 : index
    %414 = vector.load %arg6[%c4_429, %c0_430, %c0_431] : memref<8x8x256xf32, #tpu.memory_space<vmem>>, vector<1x8x256xf32>
    %415 = vector.shape_cast %414 : vector<1x8x256xf32> to vector<8x256xf32>
    %416 = arith.mulf %413, %415 : vector<8x256xf32>
    %c40_432 = arith.constant 40 : index
    %c0_433 = arith.constant 0 : index
    %417 = vector.load %arg8[%c40_432, %c0_433] : memref<80x256xf32, #tpu.memory_space<vmem>>, vector<8x256xf32>
    tpu.vector_store %arg8[%c40_432, %c0_433], %416 {strides = array<i32>} : memref<80x256xf32, #tpu.memory_space<vmem>>, vector<8x256xf32>,
    %c241_i32_434 = arith.constant 241 : i32
    %418 = tpu.dynamic_rotate %391 by %c241_i32_434 dim 1 : vector<8x256xf32>, i32 -> vector<8x256xf32>
    %c5_435 = arith.constant 5 : index
    %c0_436 = arith.constant 0 : index
    %c0_437 = arith.constant 0 : index
    %419 = vector.load %arg6[%c5_435, %c0_436, %c0_437] : memref<8x8x256xf32, #tpu.memory_space<vmem>>, vector<1x8x256xf32>
    %420 = vector.shape_cast %419 : vector<1x8x256xf32> to vector<8x256xf32>
    %421 = arith.mulf %418, %420 : vector<8x256xf32>
    %c48_438 = arith.constant 48 : index
    %c0_439 = arith.constant 0 : index
    %422 = vector.load %arg8[%c48_438, %c0_439] : memref<80x256xf32, #tpu.memory_space<vmem>>, vector<8x256xf32>
    tpu.vector_store %arg8[%c48_438, %c0_439], %421 {strides = array<i32>} : memref<80x256xf32, #tpu.memory_space<vmem>>, vector<8x256xf32>,
    %c240_i32_440 = arith.constant 240 : i32
    %423 = tpu.dynamic_rotate %391 by %c240_i32_440 dim 1 : vector<8x256xf32>, i32 -> vector<8x256xf32>
    %c6_441 = arith.constant 6 : index
    %c0_442 = arith.constant 0 : index
    %c0_443 = arith.constant 0 : index
    %424 = vector.load %arg6[%c6_441, %c0_442, %c0_443] : memref<8x8x256xf32, #tpu.memory_space<vmem>>, vector<1x8x256xf32>
    %425 = vector.shape_cast %424 : vector<1x8x256xf32> to vector<8x256xf32>
    %426 = arith.mulf %423, %425 : vector<8x256xf32>
    %c56_444 = arith.constant 56 : index
    %c0_445 = arith.constant 0 : index
    %427 = vector.load %arg8[%c56_444, %c0_445] : memref<80x256xf32, #tpu.memory_space<vmem>>, vector<8x256xf32>
    tpu.vector_store %arg8[%c56_444, %c0_445], %426 {strides = array<i32>} : memref<80x256xf32, #tpu.memory_space<vmem>>, vector<8x256xf32>,
    %c239_i32_446 = arith.constant 239 : i32
    %428 = tpu.dynamic_rotate %391 by %c239_i32_446 dim 1 : vector<8x256xf32>, i32 -> vector<8x256xf32>
    %c7_447 = arith.constant 7 : index
    %c0_448 = arith.constant 0 : index
    %c0_449 = arith.constant 0 : index
    %429 = vector.load %arg6[%c7_447, %c0_448, %c0_449] : memref<8x8x256xf32, #tpu.memory_space<vmem>>, vector<1x8x256xf32>
    %430 = vector.shape_cast %429 : vector<1x8x256xf32> to vector<8x256xf32>
    %431 = arith.mulf %428, %430 : vector<8x256xf32>
    %c64_450 = arith.constant 64 : index
    %c0_451 = arith.constant 0 : index
    %432 = vector.load %arg8[%c64_450, %c0_451] : memref<80x256xf32, #tpu.memory_space<vmem>>, vector<8x256xf32>
    tpu.vector_store %arg8[%c64_450, %c0_451], %431 {strides = array<i32>} : memref<80x256xf32, #tpu.memory_space<vmem>>, vector<8x256xf32>,
    %c1_452 = arith.constant 1 : index
    %c0_453 = arith.constant 0 : index
    %c0_454 = arith.constant 0 : index
    %433 = vector.load %arg5[%c1_452, %c0_453, %c0_454] : memref<6x8x80xbf16, #tpu.memory_space<vmem>>, vector<1x8x80xbf16>
    %434 = vector.shape_cast %433 : vector<1x8x80xbf16> to vector<8x80xbf16>
    %c0_455 = arith.constant 0 : index
    %c0_456 = arith.constant 0 : index
    %435 = vector.load %arg8[%c0_455, %c0_456] : memref<80x256xf32, #tpu.memory_space<vmem>>, vector<80x256xf32>
    %436 = arith.truncf %435 : vector<80x256xf32> to vector<80x256xbf16>
    %cst_457 = arith.constant dense<0.000000e+00> : vector<8x256xf32>
    %437 = tpu.matmul %434, %436, %cst_457 {dimension_numbers = #tpu.dot_dimension_numbers<[1], [0], [0], [1], [0, 0, 1, 1], [], []>} : vector<8x80xbf16>, vector<80x256xbf16>, vector<8x256xf32> -> vector<8x256xf32>
    %cst_458 = arith.constant 0.000000e+00 : f32
    %438 = vector.broadcast %cst_458 : f32 to vector<8x256xf32>
    %439 = arith.maximumf %437, %438 : vector<8x256xf32>
    %c17_i32_459 = arith.constant 17 : i32
    %440 = tpu.dynamic_rotate %439 by %c17_i32_459 dim 1 : vector<8x256xf32>, i32 -> vector<8x256xf32>
    %c0_460 = arith.constant 0 : index
    %c0_461 = arith.constant 0 : index
    %c0_462 = arith.constant 0 : index
    %441 = vector.load %arg6[%c0_460, %c0_461, %c0_462] : memref<8x8x256xf32, #tpu.memory_space<vmem>>, vector<1x8x256xf32>
    %442 = vector.shape_cast %441 : vector<1x8x256xf32> to vector<8x256xf32>
    %443 = arith.mulf %440, %442 : vector<8x256xf32>
    %c0_463 = arith.constant 0 : index
    %c0_464 = arith.constant 0 : index
    %444 = vector.load %arg8[%c0_463, %c0_464] : memref<80x256xf32, #tpu.memory_space<vmem>>, vector<8x256xf32>
    tpu.vector_store %arg8[%c0_463, %c0_464], %443 {strides = array<i32>} : memref<80x256xf32, #tpu.memory_space<vmem>>, vector<8x256xf32>,
    %c16_i32_465 = arith.constant 16 : i32
    %445 = tpu.dynamic_rotate %439 by %c16_i32_465 dim 1 : vector<8x256xf32>, i32 -> vector<8x256xf32>
    %c1_466 = arith.constant 1 : index
    %c0_467 = arith.constant 0 : index
    %c0_468 = arith.constant 0 : index
    %446 = vector.load %arg6[%c1_466, %c0_467, %c0_468] : memref<8x8x256xf32, #tpu.memory_space<vmem>>, vector<1x8x256xf32>
    %447 = vector.shape_cast %446 : vector<1x8x256xf32> to vector<8x256xf32>
    %448 = arith.mulf %445, %447 : vector<8x256xf32>
    %c8_469 = arith.constant 8 : index
    %c0_470 = arith.constant 0 : index
    %449 = vector.load %arg8[%c8_469, %c0_470] : memref<80x256xf32, #tpu.memory_space<vmem>>, vector<8x256xf32>
    tpu.vector_store %arg8[%c8_469, %c0_470], %448 {strides = array<i32>} : memref<80x256xf32, #tpu.memory_space<vmem>>, vector<8x256xf32>,
    %c15_i32_471 = arith.constant 15 : i32
    %450 = tpu.dynamic_rotate %439 by %c15_i32_471 dim 1 : vector<8x256xf32>, i32 -> vector<8x256xf32>
    %c2_472 = arith.constant 2 : index
    %c0_473 = arith.constant 0 : index
    %c0_474 = arith.constant 0 : index
    %451 = vector.load %arg6[%c2_472, %c0_473, %c0_474] : memref<8x8x256xf32, #tpu.memory_space<vmem>>, vector<1x8x256xf32>
    %452 = vector.shape_cast %451 : vector<1x8x256xf32> to vector<8x256xf32>
    %453 = arith.mulf %450, %452 : vector<8x256xf32>
    %c16_475 = arith.constant 16 : index
    %c0_476 = arith.constant 0 : index
    %454 = vector.load %arg8[%c16_475, %c0_476] : memref<80x256xf32, #tpu.memory_space<vmem>>, vector<8x256xf32>
    tpu.vector_store %arg8[%c16_475, %c0_476], %453 {strides = array<i32>} : memref<80x256xf32, #tpu.memory_space<vmem>>, vector<8x256xf32>,
    %c1_i32_477 = arith.constant 1 : i32
    %455 = tpu.dynamic_rotate %439 by %c1_i32_477 dim 1 : vector<8x256xf32>, i32 -> vector<8x256xf32>
    %c3_478 = arith.constant 3 : index
    %c0_479 = arith.constant 0 : index
    %c0_480 = arith.constant 0 : index
    %456 = vector.load %arg6[%c3_478, %c0_479, %c0_480] : memref<8x8x256xf32, #tpu.memory_space<vmem>>, vector<1x8x256xf32>
    %457 = vector.shape_cast %456 : vector<1x8x256xf32> to vector<8x256xf32>
    %458 = arith.mulf %455, %457 : vector<8x256xf32>
    %c24_481 = arith.constant 24 : index
    %c0_482 = arith.constant 0 : index
    %459 = vector.load %arg8[%c24_481, %c0_482] : memref<80x256xf32, #tpu.memory_space<vmem>>, vector<8x256xf32>
    tpu.vector_store %arg8[%c24_481, %c0_482], %458 {strides = array<i32>} : memref<80x256xf32, #tpu.memory_space<vmem>>, vector<8x256xf32>,
    %c32_483 = arith.constant 32 : index
    %c0_484 = arith.constant 0 : index
    %460 = vector.load %arg8[%c32_483, %c0_484] : memref<80x256xf32, #tpu.memory_space<vmem>>, vector<8x256xf32>
    tpu.vector_store %arg8[%c32_483, %c0_484], %439 {strides = array<i32>} : memref<80x256xf32, #tpu.memory_space<vmem>>, vector<8x256xf32>,
    %c255_i32_485 = arith.constant 255 : i32
    %461 = tpu.dynamic_rotate %439 by %c255_i32_485 dim 1 : vector<8x256xf32>, i32 -> vector<8x256xf32>
    %c4_486 = arith.constant 4 : index
    %c0_487 = arith.constant 0 : index
    %c0_488 = arith.constant 0 : index
    %462 = vector.load %arg6[%c4_486, %c0_487, %c0_488] : memref<8x8x256xf32, #tpu.memory_space<vmem>>, vector<1x8x256xf32>
    %463 = vector.shape_cast %462 : vector<1x8x256xf32> to vector<8x256xf32>
    %464 = arith.mulf %461, %463 : vector<8x256xf32>
    %c40_489 = arith.constant 40 : index
    %c0_490 = arith.constant 0 : index
    %465 = vector.load %arg8[%c40_489, %c0_490] : memref<80x256xf32, #tpu.memory_space<vmem>>, vector<8x256xf32>
    tpu.vector_store %arg8[%c40_489, %c0_490], %464 {strides = array<i32>} : memref<80x256xf32, #tpu.memory_space<vmem>>, vector<8x256xf32>,
    %c241_i32_491 = arith.constant 241 : i32
    %466 = tpu.dynamic_rotate %439 by %c241_i32_491 dim 1 : vector<8x256xf32>, i32 -> vector<8x256xf32>
    %c5_492 = arith.constant 5 : index
    %c0_493 = arith.constant 0 : index
    %c0_494 = arith.constant 0 : index
    %467 = vector.load %arg6[%c5_492, %c0_493, %c0_494] : memref<8x8x256xf32, #tpu.memory_space<vmem>>, vector<1x8x256xf32>
    %468 = vector.shape_cast %467 : vector<1x8x256xf32> to vector<8x256xf32>
    %469 = arith.mulf %466, %468 : vector<8x256xf32>
    %c48_495 = arith.constant 48 : index
    %c0_496 = arith.constant 0 : index
    %470 = vector.load %arg8[%c48_495, %c0_496] : memref<80x256xf32, #tpu.memory_space<vmem>>, vector<8x256xf32>
    tpu.vector_store %arg8[%c48_495, %c0_496], %469 {strides = array<i32>} : memref<80x256xf32, #tpu.memory_space<vmem>>, vector<8x256xf32>,
    %c240_i32_497 = arith.constant 240 : i32
    %471 = tpu.dynamic_rotate %439 by %c240_i32_497 dim 1 : vector<8x256xf32>, i32 -> vector<8x256xf32>
    %c6_498 = arith.constant 6 : index
    %c0_499 = arith.constant 0 : index
    %c0_500 = arith.constant 0 : index
    %472 = vector.load %arg6[%c6_498, %c0_499, %c0_500] : memref<8x8x256xf32, #tpu.memory_space<vmem>>, vector<1x8x256xf32>
    %473 = vector.shape_cast %472 : vector<1x8x256xf32> to vector<8x256xf32>
    %474 = arith.mulf %471, %473 : vector<8x256xf32>
    %c56_501 = arith.constant 56 : index
    %c0_502 = arith.constant 0 : index
    %475 = vector.load %arg8[%c56_501, %c0_502] : memref<80x256xf32, #tpu.memory_space<vmem>>, vector<8x256xf32>
    tpu.vector_store %arg8[%c56_501, %c0_502], %474 {strides = array<i32>} : memref<80x256xf32, #tpu.memory_space<vmem>>, vector<8x256xf32>,
    %c239_i32_503 = arith.constant 239 : i32
    %476 = tpu.dynamic_rotate %439 by %c239_i32_503 dim 1 : vector<8x256xf32>, i32 -> vector<8x256xf32>
    %c7_504 = arith.constant 7 : index
    %c0_505 = arith.constant 0 : index
    %c0_506 = arith.constant 0 : index
    %477 = vector.load %arg6[%c7_504, %c0_505, %c0_506] : memref<8x8x256xf32, #tpu.memory_space<vmem>>, vector<1x8x256xf32>
    %478 = vector.shape_cast %477 : vector<1x8x256xf32> to vector<8x256xf32>
    %479 = arith.mulf %476, %478 : vector<8x256xf32>
    %c64_507 = arith.constant 64 : index
    %c0_508 = arith.constant 0 : index
    %480 = vector.load %arg8[%c64_507, %c0_508] : memref<80x256xf32, #tpu.memory_space<vmem>>, vector<8x256xf32>
    tpu.vector_store %arg8[%c64_507, %c0_508], %479 {strides = array<i32>} : memref<80x256xf32, #tpu.memory_space<vmem>>, vector<8x256xf32>,
    %c2_509 = arith.constant 2 : index
    %c0_510 = arith.constant 0 : index
    %c0_511 = arith.constant 0 : index
    %481 = vector.load %arg5[%c2_509, %c0_510, %c0_511] : memref<6x8x80xbf16, #tpu.memory_space<vmem>>, vector<1x8x80xbf16>
    %482 = vector.shape_cast %481 : vector<1x8x80xbf16> to vector<8x80xbf16>
    %c0_512 = arith.constant 0 : index
    %c0_513 = arith.constant 0 : index
    %483 = vector.load %arg8[%c0_512, %c0_513] : memref<80x256xf32, #tpu.memory_space<vmem>>, vector<80x256xf32>
    %484 = arith.truncf %483 : vector<80x256xf32> to vector<80x256xbf16>
    %cst_514 = arith.constant dense<0.000000e+00> : vector<8x256xf32>
    %485 = tpu.matmul %482, %484, %cst_514 {dimension_numbers = #tpu.dot_dimension_numbers<[1], [0], [0], [1], [0, 0, 1, 1], [], []>} : vector<8x80xbf16>, vector<80x256xbf16>, vector<8x256xf32> -> vector<8x256xf32>
    %486 = arith.addf %391, %485 : vector<8x256xf32>
    %c17_i32_515 = arith.constant 17 : i32
    %487 = tpu.dynamic_rotate %486 by %c17_i32_515 dim 1 : vector<8x256xf32>, i32 -> vector<8x256xf32>
    %c0_516 = arith.constant 0 : index
    %c0_517 = arith.constant 0 : index
    %c0_518 = arith.constant 0 : index
    %488 = vector.load %arg6[%c0_516, %c0_517, %c0_518] : memref<8x8x256xf32, #tpu.memory_space<vmem>>, vector<1x8x256xf32>
    %489 = vector.shape_cast %488 : vector<1x8x256xf32> to vector<8x256xf32>
    %490 = arith.mulf %487, %489 : vector<8x256xf32>
    %c0_519 = arith.constant 0 : index
    %c0_520 = arith.constant 0 : index
    %491 = vector.load %arg8[%c0_519, %c0_520] : memref<80x256xf32, #tpu.memory_space<vmem>>, vector<8x256xf32>
    tpu.vector_store %arg8[%c0_519, %c0_520], %490 {strides = array<i32>} : memref<80x256xf32, #tpu.memory_space<vmem>>, vector<8x256xf32>,
    %c16_i32_521 = arith.constant 16 : i32
    %492 = tpu.dynamic_rotate %486 by %c16_i32_521 dim 1 : vector<8x256xf32>, i32 -> vector<8x256xf32>
    %c1_522 = arith.constant 1 : index
    %c0_523 = arith.constant 0 : index
    %c0_524 = arith.constant 0 : index
    %493 = vector.load %arg6[%c1_522, %c0_523, %c0_524] : memref<8x8x256xf32, #tpu.memory_space<vmem>>, vector<1x8x256xf32>
    %494 = vector.shape_cast %493 : vector<1x8x256xf32> to vector<8x256xf32>
    %495 = arith.mulf %492, %494 : vector<8x256xf32>
    %c8_525 = arith.constant 8 : index
    %c0_526 = arith.constant 0 : index
    %496 = vector.load %arg8[%c8_525, %c0_526] : memref<80x256xf32, #tpu.memory_space<vmem>>, vector<8x256xf32>
    tpu.vector_store %arg8[%c8_525, %c0_526], %495 {strides = array<i32>} : memref<80x256xf32, #tpu.memory_space<vmem>>, vector<8x256xf32>,
    %c15_i32_527 = arith.constant 15 : i32
    %497 = tpu.dynamic_rotate %486 by %c15_i32_527 dim 1 : vector<8x256xf32>, i32 -> vector<8x256xf32>
    %c2_528 = arith.constant 2 : index
    %c0_529 = arith.constant 0 : index
    %c0_530 = arith.constant 0 : index
    %498 = vector.load %arg6[%c2_528, %c0_529, %c0_530] : memref<8x8x256xf32, #tpu.memory_space<vmem>>, vector<1x8x256xf32>
    %499 = vector.shape_cast %498 : vector<1x8x256xf32> to vector<8x256xf32>
    %500 = arith.mulf %497, %499 : vector<8x256xf32>
    %c16_531 = arith.constant 16 : index
    %c0_532 = arith.constant 0 : index
    %501 = vector.load %arg8[%c16_531, %c0_532] : memref<80x256xf32, #tpu.memory_space<vmem>>, vector<8x256xf32>
    tpu.vector_store %arg8[%c16_531, %c0_532], %500 {strides = array<i32>} : memref<80x256xf32, #tpu.memory_space<vmem>>, vector<8x256xf32>,
    %c1_i32_533 = arith.constant 1 : i32
    %502 = tpu.dynamic_rotate %486 by %c1_i32_533 dim 1 : vector<8x256xf32>, i32 -> vector<8x256xf32>
    %c3_534 = arith.constant 3 : index
    %c0_535 = arith.constant 0 : index
    %c0_536 = arith.constant 0 : index
    %503 = vector.load %arg6[%c3_534, %c0_535, %c0_536] : memref<8x8x256xf32, #tpu.memory_space<vmem>>, vector<1x8x256xf32>
    %504 = vector.shape_cast %503 : vector<1x8x256xf32> to vector<8x256xf32>
    %505 = arith.mulf %502, %504 : vector<8x256xf32>
    %c24_537 = arith.constant 24 : index
    %c0_538 = arith.constant 0 : index
    %506 = vector.load %arg8[%c24_537, %c0_538] : memref<80x256xf32, #tpu.memory_space<vmem>>, vector<8x256xf32>
    tpu.vector_store %arg8[%c24_537, %c0_538], %505 {strides = array<i32>} : memref<80x256xf32, #tpu.memory_space<vmem>>, vector<8x256xf32>,
    %c32_539 = arith.constant 32 : index
    %c0_540 = arith.constant 0 : index
    %507 = vector.load %arg8[%c32_539, %c0_540] : memref<80x256xf32, #tpu.memory_space<vmem>>, vector<8x256xf32>
    tpu.vector_store %arg8[%c32_539, %c0_540], %486 {strides = array<i32>} : memref<80x256xf32, #tpu.memory_space<vmem>>, vector<8x256xf32>,
    %c255_i32_541 = arith.constant 255 : i32
    %508 = tpu.dynamic_rotate %486 by %c255_i32_541 dim 1 : vector<8x256xf32>, i32 -> vector<8x256xf32>
    %c4_542 = arith.constant 4 : index
    %c0_543 = arith.constant 0 : index
    %c0_544 = arith.constant 0 : index
    %509 = vector.load %arg6[%c4_542, %c0_543, %c0_544] : memref<8x8x256xf32, #tpu.memory_space<vmem>>, vector<1x8x256xf32>
    %510 = vector.shape_cast %509 : vector<1x8x256xf32> to vector<8x256xf32>
    %511 = arith.mulf %508, %510 : vector<8x256xf32>
    %c40_545 = arith.constant 40 : index
    %c0_546 = arith.constant 0 : index
    %512 = vector.load %arg8[%c40_545, %c0_546] : memref<80x256xf32, #tpu.memory_space<vmem>>, vector<8x256xf32>
    tpu.vector_store %arg8[%c40_545, %c0_546], %511 {strides = array<i32>} : memref<80x256xf32, #tpu.memory_space<vmem>>, vector<8x256xf32>,
    %c241_i32_547 = arith.constant 241 : i32
    %513 = tpu.dynamic_rotate %486 by %c241_i32_547 dim 1 : vector<8x256xf32>, i32 -> vector<8x256xf32>
    %c5_548 = arith.constant 5 : index
    %c0_549 = arith.constant 0 : index
    %c0_550 = arith.constant 0 : index
    %514 = vector.load %arg6[%c5_548, %c0_549, %c0_550] : memref<8x8x256xf32, #tpu.memory_space<vmem>>, vector<1x8x256xf32>
    %515 = vector.shape_cast %514 : vector<1x8x256xf32> to vector<8x256xf32>
    %516 = arith.mulf %513, %515 : vector<8x256xf32>
    %c48_551 = arith.constant 48 : index
    %c0_552 = arith.constant 0 : index
    %517 = vector.load %arg8[%c48_551, %c0_552] : memref<80x256xf32, #tpu.memory_space<vmem>>, vector<8x256xf32>
    tpu.vector_store %arg8[%c48_551, %c0_552], %516 {strides = array<i32>} : memref<80x256xf32, #tpu.memory_space<vmem>>, vector<8x256xf32>,
    %c240_i32_553 = arith.constant 240 : i32
    %518 = tpu.dynamic_rotate %486 by %c240_i32_553 dim 1 : vector<8x256xf32>, i32 -> vector<8x256xf32>
    %c6_554 = arith.constant 6 : index
    %c0_555 = arith.constant 0 : index
    %c0_556 = arith.constant 0 : index
    %519 = vector.load %arg6[%c6_554, %c0_555, %c0_556] : memref<8x8x256xf32, #tpu.memory_space<vmem>>, vector<1x8x256xf32>
    %520 = vector.shape_cast %519 : vector<1x8x256xf32> to vector<8x256xf32>
    %521 = arith.mulf %518, %520 : vector<8x256xf32>
    %c56_557 = arith.constant 56 : index
    %c0_558 = arith.constant 0 : index
    %522 = vector.load %arg8[%c56_557, %c0_558] : memref<80x256xf32, #tpu.memory_space<vmem>>, vector<8x256xf32>
    tpu.vector_store %arg8[%c56_557, %c0_558], %521 {strides = array<i32>} : memref<80x256xf32, #tpu.memory_space<vmem>>, vector<8x256xf32>,
    %c239_i32_559 = arith.constant 239 : i32
    %523 = tpu.dynamic_rotate %486 by %c239_i32_559 dim 1 : vector<8x256xf32>, i32 -> vector<8x256xf32>
    %c7_560 = arith.constant 7 : index
    %c0_561 = arith.constant 0 : index
    %c0_562 = arith.constant 0 : index
    %524 = vector.load %arg6[%c7_560, %c0_561, %c0_562] : memref<8x8x256xf32, #tpu.memory_space<vmem>>, vector<1x8x256xf32>
    %525 = vector.shape_cast %524 : vector<1x8x256xf32> to vector<8x256xf32>
    %526 = arith.mulf %523, %525 : vector<8x256xf32>
    %c64_563 = arith.constant 64 : index
    %c0_564 = arith.constant 0 : index
    %527 = vector.load %arg8[%c64_563, %c0_564] : memref<80x256xf32, #tpu.memory_space<vmem>>, vector<8x256xf32>
    tpu.vector_store %arg8[%c64_563, %c0_564], %526 {strides = array<i32>} : memref<80x256xf32, #tpu.memory_space<vmem>>, vector<8x256xf32>,
    %c3_565 = arith.constant 3 : index
    %c0_566 = arith.constant 0 : index
    %c0_567 = arith.constant 0 : index
    %528 = vector.load %arg5[%c3_565, %c0_566, %c0_567] : memref<6x8x80xbf16, #tpu.memory_space<vmem>>, vector<1x8x80xbf16>
    %529 = vector.shape_cast %528 : vector<1x8x80xbf16> to vector<8x80xbf16>
    %c0_568 = arith.constant 0 : index
    %c0_569 = arith.constant 0 : index
    %530 = vector.load %arg8[%c0_568, %c0_569] : memref<80x256xf32, #tpu.memory_space<vmem>>, vector<80x256xf32>
    %531 = arith.truncf %530 : vector<80x256xf32> to vector<80x256xbf16>
    %cst_570 = arith.constant dense<0.000000e+00> : vector<8x256xf32>
    %532 = tpu.matmul %529, %531, %cst_570 {dimension_numbers = #tpu.dot_dimension_numbers<[1], [0], [0], [1], [0, 0, 1, 1], [], []>} : vector<8x80xbf16>, vector<80x256xbf16>, vector<8x256xf32> -> vector<8x256xf32>
    %cst_571 = arith.constant 0.000000e+00 : f32
    %533 = vector.broadcast %cst_571 : f32 to vector<8x256xf32>
    %534 = arith.maximumf %532, %533 : vector<8x256xf32>
    %c17_i32_572 = arith.constant 17 : i32
    %535 = tpu.dynamic_rotate %534 by %c17_i32_572 dim 1 : vector<8x256xf32>, i32 -> vector<8x256xf32>
    %c0_573 = arith.constant 0 : index
    %c0_574 = arith.constant 0 : index
    %c0_575 = arith.constant 0 : index
    %536 = vector.load %arg6[%c0_573, %c0_574, %c0_575] : memref<8x8x256xf32, #tpu.memory_space<vmem>>, vector<1x8x256xf32>
    %537 = vector.shape_cast %536 : vector<1x8x256xf32> to vector<8x256xf32>
    %538 = arith.mulf %535, %537 : vector<8x256xf32>
    %c0_576 = arith.constant 0 : index
    %c0_577 = arith.constant 0 : index
    %539 = vector.load %arg8[%c0_576, %c0_577] : memref<80x256xf32, #tpu.memory_space<vmem>>, vector<8x256xf32>
    tpu.vector_store %arg8[%c0_576, %c0_577], %538 {strides = array<i32>} : memref<80x256xf32, #tpu.memory_space<vmem>>, vector<8x256xf32>,
    %c16_i32_578 = arith.constant 16 : i32
    %540 = tpu.dynamic_rotate %534 by %c16_i32_578 dim 1 : vector<8x256xf32>, i32 -> vector<8x256xf32>
    %c1_579 = arith.constant 1 : index
    %c0_580 = arith.constant 0 : index
    %c0_581 = arith.constant 0 : index
    %541 = vector.load %arg6[%c1_579, %c0_580, %c0_581] : memref<8x8x256xf32, #tpu.memory_space<vmem>>, vector<1x8x256xf32>
    %542 = vector.shape_cast %541 : vector<1x8x256xf32> to vector<8x256xf32>
    %543 = arith.mulf %540, %542 : vector<8x256xf32>
    %c8_582 = arith.constant 8 : index
    %c0_583 = arith.constant 0 : index
    %544 = vector.load %arg8[%c8_582, %c0_583] : memref<80x256xf32, #tpu.memory_space<vmem>>, vector<8x256xf32>
    tpu.vector_store %arg8[%c8_582, %c0_583], %543 {strides = array<i32>} : memref<80x256xf32, #tpu.memory_space<vmem>>, vector<8x256xf32>,
    %c15_i32_584 = arith.constant 15 : i32
    %545 = tpu.dynamic_rotate %534 by %c15_i32_584 dim 1 : vector<8x256xf32>, i32 -> vector<8x256xf32>
    %c2_585 = arith.constant 2 : index
    %c0_586 = arith.constant 0 : index
    %c0_587 = arith.constant 0 : index
    %546 = vector.load %arg6[%c2_585, %c0_586, %c0_587] : memref<8x8x256xf32, #tpu.memory_space<vmem>>, vector<1x8x256xf32>
    %547 = vector.shape_cast %546 : vector<1x8x256xf32> to vector<8x256xf32>
    %548 = arith.mulf %545, %547 : vector<8x256xf32>
    %c16_588 = arith.constant 16 : index
    %c0_589 = arith.constant 0 : index
    %549 = vector.load %arg8[%c16_588, %c0_589] : memref<80x256xf32, #tpu.memory_space<vmem>>, vector<8x256xf32>
    tpu.vector_store %arg8[%c16_588, %c0_589], %548 {strides = array<i32>} : memref<80x256xf32, #tpu.memory_space<vmem>>, vector<8x256xf32>,
    %c1_i32_590 = arith.constant 1 : i32
    %550 = tpu.dynamic_rotate %534 by %c1_i32_590 dim 1 : vector<8x256xf32>, i32 -> vector<8x256xf32>
    %c3_591 = arith.constant 3 : index
    %c0_592 = arith.constant 0 : index
    %c0_593 = arith.constant 0 : index
    %551 = vector.load %arg6[%c3_591, %c0_592, %c0_593] : memref<8x8x256xf32, #tpu.memory_space<vmem>>, vector<1x8x256xf32>
    %552 = vector.shape_cast %551 : vector<1x8x256xf32> to vector<8x256xf32>
    %553 = arith.mulf %550, %552 : vector<8x256xf32>
    %c24_594 = arith.constant 24 : index
    %c0_595 = arith.constant 0 : index
    %554 = vector.load %arg8[%c24_594, %c0_595] : memref<80x256xf32, #tpu.memory_space<vmem>>, vector<8x256xf32>
    tpu.vector_store %arg8[%c24_594, %c0_595], %553 {strides = array<i32>} : memref<80x256xf32, #tpu.memory_space<vmem>>, vector<8x256xf32>,
    %c32_596 = arith.constant 32 : index
    %c0_597 = arith.constant 0 : index
    %555 = vector.load %arg8[%c32_596, %c0_597] : memref<80x256xf32, #tpu.memory_space<vmem>>, vector<8x256xf32>
    tpu.vector_store %arg8[%c32_596, %c0_597], %534 {strides = array<i32>} : memref<80x256xf32, #tpu.memory_space<vmem>>, vector<8x256xf32>,
    %c255_i32_598 = arith.constant 255 : i32
    %556 = tpu.dynamic_rotate %534 by %c255_i32_598 dim 1 : vector<8x256xf32>, i32 -> vector<8x256xf32>
    %c4_599 = arith.constant 4 : index
    %c0_600 = arith.constant 0 : index
    %c0_601 = arith.constant 0 : index
    %557 = vector.load %arg6[%c4_599, %c0_600, %c0_601] : memref<8x8x256xf32, #tpu.memory_space<vmem>>, vector<1x8x256xf32>
    %558 = vector.shape_cast %557 : vector<1x8x256xf32> to vector<8x256xf32>
    %559 = arith.mulf %556, %558 : vector<8x256xf32>
    %c40_602 = arith.constant 40 : index
    %c0_603 = arith.constant 0 : index
    %560 = vector.load %arg8[%c40_602, %c0_603] : memref<80x256xf32, #tpu.memory_space<vmem>>, vector<8x256xf32>
    tpu.vector_store %arg8[%c40_602, %c0_603], %559 {strides = array<i32>} : memref<80x256xf32, #tpu.memory_space<vmem>>, vector<8x256xf32>,
    %c241_i32_604 = arith.constant 241 : i32
    %561 = tpu.dynamic_rotate %534 by %c241_i32_604 dim 1 : vector<8x256xf32>, i32 -> vector<8x256xf32>
    %c5_605 = arith.constant 5 : index
    %c0_606 = arith.constant 0 : index
    %c0_607 = arith.constant 0 : index
    %562 = vector.load %arg6[%c5_605, %c0_606, %c0_607] : memref<8x8x256xf32, #tpu.memory_space<vmem>>, vector<1x8x256xf32>
    %563 = vector.shape_cast %562 : vector<1x8x256xf32> to vector<8x256xf32>
    %564 = arith.mulf %561, %563 : vector<8x256xf32>
    %c48_608 = arith.constant 48 : index
    %c0_609 = arith.constant 0 : index
    %565 = vector.load %arg8[%c48_608, %c0_609] : memref<80x256xf32, #tpu.memory_space<vmem>>, vector<8x256xf32>
    tpu.vector_store %arg8[%c48_608, %c0_609], %564 {strides = array<i32>} : memref<80x256xf32, #tpu.memory_space<vmem>>, vector<8x256xf32>,
    %c240_i32_610 = arith.constant 240 : i32
    %566 = tpu.dynamic_rotate %534 by %c240_i32_610 dim 1 : vector<8x256xf32>, i32 -> vector<8x256xf32>
    %c6_611 = arith.constant 6 : index
    %c0_612 = arith.constant 0 : index
    %c0_613 = arith.constant 0 : index
    %567 = vector.load %arg6[%c6_611, %c0_612, %c0_613] : memref<8x8x256xf32, #tpu.memory_space<vmem>>, vector<1x8x256xf32>
    %568 = vector.shape_cast %567 : vector<1x8x256xf32> to vector<8x256xf32>
    %569 = arith.mulf %566, %568 : vector<8x256xf32>
    %c56_614 = arith.constant 56 : index
    %c0_615 = arith.constant 0 : index
    %570 = vector.load %arg8[%c56_614, %c0_615] : memref<80x256xf32, #tpu.memory_space<vmem>>, vector<8x256xf32>
    tpu.vector_store %arg8[%c56_614, %c0_615], %569 {strides = array<i32>} : memref<80x256xf32, #tpu.memory_space<vmem>>, vector<8x256xf32>,
    %c239_i32_616 = arith.constant 239 : i32
    %571 = tpu.dynamic_rotate %534 by %c239_i32_616 dim 1 : vector<8x256xf32>, i32 -> vector<8x256xf32>
    %c7_617 = arith.constant 7 : index
    %c0_618 = arith.constant 0 : index
    %c0_619 = arith.constant 0 : index
    %572 = vector.load %arg6[%c7_617, %c0_618, %c0_619] : memref<8x8x256xf32, #tpu.memory_space<vmem>>, vector<1x8x256xf32>
    %573 = vector.shape_cast %572 : vector<1x8x256xf32> to vector<8x256xf32>
    %574 = arith.mulf %571, %573 : vector<8x256xf32>
    %c64_620 = arith.constant 64 : index
    %c0_621 = arith.constant 0 : index
    %575 = vector.load %arg8[%c64_620, %c0_621] : memref<80x256xf32, #tpu.memory_space<vmem>>, vector<8x256xf32>
    tpu.vector_store %arg8[%c64_620, %c0_621], %574 {strides = array<i32>} : memref<80x256xf32, #tpu.memory_space<vmem>>, vector<8x256xf32>,
    %c4_622 = arith.constant 4 : index
    %c0_623 = arith.constant 0 : index
    %c0_624 = arith.constant 0 : index
    %576 = vector.load %arg5[%c4_622, %c0_623, %c0_624] : memref<6x8x80xbf16, #tpu.memory_space<vmem>>, vector<1x8x80xbf16>
    %577 = vector.shape_cast %576 : vector<1x8x80xbf16> to vector<8x80xbf16>
    %c0_625 = arith.constant 0 : index
    %c0_626 = arith.constant 0 : index
    %578 = vector.load %arg8[%c0_625, %c0_626] : memref<80x256xf32, #tpu.memory_space<vmem>>, vector<80x256xf32>
    %579 = arith.truncf %578 : vector<80x256xf32> to vector<80x256xbf16>
    %cst_627 = arith.constant dense<0.000000e+00> : vector<8x256xf32>
    %580 = tpu.matmul %577, %579, %cst_627 {dimension_numbers = #tpu.dot_dimension_numbers<[1], [0], [0], [1], [0, 0, 1, 1], [], []>} : vector<8x80xbf16>, vector<80x256xbf16>, vector<8x256xf32> -> vector<8x256xf32>
    %581 = arith.addf %486, %580 : vector<8x256xf32>
    %c17_i32_628 = arith.constant 17 : i32
    %582 = tpu.dynamic_rotate %581 by %c17_i32_628 dim 1 : vector<8x256xf32>, i32 -> vector<8x256xf32>
    %c0_629 = arith.constant 0 : index
    %c0_630 = arith.constant 0 : index
    %c0_631 = arith.constant 0 : index
    %583 = vector.load %arg6[%c0_629, %c0_630, %c0_631] : memref<8x8x256xf32, #tpu.memory_space<vmem>>, vector<1x8x256xf32>
    %584 = vector.shape_cast %583 : vector<1x8x256xf32> to vector<8x256xf32>
    %585 = arith.mulf %582, %584 : vector<8x256xf32>
    %c0_632 = arith.constant 0 : index
    %c0_633 = arith.constant 0 : index
    %586 = vector.load %arg8[%c0_632, %c0_633] : memref<80x256xf32, #tpu.memory_space<vmem>>, vector<8x256xf32>
    tpu.vector_store %arg8[%c0_632, %c0_633], %585 {strides = array<i32>} : memref<80x256xf32, #tpu.memory_space<vmem>>, vector<8x256xf32>,
    %c16_i32_634 = arith.constant 16 : i32
    %587 = tpu.dynamic_rotate %581 by %c16_i32_634 dim 1 : vector<8x256xf32>, i32 -> vector<8x256xf32>
    %c1_635 = arith.constant 1 : index
    %c0_636 = arith.constant 0 : index
    %c0_637 = arith.constant 0 : index
    %588 = vector.load %arg6[%c1_635, %c0_636, %c0_637] : memref<8x8x256xf32, #tpu.memory_space<vmem>>, vector<1x8x256xf32>
    %589 = vector.shape_cast %588 : vector<1x8x256xf32> to vector<8x256xf32>
    %590 = arith.mulf %587, %589 : vector<8x256xf32>
    %c8_638 = arith.constant 8 : index
    %c0_639 = arith.constant 0 : index
    %591 = vector.load %arg8[%c8_638, %c0_639] : memref<80x256xf32, #tpu.memory_space<vmem>>, vector<8x256xf32>
    tpu.vector_store %arg8[%c8_638, %c0_639], %590 {strides = array<i32>} : memref<80x256xf32, #tpu.memory_space<vmem>>, vector<8x256xf32>,
    %c15_i32_640 = arith.constant 15 : i32
    %592 = tpu.dynamic_rotate %581 by %c15_i32_640 dim 1 : vector<8x256xf32>, i32 -> vector<8x256xf32>
    %c2_641 = arith.constant 2 : index
    %c0_642 = arith.constant 0 : index
    %c0_643 = arith.constant 0 : index
    %593 = vector.load %arg6[%c2_641, %c0_642, %c0_643] : memref<8x8x256xf32, #tpu.memory_space<vmem>>, vector<1x8x256xf32>
    %594 = vector.shape_cast %593 : vector<1x8x256xf32> to vector<8x256xf32>
    %595 = arith.mulf %592, %594 : vector<8x256xf32>
    %c16_644 = arith.constant 16 : index
    %c0_645 = arith.constant 0 : index
    %596 = vector.load %arg8[%c16_644, %c0_645] : memref<80x256xf32, #tpu.memory_space<vmem>>, vector<8x256xf32>
    tpu.vector_store %arg8[%c16_644, %c0_645], %595 {strides = array<i32>} : memref<80x256xf32, #tpu.memory_space<vmem>>, vector<8x256xf32>,
    %c1_i32_646 = arith.constant 1 : i32
    %597 = tpu.dynamic_rotate %581 by %c1_i32_646 dim 1 : vector<8x256xf32>, i32 -> vector<8x256xf32>
    %c3_647 = arith.constant 3 : index
    %c0_648 = arith.constant 0 : index
    %c0_649 = arith.constant 0 : index
    %598 = vector.load %arg6[%c3_647, %c0_648, %c0_649] : memref<8x8x256xf32, #tpu.memory_space<vmem>>, vector<1x8x256xf32>
    %599 = vector.shape_cast %598 : vector<1x8x256xf32> to vector<8x256xf32>
    %600 = arith.mulf %597, %599 : vector<8x256xf32>
    %c24_650 = arith.constant 24 : index
    %c0_651 = arith.constant 0 : index
    %601 = vector.load %arg8[%c24_650, %c0_651] : memref<80x256xf32, #tpu.memory_space<vmem>>, vector<8x256xf32>
    tpu.vector_store %arg8[%c24_650, %c0_651], %600 {strides = array<i32>} : memref<80x256xf32, #tpu.memory_space<vmem>>, vector<8x256xf32>,
    %c32_652 = arith.constant 32 : index
    %c0_653 = arith.constant 0 : index
    %602 = vector.load %arg8[%c32_652, %c0_653] : memref<80x256xf32, #tpu.memory_space<vmem>>, vector<8x256xf32>
    tpu.vector_store %arg8[%c32_652, %c0_653], %581 {strides = array<i32>} : memref<80x256xf32, #tpu.memory_space<vmem>>, vector<8x256xf32>,
    %c255_i32_654 = arith.constant 255 : i32
    %603 = tpu.dynamic_rotate %581 by %c255_i32_654 dim 1 : vector<8x256xf32>, i32 -> vector<8x256xf32>
    %c4_655 = arith.constant 4 : index
    %c0_656 = arith.constant 0 : index
    %c0_657 = arith.constant 0 : index
    %604 = vector.load %arg6[%c4_655, %c0_656, %c0_657] : memref<8x8x256xf32, #tpu.memory_space<vmem>>, vector<1x8x256xf32>
    %605 = vector.shape_cast %604 : vector<1x8x256xf32> to vector<8x256xf32>
    %606 = arith.mulf %603, %605 : vector<8x256xf32>
    %c40_658 = arith.constant 40 : index
    %c0_659 = arith.constant 0 : index
    %607 = vector.load %arg8[%c40_658, %c0_659] : memref<80x256xf32, #tpu.memory_space<vmem>>, vector<8x256xf32>
    tpu.vector_store %arg8[%c40_658, %c0_659], %606 {strides = array<i32>} : memref<80x256xf32, #tpu.memory_space<vmem>>, vector<8x256xf32>,
    %c241_i32_660 = arith.constant 241 : i32
    %608 = tpu.dynamic_rotate %581 by %c241_i32_660 dim 1 : vector<8x256xf32>, i32 -> vector<8x256xf32>
    %c5_661 = arith.constant 5 : index
    %c0_662 = arith.constant 0 : index
    %c0_663 = arith.constant 0 : index
    %609 = vector.load %arg6[%c5_661, %c0_662, %c0_663] : memref<8x8x256xf32, #tpu.memory_space<vmem>>, vector<1x8x256xf32>
    %610 = vector.shape_cast %609 : vector<1x8x256xf32> to vector<8x256xf32>
    %611 = arith.mulf %608, %610 : vector<8x256xf32>
    %c48_664 = arith.constant 48 : index
    %c0_665 = arith.constant 0 : index
    %612 = vector.load %arg8[%c48_664, %c0_665] : memref<80x256xf32, #tpu.memory_space<vmem>>, vector<8x256xf32>
    tpu.vector_store %arg8[%c48_664, %c0_665], %611 {strides = array<i32>} : memref<80x256xf32, #tpu.memory_space<vmem>>, vector<8x256xf32>,
    %c240_i32_666 = arith.constant 240 : i32
    %613 = tpu.dynamic_rotate %581 by %c240_i32_666 dim 1 : vector<8x256xf32>, i32 -> vector<8x256xf32>
    %c6_667 = arith.constant 6 : index
    %c0_668 = arith.constant 0 : index
    %c0_669 = arith.constant 0 : index
    %614 = vector.load %arg6[%c6_667, %c0_668, %c0_669] : memref<8x8x256xf32, #tpu.memory_space<vmem>>, vector<1x8x256xf32>
    %615 = vector.shape_cast %614 : vector<1x8x256xf32> to vector<8x256xf32>
    %616 = arith.mulf %613, %615 : vector<8x256xf32>
    %c56_670 = arith.constant 56 : index
    %c0_671 = arith.constant 0 : index
    %617 = vector.load %arg8[%c56_670, %c0_671] : memref<80x256xf32, #tpu.memory_space<vmem>>, vector<8x256xf32>
    tpu.vector_store %arg8[%c56_670, %c0_671], %616 {strides = array<i32>} : memref<80x256xf32, #tpu.memory_space<vmem>>, vector<8x256xf32>,
    %c239_i32_672 = arith.constant 239 : i32
    %618 = tpu.dynamic_rotate %581 by %c239_i32_672 dim 1 : vector<8x256xf32>, i32 -> vector<8x256xf32>
    %c7_673 = arith.constant 7 : index
    %c0_674 = arith.constant 0 : index
    %c0_675 = arith.constant 0 : index
    %619 = vector.load %arg6[%c7_673, %c0_674, %c0_675] : memref<8x8x256xf32, #tpu.memory_space<vmem>>, vector<1x8x256xf32>
    %620 = vector.shape_cast %619 : vector<1x8x256xf32> to vector<8x256xf32>
    %621 = arith.mulf %618, %620 : vector<8x256xf32>
    %c64_676 = arith.constant 64 : index
    %c0_677 = arith.constant 0 : index
    %622 = vector.load %arg8[%c64_676, %c0_677] : memref<80x256xf32, #tpu.memory_space<vmem>>, vector<8x256xf32>
    tpu.vector_store %arg8[%c64_676, %c0_677], %621 {strides = array<i32>} : memref<80x256xf32, #tpu.memory_space<vmem>>, vector<8x256xf32>,
    %c5_678 = arith.constant 5 : index
    %c0_679 = arith.constant 0 : index
    %c0_680 = arith.constant 0 : index
    %623 = vector.load %arg5[%c5_678, %c0_679, %c0_680] : memref<6x8x80xbf16, #tpu.memory_space<vmem>>, vector<1x8x80xbf16>
    %624 = vector.shape_cast %623 : vector<1x8x80xbf16> to vector<8x80xbf16>
    %c0_681 = arith.constant 0 : index
    %c0_682 = arith.constant 0 : index
    %625 = vector.load %arg8[%c0_681, %c0_682] : memref<80x256xf32, #tpu.memory_space<vmem>>, vector<80x256xf32>
    %626 = arith.truncf %625 : vector<80x256xf32> to vector<80x256xbf16>
    %cst_683 = arith.constant dense<0.000000e+00> : vector<8x256xf32>
    %627 = tpu.matmul %624, %626, %cst_683 {dimension_numbers = #tpu.dot_dimension_numbers<[1], [0], [0], [1], [0, 0, 1, 1], [], []>} : vector<8x80xbf16>, vector<80x256xbf16>, vector<8x256xf32> -> vector<8x256xf32>
    %cst_684 = arith.constant 1.000000e+00 : f32
    %628 = vector.broadcast %cst_684 : f32 to vector<8x256xf32>
    %629 = arith.mulf %628, %627 : vector<8x256xf32>
    %630 = arith.subf %340, %629 : vector<8x256xf32>
    %631 = arith.truncf %337 : vector<8x256xf32> to vector<8x256xbf16>
    %cst_685 = arith.constant dense<0.000000e+00> : vector<8x128xf32>
    %632 = tpu.matmul %631, %3, %cst_685 {dimension_numbers = #tpu.dot_dimension_numbers<[1], [0], [0], [1], [0, 0, 1, 1], [], []>} : vector<8x256xbf16>, vector<256x128xbf16>, vector<8x128xf32> -> vector<8x128xf32>
    %633 = arith.subf %632, %0 : vector<8x128xf32>
    %cst_686 = arith.constant 1.000000e+00 : f32
    %634 = vector.broadcast %cst_686 : f32 to vector<8x128xf32>
    %635 = arith.mulf %634, %633 : vector<8x128xf32>
    %636 = arith.addf %326, %635 : vector<8x128xf32>
    %cst_687 = arith.constant 0.909090936 : f32
    %637 = vector.broadcast %cst_687 : f32 to vector<8x128xf32>
    %638 = arith.mulf %636, %637 : vector<8x128xf32>
    %639 = arith.truncf %638 : vector<8x128xf32> to vector<8x128xbf16>
    %cst_688 = arith.constant dense<0.000000e+00> : vector<8x256xf32>
    %640 = tpu.matmul %639, %4, %cst_688 {dimension_numbers = #tpu.dot_dimension_numbers<[1], [0], [0], [1], [0, 0, 1, 1], [], []>} : vector<8x128xbf16>, vector<128x256xbf16>, vector<8x256xf32> -> vector<8x256xf32>
    %641 = arith.addf %630, %640 : vector<8x256xf32>
    %642 = arith.subf %641, %18 : vector<8x256xf32>
    %cst_689 = arith.constant 5.000000e-02 : f32
    %643 = vector.broadcast %cst_689 : f32 to vector<8x256xf32>
    %644 = arith.mulf %643, %642 : vector<8x256xf32>
    %645 = arith.subf %334, %644 : vector<8x256xf32>
    %646 = arith.mulf %645, %25 : vector<8x256xf32>
    %cst_690 = arith.constant 2.000000e+00 : f32
    %647 = vector.broadcast %cst_690 : f32 to vector<8x256xf32>
    %648 = arith.mulf %647, %646 : vector<8x256xf32>
    %649 = arith.subf %648, %334 : vector<8x256xf32>
    %cst_691 = arith.constant 1.000000e+00 : f32
    %650 = vector.broadcast %cst_691 : f32 to vector<8x256xf32>
    %651 = arith.mulf %650, %649 : vector<8x256xf32>
    %652 = arith.addf %630, %651 : vector<8x256xf32>
    %cst_692 = arith.constant 1.000000e+00 : f32
    %653 = vector.broadcast %cst_692 : f32 to vector<8x256xf32>
    %654 = arith.mulf %630, %653 : vector<8x256xf32>
    %655 = arith.addf %654, %649 : vector<8x256xf32>
    %c17_i32_693 = arith.constant 17 : i32
    %656 = tpu.dynamic_rotate %655 by %c17_i32_693 dim 1 : vector<8x256xf32>, i32 -> vector<8x256xf32>
    %c0_694 = arith.constant 0 : index
    %c0_695 = arith.constant 0 : index
    %c0_696 = arith.constant 0 : index
    %657 = vector.load %arg6[%c0_694, %c0_695, %c0_696] : memref<8x8x256xf32, #tpu.memory_space<vmem>>, vector<1x8x256xf32>
    %658 = vector.shape_cast %657 : vector<1x8x256xf32> to vector<8x256xf32>
    %659 = arith.mulf %656, %658 : vector<8x256xf32>
    %c0_697 = arith.constant 0 : index
    %c0_698 = arith.constant 0 : index
    %660 = vector.load %arg8[%c0_697, %c0_698] : memref<80x256xf32, #tpu.memory_space<vmem>>, vector<8x256xf32>
    tpu.vector_store %arg8[%c0_697, %c0_698], %659 {strides = array<i32>} : memref<80x256xf32, #tpu.memory_space<vmem>>, vector<8x256xf32>,
    %c16_i32_699 = arith.constant 16 : i32
    %661 = tpu.dynamic_rotate %655 by %c16_i32_699 dim 1 : vector<8x256xf32>, i32 -> vector<8x256xf32>
    %c1_700 = arith.constant 1 : index
    %c0_701 = arith.constant 0 : index
    %c0_702 = arith.constant 0 : index
    %662 = vector.load %arg6[%c1_700, %c0_701, %c0_702] : memref<8x8x256xf32, #tpu.memory_space<vmem>>, vector<1x8x256xf32>
    %663 = vector.shape_cast %662 : vector<1x8x256xf32> to vector<8x256xf32>
    %664 = arith.mulf %661, %663 : vector<8x256xf32>
    %c8_703 = arith.constant 8 : index
    %c0_704 = arith.constant 0 : index
    %665 = vector.load %arg8[%c8_703, %c0_704] : memref<80x256xf32, #tpu.memory_space<vmem>>, vector<8x256xf32>
    tpu.vector_store %arg8[%c8_703, %c0_704], %664 {strides = array<i32>} : memref<80x256xf32, #tpu.memory_space<vmem>>, vector<8x256xf32>,
    %c15_i32_705 = arith.constant 15 : i32
    %666 = tpu.dynamic_rotate %655 by %c15_i32_705 dim 1 : vector<8x256xf32>, i32 -> vector<8x256xf32>
    %c2_706 = arith.constant 2 : index
    %c0_707 = arith.constant 0 : index
    %c0_708 = arith.constant 0 : index
    %667 = vector.load %arg6[%c2_706, %c0_707, %c0_708] : memref<8x8x256xf32, #tpu.memory_space<vmem>>, vector<1x8x256xf32>
    %668 = vector.shape_cast %667 : vector<1x8x256xf32> to vector<8x256xf32>
    %669 = arith.mulf %666, %668 : vector<8x256xf32>
    %c16_709 = arith.constant 16 : index
    %c0_710 = arith.constant 0 : index
    %670 = vector.load %arg8[%c16_709, %c0_710] : memref<80x256xf32, #tpu.memory_space<vmem>>, vector<8x256xf32>
    tpu.vector_store %arg8[%c16_709, %c0_710], %669 {strides = array<i32>} : memref<80x256xf32, #tpu.memory_space<vmem>>, vector<8x256xf32>,
    %c1_i32_711 = arith.constant 1 : i32
    %671 = tpu.dynamic_rotate %655 by %c1_i32_711 dim 1 : vector<8x256xf32>, i32 -> vector<8x256xf32>
    %c3_712 = arith.constant 3 : index
    %c0_713 = arith.constant 0 : index
    %c0_714 = arith.constant 0 : index
    %672 = vector.load %arg6[%c3_712, %c0_713, %c0_714] : memref<8x8x256xf32, #tpu.memory_space<vmem>>, vector<1x8x256xf32>
    %673 = vector.shape_cast %672 : vector<1x8x256xf32> to vector<8x256xf32>
    %674 = arith.mulf %671, %673 : vector<8x256xf32>
    %c24_715 = arith.constant 24 : index
    %c0_716 = arith.constant 0 : index
    %675 = vector.load %arg8[%c24_715, %c0_716] : memref<80x256xf32, #tpu.memory_space<vmem>>, vector<8x256xf32>
    tpu.vector_store %arg8[%c24_715, %c0_716], %674 {strides = array<i32>} : memref<80x256xf32, #tpu.memory_space<vmem>>, vector<8x256xf32>,
    %c32_717 = arith.constant 32 : index
    %c0_718 = arith.constant 0 : index
    %676 = vector.load %arg8[%c32_717, %c0_718] : memref<80x256xf32, #tpu.memory_space<vmem>>, vector<8x256xf32>
    tpu.vector_store %arg8[%c32_717, %c0_718], %655 {strides = array<i32>} : memref<80x256xf32, #tpu.memory_space<vmem>>, vector<8x256xf32>,
    %c255_i32_719 = arith.constant 255 : i32
    %677 = tpu.dynamic_rotate %655 by %c255_i32_719 dim 1 : vector<8x256xf32>, i32 -> vector<8x256xf32>
    %c4_720 = arith.constant 4 : index
    %c0_721 = arith.constant 0 : index
    %c0_722 = arith.constant 0 : index
    %678 = vector.load %arg6[%c4_720, %c0_721, %c0_722] : memref<8x8x256xf32, #tpu.memory_space<vmem>>, vector<1x8x256xf32>
    %679 = vector.shape_cast %678 : vector<1x8x256xf32> to vector<8x256xf32>
    %680 = arith.mulf %677, %679 : vector<8x256xf32>
    %c40_723 = arith.constant 40 : index
    %c0_724 = arith.constant 0 : index
    %681 = vector.load %arg8[%c40_723, %c0_724] : memref<80x256xf32, #tpu.memory_space<vmem>>, vector<8x256xf32>
    tpu.vector_store %arg8[%c40_723, %c0_724], %680 {strides = array<i32>} : memref<80x256xf32, #tpu.memory_space<vmem>>, vector<8x256xf32>,
    %c241_i32_725 = arith.constant 241 : i32
    %682 = tpu.dynamic_rotate %655 by %c241_i32_725 dim 1 : vector<8x256xf32>, i32 -> vector<8x256xf32>
    %c5_726 = arith.constant 5 : index
    %c0_727 = arith.constant 0 : index
    %c0_728 = arith.constant 0 : index
    %683 = vector.load %arg6[%c5_726, %c0_727, %c0_728] : memref<8x8x256xf32, #tpu.memory_space<vmem>>, vector<1x8x256xf32>
    %684 = vector.shape_cast %683 : vector<1x8x256xf32> to vector<8x256xf32>
    %685 = arith.mulf %682, %684 : vector<8x256xf32>
    %c48_729 = arith.constant 48 : index
    %c0_730 = arith.constant 0 : index
    %686 = vector.load %arg8[%c48_729, %c0_730] : memref<80x256xf32, #tpu.memory_space<vmem>>, vector<8x256xf32>
    tpu.vector_store %arg8[%c48_729, %c0_730], %685 {strides = array<i32>} : memref<80x256xf32, #tpu.memory_space<vmem>>, vector<8x256xf32>,
    %c240_i32_731 = arith.constant 240 : i32
    %687 = tpu.dynamic_rotate %655 by %c240_i32_731 dim 1 : vector<8x256xf32>, i32 -> vector<8x256xf32>
    %c6_732 = arith.constant 6 : index
    %c0_733 = arith.constant 0 : index
    %c0_734 = arith.constant 0 : index
    %688 = vector.load %arg6[%c6_732, %c0_733, %c0_734] : memref<8x8x256xf32, #tpu.memory_space<vmem>>, vector<1x8x256xf32>
    %689 = vector.shape_cast %688 : vector<1x8x256xf32> to vector<8x256xf32>
    %690 = arith.mulf %687, %689 : vector<8x256xf32>
    %c56_735 = arith.constant 56 : index
    %c0_736 = arith.constant 0 : index
    %691 = vector.load %arg8[%c56_735, %c0_736] : memref<80x256xf32, #tpu.memory_space<vmem>>, vector<8x256xf32>
    tpu.vector_store %arg8[%c56_735, %c0_736], %690 {strides = array<i32>} : memref<80x256xf32, #tpu.memory_space<vmem>>, vector<8x256xf32>,
    %c239_i32_737 = arith.constant 239 : i32
    %692 = tpu.dynamic_rotate %655 by %c239_i32_737 dim 1 : vector<8x256xf32>, i32 -> vector<8x256xf32>
    %c7_738 = arith.constant 7 : index
    %c0_739 = arith.constant 0 : index
    %c0_740 = arith.constant 0 : index
    %693 = vector.load %arg6[%c7_738, %c0_739, %c0_740] : memref<8x8x256xf32, #tpu.memory_space<vmem>>, vector<1x8x256xf32>
    %694 = vector.shape_cast %693 : vector<1x8x256xf32> to vector<8x256xf32>
    %695 = arith.mulf %692, %694 : vector<8x256xf32>
    %c64_741 = arith.constant 64 : index
    %c0_742 = arith.constant 0 : index
    %696 = vector.load %arg8[%c64_741, %c0_742] : memref<80x256xf32, #tpu.memory_space<vmem>>, vector<8x256xf32>
    tpu.vector_store %arg8[%c64_741, %c0_742], %695 {strides = array<i32>} : memref<80x256xf32, #tpu.memory_space<vmem>>, vector<8x256xf32>,
    %c0_743 = arith.constant 0 : index
    %c0_744 = arith.constant 0 : index
    %c0_745 = arith.constant 0 : index
    %697 = vector.load %arg5[%c0_743, %c0_744, %c0_745] : memref<6x8x80xbf16, #tpu.memory_space<vmem>>, vector<1x8x80xbf16>
    %698 = vector.shape_cast %697 : vector<1x8x80xbf16> to vector<8x80xbf16>
    %c0_746 = arith.constant 0 : index
    %c0_747 = arith.constant 0 : index
    %699 = vector.load %arg8[%c0_746, %c0_747] : memref<80x256xf32, #tpu.memory_space<vmem>>, vector<80x256xf32>
    %700 = arith.truncf %699 : vector<80x256xf32> to vector<80x256xbf16>
    %cst_748 = arith.constant dense<0.000000e+00> : vector<8x256xf32>
    %701 = tpu.matmul %698, %700, %cst_748 {dimension_numbers = #tpu.dot_dimension_numbers<[1], [0], [0], [1], [0, 0, 1, 1], [], []>} : vector<8x80xbf16>, vector<80x256xbf16>, vector<8x256xf32> -> vector<8x256xf32>
    %cst_749 = arith.constant 0.000000e+00 : f32
    %702 = vector.broadcast %cst_749 : f32 to vector<8x256xf32>
    %703 = arith.maximumf %701, %702 : vector<8x256xf32>
    %c17_i32_750 = arith.constant 17 : i32
    %704 = tpu.dynamic_rotate %703 by %c17_i32_750 dim 1 : vector<8x256xf32>, i32 -> vector<8x256xf32>
    %c0_751 = arith.constant 0 : index
    %c0_752 = arith.constant 0 : index
    %c0_753 = arith.constant 0 : index
    %705 = vector.load %arg6[%c0_751, %c0_752, %c0_753] : memref<8x8x256xf32, #tpu.memory_space<vmem>>, vector<1x8x256xf32>
    %706 = vector.shape_cast %705 : vector<1x8x256xf32> to vector<8x256xf32>
    %707 = arith.mulf %704, %706 : vector<8x256xf32>
    %c0_754 = arith.constant 0 : index
    %c0_755 = arith.constant 0 : index
    %708 = vector.load %arg8[%c0_754, %c0_755] : memref<80x256xf32, #tpu.memory_space<vmem>>, vector<8x256xf32>
    tpu.vector_store %arg8[%c0_754, %c0_755], %707 {strides = array<i32>} : memref<80x256xf32, #tpu.memory_space<vmem>>, vector<8x256xf32>,
    %c16_i32_756 = arith.constant 16 : i32
    %709 = tpu.dynamic_rotate %703 by %c16_i32_756 dim 1 : vector<8x256xf32>, i32 -> vector<8x256xf32>
    %c1_757 = arith.constant 1 : index
    %c0_758 = arith.constant 0 : index
    %c0_759 = arith.constant 0 : index
    %710 = vector.load %arg6[%c1_757, %c0_758, %c0_759] : memref<8x8x256xf32, #tpu.memory_space<vmem>>, vector<1x8x256xf32>
    %711 = vector.shape_cast %710 : vector<1x8x256xf32> to vector<8x256xf32>
    %712 = arith.mulf %709, %711 : vector<8x256xf32>
    %c8_760 = arith.constant 8 : index
    %c0_761 = arith.constant 0 : index
    %713 = vector.load %arg8[%c8_760, %c0_761] : memref<80x256xf32, #tpu.memory_space<vmem>>, vector<8x256xf32>
    tpu.vector_store %arg8[%c8_760, %c0_761], %712 {strides = array<i32>} : memref<80x256xf32, #tpu.memory_space<vmem>>, vector<8x256xf32>,
    %c15_i32_762 = arith.constant 15 : i32
    %714 = tpu.dynamic_rotate %703 by %c15_i32_762 dim 1 : vector<8x256xf32>, i32 -> vector<8x256xf32>
    %c2_763 = arith.constant 2 : index
    %c0_764 = arith.constant 0 : index
    %c0_765 = arith.constant 0 : index
    %715 = vector.load %arg6[%c2_763, %c0_764, %c0_765] : memref<8x8x256xf32, #tpu.memory_space<vmem>>, vector<1x8x256xf32>
    %716 = vector.shape_cast %715 : vector<1x8x256xf32> to vector<8x256xf32>
    %717 = arith.mulf %714, %716 : vector<8x256xf32>
    %c16_766 = arith.constant 16 : index
    %c0_767 = arith.constant 0 : index
    %718 = vector.load %arg8[%c16_766, %c0_767] : memref<80x256xf32, #tpu.memory_space<vmem>>, vector<8x256xf32>
    tpu.vector_store %arg8[%c16_766, %c0_767], %717 {strides = array<i32>} : memref<80x256xf32, #tpu.memory_space<vmem>>, vector<8x256xf32>,
    %c1_i32_768 = arith.constant 1 : i32
    %719 = tpu.dynamic_rotate %703 by %c1_i32_768 dim 1 : vector<8x256xf32>, i32 -> vector<8x256xf32>
    %c3_769 = arith.constant 3 : index
    %c0_770 = arith.constant 0 : index
    %c0_771 = arith.constant 0 : index
    %720 = vector.load %arg6[%c3_769, %c0_770, %c0_771] : memref<8x8x256xf32, #tpu.memory_space<vmem>>, vector<1x8x256xf32>
    %721 = vector.shape_cast %720 : vector<1x8x256xf32> to vector<8x256xf32>
    %722 = arith.mulf %719, %721 : vector<8x256xf32>
    %c24_772 = arith.constant 24 : index
    %c0_773 = arith.constant 0 : index
    %723 = vector.load %arg8[%c24_772, %c0_773] : memref<80x256xf32, #tpu.memory_space<vmem>>, vector<8x256xf32>
    tpu.vector_store %arg8[%c24_772, %c0_773], %722 {strides = array<i32>} : memref<80x256xf32, #tpu.memory_space<vmem>>, vector<8x256xf32>,
    %c32_774 = arith.constant 32 : index
    %c0_775 = arith.constant 0 : index
    %724 = vector.load %arg8[%c32_774, %c0_775] : memref<80x256xf32, #tpu.memory_space<vmem>>, vector<8x256xf32>
    tpu.vector_store %arg8[%c32_774, %c0_775], %703 {strides = array<i32>} : memref<80x256xf32, #tpu.memory_space<vmem>>, vector<8x256xf32>,
    %c255_i32_776 = arith.constant 255 : i32
    %725 = tpu.dynamic_rotate %703 by %c255_i32_776 dim 1 : vector<8x256xf32>, i32 -> vector<8x256xf32>
    %c4_777 = arith.constant 4 : index
    %c0_778 = arith.constant 0 : index
    %c0_779 = arith.constant 0 : index
    %726 = vector.load %arg6[%c4_777, %c0_778, %c0_779] : memref<8x8x256xf32, #tpu.memory_space<vmem>>, vector<1x8x256xf32>
    %727 = vector.shape_cast %726 : vector<1x8x256xf32> to vector<8x256xf32>
    %728 = arith.mulf %725, %727 : vector<8x256xf32>
    %c40_780 = arith.constant 40 : index
    %c0_781 = arith.constant 0 : index
    %729 = vector.load %arg8[%c40_780, %c0_781] : memref<80x256xf32, #tpu.memory_space<vmem>>, vector<8x256xf32>
    tpu.vector_store %arg8[%c40_780, %c0_781], %728 {strides = array<i32>} : memref<80x256xf32, #tpu.memory_space<vmem>>, vector<8x256xf32>,
    %c241_i32_782 = arith.constant 241 : i32
    %730 = tpu.dynamic_rotate %703 by %c241_i32_782 dim 1 : vector<8x256xf32>, i32 -> vector<8x256xf32>
    %c5_783 = arith.constant 5 : index
    %c0_784 = arith.constant 0 : index
    %c0_785 = arith.constant 0 : index
    %731 = vector.load %arg6[%c5_783, %c0_784, %c0_785] : memref<8x8x256xf32, #tpu.memory_space<vmem>>, vector<1x8x256xf32>
    %732 = vector.shape_cast %731 : vector<1x8x256xf32> to vector<8x256xf32>
    %733 = arith.mulf %730, %732 : vector<8x256xf32>
    %c48_786 = arith.constant 48 : index
    %c0_787 = arith.constant 0 : index
    %734 = vector.load %arg8[%c48_786, %c0_787] : memref<80x256xf32, #tpu.memory_space<vmem>>, vector<8x256xf32>
    tpu.vector_store %arg8[%c48_786, %c0_787], %733 {strides = array<i32>} : memref<80x256xf32, #tpu.memory_space<vmem>>, vector<8x256xf32>,
    %c240_i32_788 = arith.constant 240 : i32
    %735 = tpu.dynamic_rotate %703 by %c240_i32_788 dim 1 : vector<8x256xf32>, i32 -> vector<8x256xf32>
    %c6_789 = arith.constant 6 : index
    %c0_790 = arith.constant 0 : index
    %c0_791 = arith.constant 0 : index
    %736 = vector.load %arg6[%c6_789, %c0_790, %c0_791] : memref<8x8x256xf32, #tpu.memory_space<vmem>>, vector<1x8x256xf32>
    %737 = vector.shape_cast %736 : vector<1x8x256xf32> to vector<8x256xf32>
    %738 = arith.mulf %735, %737 : vector<8x256xf32>
    %c56_792 = arith.constant 56 : index
    %c0_793 = arith.constant 0 : index
    %739 = vector.load %arg8[%c56_792, %c0_793] : memref<80x256xf32, #tpu.memory_space<vmem>>, vector<8x256xf32>
    tpu.vector_store %arg8[%c56_792, %c0_793], %738 {strides = array<i32>} : memref<80x256xf32, #tpu.memory_space<vmem>>, vector<8x256xf32>,
    %c239_i32_794 = arith.constant 239 : i32
    %740 = tpu.dynamic_rotate %703 by %c239_i32_794 dim 1 : vector<8x256xf32>, i32 -> vector<8x256xf32>
    %c7_795 = arith.constant 7 : index
    %c0_796 = arith.constant 0 : index
    %c0_797 = arith.constant 0 : index
    %741 = vector.load %arg6[%c7_795, %c0_796, %c0_797] : memref<8x8x256xf32, #tpu.memory_space<vmem>>, vector<1x8x256xf32>
    %742 = vector.shape_cast %741 : vector<1x8x256xf32> to vector<8x256xf32>
    %743 = arith.mulf %740, %742 : vector<8x256xf32>
    %c64_798 = arith.constant 64 : index
    %c0_799 = arith.constant 0 : index
    %744 = vector.load %arg8[%c64_798, %c0_799] : memref<80x256xf32, #tpu.memory_space<vmem>>, vector<8x256xf32>
    tpu.vector_store %arg8[%c64_798, %c0_799], %743 {strides = array<i32>} : memref<80x256xf32, #tpu.memory_space<vmem>>, vector<8x256xf32>,
    %c1_800 = arith.constant 1 : index
    %c0_801 = arith.constant 0 : index
    %c0_802 = arith.constant 0 : index
    %745 = vector.load %arg5[%c1_800, %c0_801, %c0_802] : memref<6x8x80xbf16, #tpu.memory_space<vmem>>, vector<1x8x80xbf16>
    %746 = vector.shape_cast %745 : vector<1x8x80xbf16> to vector<8x80xbf16>
    %c0_803 = arith.constant 0 : index
    %c0_804 = arith.constant 0 : index
    %747 = vector.load %arg8[%c0_803, %c0_804] : memref<80x256xf32, #tpu.memory_space<vmem>>, vector<80x256xf32>
    %748 = arith.truncf %747 : vector<80x256xf32> to vector<80x256xbf16>
    %cst_805 = arith.constant dense<0.000000e+00> : vector<8x256xf32>
    %749 = tpu.matmul %746, %748, %cst_805 {dimension_numbers = #tpu.dot_dimension_numbers<[1], [0], [0], [1], [0, 0, 1, 1], [], []>} : vector<8x80xbf16>, vector<80x256xbf16>, vector<8x256xf32> -> vector<8x256xf32>
    %cst_806 = arith.constant 0.000000e+00 : f32
    %750 = vector.broadcast %cst_806 : f32 to vector<8x256xf32>
    %751 = arith.maximumf %749, %750 : vector<8x256xf32>
    %c17_i32_807 = arith.constant 17 : i32
    %752 = tpu.dynamic_rotate %751 by %c17_i32_807 dim 1 : vector<8x256xf32>, i32 -> vector<8x256xf32>
    %c0_808 = arith.constant 0 : index
    %c0_809 = arith.constant 0 : index
    %c0_810 = arith.constant 0 : index
    %753 = vector.load %arg6[%c0_808, %c0_809, %c0_810] : memref<8x8x256xf32, #tpu.memory_space<vmem>>, vector<1x8x256xf32>
    %754 = vector.shape_cast %753 : vector<1x8x256xf32> to vector<8x256xf32>
    %755 = arith.mulf %752, %754 : vector<8x256xf32>
    %c0_811 = arith.constant 0 : index
    %c0_812 = arith.constant 0 : index
    %756 = vector.load %arg8[%c0_811, %c0_812] : memref<80x256xf32, #tpu.memory_space<vmem>>, vector<8x256xf32>
    tpu.vector_store %arg8[%c0_811, %c0_812], %755 {strides = array<i32>} : memref<80x256xf32, #tpu.memory_space<vmem>>, vector<8x256xf32>,
    %c16_i32_813 = arith.constant 16 : i32
    %757 = tpu.dynamic_rotate %751 by %c16_i32_813 dim 1 : vector<8x256xf32>, i32 -> vector<8x256xf32>
    %c1_814 = arith.constant 1 : index
    %c0_815 = arith.constant 0 : index
    %c0_816 = arith.constant 0 : index
    %758 = vector.load %arg6[%c1_814, %c0_815, %c0_816] : memref<8x8x256xf32, #tpu.memory_space<vmem>>, vector<1x8x256xf32>
    %759 = vector.shape_cast %758 : vector<1x8x256xf32> to vector<8x256xf32>
    %760 = arith.mulf %757, %759 : vector<8x256xf32>
    %c8_817 = arith.constant 8 : index
    %c0_818 = arith.constant 0 : index
    %761 = vector.load %arg8[%c8_817, %c0_818] : memref<80x256xf32, #tpu.memory_space<vmem>>, vector<8x256xf32>
    tpu.vector_store %arg8[%c8_817, %c0_818], %760 {strides = array<i32>} : memref<80x256xf32, #tpu.memory_space<vmem>>, vector<8x256xf32>,
    %c15_i32_819 = arith.constant 15 : i32
    %762 = tpu.dynamic_rotate %751 by %c15_i32_819 dim 1 : vector<8x256xf32>, i32 -> vector<8x256xf32>
    %c2_820 = arith.constant 2 : index
    %c0_821 = arith.constant 0 : index
    %c0_822 = arith.constant 0 : index
    %763 = vector.load %arg6[%c2_820, %c0_821, %c0_822] : memref<8x8x256xf32, #tpu.memory_space<vmem>>, vector<1x8x256xf32>
    %764 = vector.shape_cast %763 : vector<1x8x256xf32> to vector<8x256xf32>
    %765 = arith.mulf %762, %764 : vector<8x256xf32>
    %c16_823 = arith.constant 16 : index
    %c0_824 = arith.constant 0 : index
    %766 = vector.load %arg8[%c16_823, %c0_824] : memref<80x256xf32, #tpu.memory_space<vmem>>, vector<8x256xf32>
    tpu.vector_store %arg8[%c16_823, %c0_824], %765 {strides = array<i32>} : memref<80x256xf32, #tpu.memory_space<vmem>>, vector<8x256xf32>,
    %c1_i32_825 = arith.constant 1 : i32
    %767 = tpu.dynamic_rotate %751 by %c1_i32_825 dim 1 : vector<8x256xf32>, i32 -> vector<8x256xf32>
    %c3_826 = arith.constant 3 : index
    %c0_827 = arith.constant 0 : index
    %c0_828 = arith.constant 0 : index
    %768 = vector.load %arg6[%c3_826, %c0_827, %c0_828] : memref<8x8x256xf32, #tpu.memory_space<vmem>>, vector<1x8x256xf32>
    %769 = vector.shape_cast %768 : vector<1x8x256xf32> to vector<8x256xf32>
    %770 = arith.mulf %767, %769 : vector<8x256xf32>
    %c24_829 = arith.constant 24 : index
    %c0_830 = arith.constant 0 : index
    %771 = vector.load %arg8[%c24_829, %c0_830] : memref<80x256xf32, #tpu.memory_space<vmem>>, vector<8x256xf32>
    tpu.vector_store %arg8[%c24_829, %c0_830], %770 {strides = array<i32>} : memref<80x256xf32, #tpu.memory_space<vmem>>, vector<8x256xf32>,
    %c32_831 = arith.constant 32 : index
    %c0_832 = arith.constant 0 : index
    %772 = vector.load %arg8[%c32_831, %c0_832] : memref<80x256xf32, #tpu.memory_space<vmem>>, vector<8x256xf32>
    tpu.vector_store %arg8[%c32_831, %c0_832], %751 {strides = array<i32>} : memref<80x256xf32, #tpu.memory_space<vmem>>, vector<8x256xf32>,
    %c255_i32_833 = arith.constant 255 : i32
    %773 = tpu.dynamic_rotate %751 by %c255_i32_833 dim 1 : vector<8x256xf32>, i32 -> vector<8x256xf32>
    %c4_834 = arith.constant 4 : index
    %c0_835 = arith.constant 0 : index
    %c0_836 = arith.constant 0 : index
    %774 = vector.load %arg6[%c4_834, %c0_835, %c0_836] : memref<8x8x256xf32, #tpu.memory_space<vmem>>, vector<1x8x256xf32>
    %775 = vector.shape_cast %774 : vector<1x8x256xf32> to vector<8x256xf32>
    %776 = arith.mulf %773, %775 : vector<8x256xf32>
    %c40_837 = arith.constant 40 : index
    %c0_838 = arith.constant 0 : index
    %777 = vector.load %arg8[%c40_837, %c0_838] : memref<80x256xf32, #tpu.memory_space<vmem>>, vector<8x256xf32>
    tpu.vector_store %arg8[%c40_837, %c0_838], %776 {strides = array<i32>} : memref<80x256xf32, #tpu.memory_space<vmem>>, vector<8x256xf32>,
    %c241_i32_839 = arith.constant 241 : i32
    %778 = tpu.dynamic_rotate %751 by %c241_i32_839 dim 1 : vector<8x256xf32>, i32 -> vector<8x256xf32>
    %c5_840 = arith.constant 5 : index
    %c0_841 = arith.constant 0 : index
    %c0_842 = arith.constant 0 : index
    %779 = vector.load %arg6[%c5_840, %c0_841, %c0_842] : memref<8x8x256xf32, #tpu.memory_space<vmem>>, vector<1x8x256xf32>
    %780 = vector.shape_cast %779 : vector<1x8x256xf32> to vector<8x256xf32>
    %781 = arith.mulf %778, %780 : vector<8x256xf32>
    %c48_843 = arith.constant 48 : index
    %c0_844 = arith.constant 0 : index
    %782 = vector.load %arg8[%c48_843, %c0_844] : memref<80x256xf32, #tpu.memory_space<vmem>>, vector<8x256xf32>
    tpu.vector_store %arg8[%c48_843, %c0_844], %781 {strides = array<i32>} : memref<80x256xf32, #tpu.memory_space<vmem>>, vector<8x256xf32>,
    %c240_i32_845 = arith.constant 240 : i32
    %783 = tpu.dynamic_rotate %751 by %c240_i32_845 dim 1 : vector<8x256xf32>, i32 -> vector<8x256xf32>
    %c6_846 = arith.constant 6 : index
    %c0_847 = arith.constant 0 : index
    %c0_848 = arith.constant 0 : index
    %784 = vector.load %arg6[%c6_846, %c0_847, %c0_848] : memref<8x8x256xf32, #tpu.memory_space<vmem>>, vector<1x8x256xf32>
    %785 = vector.shape_cast %784 : vector<1x8x256xf32> to vector<8x256xf32>
    %786 = arith.mulf %783, %785 : vector<8x256xf32>
    %c56_849 = arith.constant 56 : index
    %c0_850 = arith.constant 0 : index
    %787 = vector.load %arg8[%c56_849, %c0_850] : memref<80x256xf32, #tpu.memory_space<vmem>>, vector<8x256xf32>
    tpu.vector_store %arg8[%c56_849, %c0_850], %786 {strides = array<i32>} : memref<80x256xf32, #tpu.memory_space<vmem>>, vector<8x256xf32>,
    %c239_i32_851 = arith.constant 239 : i32
    %788 = tpu.dynamic_rotate %751 by %c239_i32_851 dim 1 : vector<8x256xf32>, i32 -> vector<8x256xf32>
    %c7_852 = arith.constant 7 : index
    %c0_853 = arith.constant 0 : index
    %c0_854 = arith.constant 0 : index
    %789 = vector.load %arg6[%c7_852, %c0_853, %c0_854] : memref<8x8x256xf32, #tpu.memory_space<vmem>>, vector<1x8x256xf32>
    %790 = vector.shape_cast %789 : vector<1x8x256xf32> to vector<8x256xf32>
    %791 = arith.mulf %788, %790 : vector<8x256xf32>
    %c64_855 = arith.constant 64 : index
    %c0_856 = arith.constant 0 : index
    %792 = vector.load %arg8[%c64_855, %c0_856] : memref<80x256xf32, #tpu.memory_space<vmem>>, vector<8x256xf32>
    tpu.vector_store %arg8[%c64_855, %c0_856], %791 {strides = array<i32>} : memref<80x256xf32, #tpu.memory_space<vmem>>, vector<8x256xf32>,
    %c2_857 = arith.constant 2 : index
    %c0_858 = arith.constant 0 : index
    %c0_859 = arith.constant 0 : index
    %793 = vector.load %arg5[%c2_857, %c0_858, %c0_859] : memref<6x8x80xbf16, #tpu.memory_space<vmem>>, vector<1x8x80xbf16>
    %794 = vector.shape_cast %793 : vector<1x8x80xbf16> to vector<8x80xbf16>
    %c0_860 = arith.constant 0 : index
    %c0_861 = arith.constant 0 : index
    %795 = vector.load %arg8[%c0_860, %c0_861] : memref<80x256xf32, #tpu.memory_space<vmem>>, vector<80x256xf32>
    %796 = arith.truncf %795 : vector<80x256xf32> to vector<80x256xbf16>
    %cst_862 = arith.constant dense<0.000000e+00> : vector<8x256xf32>
    %797 = tpu.matmul %794, %796, %cst_862 {dimension_numbers = #tpu.dot_dimension_numbers<[1], [0], [0], [1], [0, 0, 1, 1], [], []>} : vector<8x80xbf16>, vector<80x256xbf16>, vector<8x256xf32> -> vector<8x256xf32>
    %798 = arith.addf %703, %797 : vector<8x256xf32>
    %c17_i32_863 = arith.constant 17 : i32
    %799 = tpu.dynamic_rotate %798 by %c17_i32_863 dim 1 : vector<8x256xf32>, i32 -> vector<8x256xf32>
    %c0_864 = arith.constant 0 : index
    %c0_865 = arith.constant 0 : index
    %c0_866 = arith.constant 0 : index
    %800 = vector.load %arg6[%c0_864, %c0_865, %c0_866] : memref<8x8x256xf32, #tpu.memory_space<vmem>>, vector<1x8x256xf32>
    %801 = vector.shape_cast %800 : vector<1x8x256xf32> to vector<8x256xf32>
    %802 = arith.mulf %799, %801 : vector<8x256xf32>
    %c0_867 = arith.constant 0 : index
    %c0_868 = arith.constant 0 : index
    %803 = vector.load %arg8[%c0_867, %c0_868] : memref<80x256xf32, #tpu.memory_space<vmem>>, vector<8x256xf32>
    tpu.vector_store %arg8[%c0_867, %c0_868], %802 {strides = array<i32>} : memref<80x256xf32, #tpu.memory_space<vmem>>, vector<8x256xf32>,
    %c16_i32_869 = arith.constant 16 : i32
    %804 = tpu.dynamic_rotate %798 by %c16_i32_869 dim 1 : vector<8x256xf32>, i32 -> vector<8x256xf32>
    %c1_870 = arith.constant 1 : index
    %c0_871 = arith.constant 0 : index
    %c0_872 = arith.constant 0 : index
    %805 = vector.load %arg6[%c1_870, %c0_871, %c0_872] : memref<8x8x256xf32, #tpu.memory_space<vmem>>, vector<1x8x256xf32>
    %806 = vector.shape_cast %805 : vector<1x8x256xf32> to vector<8x256xf32>
    %807 = arith.mulf %804, %806 : vector<8x256xf32>
    %c8_873 = arith.constant 8 : index
    %c0_874 = arith.constant 0 : index
    %808 = vector.load %arg8[%c8_873, %c0_874] : memref<80x256xf32, #tpu.memory_space<vmem>>, vector<8x256xf32>
    tpu.vector_store %arg8[%c8_873, %c0_874], %807 {strides = array<i32>} : memref<80x256xf32, #tpu.memory_space<vmem>>, vector<8x256xf32>,
    %c15_i32_875 = arith.constant 15 : i32
    %809 = tpu.dynamic_rotate %798 by %c15_i32_875 dim 1 : vector<8x256xf32>, i32 -> vector<8x256xf32>
    %c2_876 = arith.constant 2 : index
    %c0_877 = arith.constant 0 : index
    %c0_878 = arith.constant 0 : index
    %810 = vector.load %arg6[%c2_876, %c0_877, %c0_878] : memref<8x8x256xf32, #tpu.memory_space<vmem>>, vector<1x8x256xf32>
    %811 = vector.shape_cast %810 : vector<1x8x256xf32> to vector<8x256xf32>
    %812 = arith.mulf %809, %811 : vector<8x256xf32>
    %c16_879 = arith.constant 16 : index
    %c0_880 = arith.constant 0 : index
    %813 = vector.load %arg8[%c16_879, %c0_880] : memref<80x256xf32, #tpu.memory_space<vmem>>, vector<8x256xf32>
    tpu.vector_store %arg8[%c16_879, %c0_880], %812 {strides = array<i32>} : memref<80x256xf32, #tpu.memory_space<vmem>>, vector<8x256xf32>,
    %c1_i32_881 = arith.constant 1 : i32
    %814 = tpu.dynamic_rotate %798 by %c1_i32_881 dim 1 : vector<8x256xf32>, i32 -> vector<8x256xf32>
    %c3_882 = arith.constant 3 : index
    %c0_883 = arith.constant 0 : index
    %c0_884 = arith.constant 0 : index
    %815 = vector.load %arg6[%c3_882, %c0_883, %c0_884] : memref<8x8x256xf32, #tpu.memory_space<vmem>>, vector<1x8x256xf32>
    %816 = vector.shape_cast %815 : vector<1x8x256xf32> to vector<8x256xf32>
    %817 = arith.mulf %814, %816 : vector<8x256xf32>
    %c24_885 = arith.constant 24 : index
    %c0_886 = arith.constant 0 : index
    %818 = vector.load %arg8[%c24_885, %c0_886] : memref<80x256xf32, #tpu.memory_space<vmem>>, vector<8x256xf32>
    tpu.vector_store %arg8[%c24_885, %c0_886], %817 {strides = array<i32>} : memref<80x256xf32, #tpu.memory_space<vmem>>, vector<8x256xf32>,
    %c32_887 = arith.constant 32 : index
    %c0_888 = arith.constant 0 : index
    %819 = vector.load %arg8[%c32_887, %c0_888] : memref<80x256xf32, #tpu.memory_space<vmem>>, vector<8x256xf32>
    tpu.vector_store %arg8[%c32_887, %c0_888], %798 {strides = array<i32>} : memref<80x256xf32, #tpu.memory_space<vmem>>, vector<8x256xf32>,
    %c255_i32_889 = arith.constant 255 : i32
    %820 = tpu.dynamic_rotate %798 by %c255_i32_889 dim 1 : vector<8x256xf32>, i32 -> vector<8x256xf32>
    %c4_890 = arith.constant 4 : index
    %c0_891 = arith.constant 0 : index
    %c0_892 = arith.constant 0 : index
    %821 = vector.load %arg6[%c4_890, %c0_891, %c0_892] : memref<8x8x256xf32, #tpu.memory_space<vmem>>, vector<1x8x256xf32>
    %822 = vector.shape_cast %821 : vector<1x8x256xf32> to vector<8x256xf32>
    %823 = arith.mulf %820, %822 : vector<8x256xf32>
    %c40_893 = arith.constant 40 : index
    %c0_894 = arith.constant 0 : index
    %824 = vector.load %arg8[%c40_893, %c0_894] : memref<80x256xf32, #tpu.memory_space<vmem>>, vector<8x256xf32>
    tpu.vector_store %arg8[%c40_893, %c0_894], %823 {strides = array<i32>} : memref<80x256xf32, #tpu.memory_space<vmem>>, vector<8x256xf32>,
    %c241_i32_895 = arith.constant 241 : i32
    %825 = tpu.dynamic_rotate %798 by %c241_i32_895 dim 1 : vector<8x256xf32>, i32 -> vector<8x256xf32>
    %c5_896 = arith.constant 5 : index
    %c0_897 = arith.constant 0 : index
    %c0_898 = arith.constant 0 : index
    %826 = vector.load %arg6[%c5_896, %c0_897, %c0_898] : memref<8x8x256xf32, #tpu.memory_space<vmem>>, vector<1x8x256xf32>
    %827 = vector.shape_cast %826 : vector<1x8x256xf32> to vector<8x256xf32>
    %828 = arith.mulf %825, %827 : vector<8x256xf32>
    %c48_899 = arith.constant 48 : index
    %c0_900 = arith.constant 0 : index
    %829 = vector.load %arg8[%c48_899, %c0_900] : memref<80x256xf32, #tpu.memory_space<vmem>>, vector<8x256xf32>
    tpu.vector_store %arg8[%c48_899, %c0_900], %828 {strides = array<i32>} : memref<80x256xf32, #tpu.memory_space<vmem>>, vector<8x256xf32>,
    %c240_i32_901 = arith.constant 240 : i32
    %830 = tpu.dynamic_rotate %798 by %c240_i32_901 dim 1 : vector<8x256xf32>, i32 -> vector<8x256xf32>
    %c6_902 = arith.constant 6 : index
    %c0_903 = arith.constant 0 : index
    %c0_904 = arith.constant 0 : index
    %831 = vector.load %arg6[%c6_902, %c0_903, %c0_904] : memref<8x8x256xf32, #tpu.memory_space<vmem>>, vector<1x8x256xf32>
    %832 = vector.shape_cast %831 : vector<1x8x256xf32> to vector<8x256xf32>
    %833 = arith.mulf %830, %832 : vector<8x256xf32>
    %c56_905 = arith.constant 56 : index
    %c0_906 = arith.constant 0 : index
    %834 = vector.load %arg8[%c56_905, %c0_906] : memref<80x256xf32, #tpu.memory_space<vmem>>, vector<8x256xf32>
    tpu.vector_store %arg8[%c56_905, %c0_906], %833 {strides = array<i32>} : memref<80x256xf32, #tpu.memory_space<vmem>>, vector<8x256xf32>,
    %c239_i32_907 = arith.constant 239 : i32
    %835 = tpu.dynamic_rotate %798 by %c239_i32_907 dim 1 : vector<8x256xf32>, i32 -> vector<8x256xf32>
    %c7_908 = arith.constant 7 : index
    %c0_909 = arith.constant 0 : index
    %c0_910 = arith.constant 0 : index
    %836 = vector.load %arg6[%c7_908, %c0_909, %c0_910] : memref<8x8x256xf32, #tpu.memory_space<vmem>>, vector<1x8x256xf32>
    %837 = vector.shape_cast %836 : vector<1x8x256xf32> to vector<8x256xf32>
    %838 = arith.mulf %835, %837 : vector<8x256xf32>
    %c64_911 = arith.constant 64 : index
    %c0_912 = arith.constant 0 : index
    %839 = vector.load %arg8[%c64_911, %c0_912] : memref<80x256xf32, #tpu.memory_space<vmem>>, vector<8x256xf32>
    tpu.vector_store %arg8[%c64_911, %c0_912], %838 {strides = array<i32>} : memref<80x256xf32, #tpu.memory_space<vmem>>, vector<8x256xf32>,
    %c3_913 = arith.constant 3 : index
    %c0_914 = arith.constant 0 : index
    %c0_915 = arith.constant 0 : index
    %840 = vector.load %arg5[%c3_913, %c0_914, %c0_915] : memref<6x8x80xbf16, #tpu.memory_space<vmem>>, vector<1x8x80xbf16>
    %841 = vector.shape_cast %840 : vector<1x8x80xbf16> to vector<8x80xbf16>
    %c0_916 = arith.constant 0 : index
    %c0_917 = arith.constant 0 : index
    %842 = vector.load %arg8[%c0_916, %c0_917] : memref<80x256xf32, #tpu.memory_space<vmem>>, vector<80x256xf32>
    %843 = arith.truncf %842 : vector<80x256xf32> to vector<80x256xbf16>
    %cst_918 = arith.constant dense<0.000000e+00> : vector<8x256xf32>
    %844 = tpu.matmul %841, %843, %cst_918 {dimension_numbers = #tpu.dot_dimension_numbers<[1], [0], [0], [1], [0, 0, 1, 1], [], []>} : vector<8x80xbf16>, vector<80x256xbf16>, vector<8x256xf32> -> vector<8x256xf32>
    %cst_919 = arith.constant 0.000000e+00 : f32
    %845 = vector.broadcast %cst_919 : f32 to vector<8x256xf32>
    %846 = arith.maximumf %844, %845 : vector<8x256xf32>
    %c17_i32_920 = arith.constant 17 : i32
    %847 = tpu.dynamic_rotate %846 by %c17_i32_920 dim 1 : vector<8x256xf32>, i32 -> vector<8x256xf32>
    %c0_921 = arith.constant 0 : index
    %c0_922 = arith.constant 0 : index
    %c0_923 = arith.constant 0 : index
    %848 = vector.load %arg6[%c0_921, %c0_922, %c0_923] : memref<8x8x256xf32, #tpu.memory_space<vmem>>, vector<1x8x256xf32>
    %849 = vector.shape_cast %848 : vector<1x8x256xf32> to vector<8x256xf32>
    %850 = arith.mulf %847, %849 : vector<8x256xf32>
    %c0_924 = arith.constant 0 : index
    %c0_925 = arith.constant 0 : index
    %851 = vector.load %arg8[%c0_924, %c0_925] : memref<80x256xf32, #tpu.memory_space<vmem>>, vector<8x256xf32>
    tpu.vector_store %arg8[%c0_924, %c0_925], %850 {strides = array<i32>} : memref<80x256xf32, #tpu.memory_space<vmem>>, vector<8x256xf32>,
    %c16_i32_926 = arith.constant 16 : i32
    %852 = tpu.dynamic_rotate %846 by %c16_i32_926 dim 1 : vector<8x256xf32>, i32 -> vector<8x256xf32>
    %c1_927 = arith.constant 1 : index
    %c0_928 = arith.constant 0 : index
    %c0_929 = arith.constant 0 : index
    %853 = vector.load %arg6[%c1_927, %c0_928, %c0_929] : memref<8x8x256xf32, #tpu.memory_space<vmem>>, vector<1x8x256xf32>
    %854 = vector.shape_cast %853 : vector<1x8x256xf32> to vector<8x256xf32>
    %855 = arith.mulf %852, %854 : vector<8x256xf32>
    %c8_930 = arith.constant 8 : index
    %c0_931 = arith.constant 0 : index
    %856 = vector.load %arg8[%c8_930, %c0_931] : memref<80x256xf32, #tpu.memory_space<vmem>>, vector<8x256xf32>
    tpu.vector_store %arg8[%c8_930, %c0_931], %855 {strides = array<i32>} : memref<80x256xf32, #tpu.memory_space<vmem>>, vector<8x256xf32>,
    %c15_i32_932 = arith.constant 15 : i32
    %857 = tpu.dynamic_rotate %846 by %c15_i32_932 dim 1 : vector<8x256xf32>, i32 -> vector<8x256xf32>
    %c2_933 = arith.constant 2 : index
    %c0_934 = arith.constant 0 : index
    %c0_935 = arith.constant 0 : index
    %858 = vector.load %arg6[%c2_933, %c0_934, %c0_935] : memref<8x8x256xf32, #tpu.memory_space<vmem>>, vector<1x8x256xf32>
    %859 = vector.shape_cast %858 : vector<1x8x256xf32> to vector<8x256xf32>
    %860 = arith.mulf %857, %859 : vector<8x256xf32>
    %c16_936 = arith.constant 16 : index
    %c0_937 = arith.constant 0 : index
    %861 = vector.load %arg8[%c16_936, %c0_937] : memref<80x256xf32, #tpu.memory_space<vmem>>, vector<8x256xf32>
    tpu.vector_store %arg8[%c16_936, %c0_937], %860 {strides = array<i32>} : memref<80x256xf32, #tpu.memory_space<vmem>>, vector<8x256xf32>,
    %c1_i32_938 = arith.constant 1 : i32
    %862 = tpu.dynamic_rotate %846 by %c1_i32_938 dim 1 : vector<8x256xf32>, i32 -> vector<8x256xf32>
    %c3_939 = arith.constant 3 : index
    %c0_940 = arith.constant 0 : index
    %c0_941 = arith.constant 0 : index
    %863 = vector.load %arg6[%c3_939, %c0_940, %c0_941] : memref<8x8x256xf32, #tpu.memory_space<vmem>>, vector<1x8x256xf32>
    %864 = vector.shape_cast %863 : vector<1x8x256xf32> to vector<8x256xf32>
    %865 = arith.mulf %862, %864 : vector<8x256xf32>
    %c24_942 = arith.constant 24 : index
    %c0_943 = arith.constant 0 : index
    %866 = vector.load %arg8[%c24_942, %c0_943] : memref<80x256xf32, #tpu.memory_space<vmem>>, vector<8x256xf32>
    tpu.vector_store %arg8[%c24_942, %c0_943], %865 {strides = array<i32>} : memref<80x256xf32, #tpu.memory_space<vmem>>, vector<8x256xf32>,
    %c32_944 = arith.constant 32 : index
    %c0_945 = arith.constant 0 : index
    %867 = vector.load %arg8[%c32_944, %c0_945] : memref<80x256xf32, #tpu.memory_space<vmem>>, vector<8x256xf32>
    tpu.vector_store %arg8[%c32_944, %c0_945], %846 {strides = array<i32>} : memref<80x256xf32, #tpu.memory_space<vmem>>, vector<8x256xf32>,
    %c255_i32_946 = arith.constant 255 : i32
    %868 = tpu.dynamic_rotate %846 by %c255_i32_946 dim 1 : vector<8x256xf32>, i32 -> vector<8x256xf32>
    %c4_947 = arith.constant 4 : index
    %c0_948 = arith.constant 0 : index
    %c0_949 = arith.constant 0 : index
    %869 = vector.load %arg6[%c4_947, %c0_948, %c0_949] : memref<8x8x256xf32, #tpu.memory_space<vmem>>, vector<1x8x256xf32>
    %870 = vector.shape_cast %869 : vector<1x8x256xf32> to vector<8x256xf32>
    %871 = arith.mulf %868, %870 : vector<8x256xf32>
    %c40_950 = arith.constant 40 : index
    %c0_951 = arith.constant 0 : index
    %872 = vector.load %arg8[%c40_950, %c0_951] : memref<80x256xf32, #tpu.memory_space<vmem>>, vector<8x256xf32>
    tpu.vector_store %arg8[%c40_950, %c0_951], %871 {strides = array<i32>} : memref<80x256xf32, #tpu.memory_space<vmem>>, vector<8x256xf32>,
    %c241_i32_952 = arith.constant 241 : i32
    %873 = tpu.dynamic_rotate %846 by %c241_i32_952 dim 1 : vector<8x256xf32>, i32 -> vector<8x256xf32>
    %c5_953 = arith.constant 5 : index
    %c0_954 = arith.constant 0 : index
    %c0_955 = arith.constant 0 : index
    %874 = vector.load %arg6[%c5_953, %c0_954, %c0_955] : memref<8x8x256xf32, #tpu.memory_space<vmem>>, vector<1x8x256xf32>
    %875 = vector.shape_cast %874 : vector<1x8x256xf32> to vector<8x256xf32>
    %876 = arith.mulf %873, %875 : vector<8x256xf32>
    %c48_956 = arith.constant 48 : index
    %c0_957 = arith.constant 0 : index
    %877 = vector.load %arg8[%c48_956, %c0_957] : memref<80x256xf32, #tpu.memory_space<vmem>>, vector<8x256xf32>
    tpu.vector_store %arg8[%c48_956, %c0_957], %876 {strides = array<i32>} : memref<80x256xf32, #tpu.memory_space<vmem>>, vector<8x256xf32>,
    %c240_i32_958 = arith.constant 240 : i32
    %878 = tpu.dynamic_rotate %846 by %c240_i32_958 dim 1 : vector<8x256xf32>, i32 -> vector<8x256xf32>
    %c6_959 = arith.constant 6 : index
    %c0_960 = arith.constant 0 : index
    %c0_961 = arith.constant 0 : index
    %879 = vector.load %arg6[%c6_959, %c0_960, %c0_961] : memref<8x8x256xf32, #tpu.memory_space<vmem>>, vector<1x8x256xf32>
    %880 = vector.shape_cast %879 : vector<1x8x256xf32> to vector<8x256xf32>
    %881 = arith.mulf %878, %880 : vector<8x256xf32>
    %c56_962 = arith.constant 56 : index
    %c0_963 = arith.constant 0 : index
    %882 = vector.load %arg8[%c56_962, %c0_963] : memref<80x256xf32, #tpu.memory_space<vmem>>, vector<8x256xf32>
    tpu.vector_store %arg8[%c56_962, %c0_963], %881 {strides = array<i32>} : memref<80x256xf32, #tpu.memory_space<vmem>>, vector<8x256xf32>,
    %c239_i32_964 = arith.constant 239 : i32
    %883 = tpu.dynamic_rotate %846 by %c239_i32_964 dim 1 : vector<8x256xf32>, i32 -> vector<8x256xf32>
    %c7_965 = arith.constant 7 : index
    %c0_966 = arith.constant 0 : index
    %c0_967 = arith.constant 0 : index
    %884 = vector.load %arg6[%c7_965, %c0_966, %c0_967] : memref<8x8x256xf32, #tpu.memory_space<vmem>>, vector<1x8x256xf32>
    %885 = vector.shape_cast %884 : vector<1x8x256xf32> to vector<8x256xf32>
    %886 = arith.mulf %883, %885 : vector<8x256xf32>
    %c64_968 = arith.constant 64 : index
    %c0_969 = arith.constant 0 : index
    %887 = vector.load %arg8[%c64_968, %c0_969] : memref<80x256xf32, #tpu.memory_space<vmem>>, vector<8x256xf32>
    tpu.vector_store %arg8[%c64_968, %c0_969], %886 {strides = array<i32>} : memref<80x256xf32, #tpu.memory_space<vmem>>, vector<8x256xf32>,
    %c4_970 = arith.constant 4 : index
    %c0_971 = arith.constant 0 : index
    %c0_972 = arith.constant 0 : index
    %888 = vector.load %arg5[%c4_970, %c0_971, %c0_972] : memref<6x8x80xbf16, #tpu.memory_space<vmem>>, vector<1x8x80xbf16>
    %889 = vector.shape_cast %888 : vector<1x8x80xbf16> to vector<8x80xbf16>
    %c0_973 = arith.constant 0 : index
    %c0_974 = arith.constant 0 : index
    %890 = vector.load %arg8[%c0_973, %c0_974] : memref<80x256xf32, #tpu.memory_space<vmem>>, vector<80x256xf32>
    %891 = arith.truncf %890 : vector<80x256xf32> to vector<80x256xbf16>
    %cst_975 = arith.constant dense<0.000000e+00> : vector<8x256xf32>
    %892 = tpu.matmul %889, %891, %cst_975 {dimension_numbers = #tpu.dot_dimension_numbers<[1], [0], [0], [1], [0, 0, 1, 1], [], []>} : vector<8x80xbf16>, vector<80x256xbf16>, vector<8x256xf32> -> vector<8x256xf32>
    %893 = arith.addf %798, %892 : vector<8x256xf32>
    %c17_i32_976 = arith.constant 17 : i32
    %894 = tpu.dynamic_rotate %893 by %c17_i32_976 dim 1 : vector<8x256xf32>, i32 -> vector<8x256xf32>
    %c0_977 = arith.constant 0 : index
    %c0_978 = arith.constant 0 : index
    %c0_979 = arith.constant 0 : index
    %895 = vector.load %arg6[%c0_977, %c0_978, %c0_979] : memref<8x8x256xf32, #tpu.memory_space<vmem>>, vector<1x8x256xf32>
    %896 = vector.shape_cast %895 : vector<1x8x256xf32> to vector<8x256xf32>
    %897 = arith.mulf %894, %896 : vector<8x256xf32>
    %c0_980 = arith.constant 0 : index
    %c0_981 = arith.constant 0 : index
    %898 = vector.load %arg8[%c0_980, %c0_981] : memref<80x256xf32, #tpu.memory_space<vmem>>, vector<8x256xf32>
    tpu.vector_store %arg8[%c0_980, %c0_981], %897 {strides = array<i32>} : memref<80x256xf32, #tpu.memory_space<vmem>>, vector<8x256xf32>,
    %c16_i32_982 = arith.constant 16 : i32
    %899 = tpu.dynamic_rotate %893 by %c16_i32_982 dim 1 : vector<8x256xf32>, i32 -> vector<8x256xf32>
    %c1_983 = arith.constant 1 : index
    %c0_984 = arith.constant 0 : index
    %c0_985 = arith.constant 0 : index
    %900 = vector.load %arg6[%c1_983, %c0_984, %c0_985] : memref<8x8x256xf32, #tpu.memory_space<vmem>>, vector<1x8x256xf32>
    %901 = vector.shape_cast %900 : vector<1x8x256xf32> to vector<8x256xf32>
    %902 = arith.mulf %899, %901 : vector<8x256xf32>
    %c8_986 = arith.constant 8 : index
    %c0_987 = arith.constant 0 : index
    %903 = vector.load %arg8[%c8_986, %c0_987] : memref<80x256xf32, #tpu.memory_space<vmem>>, vector<8x256xf32>
    tpu.vector_store %arg8[%c8_986, %c0_987], %902 {strides = array<i32>} : memref<80x256xf32, #tpu.memory_space<vmem>>, vector<8x256xf32>,
    %c15_i32_988 = arith.constant 15 : i32
    %904 = tpu.dynamic_rotate %893 by %c15_i32_988 dim 1 : vector<8x256xf32>, i32 -> vector<8x256xf32>
    %c2_989 = arith.constant 2 : index
    %c0_990 = arith.constant 0 : index
    %c0_991 = arith.constant 0 : index
    %905 = vector.load %arg6[%c2_989, %c0_990, %c0_991] : memref<8x8x256xf32, #tpu.memory_space<vmem>>, vector<1x8x256xf32>
    %906 = vector.shape_cast %905 : vector<1x8x256xf32> to vector<8x256xf32>
    %907 = arith.mulf %904, %906 : vector<8x256xf32>
    %c16_992 = arith.constant 16 : index
    %c0_993 = arith.constant 0 : index
    %908 = vector.load %arg8[%c16_992, %c0_993] : memref<80x256xf32, #tpu.memory_space<vmem>>, vector<8x256xf32>
    tpu.vector_store %arg8[%c16_992, %c0_993], %907 {strides = array<i32>} : memref<80x256xf32, #tpu.memory_space<vmem>>, vector<8x256xf32>,
    %c1_i32_994 = arith.constant 1 : i32
    %909 = tpu.dynamic_rotate %893 by %c1_i32_994 dim 1 : vector<8x256xf32>, i32 -> vector<8x256xf32>
    %c3_995 = arith.constant 3 : index
    %c0_996 = arith.constant 0 : index
    %c0_997 = arith.constant 0 : index
    %910 = vector.load %arg6[%c3_995, %c0_996, %c0_997] : memref<8x8x256xf32, #tpu.memory_space<vmem>>, vector<1x8x256xf32>
    %911 = vector.shape_cast %910 : vector<1x8x256xf32> to vector<8x256xf32>
    %912 = arith.mulf %909, %911 : vector<8x256xf32>
    %c24_998 = arith.constant 24 : index
    %c0_999 = arith.constant 0 : index
    %913 = vector.load %arg8[%c24_998, %c0_999] : memref<80x256xf32, #tpu.memory_space<vmem>>, vector<8x256xf32>
    tpu.vector_store %arg8[%c24_998, %c0_999], %912 {strides = array<i32>} : memref<80x256xf32, #tpu.memory_space<vmem>>, vector<8x256xf32>,
    %c32_1000 = arith.constant 32 : index
    %c0_1001 = arith.constant 0 : index
    %914 = vector.load %arg8[%c32_1000, %c0_1001] : memref<80x256xf32, #tpu.memory_space<vmem>>, vector<8x256xf32>
    tpu.vector_store %arg8[%c32_1000, %c0_1001], %893 {strides = array<i32>} : memref<80x256xf32, #tpu.memory_space<vmem>>, vector<8x256xf32>,
    %c255_i32_1002 = arith.constant 255 : i32
    %915 = tpu.dynamic_rotate %893 by %c255_i32_1002 dim 1 : vector<8x256xf32>, i32 -> vector<8x256xf32>
    %c4_1003 = arith.constant 4 : index
    %c0_1004 = arith.constant 0 : index
    %c0_1005 = arith.constant 0 : index
    %916 = vector.load %arg6[%c4_1003, %c0_1004, %c0_1005] : memref<8x8x256xf32, #tpu.memory_space<vmem>>, vector<1x8x256xf32>
    %917 = vector.shape_cast %916 : vector<1x8x256xf32> to vector<8x256xf32>
    %918 = arith.mulf %915, %917 : vector<8x256xf32>
    %c40_1006 = arith.constant 40 : index
    %c0_1007 = arith.constant 0 : index
    %919 = vector.load %arg8[%c40_1006, %c0_1007] : memref<80x256xf32, #tpu.memory_space<vmem>>, vector<8x256xf32>
    tpu.vector_store %arg8[%c40_1006, %c0_1007], %918 {strides = array<i32>} : memref<80x256xf32, #tpu.memory_space<vmem>>, vector<8x256xf32>,
    %c241_i32_1008 = arith.constant 241 : i32
    %920 = tpu.dynamic_rotate %893 by %c241_i32_1008 dim 1 : vector<8x256xf32>, i32 -> vector<8x256xf32>
    %c5_1009 = arith.constant 5 : index
    %c0_1010 = arith.constant 0 : index
    %c0_1011 = arith.constant 0 : index
    %921 = vector.load %arg6[%c5_1009, %c0_1010, %c0_1011] : memref<8x8x256xf32, #tpu.memory_space<vmem>>, vector<1x8x256xf32>
    %922 = vector.shape_cast %921 : vector<1x8x256xf32> to vector<8x256xf32>
    %923 = arith.mulf %920, %922 : vector<8x256xf32>
    %c48_1012 = arith.constant 48 : index
    %c0_1013 = arith.constant 0 : index
    %924 = vector.load %arg8[%c48_1012, %c0_1013] : memref<80x256xf32, #tpu.memory_space<vmem>>, vector<8x256xf32>
    tpu.vector_store %arg8[%c48_1012, %c0_1013], %923 {strides = array<i32>} : memref<80x256xf32, #tpu.memory_space<vmem>>, vector<8x256xf32>,
    %c240_i32_1014 = arith.constant 240 : i32
    %925 = tpu.dynamic_rotate %893 by %c240_i32_1014 dim 1 : vector<8x256xf32>, i32 -> vector<8x256xf32>
    %c6_1015 = arith.constant 6 : index
    %c0_1016 = arith.constant 0 : index
    %c0_1017 = arith.constant 0 : index
    %926 = vector.load %arg6[%c6_1015, %c0_1016, %c0_1017] : memref<8x8x256xf32, #tpu.memory_space<vmem>>, vector<1x8x256xf32>
    %927 = vector.shape_cast %926 : vector<1x8x256xf32> to vector<8x256xf32>
    %928 = arith.mulf %925, %927 : vector<8x256xf32>
    %c56_1018 = arith.constant 56 : index
    %c0_1019 = arith.constant 0 : index
    %929 = vector.load %arg8[%c56_1018, %c0_1019] : memref<80x256xf32, #tpu.memory_space<vmem>>, vector<8x256xf32>
    tpu.vector_store %arg8[%c56_1018, %c0_1019], %928 {strides = array<i32>} : memref<80x256xf32, #tpu.memory_space<vmem>>, vector<8x256xf32>,
    %c239_i32_1020 = arith.constant 239 : i32
    %930 = tpu.dynamic_rotate %893 by %c239_i32_1020 dim 1 : vector<8x256xf32>, i32 -> vector<8x256xf32>
    %c7_1021 = arith.constant 7 : index
    %c0_1022 = arith.constant 0 : index
    %c0_1023 = arith.constant 0 : index
    %931 = vector.load %arg6[%c7_1021, %c0_1022, %c0_1023] : memref<8x8x256xf32, #tpu.memory_space<vmem>>, vector<1x8x256xf32>
    %932 = vector.shape_cast %931 : vector<1x8x256xf32> to vector<8x256xf32>
    %933 = arith.mulf %930, %932 : vector<8x256xf32>
    %c64_1024 = arith.constant 64 : index
    %c0_1025 = arith.constant 0 : index
    %934 = vector.load %arg8[%c64_1024, %c0_1025] : memref<80x256xf32, #tpu.memory_space<vmem>>, vector<8x256xf32>
    tpu.vector_store %arg8[%c64_1024, %c0_1025], %933 {strides = array<i32>} : memref<80x256xf32, #tpu.memory_space<vmem>>, vector<8x256xf32>,
    %c5_1026 = arith.constant 5 : index
    %c0_1027 = arith.constant 0 : index
    %c0_1028 = arith.constant 0 : index
    %935 = vector.load %arg5[%c5_1026, %c0_1027, %c0_1028] : memref<6x8x80xbf16, #tpu.memory_space<vmem>>, vector<1x8x80xbf16>
    %936 = vector.shape_cast %935 : vector<1x8x80xbf16> to vector<8x80xbf16>
    %c0_1029 = arith.constant 0 : index
    %c0_1030 = arith.constant 0 : index
    %937 = vector.load %arg8[%c0_1029, %c0_1030] : memref<80x256xf32, #tpu.memory_space<vmem>>, vector<80x256xf32>
    %938 = arith.truncf %937 : vector<80x256xf32> to vector<80x256xbf16>
    %cst_1031 = arith.constant dense<0.000000e+00> : vector<8x256xf32>
    %939 = tpu.matmul %936, %938, %cst_1031 {dimension_numbers = #tpu.dot_dimension_numbers<[1], [0], [0], [1], [0, 0, 1, 1], [], []>} : vector<8x80xbf16>, vector<80x256xbf16>, vector<8x256xf32> -> vector<8x256xf32>
    %cst_1032 = arith.constant 1.000000e+00 : f32
    %940 = vector.broadcast %cst_1032 : f32 to vector<8x256xf32>
    %941 = arith.mulf %940, %939 : vector<8x256xf32>
    %942 = arith.subf %652, %941 : vector<8x256xf32>
    %943 = arith.truncf %649 : vector<8x256xf32> to vector<8x256xbf16>
    %cst_1033 = arith.constant dense<0.000000e+00> : vector<8x128xf32>
    %944 = tpu.matmul %943, %3, %cst_1033 {dimension_numbers = #tpu.dot_dimension_numbers<[1], [0], [0], [1], [0, 0, 1, 1], [], []>} : vector<8x256xbf16>, vector<256x128xbf16>, vector<8x128xf32> -> vector<8x128xf32>
    %945 = arith.subf %944, %0 : vector<8x128xf32>
    %cst_1034 = arith.constant 1.000000e+00 : f32
    %946 = vector.broadcast %cst_1034 : f32 to vector<8x128xf32>
    %947 = arith.mulf %946, %945 : vector<8x128xf32>
    %948 = arith.addf %638, %947 : vector<8x128xf32>
    %cst_1035 = arith.constant 0.909090936 : f32
    %949 = vector.broadcast %cst_1035 : f32 to vector<8x128xf32>
    %950 = arith.mulf %948, %949 : vector<8x128xf32>
    %951 = arith.truncf %950 : vector<8x128xf32> to vector<8x128xbf16>
    %cst_1036 = arith.constant dense<0.000000e+00> : vector<8x256xf32>
    %952 = tpu.matmul %951, %4, %cst_1036 {dimension_numbers = #tpu.dot_dimension_numbers<[1], [0], [0], [1], [0, 0, 1, 1], [], []>} : vector<8x128xbf16>, vector<128x256xbf16>, vector<8x256xf32> -> vector<8x256xf32>
    %953 = arith.addf %942, %952 : vector<8x256xf32>
    %954 = arith.subf %953, %18 : vector<8x256xf32>
    %cst_1037 = arith.constant 5.000000e-02 : f32
    %955 = vector.broadcast %cst_1037 : f32 to vector<8x256xf32>
    %956 = arith.mulf %955, %954 : vector<8x256xf32>
    %957 = arith.subf %646, %956 : vector<8x256xf32>
    %958 = arith.mulf %957, %25 : vector<8x256xf32>
    %c0_1038 = arith.constant 0 : index
    %c0_1039 = arith.constant 0 : index
    %959 = vector.load %arg7[%c0_1038, %c0_1039] : memref<8x256xf32, #tpu.memory_space<vmem>>, vector<8x256xf32>
    tpu.vector_store %arg7[%c0_1038, %c0_1039], %958 {strides = array<i32>} : memref<8x256xf32, #tpu.memory_space<vmem>>, vector<8x256xf32>,
    return
  }
}

</mosaic_0001>

<bundles_post_ra>
// kernel: vpsnet_forward.1
= control target key start
LH: loop header
LB: loop body
LE: loop exit
PB: predicated region body
PF: predicated region fallthrough
CT: control target
= control target key end

     0   :  { %s4505_s9 = smov 16   ;;  %s4506_s10 = smov 17   ;;  %v4511_v20 = vmov 0   ;;  %v408_v43 = vlaneseq  ;;  %vm550_vm8 = vcmask 654336   ;;  %s7136_s1 = inlined_call_operand.vmem [shape: f32[8,256], index: 1, kind: input, shape index: {}]   ;;  %s7137_s3 = inlined_call_operand.vmem [shape: bf16[256,128], index: 3, kind: input, shape index: {}]   ;;  %s7138_s2 = inlined_call_operand.vmem [shape: f32[8,256], index: 2, kind: input, shape index: {}]   ;;  %s7139_s4 = inlined_call_operand.vmem [shape: bf16[128,256], index: 4, kind: input, shape index: {}]   ;;  %s7140_s0 = inlined_call_operand.vmem [shape: f32[8,128], index: 0, kind: input, shape index: {}]   ;;  %s7141_s6 = inlined_call_operand.vmem [shape: f32[8,8,256], index: 6, kind: input, shape index: {}]   ;;  %s7142_s5 = inlined_call_operand.vmem [shape: bf16[6,8,80], index: 5, kind: input, shape index: {}]   ;;  %s7143_s7 = inlined_call_operand.vmem [shape: f32[8,256], index: 7, kind: output, shape index: {}]  }
   0x1   :  { %v28_v0 = vld [vmem:[%s7136_s1] sm:$0xff]  ;;  %v29_v1 = vld [vmem:[%s7136_s1 + $0x8] sm:$0xff]  ;;  %v4364_v8 = vld [vmem:[%s7137_s3 + $0x50] sm:$0xff]   ;;  %s4507_s21 = smov 15   ;;  %s4508_s26 = smov 1   ;;  %195 = vmatprep.mubr.bf16.mxu0 %v4511_v20 }
   0x2   :  { %v4561_v2 = vadd.f32 %v28_v0, %v28_v0  ;;  %v4360_v3 = vld [vmem:[%s7137_s3 + $0x40] sm:$0xff]   ;;  %v4573_v5 = vadd.f32 %v29_v1, %v29_v1  ;;  %v4362_v6 = vld [vmem:[%s7137_s3 + $0x48] sm:$0xff]   ;;  %v4365_v9 = vld [vmem:[%s7137_s3 + $0x10] sm:$0xff]   ;;  %s4509_s8 = smov 127   ;;  %s4510_s17 = smov 113   ;;  %v4713_v44 = vand.u32 127, %v408_v43 }
   0x3   :  { %v4361_v4 = vld [vmem:[%s7137_s3] sm:$0xff]   ;;  %4240 = vmatprep.subr.bf16.mxu1 %v4360_v3  ;;  %v4363_v7 = vld [vmem:[%s7137_s3 + $0x8] sm:$0xff]   ;;  %v4366_v10 = vld [vmem:[%s7137_s3 + $0x58] sm:$0xff]   ;;  %s4512_s23 = smov 112   ;;  %s4513_s15 = smov 111  }
   0x4   :  { %419 = vrot.lane.b32.xlu1 %v4561_v2, %s4505_s9  ;;  %404 = vrot.lane.b32.xlu0 %v4561_v2, %s4506_s10  ;;  %v4367_v11 = vld [vmem:[%s7137_s3 + $0x18] sm:$0xff]   ;;  %v4368_v12 = vld [vmem:[%s7137_s3 + $0x60] sm:$0xff]   ;;  %vm423_vm0 = vcmp.lt.s32.totalorder %v4713_v44, 16  ;;  %vm410_vm1 = vcmp.lt.s32.totalorder %v4713_v44, 17  ;;  %vm437_vm2 = vcmp.lt.s32.totalorder %v4713_v44, 15  ;;  %vm451_vm3 = vcmp.lt.s32.totalorder %v4713_v44, 1 }
   0x5   :  { %4241 = vmatpush3.bf16.msra.mxu1 %v4361_v4  ;;  %v4369_v13 = vld [vmem:[%s7137_s3 + $0x20] sm:$0xff]   ;;  %v4370_v14 = vld [vmem:[%s7137_s3 + $0x68] sm:$0xff]   ;;  %v4372_v17 = vld [vmem:[%s7137_s3 + $0x70] sm:$0xff]   ;;  %vm467_vm4 = vcmp.lt.s32.totalorder %v4713_v44, 127  ;;  %vm481_vm5 = vcmp.lt.s32.totalorder %v4713_v44, 113  ;;  %vm495_vm6 = vcmp.lt.s32.totalorder %v4713_v44, 112 }
   0x6   :  { %4242 = vmatprep.subr.bf16.mxu1 %v4362_v6  ;;  %v4371_v15 = vld [vmem:[%s7137_s3 + $0x28] sm:$0xff]   ;;  %v4373_v19 = vld [vmem:[%s7137_s3 + $0x30] sm:$0xff]   ;;  %v4374_v21 = vld [vmem:[%s7137_s3 + $0x78] sm:$0xff]   ;;  %vm509_vm7 = vcmp.lt.s32.totalorder %v4713_v44, 111 }
   0x7   :  { %v4624_v16 = vld [vmem:[%s7138_s2 + $0x8] sm:$0xff]  ;;  %v4375_v22 = vld [vmem:[%s7137_s3 + $0x38] sm:$0xff]   ;;  %v4652_v23 = vld [vmem:[%s7138_s2] sm:$0xff] }
   0x8   :  { %421 = vrot.lane.b32.xlu1 %v4573_v5, %s4505_s9  ;;  %406 = vrot.lane.b32.xlu0 %v4573_v5, %s4506_s10  ;;  %v205_v18 = vpack.c.bf16 %v4624_v16, %v4624_v16  ;;  %v4376_v24 = vld [vmem:[%s7139_s4 + $0x4] ss:$8 sps:$4 sm:$0xff]   ;;  %v4378_v25 = vld [vmem:[%s7139_s4] ss:$8 sps:$4 sm:$0xff]   ;;  %v204_v27 = vpack.c.bf16 %v4652_v23, %v4652_v23 }
   0x9   :  { %4243 = vmatpush3.bf16.msra.mxu1 %v4363_v7  ;;  %163 = vmatprep.subr.bf16.mxu0 %v4376_v24  ;;  %v4379_v26 = vld [vmem:[%s7139_s4 + $0x14] ss:$8 sps:$4 sm:$0xff]   ;;  %v4381_v28 = vld [vmem:[%s7139_s4 + $0x10] ss:$8 sps:$4 sm:$0xff]   ;;  %v4382_v29 = vld [vmem:[%s7139_s4 + $0x24] ss:$8 sps:$4 sm:$0xff]  }
   0xa   :  { %4244 = vmatprep.subr.bf16.mxu1 %v4364_v8  ;;  %334 = vmatprep.mubr.bf16.mxu1 %v205_v18  ;;  %v4384_v30 = vld [vmem:[%s7139_s4 + $0x20] ss:$8 sps:$4 sm:$0xff]   ;;  %v4385_v31 = vld [vmem:[%s7139_s4 + $0x34] ss:$8 sps:$4 sm:$0xff]   ;;  %v4387_v32 = vld [vmem:[%s7139_s4 + $0x30] ss:$8 sps:$4 sm:$0xff]  }
   0xb   :  { %164 = vmatpush1.bf16.msra.mxu0 %v4378_v25  ;;  %v4388_v33 = vld [vmem:[%s7139_s4 + $0x44] ss:$8 sps:$4 sm:$0xff]   ;;  %v4390_v34 = vld [vmem:[%s7139_s4 + $0x40] ss:$8 sps:$4 sm:$0xff]   ;;  %v4391_v35 = vld [vmem:[%s7139_s4 + $0x54] ss:$8 sps:$4 sm:$0xff]  }
   0xc   :  { %435 = vrot.lane.b32.xlu1 %v4573_v5, %s4507_s21  ;;  %433 = vrot.lane.b32.xlu0 %v4561_v2, %s4507_s21  ;;  %v4393_v36 = vld [vmem:[%s7139_s4 + $0x50] ss:$8 sps:$4 sm:$0xff]   ;;  %v4394_v37 = vld [vmem:[%s7139_s4 + $0x64] ss:$8 sps:$4 sm:$0xff]  }
   0xd   :  { %4245 = vmatpush3.bf16.msra.mxu1 %v4365_v9  ;;  %165 = vmatprep.subr.bf16.mxu0 %v4379_v26  ;;  %v4396_v38 = vld [vmem:[%s7139_s4 + $0x60] ss:$8 sps:$4 sm:$0xff]   ;;  %v4397_v39 = vld [vmem:[%s7139_s4 + $0x74] ss:$8 sps:$4 sm:$0xff]   ;;  %v4399_v40 = vld [vmem:[%s7139_s4 + $0x70] ss:$8 sps:$4 sm:$0xff]  }
   0xe   :  { %4246 = vmatprep.subr.bf16.mxu1 %v4366_v10  ;;  %v27_v41 = vld [vmem:[%s7140_s0] sm:$0xff]  ;;  %v4719_v47 = vld [vmem:[%s7141_s6 + $0x10] sm:$0xff]  ;;  %v4725_v48 = vld [vmem:[%s7141_s6 + $0x18] sm:$0xff] }
   0xf   :  { %166 = vmatpush1.bf16.msra.mxu0 %v4381_v28  ;;  %v82_v42 = vpack.c.bf16 %v27_v41, %v27_v41  ;;  %v4730_v49 = vld [vmem:[%s7141_s6] sm:$0xff]  ;;  %v4735_v50 = vld [vmem:[%s7141_s6 + $0x8] sm:$0xff]  ;;  %v4768_v7 = vld [vmem:[%s7141_s6 + $0x30] sm:$0xff] }
  0x10   :  { %449 = vrot.lane.b32.xlu1 %v4573_v5, %s4508_s26  ;;  %447 = vrot.lane.b32.xlu0 %v4561_v2, %s4508_s26  ;;  %v4753_v1 = vld [vmem:[%s7141_s6 + $0x20] sm:$0xff]  ;;  %v4759_v3 = vld [vmem:[%s7141_s6 + $0x28] sm:$0xff] }
  0x11   :  { %4247 = vmatpush3.bf16.msra.mxu1 %v4367_v11  ;;  %167 = vmatprep.subr.bf16.mxu0 %v4382_v29  ;;  %v4773_v8 = vld [vmem:[%s7141_s6 + $0x38] sm:$0xff]  ;;  %v4787_v18 = vld [vmem:[%s7141_s6 + $0x40] sm:$0xff] }
  0x12   :  { %4248 = vmatprep.subr.bf16.mxu1 %v4368_v12  ;;  %v4488_v44 = vld [vmem:[%s7139_s4 + $0x4] ss:$8 sps:$4 sm:$0xff]  }
  0x13   :  { %168 = vmatpush1.bf16.msra.mxu0 %v4384_v30 }
  0x14   :  { %465 = vrot.lane.b32.xlu1 %v4573_v5, %s4509_s8  ;;  %463 = vrot.lane.b32.xlu0 %v4561_v2, %s4509_s8 }
  0x15   :  { %4249 = vmatpush3.bf16.msra.mxu1 %v4369_v13  ;;  %169 = vmatprep.subr.bf16.mxu0 %v4385_v31 }
  0x16   :  { %4250 = vmatprep.subr.bf16.mxu1 %v4370_v14 }
  0x17   :  { %170 = vmatpush1.bf16.msra.mxu0 %v4387_v32 }
  0x18   :  { %479 = vrot.lane.b32.xlu1 %v4573_v5, %s4510_s17  ;;  %477 = vrot.lane.b32.xlu0 %v4561_v2, %s4510_s17 }
  0x19   :  { %4251 = vmatpush3.bf16.msra.mxu1 %v4371_v15  ;;  %171 = vmatprep.subr.bf16.mxu0 %v4388_v33 }
  0x1a   :  { %4252 = vmatprep.subr.bf16.mxu1 %v4372_v17 }
  0x1b   :  { %172 = vmatpush1.bf16.msra.mxu0 %v4390_v34 }
  0x1c   :  { %493 = vrot.lane.b32.xlu1 %v4573_v5, %s4512_s23  ;;  %491 = vrot.lane.b32.xlu0 %v4561_v2, %s4512_s23 }
  0x1d   :  { %4253 = vmatpush3.bf16.msra.mxu1 %v4373_v19  ;;  %173 = vmatprep.subr.bf16.mxu0 %v4391_v35  ;;  %v4792_v19 = vld [vmem:[%s7141_s6 + $0x48] sm:$0xff] }
  0x1e   :  { %4254 = vmatprep.subr.bf16.mxu1 %v4374_v21 }
  0x1f   :  { %174 = vmatpush1.bf16.msra.mxu0 %v4393_v36 }
  0x20   :  { %507 = vrot.lane.b32.xlu1 %v4573_v5, %s4513_s15  ;;  %505 = vrot.lane.b32.xlu0 %v4561_v2, %s4513_s15 }
  0x21   :  { %4255 = vmatpush3.bf16.msra.mxu1 %v4375_v22  ;;  %175 = vmatprep.subr.bf16.mxu0 %v4394_v37 }
  0x23   :  { %176 = vmatpush1.bf16.msra.mxu0 %v4396_v38 }
  0x24   :  { %335 = vmatmul.mubr.bf16.vlgmr.msra.gmra.mrb[0].mxu1 %v204_v27  ;;  %177 = vmatprep.subr.bf16.mxu0 %v4397_v39 }
  0x25   :  { %586 = vmatprep.mubr.bf16.mxu1 %v4511_v20 }
  0x27   :  { %178 = vmatpush1.bf16.msra.mxu0 %v4399_v40 }
  0x28   :  { %343 = vmatprep.subr.bf16.mxu0 %v4376_v24 }
  0x2a   :  { %196 = vmatmul.mubr.bf16.vlgmr.msra.gmra.mrb[0].mxu0 %v82_v42 }
  0x2b   :  { %344 = vmatpush1.bf16.msra.mxu0 %v4378_v25  ;;  %375 = vmatprep.mubr.bf16.mxu0 %v4511_v20 }
  0x2c   :  { %345 = vmatprep.subr.bf16.mxu0 %v4379_v26 }
  0x2f   :  { %346 = vmatpush1.bf16.msra.mxu0 %v4381_v28 }
  0x30   :  { %347 = vmatprep.subr.bf16.mxu0 %v4382_v29 }
  0x33   :  { %348 = vmatpush1.bf16.msra.mxu0 %v4384_v30 }
  0x34   :  { %349 = vmatprep.subr.bf16.mxu0 %v4385_v31 }
  0x37   :  { %350 = vmatpush1.bf16.msra.mxu0 %v4387_v32 }
  0x38   :  { %351 = vmatprep.subr.bf16.mxu0 %v4388_v33 }
  0x3b   :  { %352 = vmatpush1.bf16.msra.mxu0 %v4390_v34  ;;  %v4806_v34 = vld [vmem:[%s7141_s6 + $0x50] sm:$0xff] }
  0x3c   :  { %353 = vmatprep.subr.bf16.mxu0 %v4391_v35  ;;  %v4812_v35 = vld [vmem:[%s7141_s6 + $0x58] sm:$0xff] }
  0x3f   :  { %354 = vmatpush1.bf16.msra.mxu0 %v4393_v36 }
  0x40   :  { %355 = vmatprep.subr.bf16.mxu0 %v4394_v37 }
  0x43   :  { %356 = vmatpush1.bf16.msra.mxu0 %v4396_v38  ;;  %v4821_v38 = vld [vmem:[%s7141_s6 + $0x60] sm:$0xff] }
  0x44   :  { %357 = vmatprep.subr.bf16.mxu0 %v4397_v39  ;;  %v4826_v39 = vld [vmem:[%s7141_s6 + $0x68] sm:$0xff] }
  0x47   :  { %358 = vmatpush1.bf16.msra.mxu0 %v4399_v40 }
  0x76   :  { %v420_v45 = vpop.permute.xlu1 %419  ;;  %v405_v46 = vpop.permute.xlu0 %404 }
  0x7a   :  { %v422_v51 = vpop.permute.xlu1 %421  ;;  %v407_v52 = vpop.permute.xlu0 %406 }
  0x7b   :  { %v424_v53 = vsel %vm423_vm0, %v420_v45, %v422_v51  ;;  %v425_v54 = vsel %vm423_vm0, %v422_v51, %v420_v45  ;;  %v411_v55 = vsel %vm410_vm1, %v405_v46, %v407_v52  ;;  %v412_v56 = vsel %vm410_vm1, %v407_v52, %v405_v46 }
  0x7c   :  { %v429_v57 = vmul.f32 %v4719_v47, %v425_v54  ;;  %v430_v58 = vmul.f32 %v4725_v48, %v424_v53  ;;  %v415_v59 = vmul.f32 %v4730_v49, %v412_v56  ;;  %v416_v60 = vmul.f32 %v4735_v50, %v411_v55  ;;  %v4840_v53 = vld [vmem:[%s7141_s6 + $0x70] sm:$0xff]  ;;  %v4845_v54 = vld [vmem:[%s7141_s6 + $0x78] sm:$0xff] }
  0x7e   :  { %v540_v61 = vpack.c.bf16 %v429_v57, %v415_v59  ;;  %v436_v62 = vpop.permute.xlu1 %435  ;;  %v434_v63 = vpop.permute.xlu0 %433  ;;  %v541_v0 = vpack.c.bf16 %v430_v58, %v416_v60 }
  0x7f   :  { %v438_v4 = vsel %vm437_vm2, %v434_v63, %v436_v62  ;;  %v439_v6 = vsel %vm437_vm2, %v436_v62, %v434_v63  ;;  %v4514_v63 = vmov 1.0  }
  0x80   :  { %554 = vmatprep.subr.bf16.mxu1 %v541_v0  ;;  %v443_v13 = vmul.f32 %v4753_v1, %v439_v6  ;;  %v444_v14 = vmul.f32 %v4759_v3, %v438_v4  ;;  %v519_v6 = vld [vmem:[%s7142_s5] sm:$0xf] }
  0x81   :  { %555 = vmatpush1.bf16.msra.mxu1 %v540_v61 }
  0x82   :  { %v450_v9 = vpop.permute.xlu1 %449  ;;  %v448_v10 = vpop.permute.xlu0 %447 }
  0x83   :  { %v452_v11 = vsel %vm451_vm3, %v448_v10, %v450_v9  ;;  %v453_v12 = vsel %vm451_vm3, %v450_v9, %v448_v10 }
  0x84   :  { %v457_v15 = vmul.f32 %v4768_v7, %v453_v12  ;;  %v458_v17 = vmul.f32 %v4773_v8, %v452_v11 }
  0x86   :  { %v542_v21 = vpack.c.bf16 %v457_v15, %v443_v13  ;;  %v466_v22 = vpop.permute.xlu1 %465  ;;  %v464_v24 = vpop.permute.xlu0 %463  ;;  %v543_v25 = vpack.c.bf16 %v458_v17, %v444_v14 }
  0x87   :  { %v468_v26 = vsel %vm467_vm4, %v464_v24, %v466_v22  ;;  %v469_v27 = vsel %vm467_vm4, %v466_v22, %v464_v24 }
  0x88   :  { %v473_v28 = vmul.f32 %v4787_v18, %v468_v26  ;;  %v474_v29 = vmul.f32 %v4792_v19, %v469_v27  ;;  %556 = vmatprep.subr.bf16.mxu1 %v543_v25 }
  0x89   :  { %557 = vmatpush1.bf16.msra.mxu1 %v542_v21 }
  0x8a   :  { %v544_v30 = vpack.c.bf16 %v473_v28, %v4561_v2  ;;  %v480_v31 = vpop.permute.xlu1 %479  ;;  %v478_v32 = vpop.permute.xlu0 %477  ;;  %v545_v33 = vpack.c.bf16 %v474_v29, %v4573_v5 }
  0x8b   :  { %v482_v36 = vsel %vm481_vm5, %v478_v32, %v480_v31  ;;  %v483_v37 = vsel %vm481_vm5, %v480_v31, %v478_v32 }
  0x8c   :  { %558 = vmatprep.subr.bf16.mxu1 %v545_v33  ;;  %v487_v45 = vmul.f32 %v4806_v34, %v482_v36  ;;  %v488_v46 = vmul.f32 %v4812_v35, %v483_v37 }
  0x8d   :  { %559 = vmatpush1.bf16.msra.mxu1 %v544_v30 }
  0x8e   :  { %v494_v40 = vpop.permute.xlu1 %493  ;;  %v492_v41 = vpop.permute.xlu0 %491 }
  0x8f   :  { %v496_v42 = vsel %vm495_vm6, %v492_v41, %v494_v40  ;;  %v497_v43 = vsel %vm495_vm6, %v494_v40, %v492_v41 }
  0x90   :  { %v501_v51 = vmul.f32 %v4821_v38, %v496_v42  ;;  %v502_v52 = vmul.f32 %v4826_v39, %v497_v43 }
  0x92   :  { %v546_v55 = vpack.c.bf16 %v501_v51, %v487_v45  ;;  %v508_v56 = vpop.permute.xlu1 %507  ;;  %v506_v57 = vpop.permute.xlu0 %505  ;;  %v547_v58 = vpack.c.bf16 %v502_v52, %v488_v46 }
  0x93   :  { %v510_v59 = vsel %vm509_vm7, %v506_v57, %v508_v56  ;;  %v511_v60 = vsel %vm509_vm7, %v508_v56, %v506_v57 }
  0x94   :  { %v515_v61 = vmul.f32 %v4840_v53, %v510_v59  ;;  %v516_v62 = vmul.f32 %v4845_v54, %v511_v60  ;;  %560 = vmatprep.subr.bf16.mxu1 %v547_v58 }
  0x95   :  { %561 = vmatpush1.bf16.msra.mxu1 %v546_v55 }
  0x96   :  { %v548_v0 = vpack.c.bf16 %v4514_v63, %v515_v61  ;;  %v549_v4 = vpack.c.bf16 %v4514_v63, %v516_v62 }
  0x98   :  { %562 = vmatprep.subr.bf16.mxu1 %v549_v4 }
  0x99   :  { %563 = vmatpush1.bf16.msra.mxu1 %v548_v0 }
  0x9c   :  { %3969 = vmatmul.mubr.msk.bf16.vlgmr.msra.gmra.mrb[4].mxu1 %vm550_vm8, %v519_v6 }
  0x9d   :  { %762 = vmatprep.mubr.bf16.mxu1 %v4511_v20 }
  0xf7   :  { %v4256_v9 = vpop.f32.mrb[0].mxu1 }
  0xf8   :  { %v4257_v10 = vpop.f32.mrb[1].mxu1 }
  0xf9   :  { %v4258_v11 = vadd.f32 %v4257_v10, %v4256_v9  ;;  %v4259_v12 = vpop.f32.mrb[2].mxu1 }
  0xfa   :  { %v4260_v13 = vpop.f32.mrb[3].mxu1 }
  0xfb   :  { %v342_v14 = vpack.c.bf16 %v4258_v11, %v4258_v11 }
  0xfd   :  { %376 = vmatmul.mubr.bf16.vlgmr.msra.gmra.mrb[4].mxu0 %v342_v14  ;;  %v197_v26 = vpop.f32.mrb[0].mxu0 }
  0xfe   :  { %938 = vmatprep.mubr.bf16.mxu0 %v4511_v20  ;;  %v199_v27 = vpop.f32.mrb[1].mxu0 }
  0xff   :  { %v201_v28 = vpop.f32.mrb[2].mxu0 }
 0x100   :  { %v202_v29 = vpop.f32.mrb[3].mxu0 }
 0x16f   :  { %v588_v15 = vpop.f32.mrb[4].mxu1 }
 0x170   :  { %v4861_v17 = vmax.f32 %v588_v15, 0.0  ;;  %v590_v21 = vpop.f32.mrb[5].mxu1 }
 0x171   :  { %v4863_v22 = vmax.f32 %v590_v21, 0.0  ;;  %v592_v24 = vpop.f32.mrb[6].mxu1 }
 0x172   :  { %597 = vrot.lane.b32.xlu0 %v4861_v17, %s4506_s10  ;;  %v593_v25 = vpop.f32.mrb[7].mxu1 }
 0x173   :  { %599 = vrot.lane.b32.xlu1 %v4863_v22, %s4506_s10 }
 0x176   :  { %609 = vrot.lane.b32.xlu0 %v4861_v17, %s4505_s9 }
 0x177   :  { %611 = vrot.lane.b32.xlu1 %v4863_v22, %s4505_s9 }
 0x17a   :  { %621 = vrot.lane.b32.xlu0 %v4861_v17, %s4507_s21 }
 0x17b   :  { %623 = vrot.lane.b32.xlu1 %v4863_v22, %s4507_s21 }
 0x17e   :  { %633 = vrot.lane.b32.xlu0 %v4861_v17, %s4508_s26 }
 0x17f   :  { %635 = vrot.lane.b32.xlu1 %v4863_v22, %s4508_s26 }
 0x182   :  { %647 = vrot.lane.b32.xlu0 %v4861_v17, %s4509_s8 }
 0x183   :  { %649 = vrot.lane.b32.xlu1 %v4863_v22, %s4509_s8 }
 0x186   :  { %659 = vrot.lane.b32.xlu0 %v4861_v17, %s4510_s17 }
 0x187   :  { %661 = vrot.lane.b32.xlu1 %v4863_v22, %s4510_s17 }
 0x18a   :  { %671 = vrot.lane.b32.xlu0 %v4861_v17, %s4512_s23 }
 0x18b   :  { %673 = vrot.lane.b32.xlu1 %v4863_v22, %s4512_s23 }
 0x18e   :  { %683 = vrot.lane.b32.xlu0 %v4861_v17, %s4513_s15 }
 0x18f   :  { %685 = vrot.lane.b32.xlu1 %v4863_v22, %s4513_s15 }
 0x1d0   :  { %v4897_v30 = vpop.f32.mrb[4].mxu0 }
 0x1d1   :  { %v386_v31 = vmul.f32 50.0, %v4897_v30  ;;  %v4900_v32 = vpop.f32.mrb[5].mxu0 }
 0x1d2   :  { %v387_v33 = vmul.f32 50.0, %v4900_v32  ;;  %v381_v36 = vpop.f32.mrb[6].mxu0 }
 0x1d3   :  { %v388_v37 = vmul.f32 %v386_v31, %v4652_v23  ;;  %v382_v40 = vpop.f32.mrb[7].mxu0 }
 0x1d4   :  { %v389_v41 = vmul.f32 %v387_v33, %v4624_v16 }
 0x1d5   :  { %v4905_v42 = vmul.f32 %v388_v37, %v197_v26 }
 0x1d6   :  { %v4907_v43 = vmul.f32 %v389_v41, %v199_v27 }
 0x1e4   :  { %v598_v45 = vpop.permute.xlu0 %597 }
 0x1e5   :  { %v600_v46 = vpop.permute.xlu1 %599 }
 0x1e6   :  { %v601_v51 = vsel %vm410_vm1, %v598_v45, %v600_v46  ;;  %v602_v52 = vsel %vm410_vm1, %v600_v46, %v598_v45 }
 0x1e7   :  { %v605_v57 = vmul.f32 %v602_v52, %v4730_v49  ;;  %v606_v58 = vmul.f32 %v601_v51, %v4735_v50 }
 0x1e8   :  { %v610_v55 = vpop.permute.xlu0 %609 }
 0x1e9   :  { %v612_v56 = vpop.permute.xlu1 %611 }
 0x1ea   :  { %v613_v23 = vsel %vm423_vm0, %v610_v55, %v612_v56  ;;  %v614_v16 = vsel %vm423_vm0, %v612_v56, %v610_v55 }
 0x1eb   :  { %v617_v59 = vmul.f32 %v4719_v47, %v614_v16  ;;  %v618_v60 = vmul.f32 %v4725_v48, %v613_v23 }
 0x1ec   :  { %v622_v61 = vpop.permute.xlu0 %621 }
 0x1ed   :  { %v717_v62 = vpack.c.bf16 %v617_v59, %v605_v57  ;;  %v624_v0 = vpop.permute.xlu1 %623  ;;  %v718_v4 = vpack.c.bf16 %v618_v60, %v606_v58 }
 0x1ee   :  { %v625_v6 = vsel %vm437_vm2, %v622_v61, %v624_v0  ;;  %v626_v9 = vsel %vm437_vm2, %v624_v0, %v622_v61 }
 0x1ef   :  { %730 = vmatprep.subr.bf16.mxu1 %v718_v4  ;;  %v629_v14 = vmul.f32 %v4753_v1, %v626_v9  ;;  %v630_v15 = vmul.f32 %v4759_v3, %v625_v6 }
 0x1f0   :  { %v634_v10 = vpop.permute.xlu0 %633  ;;  %731 = vmatpush1.bf16.msra.mxu1 %v717_v62 }
 0x1f1   :  { %v636_v11 = vpop.permute.xlu1 %635 }
 0x1f2   :  { %v637_v12 = vsel %vm451_vm3, %v634_v10, %v636_v11  ;;  %v638_v13 = vsel %vm451_vm3, %v636_v11, %v634_v10 }
 0x1f3   :  { %v641_v21 = vmul.f32 %v4768_v7, %v638_v13  ;;  %v642_v24 = vmul.f32 %v4773_v8, %v637_v12  ;;  %v3984_v13 = vld [vmem:[%s7142_s5 + $0x4] sm:$0xf] }
 0x1f4   :  { %v648_v25 = vpop.permute.xlu0 %647 }
 0x1f5   :  { %v719_v26 = vpack.c.bf16 %v641_v21, %v629_v14  ;;  %v650_v27 = vpop.permute.xlu1 %649  ;;  %v720_v28 = vpack.c.bf16 %v642_v24, %v630_v15 }
 0x1f6   :  { %v651_v29 = vsel %vm467_vm4, %v648_v25, %v650_v27  ;;  %v652_v31 = vsel %vm467_vm4, %v650_v27, %v648_v25 }
 0x1f7   :  { %v655_v33 = vmul.f32 %v4787_v18, %v651_v29  ;;  %v656_v36 = vmul.f32 %v4792_v19, %v652_v31  ;;  %732 = vmatprep.subr.bf16.mxu1 %v720_v28 }
 0x1f8   :  { %v660_v37 = vpop.permute.xlu0 %659  ;;  %733 = vmatpush1.bf16.msra.mxu1 %v719_v26 }
 0x1f9   :  { %v721_v40 = vpack.c.bf16 %v655_v33, %v4861_v17  ;;  %v662_v41 = vpop.permute.xlu1 %661  ;;  %v722_v45 = vpack.c.bf16 %v656_v36, %v4863_v22 }
 0x1fa   :  { %v663_v46 = vsel %vm481_vm5, %v660_v37, %v662_v41  ;;  %v664_v51 = vsel %vm481_vm5, %v662_v41, %v660_v37 }
 0x1fb   :  { %734 = vmatprep.subr.bf16.mxu1 %v722_v45  ;;  %v667_v16 = vmul.f32 %v4806_v34, %v663_v46  ;;  %v668_v57 = vmul.f32 %v4812_v35, %v664_v51 }
 0x1fc   :  { %v672_v52 = vpop.permute.xlu0 %671  ;;  %735 = vmatpush1.bf16.msra.mxu1 %v721_v40 }
 0x1fd   :  { %v674_v55 = vpop.permute.xlu1 %673 }
 0x1fe   :  { %v675_v56 = vsel %vm495_vm6, %v672_v52, %v674_v55  ;;  %v676_v23 = vsel %vm495_vm6, %v674_v55, %v672_v52 }
 0x1ff   :  { %v679_v58 = vmul.f32 %v4821_v38, %v675_v56  ;;  %v680_v59 = vmul.f32 %v4826_v39, %v676_v23 }
 0x200   :  { %v684_v60 = vpop.permute.xlu0 %683 }
 0x201   :  { %v723_v61 = vpack.c.bf16 %v679_v58, %v667_v16  ;;  %v686_v62 = vpop.permute.xlu1 %685  ;;  %v724_v0 = vpack.c.bf16 %v680_v59, %v668_v57 }
 0x202   :  { %v687_v4 = vsel %vm509_vm7, %v684_v60, %v686_v62  ;;  %v688_v6 = vsel %vm509_vm7, %v686_v62, %v684_v60 }
 0x203   :  { %v691_v9 = vmul.f32 %v4840_v53, %v687_v4  ;;  %v692_v10 = vmul.f32 %v4845_v54, %v688_v6  ;;  %736 = vmatprep.subr.bf16.mxu1 %v724_v0 }
 0x204   :  { %737 = vmatpush1.bf16.msra.mxu1 %v723_v61 }
 0x205   :  { %v725_v11 = vpack.c.bf16 %v4514_v63, %v691_v9  ;;  %v726_v12 = vpack.c.bf16 %v4514_v63, %v692_v10 }
 0x207   :  { %738 = vmatprep.subr.bf16.mxu1 %v726_v12 }
 0x208   :  { %739 = vmatpush1.bf16.msra.mxu1 %v725_v11 }
 0x20b   :  { %3985 = vmatmul.mubr.msk.bf16.vlgmr.msra.gmra.mrb[8].mxu1 %vm550_vm8, %v3984_v13 }
 0x20c   :  { %1114 = vmatprep.mubr.bf16.mxu1 %v4511_v20 }
 0x2de   :  { %v764_v14 = vpop.f32.mrb[8].mxu1 }
 0x2df   :  { %v4966_v15 = vmax.f32 %v764_v14, 0.0  ;;  %v766_v21 = vpop.f32.mrb[9].mxu1 }
 0x2e0   :  { %v772_v24 = vmax.f32 %v766_v21, 0.0  ;;  %v768_v25 = vpop.f32.mrb[10].mxu1 }
 0x2e1   :  { %773 = vrot.lane.b32.xlu0 %v4966_v15, %s4506_s10  ;;  %v769_v26 = vpop.f32.mrb[11].mxu1 }
 0x2e2   :  { %775 = vrot.lane.b32.xlu1 %v772_v24, %s4506_s10 }
 0x2e5   :  { %785 = vrot.lane.b32.xlu0 %v4966_v15, %s4505_s9 }
 0x2e6   :  { %787 = vrot.lane.b32.xlu1 %v772_v24, %s4505_s9 }
 0x2e9   :  { %797 = vrot.lane.b32.xlu0 %v4966_v15, %s4507_s21 }
 0x2ea   :  { %799 = vrot.lane.b32.xlu1 %v772_v24, %s4507_s21 }
 0x2ed   :  { %809 = vrot.lane.b32.xlu0 %v4966_v15, %s4508_s26 }
 0x2ee   :  { %811 = vrot.lane.b32.xlu1 %v772_v24, %s4508_s26 }
 0x2f1   :  { %823 = vrot.lane.b32.xlu0 %v4966_v15, %s4509_s8 }
 0x2f2   :  { %825 = vrot.lane.b32.xlu1 %v772_v24, %s4509_s8 }
 0x2f5   :  { %835 = vrot.lane.b32.xlu0 %v4966_v15, %s4510_s17 }
 0x2f6   :  { %837 = vrot.lane.b32.xlu1 %v772_v24, %s4510_s17 }
 0x2f9   :  { %847 = vrot.lane.b32.xlu0 %v4966_v15, %s4512_s23 }
 0x2fa   :  { %849 = vrot.lane.b32.xlu1 %v772_v24, %s4512_s23 }
 0x2fd   :  { %859 = vrot.lane.b32.xlu0 %v4966_v15, %s4513_s15 }
 0x2fe   :  { %861 = vrot.lane.b32.xlu1 %v772_v24, %s4513_s15 }
 0x353   :  { %v774_v27 = vpop.permute.xlu0 %773 }
 0x354   :  { %v776_v28 = vpop.permute.xlu1 %775 }
 0x355   :  { %v777_v29 = vsel %vm410_vm1, %v774_v27, %v776_v28  ;;  %v778_v31 = vsel %vm410_vm1, %v776_v28, %v774_v27 }
 0x356   :  { %v781_v41 = vmul.f32 %v778_v31, %v4730_v49  ;;  %v782_v45 = vmul.f32 %v777_v29, %v4735_v50 }
 0x357   :  { %v786_v33 = vpop.permute.xlu0 %785 }
 0x358   :  { %v788_v36 = vpop.permute.xlu1 %787 }
 0x359   :  { %v789_v37 = vsel %vm423_vm0, %v786_v33, %v788_v36  ;;  %v790_v40 = vsel %vm423_vm0, %v788_v36, %v786_v33 }
 0x35a   :  { %v793_v46 = vmul.f32 %v4719_v47, %v790_v40  ;;  %v794_v51 = vmul.f32 %v4725_v48, %v789_v37 }
 0x35b   :  { %v798_v52 = vpop.permute.xlu0 %797 }
 0x35c   :  { %v893_v55 = vpack.c.bf16 %v793_v46, %v781_v41  ;;  %v800_v56 = vpop.permute.xlu1 %799  ;;  %v894_v23 = vpack.c.bf16 %v794_v51, %v782_v45 }
 0x35d   :  { %v801_v16 = vsel %vm437_vm2, %v798_v52, %v800_v56  ;;  %v802_v57 = vsel %vm437_vm2, %v800_v56, %v798_v52 }
 0x35e   :  { %906 = vmatprep.subr.bf16.mxu0 %v894_v23  ;;  %v805_v62 = vmul.f32 %v4753_v1, %v802_v57  ;;  %v806_v0 = vmul.f32 %v4759_v3, %v801_v16 }
 0x35f   :  { %v810_v58 = vpop.permute.xlu0 %809  ;;  %907 = vmatpush1.bf16.msra.mxu0 %v893_v55 }
 0x360   :  { %v812_v59 = vpop.permute.xlu1 %811 }
 0x361   :  { %v813_v60 = vsel %vm451_vm3, %v810_v58, %v812_v59  ;;  %v814_v61 = vsel %vm451_vm3, %v812_v59, %v810_v58 }
 0x362   :  { %v817_v4 = vmul.f32 %v4768_v7, %v814_v61  ;;  %v818_v6 = vmul.f32 %v4773_v8, %v813_v60  ;;  %v4000_v61 = vld [vmem:[%s7142_s5 + $0x8] sm:$0xf] }
 0x363   :  { %v824_v9 = vpop.permute.xlu0 %823 }
 0x364   :  { %v895_v10 = vpack.c.bf16 %v817_v4, %v805_v62  ;;  %v826_v11 = vpop.permute.xlu1 %825  ;;  %v896_v12 = vpack.c.bf16 %v818_v6, %v806_v0 }
 0x365   :  { %v827_v13 = vsel %vm467_vm4, %v824_v9, %v826_v11  ;;  %v828_v14 = vsel %vm467_vm4, %v826_v11, %v824_v9 }
 0x366   :  { %v831_v21 = vmul.f32 %v4787_v18, %v827_v13  ;;  %v832_v25 = vmul.f32 %v4792_v19, %v828_v14  ;;  %908 = vmatprep.subr.bf16.mxu0 %v896_v12 }
 0x367   :  { %v836_v26 = vpop.permute.xlu0 %835  ;;  %909 = vmatpush1.bf16.msra.mxu0 %v895_v10 }
 0x368   :  { %v897_v27 = vpack.c.bf16 %v831_v21, %v4966_v15  ;;  %v838_v28 = vpop.permute.xlu1 %837  ;;  %v898_v29 = vpack.c.bf16 %v832_v25, %v772_v24 }
 0x369   :  { %v839_v31 = vsel %vm481_vm5, %v836_v26, %v838_v28  ;;  %v840_v33 = vsel %vm481_vm5, %v838_v28, %v836_v26 }
 0x36a   :  { %910 = vmatprep.subr.bf16.mxu0 %v898_v29  ;;  %v843_v15 = vmul.f32 %v4806_v34, %v839_v31  ;;  %v844_v24 = vmul.f32 %v4812_v35, %v840_v33 }
 0x36b   :  { %v848_v36 = vpop.permute.xlu0 %847  ;;  %911 = vmatpush1.bf16.msra.mxu0 %v897_v27 }
 0x36c   :  { %v850_v37 = vpop.permute.xlu1 %849 }
 0x36d   :  { %v851_v40 = vsel %vm495_vm6, %v848_v36, %v850_v37  ;;  %v852_v41 = vsel %vm495_vm6, %v850_v37, %v848_v36 }
 0x36e   :  { %v855_v45 = vmul.f32 %v4821_v38, %v851_v40  ;;  %v856_v46 = vmul.f32 %v4826_v39, %v852_v41 }
 0x36f   :  { %v860_v51 = vpop.permute.xlu0 %859 }
 0x370   :  { %v899_v52 = vpack.c.bf16 %v855_v45, %v843_v15  ;;  %v862_v55 = vpop.permute.xlu1 %861  ;;  %v900_v56 = vpack.c.bf16 %v856_v46, %v844_v24 }
 0x371   :  { %v863_v23 = vsel %vm509_vm7, %v860_v51, %v862_v55  ;;  %v864_v16 = vsel %vm509_vm7, %v862_v55, %v860_v51 }
 0x372   :  { %v867_v57 = vmul.f32 %v4840_v53, %v863_v23  ;;  %v868_v58 = vmul.f32 %v4845_v54, %v864_v16  ;;  %912 = vmatprep.subr.bf16.mxu0 %v900_v56 }
 0x373   :  { %913 = vmatpush1.bf16.msra.mxu0 %v899_v52 }
 0x374   :  { %v901_v59 = vpack.c.bf16 %v4514_v63, %v867_v57  ;;  %v902_v60 = vpack.c.bf16 %v4514_v63, %v868_v58 }
 0x376   :  { %914 = vmatprep.subr.bf16.mxu0 %v902_v60 }
 0x377   :  { %915 = vmatpush1.bf16.msra.mxu0 %v901_v59 }
 0x37a   :  { %4001 = vmatmul.mubr.msk.bf16.vlgmr.msra.gmra.mrb[8].mxu0 %vm550_vm8, %v4000_v61 }
 0x37b   :  { %1290 = vmatprep.mubr.bf16.mxu0 %v4511_v20 }
 0x44d   :  { %v940_v62 = vpop.f32.mrb[8].mxu0 }
 0x44e   :  { %v5049_v0 = vadd.f32 %v940_v62, %v4861_v17  ;;  %v942_v4 = vpop.f32.mrb[9].mxu0 }
 0x44f   :  { %v5052_v6 = vadd.f32 %v942_v4, %v4863_v22  ;;  %v944_v9 = vpop.f32.mrb[10].mxu0 }
 0x450   :  { %949 = vrot.lane.b32.xlu0 %v5049_v0, %s4506_s10  ;;  %v945_v10 = vpop.f32.mrb[11].mxu0 }
 0x451   :  { %951 = vrot.lane.b32.xlu1 %v5052_v6, %s4506_s10 }
 0x454   :  { %961 = vrot.lane.b32.xlu0 %v5049_v0, %s4505_s9 }
 0x455   :  { %963 = vrot.lane.b32.xlu1 %v5052_v6, %s4505_s9 }
 0x458   :  { %973 = vrot.lane.b32.xlu0 %v5049_v0, %s4507_s21 }
 0x459   :  { %975 = vrot.lane.b32.xlu1 %v5052_v6, %s4507_s21 }
 0x45c   :  { %985 = vrot.lane.b32.xlu0 %v5049_v0, %s4508_s26 }
 0x45d   :  { %987 = vrot.lane.b32.xlu1 %v5052_v6, %s4508_s26 }
 0x460   :  { %999 = vrot.lane.b32.xlu0 %v5049_v0, %s4509_s8 }
 0x461   :  { %1001 = vrot.lane.b32.xlu1 %v5052_v6, %s4509_s8 }
 0x464   :  { %1011 = vrot.lane.b32.xlu0 %v5049_v0, %s4510_s17 }
 0x465   :  { %1013 = vrot.lane.b32.xlu1 %v5052_v6, %s4510_s17 }
 0x468   :  { %1023 = vrot.lane.b32.xlu0 %v5049_v0, %s4512_s23 }
 0x469   :  { %1025 = vrot.lane.b32.xlu1 %v5052_v6, %s4512_s23 }
 0x46c   :  { %1035 = vrot.lane.b32.xlu0 %v5049_v0, %s4513_s15 }
 0x46d   :  { %1037 = vrot.lane.b32.xlu1 %v5052_v6, %s4513_s15 }
 0x4c2   :  { %v950_v17 = vpop.permute.xlu0 %949 }
 0x4c3   :  { %v952_v22 = vpop.permute.xlu1 %951 }
 0x4c4   :  { %v953_v11 = vsel %vm410_vm1, %v950_v17, %v952_v22  ;;  %v954_v12 = vsel %vm410_vm1, %v952_v22, %v950_v17 }
 0x4c5   :  { %v957_v26 = vmul.f32 %v954_v12, %v4730_v49  ;;  %v958_v27 = vmul.f32 %v953_v11, %v4735_v50 }
 0x4c6   :  { %v962_v13 = vpop.permute.xlu0 %961 }
 0x4c7   :  { %v964_v14 = vpop.permute.xlu1 %963 }
 0x4c8   :  { %v965_v21 = vsel %vm423_vm0, %v962_v13, %v964_v14  ;;  %v966_v25 = vsel %vm423_vm0, %v964_v14, %v962_v13 }
 0x4c9   :  { %v969_v28 = vmul.f32 %v4719_v47, %v966_v25  ;;  %v970_v29 = vmul.f32 %v4725_v48, %v965_v21 }
 0x4ca   :  { %v974_v31 = vpop.permute.xlu0 %973 }
 0x4cb   :  { %v1069_v33 = vpack.c.bf16 %v969_v28, %v957_v26  ;;  %v976_v36 = vpop.permute.xlu1 %975  ;;  %v1070_v37 = vpack.c.bf16 %v970_v29, %v958_v27 }
 0x4cc   :  { %v977_v40 = vsel %vm437_vm2, %v974_v31, %v976_v36  ;;  %v978_v41 = vsel %vm437_vm2, %v976_v36, %v974_v31  ;;  %v5182_v36 = vld [vmem:[%s7141_s6] sm:$0xff] }
 0x4cd   :  { %1082 = vmatprep.subr.bf16.mxu1 %v1070_v37  ;;  %v981_v48 = vmul.f32 %v4753_v1, %v978_v41  ;;  %v982_v24 = vmul.f32 %v4759_v3, %v977_v40  ;;  %v5187_v37 = vld [vmem:[%s7141_s6 + $0x8] sm:$0xff] }
 0x4ce   :  { %v986_v15 = vpop.permute.xlu0 %985  ;;  %1083 = vmatpush1.bf16.msra.mxu1 %v1069_v33 }
 0x4cf   :  { %v988_v49 = vpop.permute.xlu1 %987 }
 0x4d0   :  { %v989_v50 = vsel %vm451_vm3, %v986_v15, %v988_v49  ;;  %v990_v47 = vsel %vm451_vm3, %v988_v49, %v986_v15  ;;  %v5196_v49 = vld [vmem:[%s7141_s6 + $0x10] sm:$0xff] }
 0x4d1   :  { %v993_v45 = vmul.f32 %v4768_v7, %v990_v47  ;;  %v994_v46 = vmul.f32 %v4773_v8, %v989_v50  ;;  %v5201_v50 = vld [vmem:[%s7141_s6 + $0x18] sm:$0xff] }
 0x4d2   :  { %v1000_v51 = vpop.permute.xlu0 %999 }
 0x4d3   :  { %v1071_v52 = vpack.c.bf16 %v993_v45, %v981_v48  ;;  %v1002_v55 = vpop.permute.xlu1 %1001  ;;  %v1072_v56 = vpack.c.bf16 %v994_v46, %v982_v24 }
 0x4d4   :  { %v1003_v23 = vsel %vm467_vm4, %v1000_v51, %v1002_v55  ;;  %v1004_v16 = vsel %vm467_vm4, %v1002_v55, %v1000_v51 }
 0x4d5   :  { %v1007_v57 = vmul.f32 %v4787_v18, %v1003_v23  ;;  %v1008_v1 = vmul.f32 %v4792_v19, %v1004_v16  ;;  %1084 = vmatprep.subr.bf16.mxu1 %v1072_v56 }
 0x4d6   :  { %v1012_v3 = vpop.permute.xlu0 %1011  ;;  %1085 = vmatpush1.bf16.msra.mxu1 %v1071_v52 }
 0x4d7   :  { %v1073_v7 = vpack.c.bf16 %v1007_v57, %v5049_v0  ;;  %v1014_v8 = vpop.permute.xlu1 %1013  ;;  %v1074_v58 = vpack.c.bf16 %v1008_v1, %v5052_v6  ;;  %v5214_v57 = vld [vmem:[%s7141_s6 + $0x20] sm:$0xff]  ;;  %v5219_v1 = vld [vmem:[%s7141_s6 + $0x28] sm:$0xff] }
 0x4d8   :  { %v1015_v59 = vsel %vm481_vm5, %v1012_v3, %v1014_v8  ;;  %v1016_v60 = vsel %vm481_vm5, %v1014_v8, %v1012_v3 }
 0x4d9   :  { %1086 = vmatprep.subr.bf16.mxu1 %v1074_v58  ;;  %v1019_v4 = vmul.f32 %v4806_v34, %v1015_v59  ;;  %v1020_v9 = vmul.f32 %v4812_v35, %v1016_v60  ;;  %v5228_v58 = vld [vmem:[%s7141_s6 + $0x30] sm:$0xff]  ;;  %v5233_v59 = vld [vmem:[%s7141_s6 + $0x38] sm:$0xff] }
 0x4da   :  { %v1024_v61 = vpop.permute.xlu0 %1023  ;;  %1087 = vmatpush1.bf16.msra.mxu1 %v1073_v7 }
 0x4db   :  { %v1026_v18 = vpop.permute.xlu1 %1025 }
 0x4dc   :  { %v1027_v19 = vsel %vm495_vm6, %v1024_v61, %v1026_v18  ;;  %v1028_v62 = vsel %vm495_vm6, %v1026_v18, %v1024_v61 }
 0x4dd   :  { %v1031_v10 = vmul.f32 %v4821_v38, %v1027_v19  ;;  %v1032_v17 = vmul.f32 %v4826_v39, %v1028_v62  ;;  %v4016_v39 = vld [vmem:[%s7142_s5 + $0xc] sm:$0xf] }
 0x4de   :  { %v1036_v22 = vpop.permute.xlu0 %1035 }
 0x4df   :  { %v1075_v11 = vpack.c.bf16 %v1031_v10, %v1019_v4  ;;  %v1038_v12 = vpop.permute.xlu1 %1037  ;;  %v1076_v13 = vpack.c.bf16 %v1032_v17, %v1020_v9  ;;  %v5246_v17 = vld [vmem:[%s7141_s6 + $0x40] sm:$0xff] }
 0x4e0   :  { %v1039_v14 = vsel %vm509_vm7, %v1036_v22, %v1038_v12  ;;  %v1040_v21 = vsel %vm509_vm7, %v1038_v12, %v1036_v22  ;;  %v5251_v22 = vld [vmem:[%s7141_s6 + $0x48] sm:$0xff] }
 0x4e1   :  { %v1043_v25 = vmul.f32 %v4840_v53, %v1039_v14  ;;  %v1044_v34 = vmul.f32 %v4845_v54, %v1040_v21  ;;  %1088 = vmatprep.subr.bf16.mxu1 %v1076_v13 }
 0x4e2   :  { %1089 = vmatpush1.bf16.msra.mxu1 %v1075_v11 }
 0x4e3   :  { %v1077_v35 = vpack.c.bf16 %v4514_v63, %v1043_v25  ;;  %v1078_v38 = vpack.c.bf16 %v4514_v63, %v1044_v34 }
 0x4e5   :  { %1090 = vmatprep.subr.bf16.mxu1 %v1078_v38 }
 0x4e6   :  { %1091 = vmatpush1.bf16.msra.mxu1 %v1077_v35 }
 0x4e9   :  { %4017 = vmatmul.mubr.msk.bf16.vlgmr.msra.gmra.mrb[12].mxu1 %vm550_vm8, %v4016_v39 }
 0x4ea   :  { %1466 = vmatprep.mubr.bf16.mxu1 %v4511_v20 }
 0x5bc   :  { %v1116_v26 = vpop.f32.mrb[12].mxu1 }
 0x5bd   :  { %v5143_v53 = vmax.f32 %v1116_v26, 0.0  ;;  %v1118_v54 = vpop.f32.mrb[13].mxu1 }
 0x5be   :  { %v5145_v27 = vmax.f32 %v1118_v54, 0.0  ;;  %v1120_v28 = vpop.f32.mrb[14].mxu1  ;;  %v5264_v54 = vld [vmem:[%s7141_s6 + $0x50] sm:$0xff] }
 0x5bf   :  { %1125 = vrot.lane.b32.xlu0 %v5143_v53, %s4506_s10  ;;  %v1121_v29 = vpop.f32.mrb[15].mxu1  ;;  %v5269_v28 = vld [vmem:[%s7141_s6 + $0x58] sm:$0xff] }
 0x5c0   :  { %1127 = vrot.lane.b32.xlu1 %v5145_v27, %s4506_s10 }
 0x5c3   :  { %1137 = vrot.lane.b32.xlu0 %v5143_v53, %s4505_s9 }
 0x5c4   :  { %1139 = vrot.lane.b32.xlu1 %v5145_v27, %s4505_s9 }
 0x5c7   :  { %1149 = vrot.lane.b32.xlu0 %v5143_v53, %s4507_s21 }
 0x5c8   :  { %1151 = vrot.lane.b32.xlu1 %v5145_v27, %s4507_s21 }
 0x5cb   :  { %1161 = vrot.lane.b32.xlu0 %v5143_v53, %s4508_s26 }
 0x5cc   :  { %1163 = vrot.lane.b32.xlu1 %v5145_v27, %s4508_s26 }
 0x5cf   :  { %1175 = vrot.lane.b32.xlu0 %v5143_v53, %s4509_s8 }
 0x5d0   :  { %1177 = vrot.lane.b32.xlu1 %v5145_v27, %s4509_s8 }
 0x5d3   :  { %1187 = vrot.lane.b32.xlu0 %v5143_v53, %s4510_s17 }
 0x5d4   :  { %1189 = vrot.lane.b32.xlu1 %v5145_v27, %s4510_s17 }
 0x5d7   :  { %1199 = vrot.lane.b32.xlu0 %v5143_v53, %s4512_s23 }
 0x5d8   :  { %1201 = vrot.lane.b32.xlu1 %v5145_v27, %s4512_s23 }
 0x5db   :  { %1211 = vrot.lane.b32.xlu0 %v5143_v53, %s4513_s15 }
 0x5dc   :  { %1213 = vrot.lane.b32.xlu1 %v5145_v27, %s4513_s15 }
 0x631   :  { %v1126_v31 = vpop.permute.xlu0 %1125 }
 0x632   :  { %v1128_v33 = vpop.permute.xlu1 %1127 }
 0x633   :  { %v1129_v40 = vsel %vm410_vm1, %v1126_v31, %v1128_v33  ;;  %v1130_v41 = vsel %vm410_vm1, %v1128_v33, %v1126_v31  ;;  %v5283_v33 = vld [vmem:[%s7141_s6 + $0x68] sm:$0xff] }
 0x634   :  { %v1133_v45 = vmul.f32 %v5182_v36, %v1130_v41  ;;  %v1134_v46 = vmul.f32 %v5187_v37, %v1129_v40 }
 0x635   :  { %v1138_v15 = vpop.permute.xlu0 %1137 }
 0x636   :  { %v1140_v47 = vpop.permute.xlu1 %1139 }
 0x637   :  { %v1141_v48 = vsel %vm423_vm0, %v1138_v15, %v1140_v47  ;;  %v1142_v24 = vsel %vm423_vm0, %v1140_v47, %v1138_v15 }
 0x638   :  { %v1145_v51 = vmul.f32 %v5196_v49, %v1142_v24  ;;  %v1146_v52 = vmul.f32 %v5201_v50, %v1141_v48 }
 0x639   :  { %v1150_v55 = vpop.permute.xlu0 %1149 }
 0x63a   :  { %v1245_v56 = vpack.c.bf16 %v1145_v51, %v1133_v45  ;;  %v1152_v23 = vpop.permute.xlu1 %1151  ;;  %v1246_v16 = vpack.c.bf16 %v1146_v52, %v1134_v46  ;;  %v5296_v51 = vld [vmem:[%s7141_s6 + $0x70] sm:$0xff]  ;;  %v5301_v52 = vld [vmem:[%s7141_s6 + $0x78] sm:$0xff] }
 0x63b   :  { %v1153_v3 = vsel %vm437_vm2, %v1150_v55, %v1152_v23  ;;  %v1154_v7 = vsel %vm437_vm2, %v1152_v23, %v1150_v55 }
 0x63c   :  { %1258 = vmatprep.subr.bf16.mxu0 %v1246_v16  ;;  %v1157_v19 = vmul.f32 %v5214_v57, %v1154_v7  ;;  %v1158_v62 = vmul.f32 %v5219_v1, %v1153_v3 }
 0x63d   :  { %v1162_v8 = vpop.permute.xlu0 %1161  ;;  %1259 = vmatpush1.bf16.msra.mxu0 %v1245_v56 }
 0x63e   :  { %v1164_v60 = vpop.permute.xlu1 %1163 }
 0x63f   :  { %v1165_v61 = vsel %vm451_vm3, %v1162_v8, %v1164_v60  ;;  %v1166_v18 = vsel %vm451_vm3, %v1164_v60, %v1162_v8 }
 0x640   :  { %v1169_v4 = vmul.f32 %v5228_v58, %v1166_v18  ;;  %v1170_v9 = vmul.f32 %v5233_v59, %v1165_v61  ;;  %v4032_v18 = vld [vmem:[%s7142_s5 + $0x10] sm:$0xf] }
 0x641   :  { %v1176_v10 = vpop.permute.xlu0 %1175 }
 0x642   :  { %v1247_v11 = vpack.c.bf16 %v1169_v4, %v1157_v19  ;;  %v1178_v12 = vpop.permute.xlu1 %1177  ;;  %v1248_v13 = vpack.c.bf16 %v1170_v9, %v1158_v62  ;;  %v5317_v19 = vld [vmem:[%s7137_s3 + $0x40] sm:$0xff]   ;;  %v5330_v4 = vld [vmem:[%s7137_s3 + $0x48] sm:$0xff]  }
 0x643   :  { %v1179_v14 = vsel %vm467_vm4, %v1176_v10, %v1178_v12  ;;  %v1180_v21 = vsel %vm467_vm4, %v1178_v12, %v1176_v10  ;;  %v5324_v62 = vld [vmem:[%s7137_s3] sm:$0xff]   ;;  %v5336_v9 = vld [vmem:[%s7137_s3 + $0x8] sm:$0xff]   ;;  %v5342_v10 = vld [vmem:[%s7137_s3 + $0x50] sm:$0xff]  }
 0x644   :  { %v1183_v25 = vmul.f32 %v5246_v17, %v1179_v14  ;;  %v1184_v34 = vmul.f32 %v5251_v22, %v1180_v21  ;;  %1260 = vmatprep.subr.bf16.mxu0 %v1248_v13  ;;  %v5354_v12 = vld [vmem:[%s7137_s3 + $0x58] sm:$0xff]   ;;  %v5366_v14 = vld [vmem:[%s7137_s3 + $0x60] sm:$0xff]  }
 0x645   :  { %v1188_v35 = vpop.permute.xlu0 %1187  ;;  %1261 = vmatpush1.bf16.msra.mxu0 %v1247_v11  ;;  %v5348_v11 = vld [vmem:[%s7137_s3 + $0x10] sm:$0xff]   ;;  %v5360_v13 = vld [vmem:[%s7137_s3 + $0x18] sm:$0xff]   ;;  %v5372_v21 = vld [vmem:[%s7137_s3 + $0x20] sm:$0xff]  }
 0x646   :  { %v1249_v38 = vpack.c.bf16 %v1183_v25, %v5143_v53  ;;  %v1190_v39 = vpop.permute.xlu1 %1189  ;;  %v1250_v26 = vpack.c.bf16 %v1184_v34, %v5145_v27  ;;  %v5278_v27 = vld [vmem:[%s7141_s6 + $0x60] sm:$0xff]  ;;  %v5378_v25 = vld [vmem:[%s7137_s3 + $0x68] sm:$0xff]  }
 0x647   :  { %v1191_v29 = vsel %vm481_vm5, %v1188_v35, %v1190_v39  ;;  %v1192_v53 = vsel %vm481_vm5, %v1190_v39, %v1188_v35  ;;  %v5384_v34 = vld [vmem:[%s7137_s3 + $0x28] sm:$0xff]   ;;  %v5390_v35 = vld [vmem:[%s7137_s3 + $0x70] sm:$0xff]   ;;  %v5402_v39 = vld [vmem:[%s7137_s3 + $0x78] sm:$0xff]  }
 0x648   :  { %1262 = vmatprep.subr.bf16.mxu0 %v1250_v26  ;;  %v1195_v47 = vmul.f32 %v5264_v54, %v1191_v29  ;;  %v1196_v48 = vmul.f32 %v5269_v28, %v1192_v53  ;;  %v5408_v26 = vld [vmem:[%s7137_s3 + $0x38] sm:$0xff]   ;;  %v4420_v29 = vld [vmem:[%s7139_s4 + $0x4] ss:$8 sps:$4 sm:$0xff]  }
 0x649   :  { %v1200_v31 = vpop.permute.xlu0 %1199  ;;  %1263 = vmatpush1.bf16.msra.mxu0 %v1249_v38  ;;  %v5396_v38 = vld [vmem:[%s7137_s3 + $0x30] sm:$0xff]  }
 0x64a   :  { %v1202_v40 = vpop.permute.xlu1 %1201 }
 0x64b   :  { %v1203_v41 = vsel %vm495_vm6, %v1200_v31, %v1202_v40  ;;  %v1204_v15 = vsel %vm495_vm6, %v1202_v40, %v1200_v31 }
 0x64c   :  { %v1207_v24 = vmul.f32 %v5278_v27, %v1203_v41  ;;  %v1208_v45 = vmul.f32 %v5283_v33, %v1204_v15 }
 0x64d   :  { %v1212_v46 = vpop.permute.xlu0 %1211 }
 0x64e   :  { %v1251_v55 = vpack.c.bf16 %v1207_v24, %v1195_v47  ;;  %v1214_v56 = vpop.permute.xlu1 %1213  ;;  %v1252_v23 = vpack.c.bf16 %v1208_v45, %v1196_v48  ;;  %v5464_v48 = vld [vmem:[%s7136_s1] sm:$0xff] }
 0x64f   :  { %v1215_v16 = vsel %vm509_vm7, %v1212_v46, %v1214_v56  ;;  %v1216_v3 = vsel %vm509_vm7, %v1214_v56, %v1212_v46  ;;  %v5468_v24 = vpack.c.bf16 %v5464_v48, %v5464_v48  ;;  %v4423_v45 = vld [vmem:[%s7139_s4] ss:$8 sps:$4 sm:$0xff]   ;;  %v4424_v46 = vld [vmem:[%s7139_s4 + $0x14] ss:$8 sps:$4 sm:$0xff]   ;;  %v4426_v56 = vld [vmem:[%s7139_s4 + $0x24] ss:$8 sps:$4 sm:$0xff]  }
 0x650   :  { %v1219_v7 = vmul.f32 %v5296_v51, %v1215_v16  ;;  %v1220_v8 = vmul.f32 %v5301_v52, %v1216_v3  ;;  %1264 = vmatprep.subr.bf16.mxu0 %v1252_v23  ;;  %v4427_v23 = vld [vmem:[%s7139_s4 + $0x20] ss:$8 sps:$4 sm:$0xff]   ;;  %v4428_v16 = vld [vmem:[%s7139_s4 + $0x34] ss:$8 sps:$4 sm:$0xff]   ;;  %v4429_v3 = vld [vmem:[%s7139_s4 + $0x30] ss:$8 sps:$4 sm:$0xff]  }
 0x651   :  { %1265 = vmatpush1.bf16.msra.mxu0 %v1251_v55  ;;  %v4425_v55 = vld [vmem:[%s7139_s4 + $0x10] ss:$8 sps:$4 sm:$0xff]  }
 0x652   :  { %v1253_v60 = vpack.c.bf16 %v4514_v63, %v1219_v7  ;;  %v1254_v61 = vpack.c.bf16 %v4514_v63, %v1220_v8  ;;  %v4430_v7 = vld [vmem:[%s7139_s4 + $0x44] ss:$8 sps:$4 sm:$0xff]   ;;  %v4431_v8 = vld [vmem:[%s7139_s4 + $0x40] ss:$8 sps:$4 sm:$0xff]  }
 0x654   :  { %1266 = vmatprep.subr.bf16.mxu0 %v1254_v61  ;;  %v4433_v61 = vld [vmem:[%s7139_s4 + $0x50] ss:$8 sps:$4 sm:$0xff]  }
 0x655   :  { %1267 = vmatpush1.bf16.msra.mxu0 %v1253_v60  ;;  %v4432_v60 = vld [vmem:[%s7139_s4 + $0x54] ss:$8 sps:$4 sm:$0xff]  }
 0x656   :  { %4262 = vmatprep.subr.bf16.mxu0 %v5317_v19 }
 0x658   :  { %4033 = vmatmul.mubr.msk.bf16.vlgmr.msra.gmra.mrb[12].mxu0 %vm550_vm8, %v4032_v18  ;;  %v4434_v18 = vld [vmem:[%s7139_s4 + $0x64] ss:$8 sps:$4 sm:$0xff]  }
 0x659   :  { %4263 = vmatpush3.bf16.msra.mxu0 %v5324_v62 }
 0x65a   :  { %4264 = vmatprep.subr.bf16.mxu0 %v5330_v4 }
 0x65d   :  { %4265 = vmatpush3.bf16.msra.mxu0 %v5336_v9 }
 0x65e   :  { %4266 = vmatprep.subr.bf16.mxu0 %v5342_v10 }
 0x661   :  { %4267 = vmatpush3.bf16.msra.mxu0 %v5348_v11 }
 0x662   :  { %4268 = vmatprep.subr.bf16.mxu0 %v5354_v12 }
 0x665   :  { %4269 = vmatpush3.bf16.msra.mxu0 %v5360_v13 }
 0x666   :  { %4270 = vmatprep.subr.bf16.mxu0 %v5366_v14 }
 0x669   :  { %4271 = vmatpush3.bf16.msra.mxu0 %v5372_v21 }
 0x66a   :  { %4272 = vmatprep.subr.bf16.mxu0 %v5378_v25 }
 0x66d   :  { %4273 = vmatpush3.bf16.msra.mxu0 %v5384_v34 }
 0x66e   :  { %4274 = vmatprep.subr.bf16.mxu0 %v5390_v35 }
 0x671   :  { %4275 = vmatpush3.bf16.msra.mxu0 %v5396_v38 }
 0x672   :  { %4276 = vmatprep.subr.bf16.mxu0 %v5402_v39 }
 0x675   :  { %4277 = vmatpush3.bf16.msra.mxu0 %v5408_v26 }
 0x676   :  { %1560 = vmatprep.subr.bf16.mxu0 %v4420_v29  ;;  %v4435_v29 = vld [vmem:[%s7139_s4 + $0x60] ss:$8 sps:$4 sm:$0xff]  }
 0x72b   :  { %v1292_v53 = vpop.f32.mrb[12].mxu0 }
 0x72c   :  { %v5415_v31 = vadd.f32 %v1292_v53, %v5049_v0  ;;  %v1294_v40 = vpop.f32.mrb[13].mxu0  ;;  %v5455_v0 = vld [vmem:[%s7136_s1 + $0x8] sm:$0xff]  ;;  %v4436_v53 = vld [vmem:[%s7139_s4 + $0x74] ss:$8 sps:$4 sm:$0xff]  }
 0x72d   :  { %v5418_v41 = vadd.f32 %v1294_v40, %v5052_v6  ;;  %v1296_v15 = vpop.f32.mrb[14].mxu0  ;;  %v5459_v6 = vpack.c.bf16 %v5455_v0, %v5455_v0  ;;  %v4437_v40 = vld [vmem:[%s7139_s4 + $0x70] ss:$8 sps:$4 sm:$0xff]  }
 0x72e   :  { %1301 = vrot.lane.b32.xlu0 %v5415_v31, %s4506_s10  ;;  %v1297_v47 = vpop.f32.mrb[15].mxu0 }
 0x72f   :  { %1303 = vrot.lane.b32.xlu1 %v5418_v41, %s4506_s10  ;;  %1509 = vmatprep.mubr.bf16.mxu0 %v5459_v6 }
 0x730   :  { %1510 = vmatmul.mubr.bf16.vlgmr.msra.gmra.mrb[16].mxu0 %v5468_v24 }
 0x731   :  { %1561 = vmatpush1.bf16.msra.mxu0 %v4423_v45  ;;  %1592 = vmatprep.mubr.bf16.mxu0 %v4511_v20 }
 0x732   :  { %1313 = vrot.lane.b32.xlu0 %v5415_v31, %s4505_s9  ;;  %1562 = vmatprep.subr.bf16.mxu0 %v4424_v46 }
 0x733   :  { %1315 = vrot.lane.b32.xlu1 %v5418_v41, %s4505_s9 }
 0x735   :  { %1563 = vmatpush1.bf16.msra.mxu0 %v4425_v55 }
 0x736   :  { %1325 = vrot.lane.b32.xlu0 %v5415_v31, %s4507_s21  ;;  %1564 = vmatprep.subr.bf16.mxu0 %v4426_v56 }
 0x737   :  { %1327 = vrot.lane.b32.xlu1 %v5418_v41, %s4507_s21 }
 0x739   :  { %1565 = vmatpush1.bf16.msra.mxu0 %v4427_v23 }
 0x73a   :  { %1337 = vrot.lane.b32.xlu0 %v5415_v31, %s4508_s26  ;;  %1566 = vmatprep.subr.bf16.mxu0 %v4428_v16 }
 0x73b   :  { %1339 = vrot.lane.b32.xlu1 %v5418_v41, %s4508_s26 }
 0x73d   :  { %1567 = vmatpush1.bf16.msra.mxu0 %v4429_v3 }
 0x73e   :  { %1351 = vrot.lane.b32.xlu0 %v5415_v31, %s4509_s8  ;;  %1568 = vmatprep.subr.bf16.mxu0 %v4430_v7 }
 0x73f   :  { %1353 = vrot.lane.b32.xlu1 %v5418_v41, %s4509_s8 }
 0x741   :  { %1569 = vmatpush1.bf16.msra.mxu0 %v4431_v8 }
 0x742   :  { %1363 = vrot.lane.b32.xlu0 %v5415_v31, %s4510_s17  ;;  %1570 = vmatprep.subr.bf16.mxu0 %v4432_v60 }
 0x743   :  { %1365 = vrot.lane.b32.xlu1 %v5418_v41, %s4510_s17 }
 0x745   :  { %1571 = vmatpush1.bf16.msra.mxu0 %v4433_v61 }
 0x746   :  { %1375 = vrot.lane.b32.xlu0 %v5415_v31, %s4512_s23  ;;  %1572 = vmatprep.subr.bf16.mxu0 %v4434_v18 }
 0x747   :  { %1377 = vrot.lane.b32.xlu1 %v5418_v41, %s4512_s23 }
 0x749   :  { %1573 = vmatpush1.bf16.msra.mxu0 %v4435_v29 }
 0x74a   :  { %1387 = vrot.lane.b32.xlu0 %v5415_v31, %s4513_s15  ;;  %1574 = vmatprep.subr.bf16.mxu0 %v4436_v53 }
 0x74b   :  { %1389 = vrot.lane.b32.xlu1 %v5418_v41, %s4513_s15 }
 0x74d   :  { %1575 = vmatpush1.bf16.msra.mxu0 %v4437_v40 }
 0x7a0   :  { %v1302_v15 = vpop.permute.xlu0 %1301 }
 0x7a1   :  { %v1304_v47 = vpop.permute.xlu1 %1303 }
 0x7a2   :  { %v1305_v45 = vsel %vm410_vm1, %v1302_v15, %v1304_v47  ;;  %v1306_v46 = vsel %vm410_vm1, %v1304_v47, %v1302_v15 }
 0x7a3   :  { %v1309_v3 = vmul.f32 %v1306_v46, %v5182_v36  ;;  %v1310_v7 = vmul.f32 %v1305_v45, %v5187_v37 }
 0x7a4   :  { %v1314_v55 = vpop.permute.xlu0 %1313 }
 0x7a5   :  { %v1316_v56 = vpop.permute.xlu1 %1315 }
 0x7a6   :  { %v1317_v23 = vsel %vm423_vm0, %v1314_v55, %v1316_v56  ;;  %v1318_v16 = vsel %vm423_vm0, %v1316_v56, %v1314_v55 }
 0x7a7   :  { %v1321_v8 = vmul.f32 %v5196_v49, %v1318_v16  ;;  %v1322_v60 = vmul.f32 %v5201_v50, %v1317_v23 }
 0x7a8   :  { %v1326_v61 = vpop.permute.xlu0 %1325 }
 0x7a9   :  { %v1421_v18 = vpack.c.bf16 %v1321_v8, %v1309_v3  ;;  %v1328_v29 = vpop.permute.xlu1 %1327  ;;  %v1422_v53 = vpack.c.bf16 %v1322_v60, %v1310_v7 }
 0x7aa   :  { %v1329_v40 = vsel %vm437_vm2, %v1326_v61, %v1328_v29  ;;  %v1330_v15 = vsel %vm437_vm2, %v1328_v29, %v1326_v61 }
 0x7ab   :  { %1434 = vmatprep.subr.bf16.mxu1 %v1422_v53  ;;  %v1333_v56 = vmul.f32 %v5214_v57, %v1330_v15  ;;  %v1334_v23 = vmul.f32 %v5219_v1, %v1329_v40 }
 0x7ac   :  { %v1338_v47 = vpop.permute.xlu0 %1337  ;;  %1435 = vmatpush1.bf16.msra.mxu1 %v1421_v18 }
 0x7ad   :  { %v1340_v46 = vpop.permute.xlu1 %1339 }
 0x7ae   :  { %v1341_v45 = vsel %vm451_vm3, %v1338_v47, %v1340_v46  ;;  %v1342_v55 = vsel %vm451_vm3, %v1340_v46, %v1338_v47 }
 0x7af   :  { %v1345_v16 = vmul.f32 %v5228_v58, %v1342_v55  ;;  %v1346_v3 = vmul.f32 %v5233_v59, %v1341_v45 }
 0x7b0   :  { %v1352_v7 = vpop.permute.xlu0 %1351 }
 0x7b1   :  { %v1423_v8 = vpack.c.bf16 %v1345_v16, %v1333_v56  ;;  %v1354_v60 = vpop.permute.xlu1 %1353  ;;  %v1424_v61 = vpack.c.bf16 %v1346_v3, %v1334_v23 }
 0x7b2   :  { %v1355_v18 = vsel %vm467_vm4, %v1352_v7, %v1354_v60  ;;  %v1356_v29 = vsel %vm467_vm4, %v1354_v60, %v1352_v7 }
 0x7b3   :  { %v1359_v53 = vmul.f32 %v5246_v17, %v1355_v18  ;;  %v1360_v15 = vmul.f32 %v5251_v22, %v1356_v29  ;;  %1436 = vmatprep.subr.bf16.mxu1 %v1424_v61 }
 0x7b4   :  { %v1364_v40 = vpop.permute.xlu0 %1363  ;;  %1437 = vmatpush1.bf16.msra.mxu1 %v1423_v8 }
 0x7b5   :  { %v1425_v47 = vpack.c.bf16 %v1359_v53, %v5415_v31  ;;  %v1366_v46 = vpop.permute.xlu1 %1365  ;;  %v1426_v45 = vpack.c.bf16 %v1360_v15, %v5418_v41 }
 0x7b6   :  { %v1367_v55 = vsel %vm481_vm5, %v1364_v40, %v1366_v46  ;;  %v1368_v56 = vsel %vm481_vm5, %v1366_v46, %v1364_v40 }
 0x7b7   :  { %1438 = vmatprep.subr.bf16.mxu1 %v1426_v45  ;;  %v1371_v31 = vmul.f32 %v5264_v54, %v1367_v55  ;;  %v1372_v41 = vmul.f32 %v5269_v28, %v1368_v56  ;;  %v4048_v56 = vld [vmem:[%s7142_s5 + $0x14] sm:$0xf] }
 0x7b8   :  { %v1376_v23 = vpop.permute.xlu0 %1375  ;;  %1439 = vmatpush1.bf16.msra.mxu1 %v1425_v47 }
 0x7b9   :  { %v1378_v16 = vpop.permute.xlu1 %1377 }
 0x7ba   :  { %v1379_v3 = vsel %vm495_vm6, %v1376_v23, %v1378_v16  ;;  %v1380_v7 = vsel %vm495_vm6, %v1378_v16, %v1376_v23  ;;  %v392_v16 = vmul.f32 2.5, %v4897_v30 }
 0x7bb   :  { %v1383_v8 = vmul.f32 %v5278_v27, %v1379_v3  ;;  %v1384_v60 = vmul.f32 %v5283_v33, %v1380_v7  ;;  %v393_v3 = vmul.f32 2.5, %v4900_v32 }
 0x7bc   :  { %v1388_v61 = vpop.permute.xlu0 %1387  ;;  %v394_v7 = vmul.f32 %v392_v16, %v4897_v30 }
 0x7bd   :  { %v1427_v18 = vpack.c.bf16 %v1383_v8, %v1371_v31  ;;  %v1390_v29 = vpop.permute.xlu1 %1389  ;;  %v1428_v53 = vpack.c.bf16 %v1384_v60, %v1372_v41  ;;  %v395_v31 = vmul.f32 %v393_v3, %v4900_v32 }
 0x7be   :  { %v1391_v15 = vsel %vm509_vm7, %v1388_v61, %v1390_v29  ;;  %v1392_v40 = vsel %vm509_vm7, %v1390_v29, %v1388_v61  ;;  %v396_v41 = vadd.f32 1.0, %v394_v7 }
 0x7bf   :  { %v1395_v47 = vmul.f32 %v5296_v51, %v1391_v15  ;;  %v1396_v46 = vmul.f32 %v5301_v52, %v1392_v40  ;;  %1440 = vmatprep.subr.bf16.mxu1 %v1428_v53  ;;  %v397_v8 = vadd.f32 1.0, %v395_v31 }
 0x7c0   :  { %1441 = vmatpush1.bf16.msra.mxu1 %v1427_v18  ;;  %4400 = vrcp.f32 %v396_v41 }
 0x7c1   :  { %v1429_v45 = vpack.c.bf16 %v4514_v63, %v1395_v47  ;;  %v1430_v55 = vpack.c.bf16 %v4514_v63, %v1396_v46  ;;  %4402 = vrcp.f32 %v397_v8 }
 0x7c3   :  { %1442 = vmatprep.subr.bf16.mxu1 %v1430_v55 }
 0x7c4   :  { %1443 = vmatpush1.bf16.msra.mxu1 %v1429_v45 }
 0x7c5   :  { %4284 = vmatprep.subr.bf16.mxu1 %v5317_v19 }
 0x7c7   :  { %4049 = vmatmul.mubr.msk.bf16.vlgmr.msra.gmra.mrb[16].mxu1 %vm550_vm8, %v4048_v56 }
 0x7c8   :  { %4285 = vmatpush3.bf16.msra.mxu1 %v5324_v62  ;;  %1550 = vmatprep.mubr.bf16.mxu1 %v5459_v6 }
 0x7c9   :  { %4286 = vmatprep.subr.bf16.mxu1 %v5330_v4 }
 0x7ca   :  { %v5610_v56 = vpop.eup %4400 }
 0x7cc   :  { %4287 = vmatpush3.bf16.msra.mxu1 %v5336_v9 }
 0x7cd   :  { %4288 = vmatprep.subr.bf16.mxu1 %v5342_v10 }
 0x7d0   :  { %4289 = vmatpush3.bf16.msra.mxu1 %v5348_v11 }
 0x7d1   :  { %4290 = vmatprep.subr.bf16.mxu1 %v5354_v12 }
 0x7d4   :  { %4291 = vmatpush3.bf16.msra.mxu1 %v5360_v13 }
 0x7d5   :  { %4292 = vmatprep.subr.bf16.mxu1 %v5366_v14 }
 0x7d8   :  { %4293 = vmatpush3.bf16.msra.mxu1 %v5372_v21  ;;  %v4438_v21 = vld [vmem:[%s7140_s0] sm:$0xff] }
 0x7d9   :  { %4294 = vmatprep.subr.bf16.mxu1 %v5378_v25 }
 0x7dc   :  { %4295 = vmatpush3.bf16.msra.mxu1 %v5384_v34 }
 0x7dd   :  { %4296 = vmatprep.subr.bf16.mxu1 %v5390_v35 }
 0x7e0   :  { %4297 = vmatpush3.bf16.msra.mxu1 %v5396_v38 }
 0x7e1   :  { %4298 = vmatprep.subr.bf16.mxu1 %v5402_v39 }
 0x7e4   :  { %4299 = vmatpush3.bf16.msra.mxu1 %v5408_v26 }
 0x7e7   :  { %1551 = vmatmul.mubr.bf16.vlgmr.msra.gmra.mrb[20].mxu1 %v5468_v24 }
 0x7e8   :  { %1781 = vmatprep.mubr.bf16.mxu1 %v4511_v20 }
 0x803   :  { %v4278_v19 = vpop.f32.mrb[16].mxu0 }
 0x804   :  { %v4279_v62 = vpop.f32.mrb[17].mxu0 }
 0x805   :  { %v4280_v4 = vadd.f32 %v4279_v62, %v4278_v19  ;;  %v4281_v9 = vpop.f32.mrb[18].mxu0  ;;  %v5613_v19 = vpop.eup %4402 }
 0x806   :  { %v4282_v10 = vpop.f32.mrb[19].mxu0 }
 0x807   :  { %v1517_v25 = vsub.f32 %v4280_v4, %v4438_v21 }
 0x89a   :  { %v1468_v11 = vpop.f32.mrb[16].mxu1 }
 0x89b   :  { %v1470_v12 = vpop.f32.mrb[17].mxu1  ;;  %v1475_v60 = vsub.f32 %v4561_v2, %v1468_v11 }
 0x89c   :  { %v1472_v13 = vpop.f32.mrb[18].mxu1  ;;  %v1476_v61 = vsub.f32 %v4573_v5, %v1470_v12 }
 0x89d   :  { %v1473_v14 = vpop.f32.mrb[19].mxu1 }
 0x8ba   :  { %v4300_v34 = vpop.f32.mrb[20].mxu1 }
 0x8bb   :  { %v4301_v35 = vpop.f32.mrb[21].mxu1 }
 0x8bc   :  { %v4302_v38 = vadd.f32 %v4301_v35, %v4300_v34  ;;  %v4303_v39 = vpop.f32.mrb[22].mxu1 }
 0x8bd   :  { %v4304_v26 = vpop.f32.mrb[23].mxu1 }
 0x8be   :  { %v1553_v6 = vadd.f32 %v4302_v38, %v1517_v25 }
 0x8c0   :  { %v5596_v24 = vmul.f32 0.90909094, %v1553_v6 }
 0x8c2   :  { %v1559_v23 = vpack.c.bf16 %v5596_v24, %v5596_v24 }
 0x8c4   :  { %1593 = vmatmul.mubr.bf16.vlgmr.msra.gmra.mrb[20].mxu0 %v1559_v23 }
 0x8c5   :  { %2131 = vmatprep.mubr.bf16.mxu0 %v4511_v20 }
 0x997   :  { %v1594_v18 = vpop.f32.mrb[20].mxu0 }
 0x998   :  { %v1601_v29 = vadd.f32 %v1594_v18, %v1475_v60  ;;  %v1596_v53 = vpop.f32.mrb[21].mxu0 }
 0x999   :  { %v1602_v15 = vadd.f32 %v1596_v53, %v1476_v61  ;;  %v1598_v40 = vpop.f32.mrb[22].mxu0 }
 0x99a   :  { %v1603_v47 = vsub.f32 %v1601_v29, %v4905_v42  ;;  %v1599_v46 = vpop.f32.mrb[23].mxu0 }
 0x99b   :  { %v1604_v30 = vsub.f32 %v1602_v15, %v4907_v43 }
 0x99c   :  { %v1605_v45 = vmul.f32 0.05, %v1603_v47 }
 0x99d   :  { %v1606_v32 = vmul.f32 0.05, %v1604_v30 }
 0x99e   :  { %v1607_v55 = vsub.f32 %v5464_v48, %v1605_v45 }
 0x99f   :  { %v1608_v2 = vsub.f32 %v5455_v0, %v1606_v32 }
 0x9a0   :  { %v5616_v5 = vmul.f32 %v5610_v56, %v1607_v55 }
 0x9a1   :  { %v5619_v62 = vmul.f32 %v5613_v19, %v1608_v2 }
 0x9a2   :  { %v1611_v4 = vmul.f32 2.0, %v5616_v5 }
 0x9a3   :  { %v1612_v9 = vmul.f32 2.0, %v5619_v62 }
 0x9a4   :  { %v5624_v10 = vsub.f32 %v1611_v4, %v5464_v48 }
 0x9a5   :  { %v5627_v11 = vsub.f32 %v1612_v9, %v5455_v0 }
 0x9a6   :  { %v5630_v12 = vadd.f32 %v5624_v10, %v1475_v60 }
 0x9a7   :  { %v5633_v13 = vadd.f32 %v5627_v11, %v1476_v61 }
 0x9a8   :  { %1617 = vrot.lane.b32.xlu0 %v5630_v12, %s4506_s10 }
 0x9a9   :  { %1619 = vrot.lane.b32.xlu1 %v5633_v13, %s4506_s10 }
 0x9ac   :  { %1629 = vrot.lane.b32.xlu0 %v5630_v12, %s4505_s9 }
 0x9ad   :  { %1631 = vrot.lane.b32.xlu1 %v5633_v13, %s4505_s9 }
 0x9b0   :  { %1641 = vrot.lane.b32.xlu0 %v5630_v12, %s4507_s21 }
 0x9b1   :  { %1643 = vrot.lane.b32.xlu1 %v5633_v13, %s4507_s21 }
 0x9b4   :  { %1653 = vrot.lane.b32.xlu0 %v5630_v12, %s4508_s26 }
 0x9b5   :  { %1655 = vrot.lane.b32.xlu1 %v5633_v13, %s4508_s26 }
 0x9b8   :  { %1667 = vrot.lane.b32.xlu0 %v5630_v12, %s4509_s8 }
 0x9b9   :  { %1669 = vrot.lane.b32.xlu1 %v5633_v13, %s4509_s8 }
 0x9bc   :  { %1679 = vrot.lane.b32.xlu0 %v5630_v12, %s4510_s17 }
 0x9bd   :  { %1681 = vrot.lane.b32.xlu1 %v5633_v13, %s4510_s17 }
 0x9c0   :  { %1691 = vrot.lane.b32.xlu0 %v5630_v12, %s4512_s23 }
 0x9c1   :  { %1693 = vrot.lane.b32.xlu1 %v5633_v13, %s4512_s23 }
 0x9c4   :  { %1703 = vrot.lane.b32.xlu0 %v5630_v12, %s4513_s15 }
 0x9c5   :  { %1705 = vrot.lane.b32.xlu1 %v5633_v13, %s4513_s15 }
 0xa1a   :  { %v1618_v0 = vpop.permute.xlu0 %1617 }
 0xa1b   :  { %v1620_v48 = vpop.permute.xlu1 %1619 }
 0xa1c   :  { %v1621_v14 = vsel %vm410_vm1, %v1618_v0, %v1620_v48  ;;  %v1622_v21 = vsel %vm410_vm1, %v1620_v48, %v1618_v0 }
 0xa1d   :  { %v1625_v39 = vmul.f32 %v1622_v21, %v5182_v36  ;;  %v1626_v26 = vmul.f32 %v1621_v14, %v5187_v37 }
 0xa1e   :  { %v1630_v25 = vpop.permute.xlu0 %1629 }
 0xa1f   :  { %v1632_v34 = vpop.permute.xlu1 %1631 }
 0xa20   :  { %v1633_v35 = vsel %vm423_vm0, %v1630_v25, %v1632_v34  ;;  %v1634_v38 = vsel %vm423_vm0, %v1632_v34, %v1630_v25 }
 0xa21   :  { %v1637_v6 = vmul.f32 %v5196_v49, %v1634_v38  ;;  %v1638_v23 = vmul.f32 %v5201_v50, %v1633_v35 }
 0xa22   :  { %v1642_v16 = vpop.permute.xlu0 %1641 }
 0xa23   :  { %v1736_v3 = vpack.c.bf16 %v1637_v6, %v1625_v39  ;;  %v1644_v7 = vpop.permute.xlu1 %1643  ;;  %v1737_v31 = vpack.c.bf16 %v1638_v23, %v1626_v26 }
 0xa24   :  { %v1645_v41 = vsel %vm437_vm2, %v1642_v16, %v1644_v7  ;;  %v1646_v8 = vsel %vm437_vm2, %v1644_v7, %v1642_v16 }
 0xa25   :  { %1749 = vmatprep.subr.bf16.mxu1 %v1737_v31  ;;  %v1649_v53 = vmul.f32 %v5214_v57, %v1646_v8  ;;  %v1650_v15 = vmul.f32 %v5219_v1, %v1645_v41 }
 0xa26   :  { %v1654_v60 = vpop.permute.xlu0 %1653  ;;  %1750 = vmatpush1.bf16.msra.mxu1 %v1736_v3 }
 0xa27   :  { %v1656_v61 = vpop.permute.xlu1 %1655 }
 0xa28   :  { %v1657_v18 = vsel %vm451_vm3, %v1654_v60, %v1656_v61  ;;  %v1658_v29 = vsel %vm451_vm3, %v1656_v61, %v1654_v60 }
 0xa29   :  { %v1661_v40 = vmul.f32 %v5228_v58, %v1658_v29  ;;  %v1662_v47 = vmul.f32 %v5233_v59, %v1657_v18 }
 0xa2a   :  { %v1668_v46 = vpop.permute.xlu0 %1667 }
 0xa2b   :  { %v1738_v30 = vpack.c.bf16 %v1661_v40, %v1649_v53  ;;  %v1670_v45 = vpop.permute.xlu1 %1669  ;;  %v1739_v32 = vpack.c.bf16 %v1662_v47, %v1650_v15  ;;  %v1715_v40 = vld [vmem:[%s7142_s5] sm:$0xf] }
 0xa2c   :  { %v1671_v55 = vsel %vm467_vm4, %v1668_v46, %v1670_v45  ;;  %v1672_v2 = vsel %vm467_vm4, %v1670_v45, %v1668_v46 }
 0xa2d   :  { %v1675_v4 = vmul.f32 %v5246_v17, %v1671_v55  ;;  %v1676_v9 = vmul.f32 %v5251_v22, %v1672_v2  ;;  %1751 = vmatprep.subr.bf16.mxu1 %v1739_v32 }
 0xa2e   :  { %v1680_v0 = vpop.permute.xlu0 %1679  ;;  %1752 = vmatpush1.bf16.msra.mxu1 %v1738_v30 }
 0xa2f   :  { %v1740_v48 = vpack.c.bf16 %v1675_v4, %v5630_v12  ;;  %v1682_v14 = vpop.permute.xlu1 %1681  ;;  %v1741_v21 = vpack.c.bf16 %v1676_v9, %v5633_v13 }
 0xa30   :  { %v1683_v25 = vsel %vm481_vm5, %v1680_v0, %v1682_v14  ;;  %v1684_v34 = vsel %vm481_vm5, %v1682_v14, %v1680_v0 }
 0xa31   :  { %1753 = vmatprep.subr.bf16.mxu1 %v1741_v21  ;;  %v1687_v6 = vmul.f32 %v5264_v54, %v1683_v25  ;;  %v1688_v23 = vmul.f32 %v5269_v28, %v1684_v34 }
 0xa32   :  { %v1692_v35 = vpop.permute.xlu0 %1691  ;;  %1754 = vmatpush1.bf16.msra.mxu1 %v1740_v48 }
 0xa33   :  { %v1694_v38 = vpop.permute.xlu1 %1693 }
 0xa34   :  { %v1695_v39 = vsel %vm495_vm6, %v1692_v35, %v1694_v38  ;;  %v1696_v26 = vsel %vm495_vm6, %v1694_v38, %v1692_v35 }
 0xa35   :  { %v1699_v16 = vmul.f32 %v5278_v27, %v1695_v39  ;;  %v1700_v3 = vmul.f32 %v5283_v33, %v1696_v26 }
 0xa36   :  { %v1704_v7 = vpop.permute.xlu0 %1703 }
 0xa37   :  { %v1742_v31 = vpack.c.bf16 %v1699_v16, %v1687_v6  ;;  %v1706_v41 = vpop.permute.xlu1 %1705  ;;  %v1743_v8 = vpack.c.bf16 %v1700_v3, %v1688_v23 }
 0xa38   :  { %v1707_v60 = vsel %vm509_vm7, %v1704_v7, %v1706_v41  ;;  %v1708_v61 = vsel %vm509_vm7, %v1706_v41, %v1704_v7 }
 0xa39   :  { %v1711_v18 = vmul.f32 %v5296_v51, %v1707_v60  ;;  %v1712_v29 = vmul.f32 %v5301_v52, %v1708_v61  ;;  %1755 = vmatprep.subr.bf16.mxu1 %v1743_v8 }
 0xa3a   :  { %1756 = vmatpush1.bf16.msra.mxu1 %v1742_v31 }
 0xa3b   :  { %v1744_v53 = vpack.c.bf16 %v4514_v63, %v1711_v18  ;;  %v1745_v15 = vpack.c.bf16 %v4514_v63, %v1712_v29 }
 0xa3d   :  { %1757 = vmatprep.subr.bf16.mxu1 %v1745_v15 }
 0xa3e   :  { %1758 = vmatpush1.bf16.msra.mxu1 %v1744_v53 }
 0xa41   :  { %4064 = vmatmul.mubr.msk.bf16.vlgmr.msra.gmra.mrb[24].mxu1 %vm550_vm8, %v1715_v40 }
 0xa42   :  { %1956 = vmatprep.mubr.bf16.mxu1 %v4511_v20 }
 0xb14   :  { %v1783_v47 = vpop.f32.mrb[24].mxu1 }
 0xb15   :  { %v5724_v46 = vmax.f32 %v1783_v47, 0.0  ;;  %v1785_v30 = vpop.f32.mrb[25].mxu1 }
 0xb16   :  { %v5726_v45 = vmax.f32 %v1785_v30, 0.0  ;;  %v1787_v32 = vpop.f32.mrb[26].mxu1 }
 0xb17   :  { %1792 = vrot.lane.b32.xlu0 %v5724_v46, %s4506_s10  ;;  %v1788_v55 = vpop.f32.mrb[27].mxu1 }
 0xb18   :  { %1794 = vrot.lane.b32.xlu1 %v5726_v45, %s4506_s10 }
 0xb1b   :  { %1804 = vrot.lane.b32.xlu0 %v5724_v46, %s4505_s9 }
 0xb1c   :  { %1806 = vrot.lane.b32.xlu1 %v5726_v45, %s4505_s9 }
 0xb1f   :  { %1816 = vrot.lane.b32.xlu0 %v5724_v46, %s4507_s21 }
 0xb20   :  { %1818 = vrot.lane.b32.xlu1 %v5726_v45, %s4507_s21 }
 0xb23   :  { %1828 = vrot.lane.b32.xlu0 %v5724_v46, %s4508_s26 }
 0xb24   :  { %1830 = vrot.lane.b32.xlu1 %v5726_v45, %s4508_s26 }
 0xb27   :  { %1842 = vrot.lane.b32.xlu0 %v5724_v46, %s4509_s8 }
 0xb28   :  { %1844 = vrot.lane.b32.xlu1 %v5726_v45, %s4509_s8 }
 0xb2b   :  { %1854 = vrot.lane.b32.xlu0 %v5724_v46, %s4510_s17 }
 0xb2c   :  { %1856 = vrot.lane.b32.xlu1 %v5726_v45, %s4510_s17 }
 0xb2f   :  { %1866 = vrot.lane.b32.xlu0 %v5724_v46, %s4512_s23 }
 0xb30   :  { %1868 = vrot.lane.b32.xlu1 %v5726_v45, %s4512_s23 }
 0xb33   :  { %1878 = vrot.lane.b32.xlu0 %v5724_v46, %s4513_s15 }
 0xb34   :  { %1880 = vrot.lane.b32.xlu1 %v5726_v45, %s4513_s15 }
 0xb89   :  { %v1793_v2 = vpop.permute.xlu0 %1792 }
 0xb8a   :  { %v1795_v4 = vpop.permute.xlu1 %1794 }
 0xb8b   :  { %v1796_v9 = vsel %vm410_vm1, %v1793_v2, %v1795_v4  ;;  %v1797_v0 = vsel %vm410_vm1, %v1795_v4, %v1793_v2 }
 0xb8c   :  { %v1800_v34 = vmul.f32 %v1797_v0, %v5182_v36  ;;  %v1801_v35 = vmul.f32 %v1796_v9, %v5187_v37 }
 0xb8d   :  { %v1805_v48 = vpop.permute.xlu0 %1804 }
 0xb8e   :  { %v1807_v14 = vpop.permute.xlu1 %1806 }
 0xb8f   :  { %v1808_v21 = vsel %vm423_vm0, %v1805_v48, %v1807_v14  ;;  %v1809_v25 = vsel %vm423_vm0, %v1807_v14, %v1805_v48 }
 0xb90   :  { %v1812_v38 = vmul.f32 %v5196_v49, %v1809_v25  ;;  %v1813_v39 = vmul.f32 %v5201_v50, %v1808_v21 }
 0xb91   :  { %v1817_v26 = vpop.permute.xlu0 %1816 }
 0xb92   :  { %v1911_v6 = vpack.c.bf16 %v1812_v38, %v1800_v34  ;;  %v1819_v23 = vpop.permute.xlu1 %1818  ;;  %v1912_v16 = vpack.c.bf16 %v1813_v39, %v1801_v35 }
 0xb93   :  { %v1820_v3 = vsel %vm437_vm2, %v1817_v26, %v1819_v23  ;;  %v1821_v7 = vsel %vm437_vm2, %v1819_v23, %v1817_v26 }
 0xb94   :  { %1924 = vmatprep.subr.bf16.mxu1 %v1912_v16  ;;  %v1824_v50 = vmul.f32 %v5214_v57, %v1821_v7  ;;  %v1825_v41 = vmul.f32 %v5219_v1, %v1820_v3 }
 0xb95   :  { %v1829_v31 = vpop.permute.xlu0 %1828  ;;  %1925 = vmatpush1.bf16.msra.mxu1 %v1911_v6 }
 0xb96   :  { %v1831_v36 = vpop.permute.xlu1 %1830 }
 0xb97   :  { %v1832_v37 = vsel %vm451_vm3, %v1829_v31, %v1831_v36  ;;  %v1833_v49 = vsel %vm451_vm3, %v1831_v36, %v1829_v31  ;;  %v5856_v36 = vld [vmem:[%s7141_s6] sm:$0xff] }
 0xb98   :  { %v1836_v8 = vmul.f32 %v5228_v58, %v1833_v49  ;;  %v1837_v60 = vmul.f32 %v5233_v59, %v1832_v37  ;;  %v5861_v37 = vld [vmem:[%s7141_s6 + $0x8] sm:$0xff] }
 0xb99   :  { %v1843_v61 = vpop.permute.xlu0 %1842 }
 0xb9a   :  { %v1913_v18 = vpack.c.bf16 %v1836_v8, %v1824_v50  ;;  %v1845_v29 = vpop.permute.xlu1 %1844  ;;  %v1914_v53 = vpack.c.bf16 %v1837_v60, %v1825_v41  ;;  %v5870_v8 = vld [vmem:[%s7141_s6 + $0x10] sm:$0xff]  ;;  %v5875_v60 = vld [vmem:[%s7141_s6 + $0x18] sm:$0xff] }
 0xb9b   :  { %v1846_v15 = vsel %vm467_vm4, %v1843_v61, %v1845_v29  ;;  %v1847_v40 = vsel %vm467_vm4, %v1845_v29, %v1843_v61 }
 0xb9c   :  { %v1850_v47 = vmul.f32 %v5246_v17, %v1846_v15  ;;  %v1851_v57 = vmul.f32 %v5251_v22, %v1847_v40  ;;  %1926 = vmatprep.subr.bf16.mxu1 %v1914_v53 }
 0xb9d   :  { %v1855_v1 = vpop.permute.xlu0 %1854  ;;  %1927 = vmatpush1.bf16.msra.mxu1 %v1913_v18 }
 0xb9e   :  { %v1915_v58 = vpack.c.bf16 %v1850_v47, %v5724_v46  ;;  %v1857_v59 = vpop.permute.xlu1 %1856  ;;  %v1916_v30 = vpack.c.bf16 %v1851_v57, %v5726_v45 }
 0xb9f   :  { %v1858_v32 = vsel %vm481_vm5, %v1855_v1, %v1857_v59  ;;  %v1859_v55 = vsel %vm481_vm5, %v1857_v59, %v1855_v1 }
 0xba0   :  { %1928 = vmatprep.subr.bf16.mxu1 %v1916_v30  ;;  %v1862_v9 = vmul.f32 %v5264_v54, %v1858_v32  ;;  %v1863_v0 = vmul.f32 %v5269_v28, %v1859_v55  ;;  %v5888_v30 = vld [vmem:[%s7141_s6 + $0x20] sm:$0xff]  ;;  %v5893_v32 = vld [vmem:[%s7141_s6 + $0x28] sm:$0xff] }
 0xba1   :  { %v1867_v2 = vpop.permute.xlu0 %1866  ;;  %1929 = vmatpush1.bf16.msra.mxu1 %v1915_v58 }
 0xba2   :  { %v1869_v17 = vpop.permute.xlu1 %1868 }
 0xba3   :  { %v1870_v22 = vsel %vm495_vm6, %v1867_v2, %v1869_v17  ;;  %v1871_v4 = vsel %vm495_vm6, %v1869_v17, %v1867_v2 }
 0xba4   :  { %v1874_v48 = vmul.f32 %v5278_v27, %v1870_v22  ;;  %v1875_v14 = vmul.f32 %v5283_v33, %v1871_v4  ;;  %v4079_v33 = vld [vmem:[%s7142_s5 + $0x4] sm:$0xf]  ;;  %v5902_v22 = vld [vmem:[%s7141_s6 + $0x30] sm:$0xff]  ;;  %v5907_v4 = vld [vmem:[%s7141_s6 + $0x38] sm:$0xff] }
 0xba5   :  { %v1879_v21 = vpop.permute.xlu0 %1878 }
 0xba6   :  { %v1917_v25 = vpack.c.bf16 %v1874_v48, %v1862_v9  ;;  %v1881_v34 = vpop.permute.xlu1 %1880  ;;  %v1918_v35 = vpack.c.bf16 %v1875_v14, %v1863_v0 }
 0xba7   :  { %v1882_v38 = vsel %vm509_vm7, %v1879_v21, %v1881_v34  ;;  %v1883_v39 = vsel %vm509_vm7, %v1881_v34, %v1879_v21 }
 0xba8   :  { %v1886_v26 = vmul.f32 %v5296_v51, %v1882_v38  ;;  %v1887_v54 = vmul.f32 %v5301_v52, %v1883_v39  ;;  %1930 = vmatprep.subr.bf16.mxu1 %v1918_v35  ;;  %v5920_v38 = vld [vmem:[%s7141_s6 + $0x40] sm:$0xff]  ;;  %v5925_v39 = vld [vmem:[%s7141_s6 + $0x48] sm:$0xff] }
 0xba9   :  { %1931 = vmatpush1.bf16.msra.mxu1 %v1917_v25 }
 0xbaa   :  { %v1919_v28 = vpack.c.bf16 %v4514_v63, %v1886_v26  ;;  %v1920_v27 = vpack.c.bf16 %v4514_v63, %v1887_v54 }
 0xbac   :  { %1932 = vmatprep.subr.bf16.mxu1 %v1920_v27 }
 0xbad   :  { %1933 = vmatpush1.bf16.msra.mxu1 %v1919_v28 }
 0xbb0   :  { %4080 = vmatmul.mubr.msk.bf16.vlgmr.msra.gmra.mrb[28].mxu1 %vm550_vm8, %v4079_v33 }
 0xbb1   :  { %2306 = vmatprep.mubr.bf16.mxu1 %v4511_v20 }
 0xc83   :  { %v1958_v6 = vpop.f32.mrb[28].mxu1 }
 0xc84   :  { %v5817_v51 = vmax.f32 %v1958_v6, 0.0  ;;  %v1960_v52 = vpop.f32.mrb[29].mxu1 }
 0xc85   :  { %v5819_v23 = vmax.f32 %v1960_v52, 0.0  ;;  %v1962_v16 = vpop.f32.mrb[30].mxu1 }
 0xc86   :  { %1967 = vrot.lane.b32.xlu0 %v5817_v51, %s4506_s10  ;;  %v1963_v3 = vpop.f32.mrb[31].mxu1 }
 0xc87   :  { %1969 = vrot.lane.b32.xlu1 %v5819_v23, %s4506_s10 }
 0xc8a   :  { %1979 = vrot.lane.b32.xlu0 %v5817_v51, %s4505_s9 }
 0xc8b   :  { %1981 = vrot.lane.b32.xlu1 %v5819_v23, %s4505_s9 }
 0xc8e   :  { %1991 = vrot.lane.b32.xlu0 %v5817_v51, %s4507_s21 }
 0xc8f   :  { %1993 = vrot.lane.b32.xlu1 %v5819_v23, %s4507_s21 }
 0xc92   :  { %2003 = vrot.lane.b32.xlu0 %v5817_v51, %s4508_s26 }
 0xc93   :  { %2005 = vrot.lane.b32.xlu1 %v5819_v23, %s4508_s26 }
 0xc96   :  { %2017 = vrot.lane.b32.xlu0 %v5817_v51, %s4509_s8 }
 0xc97   :  { %2019 = vrot.lane.b32.xlu1 %v5819_v23, %s4509_s8 }
 0xc9a   :  { %2029 = vrot.lane.b32.xlu0 %v5817_v51, %s4510_s17 }
 0xc9b   :  { %2031 = vrot.lane.b32.xlu1 %v5819_v23, %s4510_s17 }
 0xc9e   :  { %2041 = vrot.lane.b32.xlu0 %v5817_v51, %s4512_s23 }
 0xc9f   :  { %2043 = vrot.lane.b32.xlu1 %v5819_v23, %s4512_s23 }
 0xca2   :  { %2053 = vrot.lane.b32.xlu0 %v5817_v51, %s4513_s15 }
 0xca3   :  { %2055 = vrot.lane.b32.xlu1 %v5819_v23, %s4513_s15 }
 0xcf8   :  { %v1968_v7 = vpop.permute.xlu0 %1967 }
 0xcf9   :  { %v1970_v31 = vpop.permute.xlu1 %1969 }
 0xcfa   :  { %v1971_v49 = vsel %vm410_vm1, %v1968_v7, %v1970_v31  ;;  %v1972_v50 = vsel %vm410_vm1, %v1970_v31, %v1968_v7 }
 0xcfb   :  { %v1975_v53 = vmul.f32 %v5856_v36, %v1972_v50  ;;  %v1976_v15 = vmul.f32 %v5861_v37, %v1971_v49  ;;  %v5938_v49 = vld [vmem:[%s7141_s6 + $0x50] sm:$0xff]  ;;  %v5943_v50 = vld [vmem:[%s7141_s6 + $0x58] sm:$0xff] }
 0xcfc   :  { %v1980_v41 = vpop.permute.xlu0 %1979 }
 0xcfd   :  { %v1982_v61 = vpop.permute.xlu1 %1981 }
 0xcfe   :  { %v1983_v18 = vsel %vm423_vm0, %v1980_v41, %v1982_v61  ;;  %v1984_v29 = vsel %vm423_vm0, %v1982_v61, %v1980_v41 }
 0xcff   :  { %v1987_v40 = vmul.f32 %v5870_v8, %v1984_v29  ;;  %v1988_v47 = vmul.f32 %v5875_v60, %v1983_v18  ;;  %v5957_v18 = vld [vmem:[%s7141_s6 + $0x68] sm:$0xff] }
 0xd00   :  { %v1992_v57 = vpop.permute.xlu0 %1991 }
 0xd01   :  { %v2086_v1 = vpack.c.bf16 %v1987_v40, %v1975_v53  ;;  %v1994_v58 = vpop.permute.xlu1 %1993  ;;  %v2087_v59 = vpack.c.bf16 %v1988_v47, %v1976_v15 }
 0xd02   :  { %v1995_v55 = vsel %vm437_vm2, %v1992_v57, %v1994_v58  ;;  %v1996_v2 = vsel %vm437_vm2, %v1994_v58, %v1992_v57 }
 0xd03   :  { %2099 = vmatprep.subr.bf16.mxu0 %v2087_v59  ;;  %v1999_v14 = vmul.f32 %v5888_v30, %v1996_v2  ;;  %v2000_v21 = vmul.f32 %v5893_v32, %v1995_v55  ;;  %v5970_v59 = vld [vmem:[%s7141_s6 + $0x70] sm:$0xff]  ;;  %v5975_v55 = vld [vmem:[%s7141_s6 + $0x78] sm:$0xff] }
 0xd04   :  { %v2004_v17 = vpop.permute.xlu0 %2003  ;;  %2100 = vmatpush1.bf16.msra.mxu0 %v2086_v1 }
 0xd05   :  { %v2006_v9 = vpop.permute.xlu1 %2005 }
 0xd06   :  { %v2007_v0 = vsel %vm451_vm3, %v2004_v17, %v2006_v9  ;;  %v2008_v48 = vsel %vm451_vm3, %v2006_v9, %v2004_v17 }
 0xd07   :  { %v2011_v25 = vmul.f32 %v5902_v22, %v2008_v48  ;;  %v2012_v34 = vmul.f32 %v5907_v4, %v2007_v0 }
 0xd08   :  { %v2018_v35 = vpop.permute.xlu0 %2017 }
 0xd09   :  { %v2088_v26 = vpack.c.bf16 %v2011_v25, %v1999_v14  ;;  %v2020_v54 = vpop.permute.xlu1 %2019  ;;  %v2089_v28 = vpack.c.bf16 %v2012_v34, %v2000_v21 }
 0xd0a   :  { %v2021_v27 = vsel %vm467_vm4, %v2018_v35, %v2020_v54  ;;  %v2022_v33 = vsel %vm467_vm4, %v2020_v54, %v2018_v35  ;;  %v4095_v35 = vld [vmem:[%s7142_s5 + $0x8] sm:$0xf] }
 0xd0b   :  { %v2025_v6 = vmul.f32 %v5920_v38, %v2021_v27  ;;  %v2026_v52 = vmul.f32 %v5925_v39, %v2022_v33  ;;  %2101 = vmatprep.subr.bf16.mxu0 %v2089_v28 }
 0xd0c   :  { %v2030_v16 = vpop.permute.xlu0 %2029  ;;  %2102 = vmatpush1.bf16.msra.mxu0 %v2088_v26 }
 0xd0d   :  { %v2090_v3 = vpack.c.bf16 %v2025_v6, %v5817_v51  ;;  %v2032_v7 = vpop.permute.xlu1 %2031  ;;  %v2091_v31 = vpack.c.bf16 %v2026_v52, %v5819_v23  ;;  %v5952_v23 = vld [vmem:[%s7141_s6 + $0x60] sm:$0xff] }
 0xd0e   :  { %v2033_v41 = vsel %vm481_vm5, %v2030_v16, %v2032_v7  ;;  %v2034_v51 = vsel %vm481_vm5, %v2032_v7, %v2030_v16 }
 0xd0f   :  { %2103 = vmatprep.subr.bf16.mxu0 %v2091_v31  ;;  %v2037_v40 = vmul.f32 %v5938_v49, %v2033_v41  ;;  %v2038_v47 = vmul.f32 %v5943_v50, %v2034_v51 }
 0xd10   :  { %v2042_v61 = vpop.permute.xlu0 %2041  ;;  %2104 = vmatpush1.bf16.msra.mxu0 %v2090_v3 }
 0xd11   :  { %v2044_v29 = vpop.permute.xlu1 %2043 }
 0xd12   :  { %v2045_v53 = vsel %vm495_vm6, %v2042_v61, %v2044_v29  ;;  %v2046_v15 = vsel %vm495_vm6, %v2044_v29, %v2042_v61 }
 0xd13   :  { %v2049_v57 = vmul.f32 %v5952_v23, %v2045_v53  ;;  %v2050_v1 = vmul.f32 %v5957_v18, %v2046_v15 }
 0xd14   :  { %v2054_v58 = vpop.permute.xlu0 %2053 }
 0xd15   :  { %v2092_v2 = vpack.c.bf16 %v2049_v57, %v2037_v40  ;;  %v2056_v17 = vpop.permute.xlu1 %2055  ;;  %v2093_v9 = vpack.c.bf16 %v2050_v1, %v2038_v47 }
 0xd16   :  { %v2057_v0 = vsel %vm509_vm7, %v2054_v58, %v2056_v17  ;;  %v2058_v48 = vsel %vm509_vm7, %v2056_v17, %v2054_v58 }
 0xd17   :  { %v2061_v14 = vmul.f32 %v5970_v59, %v2057_v0  ;;  %v2062_v21 = vmul.f32 %v5975_v55, %v2058_v48  ;;  %2105 = vmatprep.subr.bf16.mxu0 %v2093_v9 }
 0xd18   :  { %2106 = vmatpush1.bf16.msra.mxu0 %v2092_v2 }
 0xd19   :  { %v2094_v25 = vpack.c.bf16 %v4514_v63, %v2061_v14  ;;  %v2095_v34 = vpack.c.bf16 %v4514_v63, %v2062_v21 }
 0xd1b   :  { %2107 = vmatprep.subr.bf16.mxu0 %v2095_v34 }
 0xd1c   :  { %2108 = vmatpush1.bf16.msra.mxu0 %v2094_v25 }
 0xd1f   :  { %4096 = vmatmul.mubr.msk.bf16.vlgmr.msra.gmra.mrb[24].mxu0 %vm550_vm8, %v4095_v35 }
 0xd20   :  { %2481 = vmatprep.mubr.bf16.mxu0 %v4511_v20 }
 0xdf2   :  { %v2133_v26 = vpop.f32.mrb[24].mxu0 }
 0xdf3   :  { %v5991_v54 = vadd.f32 %v2133_v26, %v5724_v46  ;;  %v2135_v28 = vpop.f32.mrb[25].mxu0 }
 0xdf4   :  { %v5994_v27 = vadd.f32 %v2135_v28, %v5726_v45  ;;  %v2137_v33 = vpop.f32.mrb[26].mxu0 }
 0xdf5   :  { %2142 = vrot.lane.b32.xlu0 %v5991_v54, %s4506_s10  ;;  %v2138_v6 = vpop.f32.mrb[27].mxu0 }
 0xdf6   :  { %2144 = vrot.lane.b32.xlu1 %v5994_v27, %s4506_s10 }
 0xdf9   :  { %2154 = vrot.lane.b32.xlu0 %v5991_v54, %s4505_s9 }
 0xdfa   :  { %2156 = vrot.lane.b32.xlu1 %v5994_v27, %s4505_s9 }
 0xdfd   :  { %2166 = vrot.lane.b32.xlu0 %v5991_v54, %s4507_s21 }
 0xdfe   :  { %2168 = vrot.lane.b32.xlu1 %v5994_v27, %s4507_s21 }
 0xe01   :  { %2178 = vrot.lane.b32.xlu0 %v5991_v54, %s4508_s26 }
 0xe02   :  { %2180 = vrot.lane.b32.xlu1 %v5994_v27, %s4508_s26 }
 0xe05   :  { %2192 = vrot.lane.b32.xlu0 %v5991_v54, %s4509_s8 }
 0xe06   :  { %2194 = vrot.lane.b32.xlu1 %v5994_v27, %s4509_s8 }
 0xe09   :  { %2204 = vrot.lane.b32.xlu0 %v5991_v54, %s4510_s17 }
 0xe0a   :  { %2206 = vrot.lane.b32.xlu1 %v5994_v27, %s4510_s17 }
 0xe0d   :  { %2216 = vrot.lane.b32.xlu0 %v5991_v54, %s4512_s23 }
 0xe0e   :  { %2218 = vrot.lane.b32.xlu1 %v5994_v27, %s4512_s23 }
 0xe11   :  { %2228 = vrot.lane.b32.xlu0 %v5991_v54, %s4513_s15 }
 0xe12   :  { %2230 = vrot.lane.b32.xlu1 %v5994_v27, %s4513_s15 }
 0xe67   :  { %v2143_v46 = vpop.permute.xlu0 %2142 }
 0xe68   :  { %v2145_v45 = vpop.permute.xlu1 %2144 }
 0xe69   :  { %v2146_v52 = vsel %vm410_vm1, %v2143_v46, %v2145_v45  ;;  %v2147_v16 = vsel %vm410_vm1, %v2145_v45, %v2143_v46 }
 0xe6a   :  { %v2150_v51 = vmul.f32 %v2147_v16, %v5856_v36  ;;  %v2151_v61 = vmul.f32 %v2146_v52, %v5861_v37 }
 0xe6b   :  { %v2155_v3 = vpop.permute.xlu0 %2154 }
 0xe6c   :  { %v2157_v7 = vpop.permute.xlu1 %2156 }
 0xe6d   :  { %v2158_v31 = vsel %vm423_vm0, %v2155_v3, %v2157_v7  ;;  %v2159_v41 = vsel %vm423_vm0, %v2157_v7, %v2155_v3 }
 0xe6e   :  { %v2162_v29 = vmul.f32 %v5870_v8, %v2159_v41  ;;  %v2163_v53 = vmul.f32 %v5875_v60, %v2158_v31 }
 0xe6f   :  { %v2167_v15 = vpop.permute.xlu0 %2166 }
 0xe70   :  { %v2261_v40 = vpack.c.bf16 %v2162_v29, %v2150_v51  ;;  %v2169_v47 = vpop.permute.xlu1 %2168  ;;  %v2262_v57 = vpack.c.bf16 %v2163_v53, %v2151_v61 }
 0xe71   :  { %v2170_v1 = vsel %vm437_vm2, %v2167_v15, %v2169_v47  ;;  %v2171_v58 = vsel %vm437_vm2, %v2169_v47, %v2167_v15 }
 0xe72   :  { %2274 = vmatprep.subr.bf16.mxu1 %v2262_v57  ;;  %v2174_v48 = vmul.f32 %v5888_v30, %v2171_v58  ;;  %v2175_v14 = vmul.f32 %v5893_v32, %v2170_v1 }
 0xe73   :  { %v2179_v2 = vpop.permute.xlu0 %2178  ;;  %2275 = vmatpush1.bf16.msra.mxu1 %v2261_v40 }
 0xe74   :  { %v2181_v17 = vpop.permute.xlu1 %2180 }
 0xe75   :  { %v2182_v9 = vsel %vm451_vm3, %v2179_v2, %v2181_v17  ;;  %v2183_v0 = vsel %vm451_vm3, %v2181_v17, %v2179_v2 }
 0xe76   :  { %v2186_v21 = vmul.f32 %v5902_v22, %v2183_v0  ;;  %v2187_v25 = vmul.f32 %v5907_v4, %v2182_v9 }
 0xe77   :  { %v2193_v34 = vpop.permute.xlu0 %2192 }
 0xe78   :  { %v2263_v35 = vpack.c.bf16 %v2186_v21, %v2174_v48  ;;  %v2195_v26 = vpop.permute.xlu1 %2194  ;;  %v2264_v28 = vpack.c.bf16 %v2187_v25, %v2175_v14 }
 0xe79   :  { %v2196_v33 = vsel %vm467_vm4, %v2193_v34, %v2195_v26  ;;  %v2197_v6 = vsel %vm467_vm4, %v2195_v26, %v2193_v34  ;;  %v4111_v34 = vld [vmem:[%s7142_s5 + $0xc] sm:$0xf] }
 0xe7a   :  { %v2200_v46 = vmul.f32 %v5920_v38, %v2196_v33  ;;  %v2201_v45 = vmul.f32 %v5925_v39, %v2197_v6  ;;  %2276 = vmatprep.subr.bf16.mxu1 %v2264_v28 }
 0xe7b   :  { %v2205_v52 = vpop.permute.xlu0 %2204  ;;  %2277 = vmatpush1.bf16.msra.mxu1 %v2263_v35 }
 0xe7c   :  { %v2265_v16 = vpack.c.bf16 %v2200_v46, %v5991_v54  ;;  %v2207_v3 = vpop.permute.xlu1 %2206  ;;  %v2266_v7 = vpack.c.bf16 %v2201_v45, %v5994_v27 }
 0xe7d   :  { %v2208_v31 = vsel %vm481_vm5, %v2205_v52, %v2207_v3  ;;  %v2209_v41 = vsel %vm481_vm5, %v2207_v3, %v2205_v52 }
 0xe7e   :  { %2278 = vmatprep.subr.bf16.mxu1 %v2266_v7  ;;  %v2212_v15 = vmul.f32 %v5938_v49, %v2208_v31  ;;  %v2213_v40 = vmul.f32 %v5943_v50, %v2209_v41 }
 0xe7f   :  { %v2217_v51 = vpop.permute.xlu0 %2216  ;;  %2279 = vmatpush1.bf16.msra.mxu1 %v2265_v16 }
 0xe80   :  { %v2219_v61 = vpop.permute.xlu1 %2218 }
 0xe81   :  { %v2220_v29 = vsel %vm495_vm6, %v2217_v51, %v2219_v61  ;;  %v2221_v53 = vsel %vm495_vm6, %v2219_v61, %v2217_v51 }
 0xe82   :  { %v2224_v47 = vmul.f32 %v5952_v23, %v2220_v29  ;;  %v2225_v57 = vmul.f32 %v5957_v18, %v2221_v53 }
 0xe83   :  { %v2229_v1 = vpop.permute.xlu0 %2228 }
 0xe84   :  { %v2267_v58 = vpack.c.bf16 %v2224_v47, %v2212_v15  ;;  %v2231_v2 = vpop.permute.xlu1 %2230  ;;  %v2268_v17 = vpack.c.bf16 %v2225_v57, %v2213_v40 }
 0xe85   :  { %v2232_v9 = vsel %vm509_vm7, %v2229_v1, %v2231_v2  ;;  %v2233_v0 = vsel %vm509_vm7, %v2231_v2, %v2229_v1 }
 0xe86   :  { %v2236_v48 = vmul.f32 %v5970_v59, %v2232_v9  ;;  %v2237_v14 = vmul.f32 %v5975_v55, %v2233_v0  ;;  %2280 = vmatprep.subr.bf16.mxu1 %v2268_v17 }
 0xe87   :  { %2281 = vmatpush1.bf16.msra.mxu1 %v2267_v58 }
 0xe88   :  { %v2269_v21 = vpack.c.bf16 %v4514_v63, %v2236_v48  ;;  %v2270_v25 = vpack.c.bf16 %v4514_v63, %v2237_v14 }
 0xe8a   :  { %2282 = vmatprep.subr.bf16.mxu1 %v2270_v25 }
 0xe8b   :  { %2283 = vmatpush1.bf16.msra.mxu1 %v2269_v21 }
 0xe8e   :  { %4112 = vmatmul.mubr.msk.bf16.vlgmr.msra.gmra.mrb[32].mxu1 %vm550_vm8, %v4111_v34 }
 0xe8f   :  { %2656 = vmatprep.mubr.bf16.mxu1 %v4511_v20 }
 0xf61   :  { %v2308_v35 = vpop.f32.mrb[32].mxu1 }
 0xf62   :  { %v6085_v26 = vmax.f32 %v2308_v35, 0.0  ;;  %v2310_v28 = vpop.f32.mrb[33].mxu1 }
 0xf63   :  { %v2316_v33 = vmax.f32 %v2310_v28, 0.0  ;;  %v2312_v6 = vpop.f32.mrb[34].mxu1 }
 0xf64   :  { %2317 = vrot.lane.b32.xlu0 %v6085_v26, %s4506_s10  ;;  %v2313_v46 = vpop.f32.mrb[35].mxu1 }
 0xf65   :  { %2319 = vrot.lane.b32.xlu1 %v2316_v33, %s4506_s10 }
 0xf68   :  { %2329 = vrot.lane.b32.xlu0 %v6085_v26, %s4505_s9 }
 0xf69   :  { %2331 = vrot.lane.b32.xlu1 %v2316_v33, %s4505_s9 }
 0xf6c   :  { %2341 = vrot.lane.b32.xlu0 %v6085_v26, %s4507_s21 }
 0xf6d   :  { %2343 = vrot.lane.b32.xlu1 %v2316_v33, %s4507_s21 }
 0xf70   :  { %2353 = vrot.lane.b32.xlu0 %v6085_v26, %s4508_s26 }
 0xf71   :  { %2355 = vrot.lane.b32.xlu1 %v2316_v33, %s4508_s26 }
 0xf74   :  { %2367 = vrot.lane.b32.xlu0 %v6085_v26, %s4509_s8 }
 0xf75   :  { %2369 = vrot.lane.b32.xlu1 %v2316_v33, %s4509_s8 }
 0xf78   :  { %2379 = vrot.lane.b32.xlu0 %v6085_v26, %s4510_s17 }
 0xf79   :  { %2381 = vrot.lane.b32.xlu1 %v2316_v33, %s4510_s17 }
 0xf7c   :  { %2391 = vrot.lane.b32.xlu0 %v6085_v26, %s4512_s23 }
 0xf7d   :  { %2393 = vrot.lane.b32.xlu1 %v2316_v33, %s4512_s23 }
 0xf80   :  { %2403 = vrot.lane.b32.xlu0 %v6085_v26, %s4513_s15 }
 0xf81   :  { %2405 = vrot.lane.b32.xlu1 %v2316_v33, %s4513_s15 }
 0xfd6   :  { %v2318_v45 = vpop.permute.xlu0 %2317 }
 0xfd7   :  { %v2320_v52 = vpop.permute.xlu1 %2319 }
 0xfd8   :  { %v2321_v16 = vsel %vm410_vm1, %v2318_v45, %v2320_v52  ;;  %v2322_v3 = vsel %vm410_vm1, %v2320_v52, %v2318_v45 }
 0xfd9   :  { %v2325_v61 = vmul.f32 %v2322_v3, %v5856_v36  ;;  %v2326_v29 = vmul.f32 %v2321_v16, %v5861_v37 }
 0xfda   :  { %v2330_v7 = vpop.permute.xlu0 %2329 }
 0xfdb   :  { %v2332_v31 = vpop.permute.xlu1 %2331 }
 0xfdc   :  { %v2333_v41 = vsel %vm423_vm0, %v2330_v7, %v2332_v31  ;;  %v2334_v51 = vsel %vm423_vm0, %v2332_v31, %v2330_v7 }
 0xfdd   :  { %v2337_v53 = vmul.f32 %v5870_v8, %v2334_v51  ;;  %v2338_v15 = vmul.f32 %v5875_v60, %v2333_v41 }
 0xfde   :  { %v2342_v40 = vpop.permute.xlu0 %2341 }
 0xfdf   :  { %v2436_v47 = vpack.c.bf16 %v2337_v53, %v2325_v61  ;;  %v2344_v57 = vpop.permute.xlu1 %2343  ;;  %v2437_v1 = vpack.c.bf16 %v2338_v15, %v2326_v29 }
 0xfe0   :  { %v2345_v58 = vsel %vm437_vm2, %v2342_v40, %v2344_v57  ;;  %v2346_v2 = vsel %vm437_vm2, %v2344_v57, %v2342_v40 }
 0xfe1   :  { %2449 = vmatprep.subr.bf16.mxu0 %v2437_v1  ;;  %v2349_v14 = vmul.f32 %v5888_v30, %v2346_v2  ;;  %v2350_v21 = vmul.f32 %v5893_v32, %v2345_v58 }
 0xfe2   :  { %v2354_v17 = vpop.permute.xlu0 %2353  ;;  %2450 = vmatpush1.bf16.msra.mxu0 %v2436_v47 }
 0xfe3   :  { %v2356_v9 = vpop.permute.xlu1 %2355 }
 0xfe4   :  { %v2357_v0 = vsel %vm451_vm3, %v2354_v17, %v2356_v9  ;;  %v2358_v48 = vsel %vm451_vm3, %v2356_v9, %v2354_v17 }
 0xfe5   :  { %v2361_v25 = vmul.f32 %v5902_v22, %v2358_v48  ;;  %v2362_v34 = vmul.f32 %v5907_v4, %v2357_v0 }
 0xfe6   :  { %v2368_v35 = vpop.permute.xlu0 %2367 }
 0xfe7   :  { %v2438_v28 = vpack.c.bf16 %v2361_v25, %v2349_v14  ;;  %v2370_v6 = vpop.permute.xlu1 %2369  ;;  %v2439_v46 = vpack.c.bf16 %v2362_v34, %v2350_v21 }
 0xfe8   :  { %v2371_v45 = vsel %vm467_vm4, %v2368_v35, %v2370_v6  ;;  %v2372_v52 = vsel %vm467_vm4, %v2370_v6, %v2368_v35  ;;  %v4127_v35 = vld [vmem:[%s7142_s5 + $0x10] sm:$0xf]  ;;  %v2668_v6 = vpack.c.bf16 %v5627_v11, %v5627_v11 }
 0xfe9   :  { %v2375_v16 = vmul.f32 %v5920_v38, %v2371_v45  ;;  %v2376_v3 = vmul.f32 %v5925_v39, %v2372_v52  ;;  %2451 = vmatprep.subr.bf16.mxu0 %v2439_v46  ;;  %v4440_v46 = vld [vmem:[%s7137_s3] sm:$0xff]   ;;  %v4441_v45 = vld [vmem:[%s7137_s3 + $0x48] sm:$0xff]   ;;  %v4443_v11 = vld [vmem:[%s7137_s3 + $0x50] sm:$0xff]  }
 0xfea   :  { %v2380_v7 = vpop.permute.xlu0 %2379  ;;  %2452 = vmatpush1.bf16.msra.mxu0 %v2438_v28  ;;  %v4439_v28 = vld [vmem:[%s7137_s3 + $0x40] sm:$0xff]   ;;  %v4442_v52 = vld [vmem:[%s7137_s3 + $0x8] sm:$0xff]  }
 0xfeb   :  { %v2440_v31 = vpack.c.bf16 %v2375_v16, %v6085_v26  ;;  %v2382_v41 = vpop.permute.xlu1 %2381  ;;  %v2441_v51 = vpack.c.bf16 %v2376_v3, %v2316_v33  ;;  %v4444_v16 = vld [vmem:[%s7137_s3 + $0x10] sm:$0xff]   ;;  %v4445_v3 = vld [vmem:[%s7137_s3 + $0x58] sm:$0xff]  }
 0xfec   :  { %v2383_v61 = vsel %vm481_vm5, %v2380_v7, %v2382_v41  ;;  %v2384_v29 = vsel %vm481_vm5, %v2382_v41, %v2380_v7  ;;  %v4446_v7 = vld [vmem:[%s7137_s3 + $0x18] sm:$0xff]   ;;  %v4448_v41 = vld [vmem:[%s7137_s3 + $0x20] sm:$0xff]  }
 0xfed   :  { %2453 = vmatprep.subr.bf16.mxu0 %v2441_v51  ;;  %v2387_v26 = vmul.f32 %v5938_v49, %v2383_v61  ;;  %v2388_v33 = vmul.f32 %v5943_v50, %v2384_v29  ;;  %v4449_v51 = vld [vmem:[%s7137_s3 + $0x68] sm:$0xff]   ;;  %v4451_v29 = vld [vmem:[%s7137_s3 + $0x70] sm:$0xff]  }
 0xfee   :  { %v2392_v53 = vpop.permute.xlu0 %2391  ;;  %2454 = vmatpush1.bf16.msra.mxu0 %v2440_v31  ;;  %v4447_v31 = vld [vmem:[%s7137_s3 + $0x60] sm:$0xff]   ;;  %v4450_v61 = vld [vmem:[%s7137_s3 + $0x28] sm:$0xff]  }
 0xfef   :  { %v2394_v15 = vpop.permute.xlu1 %2393 }
 0xff0   :  { %v2395_v40 = vsel %vm495_vm6, %v2392_v53, %v2394_v15  ;;  %v2396_v47 = vsel %vm495_vm6, %v2394_v15, %v2392_v53  ;;  %v4452_v53 = vld [vmem:[%s7137_s3 + $0x30] sm:$0xff]   ;;  %v4453_v15 = vld [vmem:[%s7137_s3 + $0x78] sm:$0xff]  }
 0xff1   :  { %v2399_v57 = vmul.f32 %v5952_v23, %v2395_v40  ;;  %v2400_v1 = vmul.f32 %v5957_v18, %v2396_v47  ;;  %v4454_v40 = vld [vmem:[%s7137_s3 + $0x38] sm:$0xff]   ;;  %v2667_v47 = vpack.c.bf16 %v5624_v10, %v5624_v10 }
 0xff2   :  { %v2404_v58 = vpop.permute.xlu0 %2403 }
 0xff3   :  { %v2442_v2 = vpack.c.bf16 %v2399_v57, %v2387_v26  ;;  %v2406_v17 = vpop.permute.xlu1 %2405  ;;  %v2443_v9 = vpack.c.bf16 %v2400_v1, %v2388_v33 }
 0xff4   :  { %v2407_v0 = vsel %vm509_vm7, %v2404_v58, %v2406_v17  ;;  %v2408_v48 = vsel %vm509_vm7, %v2406_v17, %v2404_v58 }
 0xff5   :  { %v2411_v14 = vmul.f32 %v5970_v59, %v2407_v0  ;;  %v2412_v21 = vmul.f32 %v5975_v55, %v2408_v48  ;;  %2455 = vmatprep.subr.bf16.mxu0 %v2443_v9 }
 0xff6   :  { %2456 = vmatpush1.bf16.msra.mxu0 %v2442_v2 }
 0xff7   :  { %v2444_v25 = vpack.c.bf16 %v4514_v63, %v2411_v14  ;;  %v2445_v34 = vpack.c.bf16 %v4514_v63, %v2412_v21 }
 0xff9   :  { %2457 = vmatprep.subr.bf16.mxu0 %v2445_v34 }
 0xffa   :  { %2458 = vmatpush1.bf16.msra.mxu0 %v2444_v25 }
 0xffb   :  { %4306 = vmatprep.subr.bf16.mxu0 %v4439_v28 }
 0xffd   :  { %4128 = vmatmul.mubr.msk.bf16.vlgmr.msra.gmra.mrb[28].mxu0 %vm550_vm8, %v4127_v35 }
 0xffe   :  { %4307 = vmatpush3.bf16.msra.mxu0 %v4440_v46  ;;  %2701 = vmatprep.mubr.bf16.mxu0 %v2668_v6 }
 0xfff   :  { %4308 = vmatprep.subr.bf16.mxu0 %v4441_v45 }
0x1002   :  { %4309 = vmatpush3.bf16.msra.mxu0 %v4442_v52 }
0x1003   :  { %4310 = vmatprep.subr.bf16.mxu0 %v4443_v11 }
0x1006   :  { %4311 = vmatpush3.bf16.msra.mxu0 %v4444_v16 }
0x1007   :  { %4312 = vmatprep.subr.bf16.mxu0 %v4445_v3 }
0x100a   :  { %4313 = vmatpush3.bf16.msra.mxu0 %v4446_v7 }
0x100b   :  { %4314 = vmatprep.subr.bf16.mxu0 %v4447_v31 }
0x100e   :  { %4315 = vmatpush3.bf16.msra.mxu0 %v4448_v41 }
0x100f   :  { %4316 = vmatprep.subr.bf16.mxu0 %v4449_v51 }
0x1012   :  { %4317 = vmatpush3.bf16.msra.mxu0 %v4450_v61 }
0x1013   :  { %4318 = vmatprep.subr.bf16.mxu0 %v4451_v29 }
0x1016   :  { %4319 = vmatpush3.bf16.msra.mxu0 %v4452_v53 }
0x1017   :  { %4320 = vmatprep.subr.bf16.mxu0 %v4453_v15 }
0x101a   :  { %4321 = vmatpush3.bf16.msra.mxu0 %v4454_v40 }
0x101d   :  { %2702 = vmatmul.mubr.bf16.vlgmr.msra.gmra.mrb[32].mxu0 %v2667_v47 }
0x101e   :  { %2934 = vmatprep.mubr.bf16.mxu0 %v4511_v20 }
0x10d0   :  { %v2483_v26 = vpop.f32.mrb[28].mxu0 }
0x10d1   :  { %v6220_v33 = vadd.f32 %v2483_v26, %v5991_v54  ;;  %v2485_v57 = vpop.f32.mrb[29].mxu0 }
0x10d2   :  { %v6223_v1 = vadd.f32 %v2485_v57, %v5994_v27  ;;  %v2487_v58 = vpop.f32.mrb[30].mxu0 }
0x10d3   :  { %2492 = vrot.lane.b32.xlu0 %v6220_v33, %s4506_s10  ;;  %v2488_v2 = vpop.f32.mrb[31].mxu0 }
0x10d4   :  { %2494 = vrot.lane.b32.xlu1 %v6223_v1, %s4506_s10 }
0x10d7   :  { %2504 = vrot.lane.b32.xlu0 %v6220_v33, %s4505_s9 }
0x10d8   :  { %2506 = vrot.lane.b32.xlu1 %v6223_v1, %s4505_s9 }
0x10db   :  { %2516 = vrot.lane.b32.xlu0 %v6220_v33, %s4507_s21 }
0x10dc   :  { %2518 = vrot.lane.b32.xlu1 %v6223_v1, %s4507_s21 }
0x10df   :  { %2528 = vrot.lane.b32.xlu0 %v6220_v33, %s4508_s26 }
0x10e0   :  { %2530 = vrot.lane.b32.xlu1 %v6223_v1, %s4508_s26 }
0x10e3   :  { %2542 = vrot.lane.b32.xlu0 %v6220_v33, %s4509_s8 }
0x10e4   :  { %2544 = vrot.lane.b32.xlu1 %v6223_v1, %s4509_s8 }
0x10e7   :  { %2554 = vrot.lane.b32.xlu0 %v6220_v33, %s4510_s17 }
0x10e8   :  { %2556 = vrot.lane.b32.xlu1 %v6223_v1, %s4510_s17 }
0x10eb   :  { %2566 = vrot.lane.b32.xlu0 %v6220_v33, %s4512_s23 }
0x10ec   :  { %2568 = vrot.lane.b32.xlu1 %v6223_v1, %s4512_s23 }
0x10ef   :  { %2578 = vrot.lane.b32.xlu0 %v6220_v33, %s4513_s15 }
0x10f0   :  { %2580 = vrot.lane.b32.xlu1 %v6223_v1, %s4513_s15  ;;  %v4322_v10 = vpop.f32.mrb[32].mxu0 }
0x10f1   :  { %v4323_v54 = vpop.f32.mrb[33].mxu0 }
0x10f2   :  { %v6257_v27 = vadd.f32 %v4323_v54, %v4322_v10  ;;  %v4325_v17 = vpop.f32.mrb[34].mxu0 }
0x10f3   :  { %v4326_v9 = vpop.f32.mrb[35].mxu0 }
0x1145   :  { %v2493_v0 = vpop.permute.xlu0 %2492 }
0x1146   :  { %v2495_v48 = vpop.permute.xlu1 %2494 }
0x1147   :  { %v2496_v14 = vsel %vm410_vm1, %v2493_v0, %v2495_v48  ;;  %v2497_v21 = vsel %vm410_vm1, %v2495_v48, %v2493_v0 }
0x1148   :  { %v2500_v6 = vmul.f32 %v2497_v21, %v5856_v36  ;;  %v2501_v46 = vmul.f32 %v2496_v14, %v5861_v37 }
0x1149   :  { %v2505_v25 = vpop.permute.xlu0 %2504 }
0x114a   :  { %v2507_v34 = vpop.permute.xlu1 %2506 }
0x114b   :  { %v2508_v35 = vsel %vm423_vm0, %v2505_v25, %v2507_v34  ;;  %v2509_v28 = vsel %vm423_vm0, %v2507_v34, %v2505_v25 }
0x114c   :  { %v2512_v45 = vmul.f32 %v5870_v8, %v2509_v28  ;;  %v2513_v52 = vmul.f32 %v5875_v60, %v2508_v35 }
0x114d   :  { %v2517_v11 = vpop.permute.xlu0 %2516 }
0x114e   :  { %v2611_v16 = vpack.c.bf16 %v2512_v45, %v2500_v6  ;;  %v2519_v3 = vpop.permute.xlu1 %2518  ;;  %v2612_v7 = vpack.c.bf16 %v2513_v52, %v2501_v46 }
0x114f   :  { %v2520_v31 = vsel %vm437_vm2, %v2517_v11, %v2519_v3  ;;  %v2521_v41 = vsel %vm437_vm2, %v2519_v3, %v2517_v11 }
0x1150   :  { %2624 = vmatprep.subr.bf16.mxu1 %v2612_v7  ;;  %v2524_v15 = vmul.f32 %v5888_v30, %v2521_v41  ;;  %v2525_v40 = vmul.f32 %v5893_v32, %v2520_v31 }
0x1151   :  { %v2529_v51 = vpop.permute.xlu0 %2528  ;;  %2625 = vmatpush1.bf16.msra.mxu1 %v2611_v16 }
0x1152   :  { %v2531_v61 = vpop.permute.xlu1 %2530 }
0x1153   :  { %v2532_v29 = vsel %vm451_vm3, %v2529_v51, %v2531_v61  ;;  %v2533_v53 = vsel %vm451_vm3, %v2531_v61, %v2529_v51 }
0x1154   :  { %v2536_v47 = vmul.f32 %v5902_v22, %v2533_v53  ;;  %v2537_v26 = vmul.f32 %v5907_v4, %v2532_v29 }
0x1155   :  { %v2543_v57 = vpop.permute.xlu0 %2542 }
0x1156   :  { %v2613_v58 = vpack.c.bf16 %v2536_v47, %v2524_v15  ;;  %v2545_v2 = vpop.permute.xlu1 %2544  ;;  %v2614_v10 = vpack.c.bf16 %v2537_v26, %v2525_v40  ;;  %v4143_v40 = vld [vmem:[%s7142_s5 + $0x14] sm:$0xf]  ;;  %v4455_v47 = vld [vmem:[%s7139_s4 + $0x4] ss:$8 sps:$4 sm:$0xff]   ;;  %v4456_v26 = vld [vmem:[%s7139_s4] ss:$8 sps:$4 sm:$0xff]  }
0x1157   :  { %v2546_v54 = vsel %vm467_vm4, %v2543_v57, %v2545_v2  ;;  %v2547_v17 = vsel %vm467_vm4, %v2545_v2, %v2543_v57  ;;  %v4457_v57 = vld [vmem:[%s7139_s4 + $0x14] ss:$8 sps:$4 sm:$0xff]   ;;  %v4459_v2 = vld [vmem:[%s7139_s4 + $0x24] ss:$8 sps:$4 sm:$0xff]  }
0x1158   :  { %v2550_v9 = vmul.f32 %v5920_v38, %v2546_v54  ;;  %v2551_v0 = vmul.f32 %v5925_v39, %v2547_v17  ;;  %2626 = vmatprep.subr.bf16.mxu1 %v2614_v10  ;;  %v4460_v10 = vld [vmem:[%s7139_s4 + $0x20] ss:$8 sps:$4 sm:$0xff]   ;;  %v4461_v54 = vld [vmem:[%s7139_s4 + $0x34] ss:$8 sps:$4 sm:$0xff]   ;;  %v4462_v17 = vld [vmem:[%s7139_s4 + $0x30] ss:$8 sps:$4 sm:$0xff]  }
0x1159   :  { %v2555_v48 = vpop.permute.xlu0 %2554  ;;  %2627 = vmatpush1.bf16.msra.mxu1 %v2613_v58  ;;  %v4458_v58 = vld [vmem:[%s7139_s4 + $0x10] ss:$8 sps:$4 sm:$0xff]  }
0x115a   :  { %v2615_v14 = vpack.c.bf16 %v2550_v9, %v6220_v33  ;;  %v2557_v21 = vpop.permute.xlu1 %2556  ;;  %v2616_v25 = vpack.c.bf16 %v2551_v0, %v6223_v1  ;;  %v4463_v9 = vld [vmem:[%s7139_s4 + $0x44] ss:$8 sps:$4 sm:$0xff]   ;;  %v4464_v0 = vld [vmem:[%s7139_s4 + $0x40] ss:$8 sps:$4 sm:$0xff]  }
0x115b   :  { %v2558_v34 = vsel %vm481_vm5, %v2555_v48, %v2557_v21  ;;  %v2559_v35 = vsel %vm481_vm5, %v2557_v21, %v2555_v48  ;;  %v4465_v48 = vld [vmem:[%s7140_s0] sm:$0xff]  ;;  %v4466_v21 = vld [vmem:[%s7139_s4 + $0x54] ss:$8 sps:$4 sm:$0xff]  }
0x115c   :  { %2628 = vmatprep.subr.bf16.mxu1 %v2616_v25  ;;  %v2562_v33 = vmul.f32 %v5938_v49, %v2558_v34  ;;  %v2563_v1 = vmul.f32 %v5943_v50, %v2559_v35  ;;  %v4467_v25 = vld [vmem:[%s7139_s4 + $0x50] ss:$8 sps:$4 sm:$0xff]   ;;  %v4468_v35 = vld [vmem:[%s7139_s4 + $0x64] ss:$8 sps:$4 sm:$0xff]  }
0x115d   :  { %v2567_v28 = vpop.permute.xlu0 %2566  ;;  %2629 = vmatpush1.bf16.msra.mxu1 %v2615_v14  ;;  %v2709_v14 = vsub.f32 %v6257_v27, %v4465_v48  ;;  %v4469_v27 = vld [vmem:[%s7139_s4 + $0x60] ss:$8 sps:$4 sm:$0xff]  }
0x115e   :  { %v2569_v6 = vpop.permute.xlu1 %2568 }
0x115f   :  { %v2570_v46 = vsel %vm495_vm6, %v2567_v28, %v2569_v6  ;;  %v2571_v45 = vsel %vm495_vm6, %v2569_v6, %v2567_v28  ;;  %v2710_v34 = vadd.f32 %v2709_v14, %v5596_v24  ;;  %v4470_v6 = vld [vmem:[%s7139_s4 + $0x74] ss:$8 sps:$4 sm:$0xff]   ;;  %v4471_v24 = vld [vmem:[%s7139_s4 + $0x70] ss:$8 sps:$4 sm:$0xff]  }
0x1160   :  { %v2574_v52 = vmul.f32 %v5952_v23, %v2570_v46  ;;  %v2575_v11 = vmul.f32 %v5957_v18, %v2571_v45 }
0x1161   :  { %v2579_v16 = vpop.permute.xlu0 %2578  ;;  %v6363_v28 = vmul.f32 0.90909094, %v2710_v34 }
0x1162   :  { %v2617_v3 = vpack.c.bf16 %v2574_v52, %v2562_v33  ;;  %v2581_v7 = vpop.permute.xlu1 %2580  ;;  %v2618_v31 = vpack.c.bf16 %v2575_v11, %v2563_v1 }
0x1163   :  { %v2582_v41 = vsel %vm509_vm7, %v2579_v16, %v2581_v7  ;;  %v2583_v51 = vsel %vm509_vm7, %v2581_v7, %v2579_v16  ;;  %v2712_v46 = vpack.c.bf16 %v6363_v28, %v6363_v28 }
0x1164   :  { %v2586_v61 = vmul.f32 %v5970_v59, %v2582_v41  ;;  %v2587_v29 = vmul.f32 %v5975_v55, %v2583_v51  ;;  %2630 = vmatprep.subr.bf16.mxu1 %v2618_v31 }
0x1165   :  { %2631 = vmatpush1.bf16.msra.mxu1 %v2617_v3 }
0x1166   :  { %v2619_v53 = vpack.c.bf16 %v4514_v63, %v2586_v61  ;;  %v2620_v15 = vpack.c.bf16 %v4514_v63, %v2587_v29 }
0x1168   :  { %2632 = vmatprep.subr.bf16.mxu1 %v2620_v15 }
0x1169   :  { %2633 = vmatpush1.bf16.msra.mxu1 %v2619_v53 }
0x116a   :  { %2713 = vmatprep.subr.bf16.mxu1 %v4455_v47 }
0x116c   :  { %4144 = vmatmul.mubr.msk.bf16.vlgmr.msra.gmra.mrb[36].mxu1 %vm550_vm8, %v4143_v40 }
0x116d   :  { %2714 = vmatpush1.bf16.msra.mxu1 %v4456_v26  ;;  %2745 = vmatprep.mubr.bf16.mxu1 %v4511_v20 }
0x116e   :  { %2715 = vmatprep.subr.bf16.mxu1 %v4457_v57 }
0x1171   :  { %2716 = vmatpush1.bf16.msra.mxu1 %v4458_v58 }
0x1172   :  { %2717 = vmatprep.subr.bf16.mxu1 %v4459_v2 }
0x1175   :  { %2718 = vmatpush1.bf16.msra.mxu1 %v4460_v10 }
0x1176   :  { %2719 = vmatprep.subr.bf16.mxu1 %v4461_v54 }
0x1179   :  { %2720 = vmatpush1.bf16.msra.mxu1 %v4462_v17 }
0x117a   :  { %2721 = vmatprep.subr.bf16.mxu1 %v4463_v9 }
0x117d   :  { %2722 = vmatpush1.bf16.msra.mxu1 %v4464_v0 }
0x117e   :  { %2723 = vmatprep.subr.bf16.mxu1 %v4466_v21 }
0x1181   :  { %2724 = vmatpush1.bf16.msra.mxu1 %v4467_v25 }
0x1182   :  { %2725 = vmatprep.subr.bf16.mxu1 %v4468_v35 }
0x1185   :  { %2726 = vmatpush1.bf16.msra.mxu1 %v4469_v27 }
0x1186   :  { %2727 = vmatprep.subr.bf16.mxu1 %v4470_v6 }
0x1189   :  { %2728 = vmatpush1.bf16.msra.mxu1 %v4471_v24 }
0x118c   :  { %2746 = vmatmul.mubr.bf16.vlgmr.msra.gmra.mrb[40].mxu1 %v2712_v46 }
0x118d   :  { %3109 = vmatprep.mubr.bf16.mxu1 %v4511_v20 }
0x123f   :  { %v2658_v45 = vpop.f32.mrb[36].mxu1 }
0x1240   :  { %v2660_v33 = vpop.f32.mrb[37].mxu1  ;;  %v2665_v11 = vsub.f32 %v5630_v12, %v2658_v45 }
0x1241   :  { %v2662_v1 = vpop.f32.mrb[38].mxu1  ;;  %v2666_v16 = vsub.f32 %v5633_v13, %v2660_v33 }
0x1242   :  { %v2663_v52 = vpop.f32.mrb[39].mxu1 }
0x125f   :  { %v2747_v3 = vpop.f32.mrb[40].mxu1 }
0x1260   :  { %v2754_v7 = vadd.f32 %v2747_v3, %v2665_v11  ;;  %v2749_v31 = vpop.f32.mrb[41].mxu1 }
0x1261   :  { %v2755_v41 = vadd.f32 %v2749_v31, %v2666_v16  ;;  %v2751_v51 = vpop.f32.mrb[42].mxu1 }
0x1262   :  { %v2756_v61 = vsub.f32 %v2754_v7, %v4905_v42  ;;  %v2752_v29 = vpop.f32.mrb[43].mxu1 }
0x1263   :  { %v2757_v53 = vsub.f32 %v2755_v41, %v4907_v43 }
0x1264   :  { %v2758_v15 = vmul.f32 0.05, %v2756_v61 }
0x1265   :  { %v2759_v40 = vmul.f32 0.05, %v2757_v53 }
0x1266   :  { %v2760_v47 = vsub.f32 %v5616_v5, %v2758_v15 }
0x1267   :  { %v2761_v26 = vsub.f32 %v5619_v62, %v2759_v40 }
0x1268   :  { %v6381_v12 = vmul.f32 %v5610_v56, %v2760_v47 }
0x1269   :  { %v6384_v13 = vmul.f32 %v5613_v19, %v2761_v26 }
0x126a   :  { %v2764_v57 = vmul.f32 2.0, %v6381_v12 }
0x126b   :  { %v2765_v58 = vmul.f32 2.0, %v6384_v13 }
0x126c   :  { %v6389_v2 = vsub.f32 %v2764_v57, %v5616_v5 }
0x126d   :  { %v6392_v10 = vsub.f32 %v2765_v58, %v5619_v62 }
0x126e   :  { %v6395_v54 = vadd.f32 %v6389_v2, %v2665_v11 }
0x126f   :  { %v6398_v17 = vadd.f32 %v6392_v10, %v2666_v16 }
0x1270   :  { %2770 = vrot.lane.b32.xlu0 %v6395_v54, %s4506_s10 }
0x1271   :  { %2772 = vrot.lane.b32.xlu1 %v6398_v17, %s4506_s10 }
0x1274   :  { %2782 = vrot.lane.b32.xlu0 %v6395_v54, %s4505_s9 }
0x1275   :  { %2784 = vrot.lane.b32.xlu1 %v6398_v17, %s4505_s9 }
0x1278   :  { %2794 = vrot.lane.b32.xlu0 %v6395_v54, %s4507_s21 }
0x1279   :  { %2796 = vrot.lane.b32.xlu1 %v6398_v17, %s4507_s21 }
0x127c   :  { %2806 = vrot.lane.b32.xlu0 %v6395_v54, %s4508_s26 }
0x127d   :  { %2808 = vrot.lane.b32.xlu1 %v6398_v17, %s4508_s26 }
0x1280   :  { %2820 = vrot.lane.b32.xlu0 %v6395_v54, %s4509_s8 }
0x1281   :  { %2822 = vrot.lane.b32.xlu1 %v6398_v17, %s4509_s8 }
0x1284   :  { %2832 = vrot.lane.b32.xlu0 %v6395_v54, %s4510_s17 }
0x1285   :  { %2834 = vrot.lane.b32.xlu1 %v6398_v17, %s4510_s17 }
0x1288   :  { %2844 = vrot.lane.b32.xlu0 %v6395_v54, %s4512_s23 }
0x1289   :  { %2846 = vrot.lane.b32.xlu1 %v6398_v17, %s4512_s23 }
0x128c   :  { %2856 = vrot.lane.b32.xlu0 %v6395_v54, %s4513_s15 }
0x128d   :  { %2858 = vrot.lane.b32.xlu1 %v6398_v17, %s4513_s15 }
0x12e2   :  { %v2771_v5 = vpop.permute.xlu0 %2770 }
0x12e3   :  { %v2773_v62 = vpop.permute.xlu1 %2772 }
0x12e4   :  { %v2774_v9 = vsel %vm410_vm1, %v2771_v5, %v2773_v62  ;;  %v2775_v0 = vsel %vm410_vm1, %v2773_v62, %v2771_v5 }
0x12e5   :  { %v2778_v34 = vmul.f32 %v2775_v0, %v5856_v36  ;;  %v2779_v35 = vmul.f32 %v2774_v9, %v5861_v37 }
0x12e6   :  { %v2783_v48 = vpop.permute.xlu0 %2782 }
0x12e7   :  { %v2785_v14 = vpop.permute.xlu1 %2784 }
0x12e8   :  { %v2786_v21 = vsel %vm423_vm0, %v2783_v48, %v2785_v14  ;;  %v2787_v25 = vsel %vm423_vm0, %v2785_v14, %v2783_v48 }
0x12e9   :  { %v2790_v27 = vmul.f32 %v5870_v8, %v2787_v25  ;;  %v2791_v6 = vmul.f32 %v5875_v60, %v2786_v21 }
0x12ea   :  { %v2795_v24 = vpop.permute.xlu0 %2794 }
0x12eb   :  { %v2889_v46 = vpack.c.bf16 %v2790_v27, %v2778_v34  ;;  %v2797_v45 = vpop.permute.xlu1 %2796  ;;  %v2890_v33 = vpack.c.bf16 %v2791_v6, %v2779_v35 }
0x12ec   :  { %v2798_v1 = vsel %vm437_vm2, %v2795_v24, %v2797_v45  ;;  %v2799_v52 = vsel %vm437_vm2, %v2797_v45, %v2795_v24 }
0x12ed   :  { %2902 = vmatprep.subr.bf16.mxu0 %v2890_v33  ;;  %v2802_v60 = vmul.f32 %v5888_v30, %v2799_v52  ;;  %v2803_v16 = vmul.f32 %v5893_v32, %v2798_v1  ;;  %v6528_v52 = vld [vmem:[%s7141_s6] sm:$0xff] }
0x12ee   :  { %v2807_v11 = vpop.permute.xlu0 %2806  ;;  %2903 = vmatpush1.bf16.msra.mxu0 %v2889_v46 }
0x12ef   :  { %v2809_v36 = vpop.permute.xlu1 %2808 }
0x12f0   :  { %v2810_v37 = vsel %vm451_vm3, %v2807_v11, %v2809_v36  ;;  %v2811_v8 = vsel %vm451_vm3, %v2809_v36, %v2807_v11  ;;  %v6533_v11 = vld [vmem:[%s7141_s6 + $0x8] sm:$0xff] }
0x12f1   :  { %v2814_v3 = vmul.f32 %v5902_v22, %v2811_v8  ;;  %v2815_v7 = vmul.f32 %v5907_v4, %v2810_v37 }
0x12f2   :  { %v2821_v31 = vpop.permute.xlu0 %2820 }
0x12f3   :  { %v2891_v41 = vpack.c.bf16 %v2814_v3, %v2802_v60  ;;  %v2823_v51 = vpop.permute.xlu1 %2822  ;;  %v2892_v61 = vpack.c.bf16 %v2815_v7, %v2803_v16  ;;  %v6542_v60 = vld [vmem:[%s7141_s6 + $0x10] sm:$0xff]  ;;  %v6547_v16 = vld [vmem:[%s7141_s6 + $0x18] sm:$0xff] }
0x12f4   :  { %v2824_v29 = vsel %vm467_vm4, %v2821_v31, %v2823_v51  ;;  %v2825_v53 = vsel %vm467_vm4, %v2823_v51, %v2821_v31 }
0x12f5   :  { %v2828_v15 = vmul.f32 %v5920_v38, %v2824_v29  ;;  %v2829_v30 = vmul.f32 %v5925_v39, %v2825_v53  ;;  %2904 = vmatprep.subr.bf16.mxu0 %v2892_v61 }
0x12f6   :  { %v2833_v32 = vpop.permute.xlu0 %2832  ;;  %2905 = vmatpush1.bf16.msra.mxu0 %v2891_v41 }
0x12f7   :  { %v2893_v22 = vpack.c.bf16 %v2828_v15, %v6395_v54  ;;  %v2835_v4 = vpop.permute.xlu1 %2834  ;;  %v2894_v40 = vpack.c.bf16 %v2829_v30, %v6398_v17 }
0x12f8   :  { %v2836_v47 = vsel %vm481_vm5, %v2833_v32, %v2835_v4  ;;  %v2837_v26 = vsel %vm481_vm5, %v2835_v4, %v2833_v32  ;;  %v6565_v4 = vld [vmem:[%s7141_s6 + $0x28] sm:$0xff] }
0x12f9   :  { %2906 = vmatprep.subr.bf16.mxu0 %v2894_v40  ;;  %v2840_v5 = vmul.f32 %v5938_v49, %v2836_v47  ;;  %v2841_v62 = vmul.f32 %v5943_v50, %v2837_v26 }
0x12fa   :  { %v2845_v57 = vpop.permute.xlu0 %2844  ;;  %2907 = vmatpush1.bf16.msra.mxu0 %v2893_v22  ;;  %v6560_v22 = vld [vmem:[%s7141_s6 + $0x20] sm:$0xff] }
0x12fb   :  { %v2847_v38 = vpop.permute.xlu1 %2846 }
0x12fc   :  { %v2848_v39 = vsel %vm495_vm6, %v2845_v57, %v2847_v38  ;;  %v2849_v58 = vsel %vm495_vm6, %v2847_v38, %v2845_v57  ;;  %v6574_v57 = vld [vmem:[%s7141_s6 + $0x30] sm:$0xff]  ;;  %v6579_v38 = vld [vmem:[%s7141_s6 + $0x38] sm:$0xff] }
0x12fd   :  { %v2852_v9 = vmul.f32 %v5952_v23, %v2848_v39  ;;  %v2853_v0 = vmul.f32 %v5957_v18, %v2849_v58  ;;  %v2868_v18 = vld [vmem:[%s7142_s5] sm:$0xf] }
0x12fe   :  { %v2857_v48 = vpop.permute.xlu0 %2856 }
0x12ff   :  { %v2895_v14 = vpack.c.bf16 %v2852_v9, %v2840_v5  ;;  %v2859_v21 = vpop.permute.xlu1 %2858  ;;  %v2896_v25 = vpack.c.bf16 %v2853_v0, %v2841_v62 }
0x1300   :  { %v2860_v34 = vsel %vm509_vm7, %v2857_v48, %v2859_v21  ;;  %v2861_v35 = vsel %vm509_vm7, %v2859_v21, %v2857_v48  ;;  %v6592_v21 = vld [vmem:[%s7141_s6 + $0x40] sm:$0xff] }
0x1301   :  { %v2864_v27 = vmul.f32 %v5970_v59, %v2860_v34  ;;  %v2865_v49 = vmul.f32 %v5975_v55, %v2861_v35  ;;  %2908 = vmatprep.subr.bf16.mxu0 %v2896_v25  ;;  %v6597_v25 = vld [vmem:[%s7141_s6 + $0x48] sm:$0xff] }
0x1302   :  { %2909 = vmatpush1.bf16.msra.mxu0 %v2895_v14 }
0x1303   :  { %v2897_v50 = vpack.c.bf16 %v4514_v63, %v2864_v27  ;;  %v2898_v23 = vpack.c.bf16 %v4514_v63, %v2865_v49 }
0x1305   :  { %2910 = vmatprep.subr.bf16.mxu0 %v2898_v23 }
0x1306   :  { %2911 = vmatpush1.bf16.msra.mxu0 %v2897_v50 }
0x1309   :  { %4159 = vmatmul.mubr.msk.bf16.vlgmr.msra.gmra.mrb[36].mxu0 %vm550_vm8, %v2868_v18 }
0x130a   :  { %3284 = vmatprep.mubr.bf16.mxu0 %v4511_v20 }
0x13dc   :  { %v2936_v6 = vpop.f32.mrb[36].mxu0 }
0x13dd   :  { %v6489_v59 = vmax.f32 %v2936_v6, 0.0  ;;  %v2938_v55 = vpop.f32.mrb[37].mxu0 }
0x13de   :  { %v6491_v24 = vmax.f32 %v2938_v55, 0.0  ;;  %v2940_v46 = vpop.f32.mrb[38].mxu0 }
0x13df   :  { %2945 = vrot.lane.b32.xlu0 %v6489_v59, %s4506_s10  ;;  %v2941_v45 = vpop.f32.mrb[39].mxu0 }
0x13e0   :  { %2947 = vrot.lane.b32.xlu1 %v6491_v24, %s4506_s10 }
0x13e3   :  { %2957 = vrot.lane.b32.xlu0 %v6489_v59, %s4505_s9 }
0x13e4   :  { %2959 = vrot.lane.b32.xlu1 %v6491_v24, %s4505_s9 }
0x13e7   :  { %2969 = vrot.lane.b32.xlu0 %v6489_v59, %s4507_s21 }
0x13e8   :  { %2971 = vrot.lane.b32.xlu1 %v6491_v24, %s4507_s21 }
0x13eb   :  { %2981 = vrot.lane.b32.xlu0 %v6489_v59, %s4508_s26 }
0x13ec   :  { %2983 = vrot.lane.b32.xlu1 %v6491_v24, %s4508_s26 }
0x13ef   :  { %2995 = vrot.lane.b32.xlu0 %v6489_v59, %s4509_s8 }
0x13f0   :  { %2997 = vrot.lane.b32.xlu1 %v6491_v24, %s4509_s8 }
0x13f3   :  { %3007 = vrot.lane.b32.xlu0 %v6489_v59, %s4510_s17 }
0x13f4   :  { %3009 = vrot.lane.b32.xlu1 %v6491_v24, %s4510_s17 }
0x13f7   :  { %3019 = vrot.lane.b32.xlu0 %v6489_v59, %s4512_s23 }
0x13f8   :  { %3021 = vrot.lane.b32.xlu1 %v6491_v24, %s4512_s23 }
0x13fb   :  { %3031 = vrot.lane.b32.xlu0 %v6489_v59, %s4513_s15 }
0x13fc   :  { %3033 = vrot.lane.b32.xlu1 %v6491_v24, %s4513_s15 }
0x1451   :  { %v2946_v33 = vpop.permute.xlu0 %2945 }
0x1452   :  { %v2948_v1 = vpop.permute.xlu1 %2947 }
0x1453   :  { %v2949_v36 = vsel %vm410_vm1, %v2946_v33, %v2948_v1  ;;  %v2950_v37 = vsel %vm410_vm1, %v2948_v1, %v2946_v33  ;;  %v6610_v33 = vld [vmem:[%s7141_s6 + $0x50] sm:$0xff]  ;;  %v6615_v1 = vld [vmem:[%s7141_s6 + $0x58] sm:$0xff] }
0x1454   :  { %v2953_v41 = vmul.f32 %v6528_v52, %v2950_v37  ;;  %v2954_v51 = vmul.f32 %v6533_v11, %v2949_v36 }
0x1455   :  { %v2958_v8 = vpop.permute.xlu0 %2957 }
0x1456   :  { %v2960_v3 = vpop.permute.xlu1 %2959 }
0x1457   :  { %v2961_v7 = vsel %vm423_vm0, %v2958_v8, %v2960_v3  ;;  %v2962_v31 = vsel %vm423_vm0, %v2960_v3, %v2958_v8  ;;  %v6624_v3 = vld [vmem:[%s7141_s6 + $0x60] sm:$0xff] }
0x1458   :  { %v2965_v61 = vmul.f32 %v6542_v60, %v2962_v31  ;;  %v2966_v29 = vmul.f32 %v6547_v16, %v2961_v7  ;;  %v6629_v7 = vld [vmem:[%s7141_s6 + $0x68] sm:$0xff] }
0x1459   :  { %v2970_v53 = vpop.permute.xlu0 %2969 }
0x145a   :  { %v3064_v15 = vpack.c.bf16 %v2965_v61, %v2953_v41  ;;  %v2972_v30 = vpop.permute.xlu1 %2971  ;;  %v3065_v32 = vpack.c.bf16 %v2966_v29, %v2954_v51 }
0x145b   :  { %v2973_v40 = vsel %vm437_vm2, %v2970_v53, %v2972_v30  ;;  %v2974_v47 = vsel %vm437_vm2, %v2972_v30, %v2970_v53 }
0x145c   :  { %3077 = vmatprep.subr.bf16.mxu1 %v3065_v32  ;;  %v2977_v62 = vmul.f32 %v6560_v22, %v2974_v47  ;;  %v2978_v9 = vmul.f32 %v6565_v4, %v2973_v40  ;;  %v6642_v32 = vld [vmem:[%s7141_s6 + $0x70] sm:$0xff]  ;;  %v6647_v40 = vld [vmem:[%s7141_s6 + $0x78] sm:$0xff] }
0x145d   :  { %v2982_v26 = vpop.permute.xlu0 %2981  ;;  %3078 = vmatpush1.bf16.msra.mxu1 %v3064_v15 }
0x145e   :  { %v2984_v39 = vpop.permute.xlu1 %2983 }
0x145f   :  { %v2985_v58 = vsel %vm451_vm3, %v2982_v26, %v2984_v39  ;;  %v2986_v5 = vsel %vm451_vm3, %v2984_v39, %v2982_v26 }
0x1460   :  { %v2989_v0 = vmul.f32 %v6574_v57, %v2986_v5  ;;  %v2990_v48 = vmul.f32 %v6579_v38, %v2985_v58 }
0x1461   :  { %v2996_v14 = vpop.permute.xlu0 %2995 }
0x1462   :  { %v3066_v34 = vpack.c.bf16 %v2989_v0, %v2977_v62  ;;  %v2998_v35 = vpop.permute.xlu1 %2997  ;;  %v3067_v27 = vpack.c.bf16 %v2990_v48, %v2978_v9 }
0x1463   :  { %v2999_v49 = vsel %vm467_vm4, %v2996_v14, %v2998_v35  ;;  %v3000_v50 = vsel %vm467_vm4, %v2998_v35, %v2996_v14  ;;  %v4174_v14 = vld [vmem:[%s7142_s5 + $0x4] sm:$0xf] }
0x1464   :  { %v3003_v23 = vmul.f32 %v6592_v21, %v2999_v49  ;;  %v3004_v18 = vmul.f32 %v6597_v25, %v3000_v50  ;;  %3079 = vmatprep.subr.bf16.mxu1 %v3067_v27 }
0x1465   :  { %v3008_v6 = vpop.permute.xlu0 %3007  ;;  %3080 = vmatpush1.bf16.msra.mxu1 %v3066_v34 }
0x1466   :  { %v3068_v55 = vpack.c.bf16 %v3003_v23, %v6489_v59  ;;  %v3010_v46 = vpop.permute.xlu1 %3009  ;;  %v3069_v45 = vpack.c.bf16 %v3004_v18, %v6491_v24 }
0x1467   :  { %v3011_v36 = vsel %vm481_vm5, %v3008_v6, %v3010_v46  ;;  %v3012_v37 = vsel %vm481_vm5, %v3010_v46, %v3008_v6 }
0x1468   :  { %3081 = vmatprep.subr.bf16.mxu1 %v3069_v45  ;;  %v3015_v61 = vmul.f32 %v6610_v33, %v3011_v36  ;;  %v3016_v29 = vmul.f32 %v6615_v1, %v3012_v37 }
0x1469   :  { %v3020_v8 = vpop.permute.xlu0 %3019  ;;  %3082 = vmatpush1.bf16.msra.mxu1 %v3068_v55 }
0x146a   :  { %v3022_v31 = vpop.permute.xlu1 %3021 }
0x146b   :  { %v3023_v41 = vsel %vm495_vm6, %v3020_v8, %v3022_v31  ;;  %v3024_v51 = vsel %vm495_vm6, %v3022_v31, %v3020_v8 }
0x146c   :  { %v3027_v53 = vmul.f32 %v6624_v3, %v3023_v41  ;;  %v3028_v15 = vmul.f32 %v6629_v7, %v3024_v51 }
0x146d   :  { %v3032_v30 = vpop.permute.xlu0 %3031 }
0x146e   :  { %v3070_v47 = vpack.c.bf16 %v3027_v53, %v3015_v61  ;;  %v3034_v26 = vpop.permute.xlu1 %3033  ;;  %v3071_v39 = vpack.c.bf16 %v3028_v15, %v3016_v29 }
0x146f   :  { %v3035_v58 = vsel %vm509_vm7, %v3032_v30, %v3034_v26  ;;  %v3036_v5 = vsel %vm509_vm7, %v3034_v26, %v3032_v30 }
0x1470   :  { %v3039_v62 = vmul.f32 %v6642_v32, %v3035_v58  ;;  %v3040_v9 = vmul.f32 %v6647_v40, %v3036_v5  ;;  %3083 = vmatprep.subr.bf16.mxu1 %v3071_v39 }
0x1471   :  { %3084 = vmatpush1.bf16.msra.mxu1 %v3070_v47 }
0x1472   :  { %v3072_v0 = vpack.c.bf16 %v4514_v63, %v3039_v62  ;;  %v3073_v48 = vpack.c.bf16 %v4514_v63, %v3040_v9 }
0x1474   :  { %3085 = vmatprep.subr.bf16.mxu1 %v3073_v48 }
0x1475   :  { %3086 = vmatpush1.bf16.msra.mxu1 %v3072_v0 }
0x1478   :  { %4175 = vmatmul.mubr.msk.bf16.vlgmr.msra.gmra.mrb[44].mxu1 %vm550_vm8, %v4174_v14 }
0x1479   :  { %3459 = vmatprep.mubr.bf16.mxu1 %v4511_v20 }
0x154b   :  { %v3111_v34 = vpop.f32.mrb[44].mxu1 }
0x154c   :  { %v6662_v35 = vmax.f32 %v3111_v34, 0.0  ;;  %v3113_v27 = vpop.f32.mrb[45].mxu1 }
0x154d   :  { %v3119_v49 = vmax.f32 %v3113_v27, 0.0  ;;  %v3115_v50 = vpop.f32.mrb[46].mxu1 }
0x154e   :  { %3120 = vrot.lane.b32.xlu0 %v6662_v35, %s4506_s10  ;;  %v3116_v23 = vpop.f32.mrb[47].mxu1 }
0x154f   :  { %3122 = vrot.lane.b32.xlu1 %v3119_v49, %s4506_s10 }
0x1552   :  { %3132 = vrot.lane.b32.xlu0 %v6662_v35, %s4505_s9 }
0x1553   :  { %3134 = vrot.lane.b32.xlu1 %v3119_v49, %s4505_s9 }
0x1556   :  { %3144 = vrot.lane.b32.xlu0 %v6662_v35, %s4507_s21 }
0x1557   :  { %3146 = vrot.lane.b32.xlu1 %v3119_v49, %s4507_s21 }
0x155a   :  { %3156 = vrot.lane.b32.xlu0 %v6662_v35, %s4508_s26 }
0x155b   :  { %3158 = vrot.lane.b32.xlu1 %v3119_v49, %s4508_s26 }
0x155e   :  { %3170 = vrot.lane.b32.xlu0 %v6662_v35, %s4509_s8 }
0x155f   :  { %3172 = vrot.lane.b32.xlu1 %v3119_v49, %s4509_s8 }
0x1562   :  { %3182 = vrot.lane.b32.xlu0 %v6662_v35, %s4510_s17 }
0x1563   :  { %3184 = vrot.lane.b32.xlu1 %v3119_v49, %s4510_s17 }
0x1566   :  { %3194 = vrot.lane.b32.xlu0 %v6662_v35, %s4512_s23 }
0x1567   :  { %3196 = vrot.lane.b32.xlu1 %v3119_v49, %s4512_s23 }
0x156a   :  { %3206 = vrot.lane.b32.xlu0 %v6662_v35, %s4513_s15 }
0x156b   :  { %3208 = vrot.lane.b32.xlu1 %v3119_v49, %s4513_s15 }
0x15c0   :  { %v3121_v18 = vpop.permute.xlu0 %3120 }
0x15c1   :  { %v3123_v6 = vpop.permute.xlu1 %3122 }
0x15c2   :  { %v3124_v55 = vsel %vm410_vm1, %v3121_v18, %v3123_v6  ;;  %v3125_v46 = vsel %vm410_vm1, %v3123_v6, %v3121_v18 }
0x15c3   :  { %v3128_v31 = vmul.f32 %v3125_v46, %v6528_v52  ;;  %v3129_v41 = vmul.f32 %v3124_v55, %v6533_v11 }
0x15c4   :  { %v3133_v45 = vpop.permute.xlu0 %3132 }
0x15c5   :  { %v3135_v36 = vpop.permute.xlu1 %3134 }
0x15c6   :  { %v3136_v37 = vsel %vm423_vm0, %v3133_v45, %v3135_v36  ;;  %v3137_v8 = vsel %vm423_vm0, %v3135_v36, %v3133_v45 }
0x15c7   :  { %v3140_v51 = vmul.f32 %v6542_v60, %v3137_v8  ;;  %v3141_v61 = vmul.f32 %v6547_v16, %v3136_v37 }
0x15c8   :  { %v3145_v29 = vpop.permute.xlu0 %3144 }
0x15c9   :  { %v3239_v53 = vpack.c.bf16 %v3140_v51, %v3128_v31  ;;  %v3147_v15 = vpop.permute.xlu1 %3146  ;;  %v3240_v30 = vpack.c.bf16 %v3141_v61, %v3129_v41 }
0x15ca   :  { %v3148_v47 = vsel %vm437_vm2, %v3145_v29, %v3147_v15  ;;  %v3149_v26 = vsel %vm437_vm2, %v3147_v15, %v3145_v29 }
0x15cb   :  { %3252 = vmatprep.subr.bf16.mxu0 %v3240_v30  ;;  %v3152_v9 = vmul.f32 %v6560_v22, %v3149_v26  ;;  %v3153_v0 = vmul.f32 %v6565_v4, %v3148_v47 }
0x15cc   :  { %v3157_v39 = vpop.permute.xlu0 %3156  ;;  %3253 = vmatpush1.bf16.msra.mxu0 %v3239_v53 }
0x15cd   :  { %v3159_v58 = vpop.permute.xlu1 %3158 }
0x15ce   :  { %v3160_v5 = vsel %vm451_vm3, %v3157_v39, %v3159_v58  ;;  %v3161_v62 = vsel %vm451_vm3, %v3159_v58, %v3157_v39 }
0x15cf   :  { %v3164_v48 = vmul.f32 %v6574_v57, %v3161_v62  ;;  %v3165_v14 = vmul.f32 %v6579_v38, %v3160_v5 }
0x15d0   :  { %v3171_v34 = vpop.permute.xlu0 %3170 }
0x15d1   :  { %v3241_v27 = vpack.c.bf16 %v3164_v48, %v3152_v9  ;;  %v3173_v50 = vpop.permute.xlu1 %3172  ;;  %v3242_v23 = vpack.c.bf16 %v3165_v14, %v3153_v0 }
0x15d2   :  { %v3174_v18 = vsel %vm467_vm4, %v3171_v34, %v3173_v50  ;;  %v3175_v6 = vsel %vm467_vm4, %v3173_v50, %v3171_v34  ;;  %v4190_v34 = vld [vmem:[%s7142_s5 + $0x8] sm:$0xf] }
0x15d3   :  { %v3178_v55 = vmul.f32 %v6592_v21, %v3174_v18  ;;  %v3179_v46 = vmul.f32 %v6597_v25, %v3175_v6  ;;  %3254 = vmatprep.subr.bf16.mxu0 %v3242_v23 }
0x15d4   :  { %v3183_v45 = vpop.permute.xlu0 %3182  ;;  %3255 = vmatpush1.bf16.msra.mxu0 %v3241_v27 }
0x15d5   :  { %v3243_v36 = vpack.c.bf16 %v3178_v55, %v6662_v35  ;;  %v3185_v37 = vpop.permute.xlu1 %3184  ;;  %v3244_v8 = vpack.c.bf16 %v3179_v46, %v3119_v49 }
0x15d6   :  { %v3186_v31 = vsel %vm481_vm5, %v3183_v45, %v3185_v37  ;;  %v3187_v41 = vsel %vm481_vm5, %v3185_v37, %v3183_v45 }
0x15d7   :  { %3256 = vmatprep.subr.bf16.mxu0 %v3244_v8  ;;  %v3190_v35 = vmul.f32 %v6610_v33, %v3186_v31  ;;  %v3191_v49 = vmul.f32 %v6615_v1, %v3187_v41 }
0x15d8   :  { %v3195_v51 = vpop.permute.xlu0 %3194  ;;  %3257 = vmatpush1.bf16.msra.mxu0 %v3243_v36 }
0x15d9   :  { %v3197_v61 = vpop.permute.xlu1 %3196 }
0x15da   :  { %v3198_v29 = vsel %vm495_vm6, %v3195_v51, %v3197_v61  ;;  %v3199_v53 = vsel %vm495_vm6, %v3197_v61, %v3195_v51 }
0x15db   :  { %v3202_v15 = vmul.f32 %v6624_v3, %v3198_v29  ;;  %v3203_v30 = vmul.f32 %v6629_v7, %v3199_v53 }
0x15dc   :  { %v3207_v47 = vpop.permute.xlu0 %3206 }
0x15dd   :  { %v3245_v26 = vpack.c.bf16 %v3202_v15, %v3190_v35  ;;  %v3209_v39 = vpop.permute.xlu1 %3208  ;;  %v3246_v58 = vpack.c.bf16 %v3203_v30, %v3191_v49 }
0x15de   :  { %v3210_v5 = vsel %vm509_vm7, %v3207_v47, %v3209_v39  ;;  %v3211_v62 = vsel %vm509_vm7, %v3209_v39, %v3207_v47 }
0x15df   :  { %v3214_v9 = vmul.f32 %v6642_v32, %v3210_v5  ;;  %v3215_v0 = vmul.f32 %v6647_v40, %v3211_v62  ;;  %3258 = vmatprep.subr.bf16.mxu0 %v3246_v58 }
0x15e0   :  { %3259 = vmatpush1.bf16.msra.mxu0 %v3245_v26 }
0x15e1   :  { %v3247_v48 = vpack.c.bf16 %v4514_v63, %v3214_v9  ;;  %v3248_v14 = vpack.c.bf16 %v4514_v63, %v3215_v0 }
0x15e3   :  { %3260 = vmatprep.subr.bf16.mxu0 %v3248_v14 }
0x15e4   :  { %3261 = vmatpush1.bf16.msra.mxu0 %v3247_v48 }
0x15e7   :  { %4191 = vmatmul.mubr.msk.bf16.vlgmr.msra.gmra.mrb[40].mxu0 %vm550_vm8, %v4190_v34 }
0x15e8   :  { %3634 = vmatprep.mubr.bf16.mxu0 %v4511_v20 }
0x16ba   :  { %v3286_v27 = vpop.f32.mrb[40].mxu0 }
0x16bb   :  { %v6745_v50 = vadd.f32 %v3286_v27, %v6489_v59  ;;  %v3288_v23 = vpop.f32.mrb[41].mxu0 }
0x16bc   :  { %v6748_v18 = vadd.f32 %v3288_v23, %v6491_v24  ;;  %v3290_v6 = vpop.f32.mrb[42].mxu0 }
0x16bd   :  { %3295 = vrot.lane.b32.xlu0 %v6745_v50, %s4506_s10  ;;  %v3291_v55 = vpop.f32.mrb[43].mxu0 }
0x16be   :  { %3297 = vrot.lane.b32.xlu1 %v6748_v18, %s4506_s10 }
0x16c1   :  { %3307 = vrot.lane.b32.xlu0 %v6745_v50, %s4505_s9 }
0x16c2   :  { %3309 = vrot.lane.b32.xlu1 %v6748_v18, %s4505_s9 }
0x16c5   :  { %3319 = vrot.lane.b32.xlu0 %v6745_v50, %s4507_s21 }
0x16c6   :  { %3321 = vrot.lane.b32.xlu1 %v6748_v18, %s4507_s21 }
0x16c9   :  { %3331 = vrot.lane.b32.xlu0 %v6745_v50, %s4508_s26 }
0x16ca   :  { %3333 = vrot.lane.b32.xlu1 %v6748_v18, %s4508_s26 }
0x16cd   :  { %3345 = vrot.lane.b32.xlu0 %v6745_v50, %s4509_s8 }
0x16ce   :  { %3347 = vrot.lane.b32.xlu1 %v6748_v18, %s4509_s8 }
0x16d1   :  { %3357 = vrot.lane.b32.xlu0 %v6745_v50, %s4510_s17 }
0x16d2   :  { %3359 = vrot.lane.b32.xlu1 %v6748_v18, %s4510_s17 }
0x16d5   :  { %3369 = vrot.lane.b32.xlu0 %v6745_v50, %s4512_s23 }
0x16d6   :  { %3371 = vrot.lane.b32.xlu1 %v6748_v18, %s4512_s23 }
0x16d9   :  { %3381 = vrot.lane.b32.xlu0 %v6745_v50, %s4513_s15 }
0x16da   :  { %3383 = vrot.lane.b32.xlu1 %v6748_v18, %s4513_s15 }
0x172f   :  { %v3296_v59 = vpop.permute.xlu0 %3295 }
0x1730   :  { %v3298_v24 = vpop.permute.xlu1 %3297 }
0x1731   :  { %v3299_v46 = vsel %vm410_vm1, %v3296_v59, %v3298_v24  ;;  %v3300_v45 = vsel %vm410_vm1, %v3298_v24, %v3296_v59 }
0x1732   :  { %v3303_v41 = vmul.f32 %v3300_v45, %v6528_v52  ;;  %v3304_v51 = vmul.f32 %v3299_v46, %v6533_v11 }
0x1733   :  { %v3308_v36 = vpop.permute.xlu0 %3307 }
0x1734   :  { %v3310_v37 = vpop.permute.xlu1 %3309 }
0x1735   :  { %v3311_v8 = vsel %vm423_vm0, %v3308_v36, %v3310_v37  ;;  %v3312_v31 = vsel %vm423_vm0, %v3310_v37, %v3308_v36 }
0x1736   :  { %v3315_v61 = vmul.f32 %v6542_v60, %v3312_v31  ;;  %v3316_v29 = vmul.f32 %v6547_v16, %v3311_v8 }
0x1737   :  { %v3320_v53 = vpop.permute.xlu0 %3319 }
0x1738   :  { %v3414_v35 = vpack.c.bf16 %v3315_v61, %v3303_v41  ;;  %v3322_v49 = vpop.permute.xlu1 %3321  ;;  %v3415_v15 = vpack.c.bf16 %v3316_v29, %v3304_v51 }
0x1739   :  { %v3323_v30 = vsel %vm437_vm2, %v3320_v53, %v3322_v49  ;;  %v3324_v47 = vsel %vm437_vm2, %v3322_v49, %v3320_v53 }
0x173a   :  { %3427 = vmatprep.subr.bf16.mxu1 %v3415_v15  ;;  %v3327_v62 = vmul.f32 %v6560_v22, %v3324_v47  ;;  %v3328_v9 = vmul.f32 %v6565_v4, %v3323_v30 }
0x173b   :  { %v3332_v26 = vpop.permute.xlu0 %3331  ;;  %3428 = vmatpush1.bf16.msra.mxu1 %v3414_v35 }
0x173c   :  { %v3334_v39 = vpop.permute.xlu1 %3333 }
0x173d   :  { %v3335_v58 = vsel %vm451_vm3, %v3332_v26, %v3334_v39  ;;  %v3336_v5 = vsel %vm451_vm3, %v3334_v39, %v3332_v26 }
0x173e   :  { %v3339_v0 = vmul.f32 %v6574_v57, %v3336_v5  ;;  %v3340_v48 = vmul.f32 %v6579_v38, %v3335_v58 }
0x173f   :  { %v3346_v14 = vpop.permute.xlu0 %3345 }
0x1740   :  { %v3416_v34 = vpack.c.bf16 %v3339_v0, %v3327_v62  ;;  %v3348_v27 = vpop.permute.xlu1 %3347  ;;  %v3417_v23 = vpack.c.bf16 %v3340_v48, %v3328_v9 }
0x1741   :  { %v3349_v6 = vsel %vm467_vm4, %v3346_v14, %v3348_v27  ;;  %v3350_v55 = vsel %vm467_vm4, %v3348_v27, %v3346_v14  ;;  %v4206_v14 = vld [vmem:[%s7142_s5 + $0xc] sm:$0xf] }
0x1742   :  { %v3353_v59 = vmul.f32 %v6592_v21, %v3349_v6  ;;  %v3354_v24 = vmul.f32 %v6597_v25, %v3350_v55  ;;  %3429 = vmatprep.subr.bf16.mxu1 %v3417_v23 }
0x1743   :  { %v3358_v46 = vpop.permute.xlu0 %3357  ;;  %3430 = vmatpush1.bf16.msra.mxu1 %v3416_v34 }
0x1744   :  { %v3418_v45 = vpack.c.bf16 %v3353_v59, %v6745_v50  ;;  %v3360_v36 = vpop.permute.xlu1 %3359  ;;  %v3419_v37 = vpack.c.bf16 %v3354_v24, %v6748_v18 }
0x1745   :  { %v3361_v8 = vsel %vm481_vm5, %v3358_v46, %v3360_v36  ;;  %v3362_v31 = vsel %vm481_vm5, %v3360_v36, %v3358_v46 }
0x1746   :  { %3431 = vmatprep.subr.bf16.mxu1 %v3419_v37  ;;  %v3365_v53 = vmul.f32 %v6610_v33, %v3361_v8  ;;  %v3366_v35 = vmul.f32 %v6615_v1, %v3362_v31 }
0x1747   :  { %v3370_v41 = vpop.permute.xlu0 %3369  ;;  %3432 = vmatpush1.bf16.msra.mxu1 %v3418_v45 }
0x1748   :  { %v3372_v51 = vpop.permute.xlu1 %3371 }
0x1749   :  { %v3373_v61 = vsel %vm495_vm6, %v3370_v41, %v3372_v51  ;;  %v3374_v29 = vsel %vm495_vm6, %v3372_v51, %v3370_v41 }
0x174a   :  { %v3377_v49 = vmul.f32 %v6624_v3, %v3373_v61  ;;  %v3378_v15 = vmul.f32 %v6629_v7, %v3374_v29 }
0x174b   :  { %v3382_v30 = vpop.permute.xlu0 %3381 }
0x174c   :  { %v3420_v47 = vpack.c.bf16 %v3377_v49, %v3365_v53  ;;  %v3384_v26 = vpop.permute.xlu1 %3383  ;;  %v3421_v39 = vpack.c.bf16 %v3378_v15, %v3366_v35 }
0x174d   :  { %v3385_v58 = vsel %vm509_vm7, %v3382_v30, %v3384_v26  ;;  %v3386_v5 = vsel %vm509_vm7, %v3384_v26, %v3382_v30 }
0x174e   :  { %v3389_v62 = vmul.f32 %v6642_v32, %v3385_v58  ;;  %v3390_v9 = vmul.f32 %v6647_v40, %v3386_v5  ;;  %3433 = vmatprep.subr.bf16.mxu1 %v3421_v39 }
0x174f   :  { %3434 = vmatpush1.bf16.msra.mxu1 %v3420_v47 }
0x1750   :  { %v3422_v0 = vpack.c.bf16 %v4514_v63, %v3389_v62  ;;  %v3423_v48 = vpack.c.bf16 %v4514_v63, %v3390_v9 }
0x1752   :  { %3435 = vmatprep.subr.bf16.mxu1 %v3423_v48 }
0x1753   :  { %3436 = vmatpush1.bf16.msra.mxu1 %v3422_v0 }
0x1756   :  { %4207 = vmatmul.mubr.msk.bf16.vlgmr.msra.gmra.mrb[48].mxu1 %vm550_vm8, %v4206_v14 }
0x1757   :  { %3809 = vmatprep.mubr.bf16.mxu1 %v4511_v20 }
0x1829   :  { %v3461_v34 = vpop.f32.mrb[48].mxu1 }
0x182a   :  { %v6839_v27 = vmax.f32 %v3461_v34, 0.0  ;;  %v3463_v23 = vpop.f32.mrb[49].mxu1 }
0x182b   :  { %v3469_v6 = vmax.f32 %v3463_v23, 0.0  ;;  %v3465_v55 = vpop.f32.mrb[50].mxu1 }
0x182c   :  { %3470 = vrot.lane.b32.xlu0 %v6839_v27, %s4506_s10  ;;  %v3466_v59 = vpop.f32.mrb[51].mxu1 }
0x182d   :  { %3472 = vrot.lane.b32.xlu1 %v3469_v6, %s4506_s10 }
0x1830   :  { %3482 = vrot.lane.b32.xlu0 %v6839_v27, %s4505_s9 }
0x1831   :  { %3484 = vrot.lane.b32.xlu1 %v3469_v6, %s4505_s9 }
0x1834   :  { %3494 = vrot.lane.b32.xlu0 %v6839_v27, %s4507_s21 }
0x1835   :  { %3496 = vrot.lane.b32.xlu1 %v3469_v6, %s4507_s21 }
0x1838   :  { %3506 = vrot.lane.b32.xlu0 %v6839_v27, %s4508_s26 }
0x1839   :  { %3508 = vrot.lane.b32.xlu1 %v3469_v6, %s4508_s26 }
0x183c   :  { %3520 = vrot.lane.b32.xlu0 %v6839_v27, %s4509_s8 }
0x183d   :  { %3522 = vrot.lane.b32.xlu1 %v3469_v6, %s4509_s8 }
0x1840   :  { %3532 = vrot.lane.b32.xlu0 %v6839_v27, %s4510_s17 }
0x1841   :  { %3534 = vrot.lane.b32.xlu1 %v3469_v6, %s4510_s17 }
0x1844   :  { %3544 = vrot.lane.b32.xlu0 %v6839_v27, %s4512_s23 }
0x1845   :  { %3546 = vrot.lane.b32.xlu1 %v3469_v6, %s4512_s23 }
0x1848   :  { %3556 = vrot.lane.b32.xlu0 %v6839_v27, %s4513_s15 }
0x1849   :  { %3558 = vrot.lane.b32.xlu1 %v3469_v6, %s4513_s15 }
0x189e   :  { %v3471_v24 = vpop.permute.xlu0 %3470 }
0x189f   :  { %v3473_v46 = vpop.permute.xlu1 %3472 }
0x18a0   :  { %v3474_v45 = vsel %vm410_vm1, %v3471_v24, %v3473_v46  ;;  %v3475_v36 = vsel %vm410_vm1, %v3473_v46, %v3471_v24 }
0x18a1   :  { %v3478_v51 = vmul.f32 %v3475_v36, %v6528_v52  ;;  %v3479_v61 = vmul.f32 %v3474_v45, %v6533_v11 }
0x18a2   :  { %v3483_v37 = vpop.permute.xlu0 %3482 }
0x18a3   :  { %v3485_v8 = vpop.permute.xlu1 %3484 }
0x18a4   :  { %v3486_v31 = vsel %vm423_vm0, %v3483_v37, %v3485_v8  ;;  %v3487_v41 = vsel %vm423_vm0, %v3485_v8, %v3483_v37 }
0x18a5   :  { %v3490_v29 = vmul.f32 %v6542_v60, %v3487_v41  ;;  %v3491_v53 = vmul.f32 %v6547_v16, %v3486_v31 }
0x18a6   :  { %v3495_v35 = vpop.permute.xlu0 %3494 }
0x18a7   :  { %v3589_v49 = vpack.c.bf16 %v3490_v29, %v3478_v51  ;;  %v3497_v15 = vpop.permute.xlu1 %3496  ;;  %v3590_v30 = vpack.c.bf16 %v3491_v53, %v3479_v61 }
0x18a8   :  { %v3498_v47 = vsel %vm437_vm2, %v3495_v35, %v3497_v15  ;;  %v3499_v26 = vsel %vm437_vm2, %v3497_v15, %v3495_v35 }
0x18a9   :  { %3602 = vmatprep.subr.bf16.mxu0 %v3590_v30  ;;  %v3502_v9 = vmul.f32 %v6560_v22, %v3499_v26  ;;  %v3503_v0 = vmul.f32 %v6565_v4, %v3498_v47 }
0x18aa   :  { %v3507_v39 = vpop.permute.xlu0 %3506  ;;  %3603 = vmatpush1.bf16.msra.mxu0 %v3589_v49 }
0x18ab   :  { %v3509_v58 = vpop.permute.xlu1 %3508 }
0x18ac   :  { %v3510_v5 = vsel %vm451_vm3, %v3507_v39, %v3509_v58  ;;  %v3511_v62 = vsel %vm451_vm3, %v3509_v58, %v3507_v39 }
0x18ad   :  { %v3514_v48 = vmul.f32 %v6574_v57, %v3511_v62  ;;  %v3515_v14 = vmul.f32 %v6579_v38, %v3510_v5 }
0x18ae   :  { %v3521_v34 = vpop.permute.xlu0 %3520 }
0x18af   :  { %v3591_v23 = vpack.c.bf16 %v3514_v48, %v3502_v9  ;;  %v3523_v55 = vpop.permute.xlu1 %3522  ;;  %v3592_v59 = vpack.c.bf16 %v3515_v14, %v3503_v0 }
0x18b0   :  { %v3524_v24 = vsel %vm467_vm4, %v3521_v34, %v3523_v55  ;;  %v3525_v46 = vsel %vm467_vm4, %v3523_v55, %v3521_v34  ;;  %v4222_v34 = vld [vmem:[%s7142_s5 + $0x10] sm:$0xf]  ;;  %v3821_v55 = vpack.c.bf16 %v6392_v10, %v6392_v10 }
0x18b1   :  { %v3528_v45 = vmul.f32 %v6592_v21, %v3524_v24  ;;  %v3529_v36 = vmul.f32 %v6597_v25, %v3525_v46  ;;  %3604 = vmatprep.subr.bf16.mxu0 %v3592_v59  ;;  %v4473_v59 = vld [vmem:[%s7137_s3] sm:$0xff]   ;;  %v4474_v24 = vld [vmem:[%s7137_s3 + $0x48] sm:$0xff]   ;;  %v4476_v10 = vld [vmem:[%s7137_s3 + $0x50] sm:$0xff]  }
0x18b2   :  { %v3533_v37 = vpop.permute.xlu0 %3532  ;;  %3605 = vmatpush1.bf16.msra.mxu0 %v3591_v23  ;;  %v4472_v23 = vld [vmem:[%s7137_s3 + $0x40] sm:$0xff]   ;;  %v4475_v46 = vld [vmem:[%s7137_s3 + $0x8] sm:$0xff]  }
0x18b3   :  { %v3593_v8 = vpack.c.bf16 %v3528_v45, %v6839_v27  ;;  %v3535_v31 = vpop.permute.xlu1 %3534  ;;  %v3594_v41 = vpack.c.bf16 %v3529_v36, %v3469_v6  ;;  %v4477_v45 = vld [vmem:[%s7137_s3 + $0x10] sm:$0xff]   ;;  %v4478_v36 = vld [vmem:[%s7137_s3 + $0x58] sm:$0xff]  }
0x18b4   :  { %v3536_v51 = vsel %vm481_vm5, %v3533_v37, %v3535_v31  ;;  %v3537_v61 = vsel %vm481_vm5, %v3535_v31, %v3533_v37  ;;  %v4479_v37 = vld [vmem:[%s7137_s3 + $0x18] sm:$0xff]   ;;  %v4481_v31 = vld [vmem:[%s7137_s3 + $0x20] sm:$0xff]  }
0x18b5   :  { %3606 = vmatprep.subr.bf16.mxu0 %v3594_v41  ;;  %v3540_v27 = vmul.f32 %v6610_v33, %v3536_v51  ;;  %v3541_v6 = vmul.f32 %v6615_v1, %v3537_v61  ;;  %v4482_v41 = vld [vmem:[%s7137_s3 + $0x68] sm:$0xff]   ;;  %v4484_v61 = vld [vmem:[%s7137_s3 + $0x70] sm:$0xff]  }
0x18b6   :  { %v3545_v29 = vpop.permute.xlu0 %3544  ;;  %3607 = vmatpush1.bf16.msra.mxu0 %v3593_v8  ;;  %v4480_v8 = vld [vmem:[%s7137_s3 + $0x60] sm:$0xff]   ;;  %v4483_v51 = vld [vmem:[%s7137_s3 + $0x28] sm:$0xff]  }
0x18b7   :  { %v3547_v53 = vpop.permute.xlu1 %3546 }
0x18b8   :  { %v3548_v35 = vsel %vm495_vm6, %v3545_v29, %v3547_v53  ;;  %v3549_v49 = vsel %vm495_vm6, %v3547_v53, %v3545_v29  ;;  %v4485_v29 = vld [vmem:[%s7137_s3 + $0x30] sm:$0xff]   ;;  %v4486_v53 = vld [vmem:[%s7137_s3 + $0x78] sm:$0xff]  }
0x18b9   :  { %v3552_v15 = vmul.f32 %v6624_v3, %v3548_v35  ;;  %v3553_v30 = vmul.f32 %v6629_v7, %v3549_v49  ;;  %v4487_v35 = vld [vmem:[%s7137_s3 + $0x38] sm:$0xff]   ;;  %v3820_v49 = vpack.c.bf16 %v6389_v2, %v6389_v2 }
0x18ba   :  { %v3557_v47 = vpop.permute.xlu0 %3556 }
0x18bb   :  { %v3595_v26 = vpack.c.bf16 %v3552_v15, %v3540_v27  ;;  %v3559_v39 = vpop.permute.xlu1 %3558  ;;  %v3596_v58 = vpack.c.bf16 %v3553_v30, %v3541_v6 }
0x18bc   :  { %v3560_v5 = vsel %vm509_vm7, %v3557_v47, %v3559_v39  ;;  %v3561_v62 = vsel %vm509_vm7, %v3559_v39, %v3557_v47 }
0x18bd   :  { %v3564_v9 = vmul.f32 %v6642_v32, %v3560_v5  ;;  %v3565_v0 = vmul.f32 %v6647_v40, %v3561_v62  ;;  %3608 = vmatprep.subr.bf16.mxu0 %v3596_v58 }
0x18be   :  { %3609 = vmatpush1.bf16.msra.mxu0 %v3595_v26 }
0x18bf   :  { %v3597_v48 = vpack.c.bf16 %v4514_v63, %v3564_v9  ;;  %v3598_v14 = vpack.c.bf16 %v4514_v63, %v3565_v0 }
0x18c1   :  { %3610 = vmatprep.subr.bf16.mxu0 %v3598_v14 }
0x18c2   :  { %3611 = vmatpush1.bf16.msra.mxu0 %v3597_v48 }
0x18c3   :  { %4328 = vmatprep.subr.bf16.mxu0 %v4472_v23 }
0x18c5   :  { %4223 = vmatmul.mubr.msk.bf16.vlgmr.msra.gmra.mrb[44].mxu0 %vm550_vm8, %v4222_v34 }
0x18c6   :  { %4329 = vmatpush3.bf16.msra.mxu0 %v4473_v59  ;;  %3854 = vmatprep.mubr.bf16.mxu0 %v3821_v55 }
0x18c7   :  { %4330 = vmatprep.subr.bf16.mxu0 %v4474_v24 }
0x18ca   :  { %4331 = vmatpush3.bf16.msra.mxu0 %v4475_v46 }
0x18cb   :  { %4332 = vmatprep.subr.bf16.mxu0 %v4476_v10 }
0x18ce   :  { %4333 = vmatpush3.bf16.msra.mxu0 %v4477_v45 }
0x18cf   :  { %4334 = vmatprep.subr.bf16.mxu0 %v4478_v36 }
0x18d2   :  { %4335 = vmatpush3.bf16.msra.mxu0 %v4479_v37 }
0x18d3   :  { %4336 = vmatprep.subr.bf16.mxu0 %v4480_v8 }
0x18d6   :  { %4337 = vmatpush3.bf16.msra.mxu0 %v4481_v31 }
0x18d7   :  { %4338 = vmatprep.subr.bf16.mxu0 %v4482_v41 }
0x18da   :  { %4339 = vmatpush3.bf16.msra.mxu0 %v4483_v51 }
0x18db   :  { %4340 = vmatprep.subr.bf16.mxu0 %v4484_v61 }
0x18de   :  { %4341 = vmatpush3.bf16.msra.mxu0 %v4485_v29 }
0x18df   :  { %4342 = vmatprep.subr.bf16.mxu0 %v4486_v53 }
0x18e2   :  { %4343 = vmatpush3.bf16.msra.mxu0 %v4487_v35 }
0x18e5   :  { %3855 = vmatmul.mubr.bf16.vlgmr.msra.gmra.mrb[48].mxu0 %v3820_v49 }
0x1998   :  { %v3636_v27 = vpop.f32.mrb[44].mxu0 }
0x1999   :  { %v6973_v6 = vadd.f32 %v3636_v27, %v6745_v50  ;;  %v3638_v15 = vpop.f32.mrb[45].mxu0 }
0x199a   :  { %v6976_v30 = vadd.f32 %v3638_v15, %v6748_v18  ;;  %v3640_v47 = vpop.f32.mrb[46].mxu0 }
0x199b   :  { %3645 = vrot.lane.b32.xlu0 %v6973_v6, %s4506_s10  ;;  %v3641_v26 = vpop.f32.mrb[47].mxu0 }
0x199c   :  { %3647 = vrot.lane.b32.xlu1 %v6976_v30, %s4506_s10 }
0x199f   :  { %3657 = vrot.lane.b32.xlu0 %v6973_v6, %s4505_s9 }
0x19a0   :  { %3659 = vrot.lane.b32.xlu1 %v6976_v30, %s4505_s9 }
0x19a3   :  { %3669 = vrot.lane.b32.xlu0 %v6973_v6, %s4507_s21 }
0x19a4   :  { %3671 = vrot.lane.b32.xlu1 %v6976_v30, %s4507_s21 }
0x19a7   :  { %3681 = vrot.lane.b32.xlu0 %v6973_v6, %s4508_s26 }
0x19a8   :  { %3683 = vrot.lane.b32.xlu1 %v6976_v30, %s4508_s26 }
0x19ab   :  { %3695 = vrot.lane.b32.xlu0 %v6973_v6, %s4509_s8 }
0x19ac   :  { %3697 = vrot.lane.b32.xlu1 %v6976_v30, %s4509_s8 }
0x19af   :  { %3707 = vrot.lane.b32.xlu0 %v6973_v6, %s4510_s17 }
0x19b0   :  { %3709 = vrot.lane.b32.xlu1 %v6976_v30, %s4510_s17 }
0x19b3   :  { %3719 = vrot.lane.b32.xlu0 %v6973_v6, %s4512_s23 }
0x19b4   :  { %3721 = vrot.lane.b32.xlu1 %v6976_v30, %s4512_s23 }
0x19b7   :  { %3731 = vrot.lane.b32.xlu0 %v6973_v6, %s4513_s15 }
0x19b8   :  { %3733 = vrot.lane.b32.xlu1 %v6976_v30, %s4513_s15  ;;  %v4344_v2 = vpop.f32.mrb[48].mxu0 }
0x19b9   :  { %v4345_v50 = vpop.f32.mrb[49].mxu0 }
0x19ba   :  { %v7010_v18 = vadd.f32 %v4345_v50, %v4344_v2  ;;  %v4347_v39 = vpop.f32.mrb[50].mxu0 }
0x19bb   :  { %v4348_v58 = vpop.f32.mrb[51].mxu0 }
0x1a0d   :  { %v3646_v5 = vpop.permute.xlu0 %3645 }
0x1a0e   :  { %v3648_v62 = vpop.permute.xlu1 %3647 }
0x1a0f   :  { %v3649_v9 = vsel %vm410_vm1, %v3646_v5, %v3648_v62  ;;  %v3650_v0 = vsel %vm410_vm1, %v3648_v62, %v3646_v5 }
0x1a10   :  { %v3653_v55 = vmul.f32 %v3650_v0, %v6528_v52  ;;  %v3654_v59 = vmul.f32 %v3649_v9, %v6533_v11 }
0x1a11   :  { %v3658_v48 = vpop.permute.xlu0 %3657 }
0x1a12   :  { %v3660_v14 = vpop.permute.xlu1 %3659 }
0x1a13   :  { %v3661_v34 = vsel %vm423_vm0, %v3658_v48, %v3660_v14  ;;  %v3662_v23 = vsel %vm423_vm0, %v3660_v14, %v3658_v48 }
0x1a14   :  { %v3665_v24 = vmul.f32 %v6542_v60, %v3662_v23  ;;  %v3666_v46 = vmul.f32 %v6547_v16, %v3661_v34 }
0x1a15   :  { %v3670_v10 = vpop.permute.xlu0 %3669 }
0x1a16   :  { %v3764_v45 = vpack.c.bf16 %v3665_v24, %v3653_v55  ;;  %v3672_v36 = vpop.permute.xlu1 %3671  ;;  %v3765_v37 = vpack.c.bf16 %v3666_v46, %v3654_v59  ;;  %v4492_v24 = vld [vmem:[%s7139_s4 + $0x24] ss:$8 sps:$4 sm:$0xff]   ;;  %v4493_v46 = vld [vmem:[%s7139_s4 + $0x20] ss:$8 sps:$4 sm:$0xff]  }
0x1a17   :  { %v3673_v8 = vsel %vm437_vm2, %v3670_v10, %v3672_v36  ;;  %v3674_v31 = vsel %vm437_vm2, %v3672_v36, %v3670_v10  ;;  %v4495_v10 = vld [vmem:[%s7139_s4 + $0x30] ss:$8 sps:$4 sm:$0xff]   ;;  %v4497_v36 = vld [vmem:[%s7139_s4 + $0x40] ss:$8 sps:$4 sm:$0xff]  }
0x1a18   :  { %3777 = vmatprep.subr.bf16.mxu1 %v3765_v37  ;;  %v3677_v16 = vmul.f32 %v6560_v22, %v3674_v31  ;;  %v3678_v51 = vmul.f32 %v6565_v4, %v3673_v8  ;;  %v4498_v37 = vld [vmem:[%s7140_s0] sm:$0xff]  ;;  %v4499_v31 = vld [vmem:[%s7139_s4 + $0x54] ss:$8 sps:$4 sm:$0xff]  }
0x1a19   :  { %v3682_v41 = vpop.permute.xlu0 %3681  ;;  %3778 = vmatpush1.bf16.msra.mxu1 %v3764_v45  ;;  %v4496_v45 = vld [vmem:[%s7139_s4 + $0x44] ss:$8 sps:$4 sm:$0xff]   ;;  %v3862_v8 = vsub.f32 %v7010_v18, %v4498_v37  ;;  %v4502_v18 = vld [vmem:[%s7139_s4 + $0x60] ss:$8 sps:$4 sm:$0xff]  }
0x1a1a   :  { %v3684_v52 = vpop.permute.xlu1 %3683 }
0x1a1b   :  { %v3685_v11 = vsel %vm451_vm3, %v3682_v41, %v3684_v52  ;;  %v3686_v60 = vsel %vm451_vm3, %v3684_v52, %v3682_v41  ;;  %v4500_v41 = vld [vmem:[%s7139_s4 + $0x50] ss:$8 sps:$4 sm:$0xff]   ;;  %v3863_v52 = vadd.f32 %v3862_v8, %v6363_v28 }
0x1a1c   :  { %v3689_v61 = vmul.f32 %v6574_v57, %v3686_v60  ;;  %v3690_v29 = vmul.f32 %v6579_v38, %v3685_v11  ;;  %v4501_v11 = vld [vmem:[%s7139_s4 + $0x64] ss:$8 sps:$4 sm:$0xff]   ;;  %v4504_v28 = vld [vmem:[%s7139_s4 + $0x70] ss:$8 sps:$4 sm:$0xff]  }
0x1a1d   :  { %v3696_v53 = vpop.permute.xlu0 %3695  ;;  %v3864_v60 = vmul.f32 0.90909094, %v3863_v52 }
0x1a1e   :  { %v3766_v35 = vpack.c.bf16 %v3689_v61, %v3677_v16  ;;  %v3698_v49 = vpop.permute.xlu1 %3697  ;;  %v3767_v27 = vpack.c.bf16 %v3690_v29, %v3678_v51  ;;  %v4503_v16 = vld [vmem:[%s7139_s4 + $0x74] ss:$8 sps:$4 sm:$0xff]  }
0x1a1f   :  { %v3699_v15 = vsel %vm467_vm4, %v3696_v53, %v3698_v49  ;;  %v3700_v47 = vsel %vm467_vm4, %v3698_v49, %v3696_v53  ;;  %v3865_v51 = vpack.c.bf16 %v3864_v60, %v3864_v60 }
0x1a20   :  { %v3703_v26 = vmul.f32 %v6592_v21, %v3699_v15  ;;  %v3704_v22 = vmul.f32 %v6597_v25, %v3700_v47  ;;  %3779 = vmatprep.subr.bf16.mxu1 %v3767_v27 }
0x1a21   :  { %v3708_v4 = vpop.permute.xlu0 %3707  ;;  %3780 = vmatpush1.bf16.msra.mxu1 %v3766_v35 }
0x1a22   :  { %v3768_v57 = vpack.c.bf16 %v3703_v26, %v6973_v6  ;;  %v3710_v38 = vpop.permute.xlu1 %3709  ;;  %v3769_v2 = vpack.c.bf16 %v3704_v22, %v6976_v30 }
0x1a23   :  { %v3711_v50 = vsel %vm481_vm5, %v3708_v4, %v3710_v38  ;;  %v3712_v39 = vsel %vm481_vm5, %v3710_v38, %v3708_v4 }
0x1a24   :  { %3781 = vmatprep.subr.bf16.mxu1 %v3769_v2  ;;  %v3715_v6 = vmul.f32 %v6610_v33, %v3711_v50  ;;  %v3716_v30 = vmul.f32 %v6615_v1, %v3712_v39 }
0x1a25   :  { %v3720_v58 = vpop.permute.xlu0 %3719  ;;  %3782 = vmatpush1.bf16.msra.mxu1 %v3768_v57 }
0x1a26   :  { %v3722_v21 = vpop.permute.xlu1 %3721 }
0x1a27   :  { %v3723_v25 = vsel %vm495_vm6, %v3720_v58, %v3722_v21  ;;  %v3724_v5 = vsel %vm495_vm6, %v3722_v21, %v3720_v58 }
0x1a28   :  { %v3727_v62 = vmul.f32 %v6624_v3, %v3723_v25  ;;  %v3728_v9 = vmul.f32 %v6629_v7, %v3724_v5  ;;  %v4238_v7 = vld [vmem:[%s7142_s5 + $0x14] sm:$0xf] }
0x1a29   :  { %v3732_v0 = vpop.permute.xlu0 %3731 }
0x1a2a   :  { %v3770_v48 = vpack.c.bf16 %v3727_v62, %v3715_v6  ;;  %v3734_v14 = vpop.permute.xlu1 %3733  ;;  %v3771_v34 = vpack.c.bf16 %v3728_v9, %v3716_v30 }
0x1a2b   :  { %v3735_v23 = vsel %vm509_vm7, %v3732_v0, %v3734_v14  ;;  %v3736_v55 = vsel %vm509_vm7, %v3734_v14, %v3732_v0 }
0x1a2c   :  { %v3739_v59 = vmul.f32 %v6642_v32, %v3735_v23  ;;  %v3740_v33 = vmul.f32 %v6647_v40, %v3736_v55  ;;  %3783 = vmatprep.subr.bf16.mxu1 %v3771_v34  ;;  %v4489_v32 = vld [vmem:[%s7139_s4] ss:$8 sps:$4 sm:$0xff]   ;;  %v4491_v40 = vld [vmem:[%s7139_s4 + $0x10] ss:$8 sps:$4 sm:$0xff]  }
0x1a2d   :  { %3784 = vmatpush1.bf16.msra.mxu1 %v3770_v48 }
0x1a2e   :  { %v3772_v1 = vpack.c.bf16 %v4514_v63, %v3739_v59  ;;  %v3773_v3 = vpack.c.bf16 %v4514_v63, %v3740_v33  ;;  %v4490_v63 = vld [vmem:[%s7139_s4 + $0x14] ss:$8 sps:$4 sm:$0xff]  }
0x1a30   :  { %3785 = vmatprep.subr.bf16.mxu1 %v3773_v3 }
0x1a31   :  { %3786 = vmatpush1.bf16.msra.mxu1 %v3772_v1 }
0x1a32   :  { %3866 = vmatprep.subr.bf16.mxu1 %v4488_v44 }
0x1a34   :  { %4239 = vmatmul.mubr.msk.bf16.vlgmr.msra.gmra.mrb[52].mxu1 %vm550_vm8, %v4238_v7 }
0x1a35   :  { %3867 = vmatpush1.bf16.msra.mxu1 %v4489_v32  ;;  %3898 = vmatprep.mubr.bf16.mxu1 %v4511_v20  ;;  %v4494_v20 = vld [vmem:[%s7139_s4 + $0x34] ss:$8 sps:$4 sm:$0xff]  }
0x1a36   :  { %3868 = vmatprep.subr.bf16.mxu1 %v4490_v63 }
0x1a39   :  { %3869 = vmatpush1.bf16.msra.mxu1 %v4491_v40 }
0x1a3a   :  { %3870 = vmatprep.subr.bf16.mxu1 %v4492_v24 }
0x1a3d   :  { %3871 = vmatpush1.bf16.msra.mxu1 %v4493_v46 }
0x1a3e   :  { %3872 = vmatprep.subr.bf16.mxu1 %v4494_v20 }
0x1a41   :  { %3873 = vmatpush1.bf16.msra.mxu1 %v4495_v10 }
0x1a42   :  { %3874 = vmatprep.subr.bf16.mxu1 %v4496_v45 }
0x1a45   :  { %3875 = vmatpush1.bf16.msra.mxu1 %v4497_v36 }
0x1a46   :  { %3876 = vmatprep.subr.bf16.mxu1 %v4499_v31 }
0x1a49   :  { %3877 = vmatpush1.bf16.msra.mxu1 %v4500_v41 }
0x1a4a   :  { %3878 = vmatprep.subr.bf16.mxu1 %v4501_v11 }
0x1a4d   :  { %3879 = vmatpush1.bf16.msra.mxu1 %v4502_v18 }
0x1a4e   :  { %3880 = vmatprep.subr.bf16.mxu1 %v4503_v16 }
0x1a51   :  { %3881 = vmatpush1.bf16.msra.mxu1 %v4504_v28 }
0x1a54   :  { %3899 = vmatmul.mubr.bf16.vlgmr.msra.gmra.mrb[56].mxu1 %v3865_v51 }
0x1b07   :  { %v3811_v61 = vpop.f32.mrb[52].mxu1 }
0x1b08   :  { %v3813_v29 = vpop.f32.mrb[53].mxu1  ;;  %v3818_v49 = vsub.f32 %v6395_v54, %v3811_v61 }
0x1b09   :  { %v3815_v53 = vpop.f32.mrb[54].mxu1  ;;  %v3819_v27 = vsub.f32 %v6398_v17, %v3813_v29 }
0x1b0a   :  { %v3816_v35 = vpop.f32.mrb[55].mxu1 }
0x1b27   :  { %v3900_v15 = vpop.f32.mrb[56].mxu1 }
0x1b28   :  { %v3907_v47 = vadd.f32 %v3900_v15, %v3818_v49  ;;  %v3902_v26 = vpop.f32.mrb[57].mxu1 }
0x1b29   :  { %v3908_v22 = vadd.f32 %v3902_v26, %v3819_v27  ;;  %v3904_v4 = vpop.f32.mrb[58].mxu1 }
0x1b2a   :  { %v3909_v57 = vsub.f32 %v3907_v47, %v4905_v42  ;;  %v3905_v38 = vpop.f32.mrb[59].mxu1 }
0x1b2b   :  { %v3910_v2 = vsub.f32 %v3908_v22, %v4907_v43 }
0x1b2c   :  { %v3911_v50 = vmul.f32 0.05, %v3909_v57 }
0x1b2d   :  { %v3912_v39 = vmul.f32 0.05, %v3910_v2 }
0x1b2e   :  { %v3913_v58 = vsub.f32 %v6381_v12, %v3911_v50 }
0x1b2f   :  { %v3914_v21 = vsub.f32 %v6384_v13, %v3912_v39 }
0x1b30   :  { %v3915_v54 = vmul.f32 %v5610_v56, %v3913_v58 }
0x1b31   :  { %v3916_v17 = vmul.f32 %v5613_v19, %v3914_v21 }
0x1b32   :  { %3917 = vst [vmem:[%s7143_s7] sm:$0xff] %v3915_v54 }
0x1b33   :  { %3918 = vst [vmem:[%s7143_s7 + $0x8] sm:$0xff] %v3916_v17 }

</bundles_post_ra>
